<compile_context>
chip_gen: v7x
topology: tpu7x:2x2x1
jax: 0.10.0
libtpu: 0.0.40
codegen_flags: <defaults>
</compile_context>

<pallas_src>
import functools
import math

import jax
import jax.numpy as jnp
from jax.experimental import pallas as pl
from jax.experimental.pallas import tpu as pltpu


# bf16 weights: at small batch the entire network is weight-HBM-bound, so
# halving weight bytes is ~2x end-to-end; kernels cast activations to the
# weight dtype before the MXU dot and always accumulate in f32.
WEIGHT_DTYPE = jnp.bfloat16


# ---------------------------------------------------------------------------
# Device-aware sizing helpers
# ---------------------------------------------------------------------------
@functools.lru_cache(None)
def _vmem_capacity_bytes():
    try:
        return int(getattr(pltpu.get_tpu_info(), "vmem_capacity_bytes",
                           128 * 1024 * 1024))
    except Exception:
        return 128 * 1024 * 1024


def _vmem_limit_bytes():
    # Leave headroom below physical VMEM: ~48 MiB on v7x (64 MiB parts),
    # ~96-100 MiB on v5e/v6e (128 MiB parts).
    return int(min(100 * 1024 * 1024, _vmem_capacity_bytes() * 3 // 4))


def _pick_tile(n, candidates):
    for c in candidates:
        if c <= n and n % c == 0:
            return c
    return n


def _round_up(n, m):
    return ((n + m - 1) // m) * m


def _pick_strip(H, W, nb, tc, pool):
    """Largest row strip (divides H, even when pooling) whose f32 accumulator
    (nb*strip*W, tc) stays <= ~128 KiB so per-strip RMW traffic is small."""
    valid = [s for s in range(1, min(H, 16) + 1)
             if H % s == 0 and not (pool and s % 2)]
    if not valid:
        return H
    for s in sorted(valid, reverse=True):
        if nb * s * W * tc * 4 <= 128 * 1024:
            return s
    return min(valid)


# ---------------------------------------------------------------------------
# Conv 3x3 + folded BN + ReLU (+ fused 2x2 maxpool) kernel
# ---------------------------------------------------------------------------
def _conv3x3_kernel(xp_ref, w_ref, shift_ref, o_ref, *,
                    nb, H, W, strip, pool, fuse_taps):
    """Direct 3x3 conv (stride 1) for one batch block / one Cout tile.

    xp_ref    : (nb, H+2, W+2, Cin)   zero-padded input block
    w_ref     : (9*Cin, Ct)           BN-scale-folded weights (tap-major rows)
    shift_ref : (1, Ct)               folded BN shift (+ conv bias)
    o_ref     : (nb, H, W, Ct) or (nb, H//2, W//2, Ct) when pool
    """
    cin = xp_ref.shape[-1]
    ct = o_ref.shape[-1]
    wdt = w_ref.dtype
    shift = shift_ref[...]
    m = nb * strip * W

    for si in range(H // strip):                      # short static loop (<=4)
        r0 = si * strip
        # One load per strip; only leading-dim slicing (no minor-dim relayout).
        blk = xp_ref[:, pl.ds(r0, strip + 2), :, :]   # (nb, strip+2, W+2, Cin)

        taps = []
        for dy in range(3):
            rows = blk[:, dy:dy + strip]              # leading-dim slice
            for dx in range(3):
                taps.append(rows[:, :, dx:dx + W, :]
                            .reshape(m, cin).astype(wdt))

        if fuse_taps:
            # In-VMEM im2col slab -> single long-K MXU dot (no per-tap
            # accumulator read-modify-write; MRB-friendly on v7x).
            a = jnp.concatenate(taps, axis=-1)        # (m, 9*Cin)
            acc = jnp.dot(a, w_ref[...], preferred_element_type=jnp.float32)
        else:
            # Narrow-Cin layers (Cin not a multiple of 128): 9 chained dots.
            acc = jnp.zeros((m, ct), jnp.float32)
            for t, a in enumerate(taps):
                acc = acc + jnp.dot(a, w_ref[pl.ds(t * cin, cin), :],
                                    preferred_element_type=jnp.float32)

        y = jnp.maximum(acc + shift, 0.0)

        if pool:
            # Fused 2x2/stride-2 maxpool on the in-VMEM strip: saves the HBM
            # round-trip of the unpooled output + a separate pallas_call.
            y = y.reshape(nb * (strip // 2), 2, W // 2, 2, ct)
            y = jnp.max(y, axis=3)
            y = jnp.max(y, axis=1)
            y = y.reshape(nb, strip // 2, W // 2, ct)
            o_ref[:, pl.ds(r0 // 2, strip // 2), :, :] = y.astype(o_ref.dtype)
        else:
            y = y.reshape(nb, strip, W, ct)
            o_ref[:, pl.ds(r0, strip), :, :] = y.astype(o_ref.dtype)


def conv_bn_relu_pool(x, w, shift, *, pool):
    """3x3 conv (stride 1, pad 1) + folded BN + ReLU (+ fused 2x2 maxpool).

    x     : (N, H, W, Cin) NHWC f32 activations
    w     : (9*Cin, Cout)  BN-scale-folded weights (tap-major), WEIGHT_DTYPE
    shift : (Cout,)        folded BN shift (+ conv bias), f32
    """
    N, H, W, Cin = x.shape
    Cout = w.shape[-1]
    assert w.shape == (9 * Cin, Cout)
    if pool:
        assert H % 2 == 0 and W % 2 == 0, "2x2 maxpool needs even H, W"
    Ho, Wo = (H // 2, W // 2) if pool else (H, W)

    xp = jnp.pad(x, ((0, 0), (1, 1), (1, 1), (0, 0)))

    tc = Cout if Cout <= 512 else _pick_tile(Cout, (512, 256, 128))
    assert Cout % tc == 0
    n_ct = Cout // tc

    # Cover the whole batch with one block when the activation blocks fit
    # comfortably in VMEM (raises MXU M on the tiny-spatial deep layers and
    # halves the grid-step count); fall back to per-image blocks otherwise.
    blk_in = N * (H + 2) * (W + 2) * Cin * 4
    blk_out = N * Ho * Wo * tc * 4
    nb = N if max(blk_in, blk_out) <= 8 * 1024 * 1024 else 1
    nbatch = N // nb

    strip = _pick_strip(H, W, nb, tc, pool)
    fuse_taps = (Cin % 128 == 0)

    shift2 = shift.reshape(1, Cout).astype(jnp.float32)
    kernel = functools.partial(_conv3x3_kernel, nb=nb, H=H, W=W, strip=strip,
                               pool=pool, fuse_taps=fuse_taps)
    w_item = jnp.dtype(w.dtype).itemsize
    cost = pl.CostEstimate(
        flops=2 * N * H * W * 9 * Cin * Cout,
        transcendentals=0,
        bytes_accessed=int(4 * (N * (H + 2) * (W + 2) * Cin + Cout
                                + N * Ho * Wo * Cout)
                           + 9 * Cin * Cout * w_item),
    )

    # grid = (Cout tiles, batch blocks): the weight block index only depends on
    # the outer axis, so each weight tile is DMA'd once and stays VMEM-resident
    # across the (inner) batch sweep.
    return pl.pallas_call(
        kernel,
        out_shape=jax.ShapeDtypeStruct((N, Ho, Wo, Cout), jnp.float32),
        grid=(n_ct, nbatch),
        in_specs=[
            pl.BlockSpec((nb, H + 2, W + 2, Cin), lambda c, n: (n, 0, 0, 0)),
            pl.BlockSpec((9 * Cin, tc), lambda c, n: (0, c)),
            pl.BlockSpec((1, tc), lambda c, n: (0, c)),
        ],
        out_specs=pl.BlockSpec((nb, Ho, Wo, tc), lambda c, n: (n, 0, 0, c)),
        compiler_params=pltpu.CompilerParams(
            dimension_semantics=("parallel", "parallel"),
            vmem_limit_bytes=_vmem_limit_bytes(),
        ),
        cost_estimate=cost,
    )(xp, w, shift2)


# ---------------------------------------------------------------------------
# FC layers: tiled GEMM with fused bias + ReLU
# ---------------------------------------------------------------------------
def _matmul_bias_kernel(a_ref, b_ref, shift_ref, o_ref, acc_ref, *, apply_relu):
    """o = act(a @ b + shift), accumulated over the K grid axis in f32."""
    @pl.when(pl.program_id(2) == 0)
    def _init():
        acc_ref[...] = jnp.zeros_like(acc_ref)

    b = b_ref[...]
    acc_ref[...] += jnp.dot(a_ref[...].astype(b.dtype), b,
                            preferred_element_type=jnp.float32)

    @pl.when(pl.program_id(2) == pl.num_programs(2) - 1)
    def _finish():
        y = acc_ref[...] + shift_ref[...]
        if apply_relu:
            y = jnp.maximum(y, 0.0)
        o_ref[...] = y.astype(o_ref.dtype)


def matmul_bias_act(a, b, shift, *, apply_relu):
    """(M,K) @ (K,N) with fused per-column bias + optional ReLU."""
    M, K = a.shape
    K2, N = b.shape
    assert K == K2 and shift.shape == (1, N)
    item = jnp.dtype(b.dtype).itemsize

    tm = M if M <= 256 else _pick_tile(M, (256, 128, 8))
    # Weight-streaming GEMM at tiny M: lane-dense tn=512 on all generations and
    # full-K blocks whenever the double-buffered weight block stays <= ~16 MiB
    # (kills the K grid axis and its per-step overhead).
    tn = _pick_tile(N, (512, 256, 128))
    tk = K
    for c in (K, 8192, 4096, 2048, 1024, 512, 256, 128):
        if c <= K and K % c == 0 and 2 * c * tn * item <= 16 * 1024 * 1024:
            tk = c
            break
    assert M % tm == 0 and N % tn == 0 and K % tk == 0

    kernel = functools.partial(_matmul_bias_kernel, apply_relu=apply_relu)
    cost = pl.CostEstimate(
        flops=2 * M * K * N,
        transcendentals=0,
        bytes_accessed=int(4 * (M * K + N + M * N) + K * N * item),
    )

    return pl.pallas_call(
        kernel,
        out_shape=jax.ShapeDtypeStruct((M, N), jnp.float32),
        grid=(M // tm, N // tn, K // tk),
        in_specs=[
            pl.BlockSpec((tm, tk), lambda i, j, k: (i, k)),
            pl.BlockSpec((tk, tn), lambda i, j, k: (k, j)),
            pl.BlockSpec((1, tn), lambda i, j, k: (0, j)),
        ],
        out_specs=pl.BlockSpec((tm, tn), lambda i, j, k: (i, j)),
        scratch_shapes=[pltpu.VMEM((tm, tn), jnp.float32)],
        compiler_params=pltpu.CompilerParams(
            dimension_semantics=("parallel", "parallel", "arbitrary"),
            vmem_limit_bytes=_vmem_limit_bytes(),
        ),
        cost_estimate=cost,
    )(a, b, shift)


def linear(x, w, bias, *, apply_relu):
    """x: (M, K), w: (K, N), bias: (N,). Pads N to a lane-dense multiple of 128."""
    K, N = w.shape
    Np = _round_up(N, 128)
    if Np != N:
        w = jnp.pad(w, ((0, 0), (0, Np - N)))
        bias = jnp.pad(bias, ((0, Np - N),))
    out = matmul_bias_act(x, w, bias.reshape(1, Np).astype(jnp.float32),
                          apply_relu=apply_relu)
    return out[:, :N] if Np != N else out


# ---------------------------------------------------------------------------
# Parameter construction (deterministic, mirrors nn.init.kaiming_uniform_)
# ---------------------------------------------------------------------------
_CONV_CFG = [
    # (cin, cout, pool_after)
    (None, 64, False), (64, 64, True),
    (64, 128, False), (128, 128, True),
    (128, 256, False), (256, 256, False), (256, 256, False), (256, 256, True),
    (256, 512, False), (512, 512, False), (512, 512, False), (512, 512, True),
    (512, 512, False), (512, 512, False), (512, 512, False), (512, 512, True),
]


def init_params(key, img_size=32, input_channel=3, num_classes=4):
    eps = 1e-5
    params = {"convs": [], "fcs": []}
    cfg = [(input_channel if cin is None else cin, cout, pool)
           for (cin, cout, pool) in _CONV_CFG]

    for (cin, cout, pool) in cfg:
        key, wk = jax.random.split(key)
        fan_in = cin * 9
        bound = math.sqrt(6.0 / fan_in)                  # kaiming_uniform_
        w = jax.random.uniform(wk, (3, 3, cin, cout), jnp.float32, -bound, bound)
        conv_bias = jnp.zeros((cout,), jnp.float32)      # init.constant_(bias, 0)
        gamma = jnp.ones((cout,), jnp.float32)           # BatchNorm eval defaults
        beta = jnp.zeros((cout,), jnp.float32)
        running_mean = jnp.zeros((cout,), jnp.float32)
        running_var = jnp.ones((cout,), jnp.float32)
        scale = gamma / jnp.sqrt(running_var + eps)
        shift = beta - running_mean * scale + conv_bias * scale
        # Fold BN scale into W; flatten taps to (9*Cin, Cout) so the kernel can
        # run one long-K dot on an in-VMEM im2col slab (tap-major rows).
        w_folded = (w * scale).reshape(9 * cin, cout).astype(WEIGHT_DTYPE)
        params["convs"].append((w_folded, shift, pool))

    feat = int(512 * img_size * img_size / 32 / 32)
    fc_dims = [(feat, 4096), (4096, 4096), (4096, num_classes)]
    for (fin, fout) in fc_dims:
        key, wk = jax.random.split(key)
        bound = math.sqrt(6.0 / fin)
        w = jax.random.uniform(wk, (fin, fout), jnp.float32,
                               -bound, bound).astype(WEIGHT_DTYPE)
        b = jnp.zeros((fout,), jnp.float32)
        params["fcs"].append((w, b))
    return params


# ---------------------------------------------------------------------------
# Forward pass
# ---------------------------------------------------------------------------
def vgg19_forward(x_nchw, params):
    # PyTorch NCHW input -> NHWC for all Pallas kernels.
    x = jnp.transpose(x_nchw, (0, 2, 3, 1)).astype(jnp.float32)

    for (w, shift, pool) in params["convs"]:
        x = conv_bn_relu_pool(x, w, shift, pool=pool)

    # Flatten exactly like PyTorch's x.view(N, -1) on an NCHW tensor.
    n = x.shape[0]
    feat = jnp.transpose(x, (0, 3, 1, 2)).reshape(n, -1)

    out = feat
    n_fc = len(params["fcs"])
    for i, (w, b) in enumerate(params["fcs"]):
        out = linear(out, w, b, apply_relu=(i < n_fc - 1))
        # Dropout(p=0.5): eval-mode identity (see TODO at top of file)
    return out


# ---------------------------------------------------------------------------
if __name__ == "__main__":
    IMG = 32          # small, divisible by 32 (five 2x2 pools -> 1x1 spatial)
    BATCH = 2
    IN_CH = 3
    NUM_CLASSES = 4

    root = jax.random.PRNGKey(0)
    pkey, xkey = jax.random.split(root)
    params = init_params(pkey, img_size=IMG, input_channel=IN_CH,
                         num_classes=NUM_CLASSES)
    x = jax.random.normal(xkey, (BATCH, IN_CH, IMG, IMG), jnp.float32)

    out = vgg19_forward(x, params)
    out = jax.block_until_ready(out)
    assert out.shape == (BATCH, NUM_CLASSES), out.shape
    assert out.dtype == jnp.float32
    assert bool(jnp.all(jnp.isfinite(out)))
    print("KERNEL_OK")
</pallas_src>

<mosaic_0001>
module attributes {stable_mosaic.version = 11 : i64} {
  func.func @_conv3x3_kernel(%arg0: i32, %arg1: i32, %arg2: memref<2x34x34x3xf32, #tpu.memory_space<vmem>>, %arg3: memref<27x64xbf16, #tpu.memory_space<vmem>>, %arg4: memref<1x64xf32, #tpu.memory_space<vmem>>, %arg5: memref<2x32x32x64xf32, #tpu.memory_space<vmem>>) attributes {dimension_semantics = [#tpu.dimension_semantics<parallel>, #tpu.dimension_semantics<parallel>], iteration_bounds = array<i64: 1, 1>, scalar_prefetch = 0 : i64, scratch_operands = 0 : i64, tpu.core_type = #tpu.core_type<tc>, window_params = [{transform_indices = @transform_0, window_bounds = array<i64: 2, 34, 34, 3>}, {transform_indices = @transform_1, window_bounds = array<i64: 27, 64>}, {transform_indices = @transform_2, window_bounds = array<i64: 1, 64>}, {transform_indices = @transform_3, window_bounds = array<i64: 2, 32, 32, 64>}]} {
    %c0 = arith.constant 0 : index
    %c0_0 = arith.constant 0 : index
    %0 = vector.load %arg4[%c0, %c0_0] : memref<1x64xf32, #tpu.memory_space<vmem>>, vector<1x64xf32>
    %c0_1 = arith.constant 0 : index
    %c0_2 = arith.constant 0 : index
    %c0_3 = arith.constant 0 : index
    %c0_4 = arith.constant 0 : index
    %1 = vector.load %arg2[%c0_1, %c0_2, %c0_3, %c0_4] : memref<2x34x34x3xf32, #tpu.memory_space<vmem>>, vector<2x10x34x3xf32>
    %2 = vector.extract_strided_slice %1 {offsets = [0, 0, 0, 0], sizes = [2, 8, 34, 3], strides = [1, 1, 1, 1]} : vector<2x10x34x3xf32> to vector<2x8x34x3xf32>
    %3 = vector.extract_strided_slice %2 {offsets = [0, 0, 0, 0], sizes = [2, 8, 32, 3], strides = [1, 1, 1, 1]} : vector<2x8x34x3xf32> to vector<2x8x32x3xf32>
    %4 = vector.shape_cast %3 : vector<2x8x32x3xf32> to vector<512x3xf32>
    %5 = arith.truncf %4 : vector<512x3xf32> to vector<512x3xbf16>
    %6 = vector.extract_strided_slice %2 {offsets = [0, 0, 1, 0], sizes = [2, 8, 32, 3], strides = [1, 1, 1, 1]} : vector<2x8x34x3xf32> to vector<2x8x32x3xf32>
    %7 = vector.shape_cast %6 : vector<2x8x32x3xf32> to vector<512x3xf32>
    %8 = arith.truncf %7 : vector<512x3xf32> to vector<512x3xbf16>
    %9 = vector.extract_strided_slice %2 {offsets = [0, 0, 2, 0], sizes = [2, 8, 32, 3], strides = [1, 1, 1, 1]} : vector<2x8x34x3xf32> to vector<2x8x32x3xf32>
    %10 = vector.shape_cast %9 : vector<2x8x32x3xf32> to vector<512x3xf32>
    %11 = arith.truncf %10 : vector<512x3xf32> to vector<512x3xbf16>
    %12 = vector.extract_strided_slice %1 {offsets = [0, 1, 0, 0], sizes = [2, 8, 34, 3], strides = [1, 1, 1, 1]} : vector<2x10x34x3xf32> to vector<2x8x34x3xf32>
    %13 = vector.extract_strided_slice %12 {offsets = [0, 0, 0, 0], sizes = [2, 8, 32, 3], strides = [1, 1, 1, 1]} : vector<2x8x34x3xf32> to vector<2x8x32x3xf32>
    %14 = vector.shape_cast %13 : vector<2x8x32x3xf32> to vector<512x3xf32>
    %15 = arith.truncf %14 : vector<512x3xf32> to vector<512x3xbf16>
    %16 = vector.extract_strided_slice %12 {offsets = [0, 0, 1, 0], sizes = [2, 8, 32, 3], strides = [1, 1, 1, 1]} : vector<2x8x34x3xf32> to vector<2x8x32x3xf32>
    %17 = vector.shape_cast %16 : vector<2x8x32x3xf32> to vector<512x3xf32>
    %18 = arith.truncf %17 : vector<512x3xf32> to vector<512x3xbf16>
    %19 = vector.extract_strided_slice %12 {offsets = [0, 0, 2, 0], sizes = [2, 8, 32, 3], strides = [1, 1, 1, 1]} : vector<2x8x34x3xf32> to vector<2x8x32x3xf32>
    %20 = vector.shape_cast %19 : vector<2x8x32x3xf32> to vector<512x3xf32>
    %21 = arith.truncf %20 : vector<512x3xf32> to vector<512x3xbf16>
    %22 = vector.extract_strided_slice %1 {offsets = [0, 2, 0, 0], sizes = [2, 8, 34, 3], strides = [1, 1, 1, 1]} : vector<2x10x34x3xf32> to vector<2x8x34x3xf32>
    %23 = vector.extract_strided_slice %22 {offsets = [0, 0, 0, 0], sizes = [2, 8, 32, 3], strides = [1, 1, 1, 1]} : vector<2x8x34x3xf32> to vector<2x8x32x3xf32>
    %24 = vector.shape_cast %23 : vector<2x8x32x3xf32> to vector<512x3xf32>
    %25 = arith.truncf %24 : vector<512x3xf32> to vector<512x3xbf16>
    %26 = vector.extract_strided_slice %22 {offsets = [0, 0, 1, 0], sizes = [2, 8, 32, 3], strides = [1, 1, 1, 1]} : vector<2x8x34x3xf32> to vector<2x8x32x3xf32>
    %27 = vector.shape_cast %26 : vector<2x8x32x3xf32> to vector<512x3xf32>
    %28 = arith.truncf %27 : vector<512x3xf32> to vector<512x3xbf16>
    %29 = vector.extract_strided_slice %22 {offsets = [0, 0, 2, 0], sizes = [2, 8, 32, 3], strides = [1, 1, 1, 1]} : vector<2x8x34x3xf32> to vector<2x8x32x3xf32>
    %30 = vector.shape_cast %29 : vector<2x8x32x3xf32> to vector<512x3xf32>
    %31 = arith.truncf %30 : vector<512x3xf32> to vector<512x3xbf16>
    %cst = arith.constant 0.000000e+00 : f32
    %32 = vector.broadcast %cst : f32 to vector<512x64xf32>
    %c0_5 = arith.constant 0 : index
    %c0_6 = arith.constant 0 : index
    %33 = vector.load %arg3[%c0_5, %c0_6] : memref<27x64xbf16, #tpu.memory_space<vmem>>, vector<3x64xbf16>
    %cst_7 = arith.constant dense<0.000000e+00> : vector<512x64xf32>
    %34 = tpu.matmul %5, %33, %cst_7 {dimension_numbers = #tpu.dot_dimension_numbers<[1], [0], [0], [1], [0, 0, 1, 1], [], []>} : vector<512x3xbf16>, vector<3x64xbf16>, vector<512x64xf32> -> vector<512x64xf32>
    %35 = arith.addf %32, %34 : vector<512x64xf32>
    %c3 = arith.constant 3 : index
    %c0_8 = arith.constant 0 : index
    %36 = vector.load %arg3[%c3, %c0_8] : memref<27x64xbf16, #tpu.memory_space<vmem>>, vector<3x64xbf16>
    %cst_9 = arith.constant dense<0.000000e+00> : vector<512x64xf32>
    %37 = tpu.matmul %8, %36, %cst_9 {dimension_numbers = #tpu.dot_dimension_numbers<[1], [0], [0], [1], [0, 0, 1, 1], [], []>} : vector<512x3xbf16>, vector<3x64xbf16>, vector<512x64xf32> -> vector<512x64xf32>
    %38 = arith.addf %35, %37 : vector<512x64xf32>
    %c6 = arith.constant 6 : index
    %c0_10 = arith.constant 0 : index
    %39 = vector.load %arg3[%c6, %c0_10] : memref<27x64xbf16, #tpu.memory_space<vmem>>, vector<3x64xbf16>
    %cst_11 = arith.constant dense<0.000000e+00> : vector<512x64xf32>
    %40 = tpu.matmul %11, %39, %cst_11 {dimension_numbers = #tpu.dot_dimension_numbers<[1], [0], [0], [1], [0, 0, 1, 1], [], []>} : vector<512x3xbf16>, vector<3x64xbf16>, vector<512x64xf32> -> vector<512x64xf32>
    %41 = arith.addf %38, %40 : vector<512x64xf32>
    %c9 = arith.constant 9 : index
    %c0_12 = arith.constant 0 : index
    %42 = vector.load %arg3[%c9, %c0_12] : memref<27x64xbf16, #tpu.memory_space<vmem>>, vector<3x64xbf16>
    %cst_13 = arith.constant dense<0.000000e+00> : vector<512x64xf32>
    %43 = tpu.matmul %15, %42, %cst_13 {dimension_numbers = #tpu.dot_dimension_numbers<[1], [0], [0], [1], [0, 0, 1, 1], [], []>} : vector<512x3xbf16>, vector<3x64xbf16>, vector<512x64xf32> -> vector<512x64xf32>
    %44 = arith.addf %41, %43 : vector<512x64xf32>
    %c12 = arith.constant 12 : index
    %c0_14 = arith.constant 0 : index
    %45 = vector.load %arg3[%c12, %c0_14] : memref<27x64xbf16, #tpu.memory_space<vmem>>, vector<3x64xbf16>
    %cst_15 = arith.constant dense<0.000000e+00> : vector<512x64xf32>
    %46 = tpu.matmul %18, %45, %cst_15 {dimension_numbers = #tpu.dot_dimension_numbers<[1], [0], [0], [1], [0, 0, 1, 1], [], []>} : vector<512x3xbf16>, vector<3x64xbf16>, vector<512x64xf32> -> vector<512x64xf32>
    %47 = arith.addf %44, %46 : vector<512x64xf32>
    %c15 = arith.constant 15 : index
    %c0_16 = arith.constant 0 : index
    %48 = vector.load %arg3[%c15, %c0_16] : memref<27x64xbf16, #tpu.memory_space<vmem>>, vector<3x64xbf16>
    %cst_17 = arith.constant dense<0.000000e+00> : vector<512x64xf32>
    %49 = tpu.matmul %21, %48, %cst_17 {dimension_numbers = #tpu.dot_dimension_numbers<[1], [0], [0], [1], [0, 0, 1, 1], [], []>} : vector<512x3xbf16>, vector<3x64xbf16>, vector<512x64xf32> -> vector<512x64xf32>
    %50 = arith.addf %47, %49 : vector<512x64xf32>
    %c18 = arith.constant 18 : index
    %c0_18 = arith.constant 0 : index
    %51 = vector.load %arg3[%c18, %c0_18] : memref<27x64xbf16, #tpu.memory_space<vmem>>, vector<3x64xbf16>
    %cst_19 = arith.constant dense<0.000000e+00> : vector<512x64xf32>
    %52 = tpu.matmul %25, %51, %cst_19 {dimension_numbers = #tpu.dot_dimension_numbers<[1], [0], [0], [1], [0, 0, 1, 1], [], []>} : vector<512x3xbf16>, vector<3x64xbf16>, vector<512x64xf32> -> vector<512x64xf32>
    %53 = arith.addf %50, %52 : vector<512x64xf32>
    %c21 = arith.constant 21 : index
    %c0_20 = arith.constant 0 : index
    %54 = vector.load %arg3[%c21, %c0_20] : memref<27x64xbf16, #tpu.memory_space<vmem>>, vector<3x64xbf16>
    %cst_21 = arith.constant dense<0.000000e+00> : vector<512x64xf32>
    %55 = tpu.matmul %28, %54, %cst_21 {dimension_numbers = #tpu.dot_dimension_numbers<[1], [0], [0], [1], [0, 0, 1, 1], [], []>} : vector<512x3xbf16>, vector<3x64xbf16>, vector<512x64xf32> -> vector<512x64xf32>
    %56 = arith.addf %53, %55 : vector<512x64xf32>
    %c24 = arith.constant 24 : index
    %c0_22 = arith.constant 0 : index
    %57 = vector.load %arg3[%c24, %c0_22] : memref<27x64xbf16, #tpu.memory_space<vmem>>, vector<3x64xbf16>
    %cst_23 = arith.constant dense<0.000000e+00> : vector<512x64xf32>
    %58 = tpu.matmul %31, %57, %cst_23 {dimension_numbers = #tpu.dot_dimension_numbers<[1], [0], [0], [1], [0, 0, 1, 1], [], []>} : vector<512x3xbf16>, vector<3x64xbf16>, vector<512x64xf32> -> vector<512x64xf32>
    %59 = arith.addf %56, %58 : vector<512x64xf32>
    %60 = vector.broadcast %0 : vector<1x64xf32> to vector<512x64xf32>
    %61 = arith.addf %59, %60 : vector<512x64xf32>
    %cst_24 = arith.constant 0.000000e+00 : f32
    %62 = vector.broadcast %cst_24 : f32 to vector<512x64xf32>
    %63 = arith.maximumf %61, %62 : vector<512x64xf32>
    %64 = vector.shape_cast %63 : vector<512x64xf32> to vector<2x8x32x64xf32>
    %c0_25 = arith.constant 0 : index
    %c0_26 = arith.constant 0 : index
    %c0_27 = arith.constant 0 : index
    %c0_28 = arith.constant 0 : index
    %65 = vector.load %arg5[%c0_25, %c0_26, %c0_27, %c0_28] : memref<2x32x32x64xf32, #tpu.memory_space<vmem>>, vector<2x8x32x64xf32>
    tpu.vector_store %arg5[%c0_25, %c0_26, %c0_27, %c0_28], %64 {strides = array<i32>} : memref<2x32x32x64xf32, #tpu.memory_space<vmem>>, vector<2x8x32x64xf32>,
    %c0_29 = arith.constant 0 : index
    %c8 = arith.constant 8 : index
    %c0_30 = arith.constant 0 : index
    %c0_31 = arith.constant 0 : index
    %66 = vector.load %arg2[%c0_29, %c8, %c0_30, %c0_31] : memref<2x34x34x3xf32, #tpu.memory_space<vmem>>, vector<2x10x34x3xf32>
    %67 = vector.extract_strided_slice %66 {offsets = [0, 0, 0, 0], sizes = [2, 8, 34, 3], strides = [1, 1, 1, 1]} : vector<2x10x34x3xf32> to vector<2x8x34x3xf32>
    %68 = vector.extract_strided_slice %67 {offsets = [0, 0, 0, 0], sizes = [2, 8, 32, 3], strides = [1, 1, 1, 1]} : vector<2x8x34x3xf32> to vector<2x8x32x3xf32>
    %69 = vector.shape_cast %68 : vector<2x8x32x3xf32> to vector<512x3xf32>
    %70 = arith.truncf %69 : vector<512x3xf32> to vector<512x3xbf16>
    %71 = vector.extract_strided_slice %67 {offsets = [0, 0, 1, 0], sizes = [2, 8, 32, 3], strides = [1, 1, 1, 1]} : vector<2x8x34x3xf32> to vector<2x8x32x3xf32>
    %72 = vector.shape_cast %71 : vector<2x8x32x3xf32> to vector<512x3xf32>
    %73 = arith.truncf %72 : vector<512x3xf32> to vector<512x3xbf16>
    %74 = vector.extract_strided_slice %67 {offsets = [0, 0, 2, 0], sizes = [2, 8, 32, 3], strides = [1, 1, 1, 1]} : vector<2x8x34x3xf32> to vector<2x8x32x3xf32>
    %75 = vector.shape_cast %74 : vector<2x8x32x3xf32> to vector<512x3xf32>
    %76 = arith.truncf %75 : vector<512x3xf32> to vector<512x3xbf16>
    %77 = vector.extract_strided_slice %66 {offsets = [0, 1, 0, 0], sizes = [2, 8, 34, 3], strides = [1, 1, 1, 1]} : vector<2x10x34x3xf32> to vector<2x8x34x3xf32>
    %78 = vector.extract_strided_slice %77 {offsets = [0, 0, 0, 0], sizes = [2, 8, 32, 3], strides = [1, 1, 1, 1]} : vector<2x8x34x3xf32> to vector<2x8x32x3xf32>
    %79 = vector.shape_cast %78 : vector<2x8x32x3xf32> to vector<512x3xf32>
    %80 = arith.truncf %79 : vector<512x3xf32> to vector<512x3xbf16>
    %81 = vector.extract_strided_slice %77 {offsets = [0, 0, 1, 0], sizes = [2, 8, 32, 3], strides = [1, 1, 1, 1]} : vector<2x8x34x3xf32> to vector<2x8x32x3xf32>
    %82 = vector.shape_cast %81 : vector<2x8x32x3xf32> to vector<512x3xf32>
    %83 = arith.truncf %82 : vector<512x3xf32> to vector<512x3xbf16>
    %84 = vector.extract_strided_slice %77 {offsets = [0, 0, 2, 0], sizes = [2, 8, 32, 3], strides = [1, 1, 1, 1]} : vector<2x8x34x3xf32> to vector<2x8x32x3xf32>
    %85 = vector.shape_cast %84 : vector<2x8x32x3xf32> to vector<512x3xf32>
    %86 = arith.truncf %85 : vector<512x3xf32> to vector<512x3xbf16>
    %87 = vector.extract_strided_slice %66 {offsets = [0, 2, 0, 0], sizes = [2, 8, 34, 3], strides = [1, 1, 1, 1]} : vector<2x10x34x3xf32> to vector<2x8x34x3xf32>
    %88 = vector.extract_strided_slice %87 {offsets = [0, 0, 0, 0], sizes = [2, 8, 32, 3], strides = [1, 1, 1, 1]} : vector<2x8x34x3xf32> to vector<2x8x32x3xf32>
    %89 = vector.shape_cast %88 : vector<2x8x32x3xf32> to vector<512x3xf32>
    %90 = arith.truncf %89 : vector<512x3xf32> to vector<512x3xbf16>
    %91 = vector.extract_strided_slice %87 {offsets = [0, 0, 1, 0], sizes = [2, 8, 32, 3], strides = [1, 1, 1, 1]} : vector<2x8x34x3xf32> to vector<2x8x32x3xf32>
    %92 = vector.shape_cast %91 : vector<2x8x32x3xf32> to vector<512x3xf32>
    %93 = arith.truncf %92 : vector<512x3xf32> to vector<512x3xbf16>
    %94 = vector.extract_strided_slice %87 {offsets = [0, 0, 2, 0], sizes = [2, 8, 32, 3], strides = [1, 1, 1, 1]} : vector<2x8x34x3xf32> to vector<2x8x32x3xf32>
    %95 = vector.shape_cast %94 : vector<2x8x32x3xf32> to vector<512x3xf32>
    %96 = arith.truncf %95 : vector<512x3xf32> to vector<512x3xbf16>
    %cst_32 = arith.constant 0.000000e+00 : f32
    %97 = vector.broadcast %cst_32 : f32 to vector<512x64xf32>
    %c0_33 = arith.constant 0 : index
    %c0_34 = arith.constant 0 : index
    %98 = vector.load %arg3[%c0_33, %c0_34] : memref<27x64xbf16, #tpu.memory_space<vmem>>, vector<3x64xbf16>
    %cst_35 = arith.constant dense<0.000000e+00> : vector<512x64xf32>
    %99 = tpu.matmul %70, %98, %cst_35 {dimension_numbers = #tpu.dot_dimension_numbers<[1], [0], [0], [1], [0, 0, 1, 1], [], []>} : vector<512x3xbf16>, vector<3x64xbf16>, vector<512x64xf32> -> vector<512x64xf32>
    %100 = arith.addf %97, %99 : vector<512x64xf32>
    %c3_36 = arith.constant 3 : index
    %c0_37 = arith.constant 0 : index
    %101 = vector.load %arg3[%c3_36, %c0_37] : memref<27x64xbf16, #tpu.memory_space<vmem>>, vector<3x64xbf16>
    %cst_38 = arith.constant dense<0.000000e+00> : vector<512x64xf32>
    %102 = tpu.matmul %73, %101, %cst_38 {dimension_numbers = #tpu.dot_dimension_numbers<[1], [0], [0], [1], [0, 0, 1, 1], [], []>} : vector<512x3xbf16>, vector<3x64xbf16>, vector<512x64xf32> -> vector<512x64xf32>
    %103 = arith.addf %100, %102 : vector<512x64xf32>
    %c6_39 = arith.constant 6 : index
    %c0_40 = arith.constant 0 : index
    %104 = vector.load %arg3[%c6_39, %c0_40] : memref<27x64xbf16, #tpu.memory_space<vmem>>, vector<3x64xbf16>
    %cst_41 = arith.constant dense<0.000000e+00> : vector<512x64xf32>
    %105 = tpu.matmul %76, %104, %cst_41 {dimension_numbers = #tpu.dot_dimension_numbers<[1], [0], [0], [1], [0, 0, 1, 1], [], []>} : vector<512x3xbf16>, vector<3x64xbf16>, vector<512x64xf32> -> vector<512x64xf32>
    %106 = arith.addf %103, %105 : vector<512x64xf32>
    %c9_42 = arith.constant 9 : index
    %c0_43 = arith.constant 0 : index
    %107 = vector.load %arg3[%c9_42, %c0_43] : memref<27x64xbf16, #tpu.memory_space<vmem>>, vector<3x64xbf16>
    %cst_44 = arith.constant dense<0.000000e+00> : vector<512x64xf32>
    %108 = tpu.matmul %80, %107, %cst_44 {dimension_numbers = #tpu.dot_dimension_numbers<[1], [0], [0], [1], [0, 0, 1, 1], [], []>} : vector<512x3xbf16>, vector<3x64xbf16>, vector<512x64xf32> -> vector<512x64xf32>
    %109 = arith.addf %106, %108 : vector<512x64xf32>
    %c12_45 = arith.constant 12 : index
    %c0_46 = arith.constant 0 : index
    %110 = vector.load %arg3[%c12_45, %c0_46] : memref<27x64xbf16, #tpu.memory_space<vmem>>, vector<3x64xbf16>
    %cst_47 = arith.constant dense<0.000000e+00> : vector<512x64xf32>
    %111 = tpu.matmul %83, %110, %cst_47 {dimension_numbers = #tpu.dot_dimension_numbers<[1], [0], [0], [1], [0, 0, 1, 1], [], []>} : vector<512x3xbf16>, vector<3x64xbf16>, vector<512x64xf32> -> vector<512x64xf32>
    %112 = arith.addf %109, %111 : vector<512x64xf32>
    %c15_48 = arith.constant 15 : index
    %c0_49 = arith.constant 0 : index
    %113 = vector.load %arg3[%c15_48, %c0_49] : memref<27x64xbf16, #tpu.memory_space<vmem>>, vector<3x64xbf16>
    %cst_50 = arith.constant dense<0.000000e+00> : vector<512x64xf32>
    %114 = tpu.matmul %86, %113, %cst_50 {dimension_numbers = #tpu.dot_dimension_numbers<[1], [0], [0], [1], [0, 0, 1, 1], [], []>} : vector<512x3xbf16>, vector<3x64xbf16>, vector<512x64xf32> -> vector<512x64xf32>
    %115 = arith.addf %112, %114 : vector<512x64xf32>
    %c18_51 = arith.constant 18 : index
    %c0_52 = arith.constant 0 : index
    %116 = vector.load %arg3[%c18_51, %c0_52] : memref<27x64xbf16, #tpu.memory_space<vmem>>, vector<3x64xbf16>
    %cst_53 = arith.constant dense<0.000000e+00> : vector<512x64xf32>
    %117 = tpu.matmul %90, %116, %cst_53 {dimension_numbers = #tpu.dot_dimension_numbers<[1], [0], [0], [1], [0, 0, 1, 1], [], []>} : vector<512x3xbf16>, vector<3x64xbf16>, vector<512x64xf32> -> vector<512x64xf32>
    %118 = arith.addf %115, %117 : vector<512x64xf32>
    %c21_54 = arith.constant 21 : index
    %c0_55 = arith.constant 0 : index
    %119 = vector.load %arg3[%c21_54, %c0_55] : memref<27x64xbf16, #tpu.memory_space<vmem>>, vector<3x64xbf16>
    %cst_56 = arith.constant dense<0.000000e+00> : vector<512x64xf32>
    %120 = tpu.matmul %93, %119, %cst_56 {dimension_numbers = #tpu.dot_dimension_numbers<[1], [0], [0], [1], [0, 0, 1, 1], [], []>} : vector<512x3xbf16>, vector<3x64xbf16>, vector<512x64xf32> -> vector<512x64xf32>
    %121 = arith.addf %118, %120 : vector<512x64xf32>
    %c24_57 = arith.constant 24 : index
    %c0_58 = arith.constant 0 : index
    %122 = vector.load %arg3[%c24_57, %c0_58] : memref<27x64xbf16, #tpu.memory_space<vmem>>, vector<3x64xbf16>
    %cst_59 = arith.constant dense<0.000000e+00> : vector<512x64xf32>
    %123 = tpu.matmul %96, %122, %cst_59 {dimension_numbers = #tpu.dot_dimension_numbers<[1], [0], [0], [1], [0, 0, 1, 1], [], []>} : vector<512x3xbf16>, vector<3x64xbf16>, vector<512x64xf32> -> vector<512x64xf32>
    %124 = arith.addf %121, %123 : vector<512x64xf32>
    %125 = vector.broadcast %0 : vector<1x64xf32> to vector<512x64xf32>
    %126 = arith.addf %124, %125 : vector<512x64xf32>
    %cst_60 = arith.constant 0.000000e+00 : f32
    %127 = vector.broadcast %cst_60 : f32 to vector<512x64xf32>
    %128 = arith.maximumf %126, %127 : vector<512x64xf32>
    %129 = vector.shape_cast %128 : vector<512x64xf32> to vector<2x8x32x64xf32>
    %c0_61 = arith.constant 0 : index
    %c8_62 = arith.constant 8 : index
    %c0_63 = arith.constant 0 : index
    %c0_64 = arith.constant 0 : index
    %130 = vector.load %arg5[%c0_61, %c8_62, %c0_63, %c0_64] : memref<2x32x32x64xf32, #tpu.memory_space<vmem>>, vector<2x8x32x64xf32>
    tpu.vector_store %arg5[%c0_61, %c8_62, %c0_63, %c0_64], %129 {strides = array<i32>} : memref<2x32x32x64xf32, #tpu.memory_space<vmem>>, vector<2x8x32x64xf32>,
    %c0_65 = arith.constant 0 : index
    %c16 = arith.constant 16 : index
    %c0_66 = arith.constant 0 : index
    %c0_67 = arith.constant 0 : index
    %131 = vector.load %arg2[%c0_65, %c16, %c0_66, %c0_67] : memref<2x34x34x3xf32, #tpu.memory_space<vmem>>, vector<2x10x34x3xf32>
    %132 = vector.extract_strided_slice %131 {offsets = [0, 0, 0, 0], sizes = [2, 8, 34, 3], strides = [1, 1, 1, 1]} : vector<2x10x34x3xf32> to vector<2x8x34x3xf32>
    %133 = vector.extract_strided_slice %132 {offsets = [0, 0, 0, 0], sizes = [2, 8, 32, 3], strides = [1, 1, 1, 1]} : vector<2x8x34x3xf32> to vector<2x8x32x3xf32>
    %134 = vector.shape_cast %133 : vector<2x8x32x3xf32> to vector<512x3xf32>
    %135 = arith.truncf %134 : vector<512x3xf32> to vector<512x3xbf16>
    %136 = vector.extract_strided_slice %132 {offsets = [0, 0, 1, 0], sizes = [2, 8, 32, 3], strides = [1, 1, 1, 1]} : vector<2x8x34x3xf32> to vector<2x8x32x3xf32>
    %137 = vector.shape_cast %136 : vector<2x8x32x3xf32> to vector<512x3xf32>
    %138 = arith.truncf %137 : vector<512x3xf32> to vector<512x3xbf16>
    %139 = vector.extract_strided_slice %132 {offsets = [0, 0, 2, 0], sizes = [2, 8, 32, 3], strides = [1, 1, 1, 1]} : vector<2x8x34x3xf32> to vector<2x8x32x3xf32>
    %140 = vector.shape_cast %139 : vector<2x8x32x3xf32> to vector<512x3xf32>
    %141 = arith.truncf %140 : vector<512x3xf32> to vector<512x3xbf16>
    %142 = vector.extract_strided_slice %131 {offsets = [0, 1, 0, 0], sizes = [2, 8, 34, 3], strides = [1, 1, 1, 1]} : vector<2x10x34x3xf32> to vector<2x8x34x3xf32>
    %143 = vector.extract_strided_slice %142 {offsets = [0, 0, 0, 0], sizes = [2, 8, 32, 3], strides = [1, 1, 1, 1]} : vector<2x8x34x3xf32> to vector<2x8x32x3xf32>
    %144 = vector.shape_cast %143 : vector<2x8x32x3xf32> to vector<512x3xf32>
    %145 = arith.truncf %144 : vector<512x3xf32> to vector<512x3xbf16>
    %146 = vector.extract_strided_slice %142 {offsets = [0, 0, 1, 0], sizes = [2, 8, 32, 3], strides = [1, 1, 1, 1]} : vector<2x8x34x3xf32> to vector<2x8x32x3xf32>
    %147 = vector.shape_cast %146 : vector<2x8x32x3xf32> to vector<512x3xf32>
    %148 = arith.truncf %147 : vector<512x3xf32> to vector<512x3xbf16>
    %149 = vector.extract_strided_slice %142 {offsets = [0, 0, 2, 0], sizes = [2, 8, 32, 3], strides = [1, 1, 1, 1]} : vector<2x8x34x3xf32> to vector<2x8x32x3xf32>
    %150 = vector.shape_cast %149 : vector<2x8x32x3xf32> to vector<512x3xf32>
    %151 = arith.truncf %150 : vector<512x3xf32> to vector<512x3xbf16>
    %152 = vector.extract_strided_slice %131 {offsets = [0, 2, 0, 0], sizes = [2, 8, 34, 3], strides = [1, 1, 1, 1]} : vector<2x10x34x3xf32> to vector<2x8x34x3xf32>
    %153 = vector.extract_strided_slice %152 {offsets = [0, 0, 0, 0], sizes = [2, 8, 32, 3], strides = [1, 1, 1, 1]} : vector<2x8x34x3xf32> to vector<2x8x32x3xf32>
    %154 = vector.shape_cast %153 : vector<2x8x32x3xf32> to vector<512x3xf32>
    %155 = arith.truncf %154 : vector<512x3xf32> to vector<512x3xbf16>
    %156 = vector.extract_strided_slice %152 {offsets = [0, 0, 1, 0], sizes = [2, 8, 32, 3], strides = [1, 1, 1, 1]} : vector<2x8x34x3xf32> to vector<2x8x32x3xf32>
    %157 = vector.shape_cast %156 : vector<2x8x32x3xf32> to vector<512x3xf32>
    %158 = arith.truncf %157 : vector<512x3xf32> to vector<512x3xbf16>
    %159 = vector.extract_strided_slice %152 {offsets = [0, 0, 2, 0], sizes = [2, 8, 32, 3], strides = [1, 1, 1, 1]} : vector<2x8x34x3xf32> to vector<2x8x32x3xf32>
    %160 = vector.shape_cast %159 : vector<2x8x32x3xf32> to vector<512x3xf32>
    %161 = arith.truncf %160 : vector<512x3xf32> to vector<512x3xbf16>
    %cst_68 = arith.constant 0.000000e+00 : f32
    %162 = vector.broadcast %cst_68 : f32 to vector<512x64xf32>
    %c0_69 = arith.constant 0 : index
    %c0_70 = arith.constant 0 : index
    %163 = vector.load %arg3[%c0_69, %c0_70] : memref<27x64xbf16, #tpu.memory_space<vmem>>, vector<3x64xbf16>
    %cst_71 = arith.constant dense<0.000000e+00> : vector<512x64xf32>
    %164 = tpu.matmul %135, %163, %cst_71 {dimension_numbers = #tpu.dot_dimension_numbers<[1], [0], [0], [1], [0, 0, 1, 1], [], []>} : vector<512x3xbf16>, vector<3x64xbf16>, vector<512x64xf32> -> vector<512x64xf32>
    %165 = arith.addf %162, %164 : vector<512x64xf32>
    %c3_72 = arith.constant 3 : index
    %c0_73 = arith.constant 0 : index
    %166 = vector.load %arg3[%c3_72, %c0_73] : memref<27x64xbf16, #tpu.memory_space<vmem>>, vector<3x64xbf16>
    %cst_74 = arith.constant dense<0.000000e+00> : vector<512x64xf32>
    %167 = tpu.matmul %138, %166, %cst_74 {dimension_numbers = #tpu.dot_dimension_numbers<[1], [0], [0], [1], [0, 0, 1, 1], [], []>} : vector<512x3xbf16>, vector<3x64xbf16>, vector<512x64xf32> -> vector<512x64xf32>
    %168 = arith.addf %165, %167 : vector<512x64xf32>
    %c6_75 = arith.constant 6 : index
    %c0_76 = arith.constant 0 : index
    %169 = vector.load %arg3[%c6_75, %c0_76] : memref<27x64xbf16, #tpu.memory_space<vmem>>, vector<3x64xbf16>
    %cst_77 = arith.constant dense<0.000000e+00> : vector<512x64xf32>
    %170 = tpu.matmul %141, %169, %cst_77 {dimension_numbers = #tpu.dot_dimension_numbers<[1], [0], [0], [1], [0, 0, 1, 1], [], []>} : vector<512x3xbf16>, vector<3x64xbf16>, vector<512x64xf32> -> vector<512x64xf32>
    %171 = arith.addf %168, %170 : vector<512x64xf32>
    %c9_78 = arith.constant 9 : index
    %c0_79 = arith.constant 0 : index
    %172 = vector.load %arg3[%c9_78, %c0_79] : memref<27x64xbf16, #tpu.memory_space<vmem>>, vector<3x64xbf16>
    %cst_80 = arith.constant dense<0.000000e+00> : vector<512x64xf32>
    %173 = tpu.matmul %145, %172, %cst_80 {dimension_numbers = #tpu.dot_dimension_numbers<[1], [0], [0], [1], [0, 0, 1, 1], [], []>} : vector<512x3xbf16>, vector<3x64xbf16>, vector<512x64xf32> -> vector<512x64xf32>
    %174 = arith.addf %171, %173 : vector<512x64xf32>
    %c12_81 = arith.constant 12 : index
    %c0_82 = arith.constant 0 : index
    %175 = vector.load %arg3[%c12_81, %c0_82] : memref<27x64xbf16, #tpu.memory_space<vmem>>, vector<3x64xbf16>
    %cst_83 = arith.constant dense<0.000000e+00> : vector<512x64xf32>
    %176 = tpu.matmul %148, %175, %cst_83 {dimension_numbers = #tpu.dot_dimension_numbers<[1], [0], [0], [1], [0, 0, 1, 1], [], []>} : vector<512x3xbf16>, vector<3x64xbf16>, vector<512x64xf32> -> vector<512x64xf32>
    %177 = arith.addf %174, %176 : vector<512x64xf32>
    %c15_84 = arith.constant 15 : index
    %c0_85 = arith.constant 0 : index
    %178 = vector.load %arg3[%c15_84, %c0_85] : memref<27x64xbf16, #tpu.memory_space<vmem>>, vector<3x64xbf16>
    %cst_86 = arith.constant dense<0.000000e+00> : vector<512x64xf32>
    %179 = tpu.matmul %151, %178, %cst_86 {dimension_numbers = #tpu.dot_dimension_numbers<[1], [0], [0], [1], [0, 0, 1, 1], [], []>} : vector<512x3xbf16>, vector<3x64xbf16>, vector<512x64xf32> -> vector<512x64xf32>
    %180 = arith.addf %177, %179 : vector<512x64xf32>
    %c18_87 = arith.constant 18 : index
    %c0_88 = arith.constant 0 : index
    %181 = vector.load %arg3[%c18_87, %c0_88] : memref<27x64xbf16, #tpu.memory_space<vmem>>, vector<3x64xbf16>
    %cst_89 = arith.constant dense<0.000000e+00> : vector<512x64xf32>
    %182 = tpu.matmul %155, %181, %cst_89 {dimension_numbers = #tpu.dot_dimension_numbers<[1], [0], [0], [1], [0, 0, 1, 1], [], []>} : vector<512x3xbf16>, vector<3x64xbf16>, vector<512x64xf32> -> vector<512x64xf32>
    %183 = arith.addf %180, %182 : vector<512x64xf32>
    %c21_90 = arith.constant 21 : index
    %c0_91 = arith.constant 0 : index
    %184 = vector.load %arg3[%c21_90, %c0_91] : memref<27x64xbf16, #tpu.memory_space<vmem>>, vector<3x64xbf16>
    %cst_92 = arith.constant dense<0.000000e+00> : vector<512x64xf32>
    %185 = tpu.matmul %158, %184, %cst_92 {dimension_numbers = #tpu.dot_dimension_numbers<[1], [0], [0], [1], [0, 0, 1, 1], [], []>} : vector<512x3xbf16>, vector<3x64xbf16>, vector<512x64xf32> -> vector<512x64xf32>
    %186 = arith.addf %183, %185 : vector<512x64xf32>
    %c24_93 = arith.constant 24 : index
    %c0_94 = arith.constant 0 : index
    %187 = vector.load %arg3[%c24_93, %c0_94] : memref<27x64xbf16, #tpu.memory_space<vmem>>, vector<3x64xbf16>
    %cst_95 = arith.constant dense<0.000000e+00> : vector<512x64xf32>
    %188 = tpu.matmul %161, %187, %cst_95 {dimension_numbers = #tpu.dot_dimension_numbers<[1], [0], [0], [1], [0, 0, 1, 1], [], []>} : vector<512x3xbf16>, vector<3x64xbf16>, vector<512x64xf32> -> vector<512x64xf32>
    %189 = arith.addf %186, %188 : vector<512x64xf32>
    %190 = vector.broadcast %0 : vector<1x64xf32> to vector<512x64xf32>
    %191 = arith.addf %189, %190 : vector<512x64xf32>
    %cst_96 = arith.constant 0.000000e+00 : f32
    %192 = vector.broadcast %cst_96 : f32 to vector<512x64xf32>
    %193 = arith.maximumf %191, %192 : vector<512x64xf32>
    %194 = vector.shape_cast %193 : vector<512x64xf32> to vector<2x8x32x64xf32>
    %c0_97 = arith.constant 0 : index
    %c16_98 = arith.constant 16 : index
    %c0_99 = arith.constant 0 : index
    %c0_100 = arith.constant 0 : index
    %195 = vector.load %arg5[%c0_97, %c16_98, %c0_99, %c0_100] : memref<2x32x32x64xf32, #tpu.memory_space<vmem>>, vector<2x8x32x64xf32>
    tpu.vector_store %arg5[%c0_97, %c16_98, %c0_99, %c0_100], %194 {strides = array<i32>} : memref<2x32x32x64xf32, #tpu.memory_space<vmem>>, vector<2x8x32x64xf32>,
    %c0_101 = arith.constant 0 : index
    %c24_102 = arith.constant 24 : index
    %c0_103 = arith.constant 0 : index
    %c0_104 = arith.constant 0 : index
    %196 = vector.load %arg2[%c0_101, %c24_102, %c0_103, %c0_104] : memref<2x34x34x3xf32, #tpu.memory_space<vmem>>, vector<2x10x34x3xf32>
    %197 = vector.extract_strided_slice %196 {offsets = [0, 0, 0, 0], sizes = [2, 8, 34, 3], strides = [1, 1, 1, 1]} : vector<2x10x34x3xf32> to vector<2x8x34x3xf32>
    %198 = vector.extract_strided_slice %197 {offsets = [0, 0, 0, 0], sizes = [2, 8, 32, 3], strides = [1, 1, 1, 1]} : vector<2x8x34x3xf32> to vector<2x8x32x3xf32>
    %199 = vector.shape_cast %198 : vector<2x8x32x3xf32> to vector<512x3xf32>
    %200 = arith.truncf %199 : vector<512x3xf32> to vector<512x3xbf16>
    %201 = vector.extract_strided_slice %197 {offsets = [0, 0, 1, 0], sizes = [2, 8, 32, 3], strides = [1, 1, 1, 1]} : vector<2x8x34x3xf32> to vector<2x8x32x3xf32>
    %202 = vector.shape_cast %201 : vector<2x8x32x3xf32> to vector<512x3xf32>
    %203 = arith.truncf %202 : vector<512x3xf32> to vector<512x3xbf16>
    %204 = vector.extract_strided_slice %197 {offsets = [0, 0, 2, 0], sizes = [2, 8, 32, 3], strides = [1, 1, 1, 1]} : vector<2x8x34x3xf32> to vector<2x8x32x3xf32>
    %205 = vector.shape_cast %204 : vector<2x8x32x3xf32> to vector<512x3xf32>
    %206 = arith.truncf %205 : vector<512x3xf32> to vector<512x3xbf16>
    %207 = vector.extract_strided_slice %196 {offsets = [0, 1, 0, 0], sizes = [2, 8, 34, 3], strides = [1, 1, 1, 1]} : vector<2x10x34x3xf32> to vector<2x8x34x3xf32>
    %208 = vector.extract_strided_slice %207 {offsets = [0, 0, 0, 0], sizes = [2, 8, 32, 3], strides = [1, 1, 1, 1]} : vector<2x8x34x3xf32> to vector<2x8x32x3xf32>
    %209 = vector.shape_cast %208 : vector<2x8x32x3xf32> to vector<512x3xf32>
    %210 = arith.truncf %209 : vector<512x3xf32> to vector<512x3xbf16>
    %211 = vector.extract_strided_slice %207 {offsets = [0, 0, 1, 0], sizes = [2, 8, 32, 3], strides = [1, 1, 1, 1]} : vector<2x8x34x3xf32> to vector<2x8x32x3xf32>
    %212 = vector.shape_cast %211 : vector<2x8x32x3xf32> to vector<512x3xf32>
    %213 = arith.truncf %212 : vector<512x3xf32> to vector<512x3xbf16>
    %214 = vector.extract_strided_slice %207 {offsets = [0, 0, 2, 0], sizes = [2, 8, 32, 3], strides = [1, 1, 1, 1]} : vector<2x8x34x3xf32> to vector<2x8x32x3xf32>
    %215 = vector.shape_cast %214 : vector<2x8x32x3xf32> to vector<512x3xf32>
    %216 = arith.truncf %215 : vector<512x3xf32> to vector<512x3xbf16>
    %217 = vector.extract_strided_slice %196 {offsets = [0, 2, 0, 0], sizes = [2, 8, 34, 3], strides = [1, 1, 1, 1]} : vector<2x10x34x3xf32> to vector<2x8x34x3xf32>
    %218 = vector.extract_strided_slice %217 {offsets = [0, 0, 0, 0], sizes = [2, 8, 32, 3], strides = [1, 1, 1, 1]} : vector<2x8x34x3xf32> to vector<2x8x32x3xf32>
    %219 = vector.shape_cast %218 : vector<2x8x32x3xf32> to vector<512x3xf32>
    %220 = arith.truncf %219 : vector<512x3xf32> to vector<512x3xbf16>
    %221 = vector.extract_strided_slice %217 {offsets = [0, 0, 1, 0], sizes = [2, 8, 32, 3], strides = [1, 1, 1, 1]} : vector<2x8x34x3xf32> to vector<2x8x32x3xf32>
    %222 = vector.shape_cast %221 : vector<2x8x32x3xf32> to vector<512x3xf32>
    %223 = arith.truncf %222 : vector<512x3xf32> to vector<512x3xbf16>
    %224 = vector.extract_strided_slice %217 {offsets = [0, 0, 2, 0], sizes = [2, 8, 32, 3], strides = [1, 1, 1, 1]} : vector<2x8x34x3xf32> to vector<2x8x32x3xf32>
    %225 = vector.shape_cast %224 : vector<2x8x32x3xf32> to vector<512x3xf32>
    %226 = arith.truncf %225 : vector<512x3xf32> to vector<512x3xbf16>
    %cst_105 = arith.constant 0.000000e+00 : f32
    %227 = vector.broadcast %cst_105 : f32 to vector<512x64xf32>
    %c0_106 = arith.constant 0 : index
    %c0_107 = arith.constant 0 : index
    %228 = vector.load %arg3[%c0_106, %c0_107] : memref<27x64xbf16, #tpu.memory_space<vmem>>, vector<3x64xbf16>
    %cst_108 = arith.constant dense<0.000000e+00> : vector<512x64xf32>
    %229 = tpu.matmul %200, %228, %cst_108 {dimension_numbers = #tpu.dot_dimension_numbers<[1], [0], [0], [1], [0, 0, 1, 1], [], []>} : vector<512x3xbf16>, vector<3x64xbf16>, vector<512x64xf32> -> vector<512x64xf32>
    %230 = arith.addf %227, %229 : vector<512x64xf32>
    %c3_109 = arith.constant 3 : index
    %c0_110 = arith.constant 0 : index
    %231 = vector.load %arg3[%c3_109, %c0_110] : memref<27x64xbf16, #tpu.memory_space<vmem>>, vector<3x64xbf16>
    %cst_111 = arith.constant dense<0.000000e+00> : vector<512x64xf32>
    %232 = tpu.matmul %203, %231, %cst_111 {dimension_numbers = #tpu.dot_dimension_numbers<[1], [0], [0], [1], [0, 0, 1, 1], [], []>} : vector<512x3xbf16>, vector<3x64xbf16>, vector<512x64xf32> -> vector<512x64xf32>
    %233 = arith.addf %230, %232 : vector<512x64xf32>
    %c6_112 = arith.constant 6 : index
    %c0_113 = arith.constant 0 : index
    %234 = vector.load %arg3[%c6_112, %c0_113] : memref<27x64xbf16, #tpu.memory_space<vmem>>, vector<3x64xbf16>
    %cst_114 = arith.constant dense<0.000000e+00> : vector<512x64xf32>
    %235 = tpu.matmul %206, %234, %cst_114 {dimension_numbers = #tpu.dot_dimension_numbers<[1], [0], [0], [1], [0, 0, 1, 1], [], []>} : vector<512x3xbf16>, vector<3x64xbf16>, vector<512x64xf32> -> vector<512x64xf32>
    %236 = arith.addf %233, %235 : vector<512x64xf32>
    %c9_115 = arith.constant 9 : index
    %c0_116 = arith.constant 0 : index
    %237 = vector.load %arg3[%c9_115, %c0_116] : memref<27x64xbf16, #tpu.memory_space<vmem>>, vector<3x64xbf16>
    %cst_117 = arith.constant dense<0.000000e+00> : vector<512x64xf32>
    %238 = tpu.matmul %210, %237, %cst_117 {dimension_numbers = #tpu.dot_dimension_numbers<[1], [0], [0], [1], [0, 0, 1, 1], [], []>} : vector<512x3xbf16>, vector<3x64xbf16>, vector<512x64xf32> -> vector<512x64xf32>
    %239 = arith.addf %236, %238 : vector<512x64xf32>
    %c12_118 = arith.constant 12 : index
    %c0_119 = arith.constant 0 : index
    %240 = vector.load %arg3[%c12_118, %c0_119] : memref<27x64xbf16, #tpu.memory_space<vmem>>, vector<3x64xbf16>
    %cst_120 = arith.constant dense<0.000000e+00> : vector<512x64xf32>
    %241 = tpu.matmul %213, %240, %cst_120 {dimension_numbers = #tpu.dot_dimension_numbers<[1], [0], [0], [1], [0, 0, 1, 1], [], []>} : vector<512x3xbf16>, vector<3x64xbf16>, vector<512x64xf32> -> vector<512x64xf32>
    %242 = arith.addf %239, %241 : vector<512x64xf32>
    %c15_121 = arith.constant 15 : index
    %c0_122 = arith.constant 0 : index
    %243 = vector.load %arg3[%c15_121, %c0_122] : memref<27x64xbf16, #tpu.memory_space<vmem>>, vector<3x64xbf16>
    %cst_123 = arith.constant dense<0.000000e+00> : vector<512x64xf32>
    %244 = tpu.matmul %216, %243, %cst_123 {dimension_numbers = #tpu.dot_dimension_numbers<[1], [0], [0], [1], [0, 0, 1, 1], [], []>} : vector<512x3xbf16>, vector<3x64xbf16>, vector<512x64xf32> -> vector<512x64xf32>
    %245 = arith.addf %242, %244 : vector<512x64xf32>
    %c18_124 = arith.constant 18 : index
    %c0_125 = arith.constant 0 : index
    %246 = vector.load %arg3[%c18_124, %c0_125] : memref<27x64xbf16, #tpu.memory_space<vmem>>, vector<3x64xbf16>
    %cst_126 = arith.constant dense<0.000000e+00> : vector<512x64xf32>
    %247 = tpu.matmul %220, %246, %cst_126 {dimension_numbers = #tpu.dot_dimension_numbers<[1], [0], [0], [1], [0, 0, 1, 1], [], []>} : vector<512x3xbf16>, vector<3x64xbf16>, vector<512x64xf32> -> vector<512x64xf32>
    %248 = arith.addf %245, %247 : vector<512x64xf32>
    %c21_127 = arith.constant 21 : index
    %c0_128 = arith.constant 0 : index
    %249 = vector.load %arg3[%c21_127, %c0_128] : memref<27x64xbf16, #tpu.memory_space<vmem>>, vector<3x64xbf16>
    %cst_129 = arith.constant dense<0.000000e+00> : vector<512x64xf32>
    %250 = tpu.matmul %223, %249, %cst_129 {dimension_numbers = #tpu.dot_dimension_numbers<[1], [0], [0], [1], [0, 0, 1, 1], [], []>} : vector<512x3xbf16>, vector<3x64xbf16>, vector<512x64xf32> -> vector<512x64xf32>
    %251 = arith.addf %248, %250 : vector<512x64xf32>
    %c24_130 = arith.constant 24 : index
    %c0_131 = arith.constant 0 : index
    %252 = vector.load %arg3[%c24_130, %c0_131] : memref<27x64xbf16, #tpu.memory_space<vmem>>, vector<3x64xbf16>
    %cst_132 = arith.constant dense<0.000000e+00> : vector<512x64xf32>
    %253 = tpu.matmul %226, %252, %cst_132 {dimension_numbers = #tpu.dot_dimension_numbers<[1], [0], [0], [1], [0, 0, 1, 1], [], []>} : vector<512x3xbf16>, vector<3x64xbf16>, vector<512x64xf32> -> vector<512x64xf32>
    %254 = arith.addf %251, %253 : vector<512x64xf32>
    %255 = vector.broadcast %0 : vector<1x64xf32> to vector<512x64xf32>
    %256 = arith.addf %254, %255 : vector<512x64xf32>
    %cst_133 = arith.constant 0.000000e+00 : f32
    %257 = vector.broadcast %cst_133 : f32 to vector<512x64xf32>
    %258 = arith.maximumf %256, %257 : vector<512x64xf32>
    %259 = vector.shape_cast %258 : vector<512x64xf32> to vector<2x8x32x64xf32>
    %c0_134 = arith.constant 0 : index
    %c24_135 = arith.constant 24 : index
    %c0_136 = arith.constant 0 : index
    %c0_137 = arith.constant 0 : index
    %260 = vector.load %arg5[%c0_134, %c24_135, %c0_136, %c0_137] : memref<2x32x32x64xf32, #tpu.memory_space<vmem>>, vector<2x8x32x64xf32>
    tpu.vector_store %arg5[%c0_134, %c24_135, %c0_136, %c0_137], %259 {strides = array<i32>} : memref<2x32x32x64xf32, #tpu.memory_space<vmem>>, vector<2x8x32x64xf32>,
    return
  }
  func.func @transform_0(%arg0: i32, %arg1: i32) -> (i32, i32, i32, i32) {
    %c0_i32 = arith.constant 0 : i32
    %c0_i32_0 = arith.constant 0 : i32
    %c0_i32_1 = arith.constant 0 : i32
    %c0_i32_2 = arith.constant 0 : i32
    return %arg1, %c0_i32, %c0_i32_0, %c0_i32_1 : i32, i32, i32, i32
  }
  func.func @transform_1(%arg0: i32, %arg1: i32) -> (i32, i32) {
    %c0_i32 = arith.constant 0 : i32
    %c0_i32_0 = arith.constant 0 : i32
    return %c0_i32, %arg0 : i32, i32
  }
  func.func @transform_2(%arg0: i32, %arg1: i32) -> (i32, i32) {
    %c0_i32 = arith.constant 0 : i32
    %c0_i32_0 = arith.constant 0 : i32
    return %c0_i32, %arg0 : i32, i32
  }
  func.func @transform_3(%arg0: i32, %arg1: i32) -> (i32, i32, i32, i32) {
    %c0_i32 = arith.constant 0 : i32
    %c0_i32_0 = arith.constant 0 : i32
    %c0_i32_1 = arith.constant 0 : i32
    return %arg1, %c0_i32, %c0_i32_0, %arg0 : i32, i32, i32, i32
  }
}

</mosaic_0001>

<bundles_post_ra>
// kernel: tpu_custom_call.1
= control target key start
LH: loop header
LB: loop body
LE: loop exit
PB: predicated region body
PF: predicated region fallthrough
CT: control target
= control target key end

     0   :  { %8 = vsyncpa [#allocation3], 0  ;;  %s31682_s0 = inlined_call_operand.hbm [shape: f32[2,34,34,3], index: 0, kind: input, shape index: {}]   ;;  %s31683_s1 = inlined_call_operand.hbm [shape: bf16[27,64], index: 1, kind: input, shape index: {}]   ;;  %s31684_s2 = inlined_call_operand.hbm [shape: f32[1,64], index: 2, kind: input, shape index: {}]   ;;  %s31685_s3 = inlined_call_operand.hbm [shape: f32[2,32,32,64], index: 3, kind: output, shape index: {}]  }
   0x1   :  { %9 = vsyncpa [#allocation6], 0 }
   0x2   :  { %10 = vsyncpa [#allocation4], 0  ;;  %s25490_s12 = smov [#allocation5]   ;;  %s25396_s16 = scalar_lea.hbm %s31683_s1, 256 }
   0x3   :  { %s28_s13 = sshll.u32 %s25490_s12, 4  ;;  %p25397_p0 = scmp.ne.s32.totalorder %s31683_s1, %s25396_s16  ;;  %s29_s13 = int_to_ptr.vmem [resolvable:$true] %s28_s13 }
   0x4   :  { %p25400_p1 = scmp.lt.u32.totalorder %s25396_s16, %s31683_s1 }
   0x6   :  { %p25402_p2 = pnand %p25400_p1, %p25397_p0 }
   0x8   :  { %25405 = shalt.err (!%p25402_p2)
}
   0x9   :  { %s25406_s21 = scalar_lea.vmem %s29_s13, 256  ;;  %p25411_p4 = scmp.lt.s32.totalorder %s29_s13, %s29_s13 }
   0xa   :  { %p25407_p3 = scmp.ne.s32.totalorder %s29_s13, %s25406_s21  ;;  %p25412_p5 = scmp.lt.s32.totalorder %s25406_s21, %s25406_s21 }
   0xc   :  { %p25413_p6 = por %p25412_p5, %p25411_p4 }
   0xe   :  { %p25414_p7 = pnand %p25413_p6, %p25407_p3 }
  0x10   :  { %25417 = shalt.err (!%p25414_p7)
}
  0x11   :  { %s25491_s22 = smov 64   ;;  %s25492_s23 = smov 4  }
  0x12   :  { %34 = dma.hbm_to_vmem [thread:$0]  %s31683_s1, 256, %s29_s13, [#allocation6], %s25491_s22, %s25491_s22, %s25492_s23  }
  0x13   :  { %s25493_s26 = smov [#allocation2]   ;;  %s25418_s30 = scalar_lea.hbm %s31682_s0, 43520 }
  0x14   :  { %s16_s27 = sshll.u32 %s25493_s26, 4  ;;  %p25419_p8 = scmp.ne.s32.totalorder %s31682_s0, %s25418_s30  ;;  %s17_s27 = int_to_ptr.vmem [resolvable:$true] %s16_s27 }
  0x15   :  { %p25422_p9 = scmp.lt.u32.totalorder %s25418_s30, %s31682_s0 }
  0x17   :  { %p25424_p10 = pnand %p25422_p9, %p25419_p8 }
  0x19   :  { %25427 = shalt.err (!%p25424_p10)
}
  0x1a   :  { %s25428_s8 = scalar_lea.vmem %s17_s27, 43520  ;;  %p25433_p12 = scmp.lt.s32.totalorder %s17_s27, %s17_s27 }
  0x1b   :  { %p25429_p11 = scmp.ne.s32.totalorder %s17_s27, %s25428_s8  ;;  %p25434_p13 = scmp.lt.s32.totalorder %s25428_s8, %s25428_s8 }
  0x1d   :  { %p25435_p0 = por %p25434_p13, %p25433_p12 }
  0x1f   :  { %p25436_p1 = pnand %p25435_p0, %p25429_p11 }
  0x21   :  { %25439 = shalt.err (!%p25436_p1)
}
  0x22   :  { %s25494_s1 = smov 128   ;;  %s25495_s9 = smov 8  }
  0x23   :  { %22 = dma.hbm_to_vmem [thread:$0]  %s31682_s0, 43520, %s17_s27, [#allocation3], %s25494_s1, %s25494_s1, %s25495_s9  }
  0x24   :  { %s25496_s12 = smov [#allocation7]   ;;  %s25440_s16 = scalar_lea.hbm %s31684_s2, 16 }
  0x25   :  { %s41_s13 = sshll.u32 %s25496_s12, 4  ;;  %p25441_p2 = scmp.ne.s32.totalorder %s31684_s2, %s25440_s16  ;;  %s42_s13 = int_to_ptr.vmem [resolvable:$true] %s41_s13 }
  0x26   :  { %p25444_p3 = scmp.lt.u32.totalorder %s25440_s16, %s31684_s2 }
  0x28   :  { %p25446_p4 = pnand %p25444_p3, %p25441_p2 }
  0x2a   :  { %25449 = shalt.err (!%p25446_p4)
}
  0x2b   :  { %s25450_s21 = scalar_lea.vmem %s42_s13, 16  ;;  %s25454_s0 = scalar_lea.vmem %s42_s13, 32 }
  0x2c   :  { %p25451_p5 = scmp.ne.s32.totalorder %s42_s13, %s25450_s21  ;;  %p25455_p6 = scmp.lt.s32.totalorder %s42_s13, %s42_s13 }
  0x2d   :  { %p25456_p7 = scmp.lt.s32.totalorder %s25454_s0, %s25450_s21 }
  0x2f   :  { %p25457_p8 = por %p25456_p7, %p25455_p6 }
  0x31   :  { %p25458_p9 = pnand %p25457_p8, %p25451_p5 }
  0x33   :  { %25461 = shalt.err (!%p25458_p9)
}
  0x34   :  { %44 = dma.hbm_to_vmem [thread:$0]  %s31684_s2, 16, %s42_s13, [#allocation6]  }
  0x35   :  { %25484 = dma.done.wait [#allocation3], 43520  }
  0x36   :  { %25485 = vsyncadd [#allocation3], 4294923776 }
  0x37   :  { %25486 = dma.done.wait [#allocation6], 272  }
  0x38   :  { %25487 = vsyncadd [#allocation6], 4294967024  ;;  %vm1008_vm0 = vcmask 1040384   ;;  %vm1009_vm1 = vcmask 1041408   ;;  %v25497_v0 = vmov 65535   ;;  %vm268_vm2 = vcmask 1046528  }
  0x39   :  { %v1010_v1 = vsel %vm1008_vm0, 4294967295, %v25497_v0  ;;  %vm509_vm3 = vcmask 1045504   ;;  %v25048_v2 = vld [vmem:[#allocation5] ss:$0 sps:$4 sm:$0x66]   ;;  %v57_v5 = vld [vmem:[#allocation2 + $0x8] sm:$0xff] }
  0x3a   :  { %v56_v3 = vld [vmem:[#allocation2] sm:$0xff]  ;;  %v904_v6 = vshrl.u32 %v25048_v2, 16  ;;  %v907_v7 = vshll.u32 %v25048_v2, 16  ;;  %v25558_v8 = vld [vmem:[#allocation2 + $0x10] sm:$0xff]  ;;  %v25560_v9 = vld [vmem:[#allocation2 + $0x18] sm:$0xff]  ;;  %v270_v11 = vrot.slane %v57_v5, 1 }
  0x3b   :  { %v25049_v4 = vld [vmem:[#allocation5] ss:$0 sps:$4 sm:$0x66]   ;;  %v269_v10 = vrot.slane %v56_v3, 1  ;;  %v272_v15 = vrot.slane %v25558_v8, 1  ;;  %vm911_vm4 = vcmask 23552  }
  0x3c   :  { %v5455_v12 = vshrl.u32 %v25049_v4, 16  ;;  %v5458_v13 = vshll.u32 %v25049_v4, 16  ;;  %v906_v16 = vrot.slane %v904_v6, 1  ;;  %v909_v17 = vrot.slane %v907_v7, 2  ;;  %v4609_v19 = vld [vmem:[#allocation2 + $0x140] sm:$0xff]  ;;  %v4610_v20 = vld [vmem:[#allocation2 + $0x148] sm:$0xff] }
  0x3d   :  { %v271_v18 = vsel %vm268_vm2, %v269_v10, %v270_v11  ;;  %v25567_v21 = vsel %vm1009_vm1, %v1010_v1, 0  ;;  %v273_v24 = vsel %vm268_vm2, %v270_v11, %v272_v15  ;;  %v25570_v25 = vld [vmem:[#allocation2 + $0x150] sm:$0xff]  ;;  %v31687_v28 = vrot.slane %v25558_v8, 2  ;;  %v25574_v30 = vld [vmem:[#allocation2 + $0x158] sm:$0xff]  ;;  %v60_v35 = vld [vmem:[#allocation2 + $0x20] sm:$0x3] }
  0x3e   :  { %32439 = vst [vmem:[#allocation12_spill] sm:$0xff] %v25567_v21  ;;  %v5457_v22 = vrot.slane %v5455_v12, 1  ;;  %v5460_v23 = vrot.slane %v5458_v13, 2  ;;  %v910_v26 = vor.u32 %v909_v17, %v906_v16  ;;  %v477_v27 = vpack.c.bf16 %v273_v24, %v271_v18  ;;  %v898_v39 = vld [vmem:[#allocation5] sm:$0x3]  ;;  %v61_v52 = vld [vmem:[#allocation2 + $0x28] sm:$0xff] }
  0x3f   :  { %v31689_v29 = vrot.slane %v25560_v9, 2  ;;  %v4821_v33 = vrot.slane %v4609_v19, 1  ;;  %v4822_v34 = vrot.slane %v4610_v20, 1  ;;  %v4824_v38 = vrot.slane %v25570_v25, 1  ;;  %v4613_v43 = vld [vmem:[#allocation2 + $0x160] sm:$0x3] }
  0x40   :  { %v5461_v31 = vor.u32 %v5460_v23, %v5457_v22  ;;  %v1013_v36 = vand.u32 %v25567_v21, %v910_v26  ;;  %20617 = vmatprep.mubr.msk.bf16.mxu0 %vm911_vm4, %v477_v27  ;;  %v31686_v42 = vrot.slane %v25570_v25, 2  ;;  %v31688_v45 = vrot.slane %v25574_v30, 2  ;;  %v5449_v48 = vld [vmem:[#allocation5] sm:$0x3]  ;;  %v62_v53 = vld [vmem:[#allocation2 + $0x30] sm:$0xff]  ;;  %v63_v54 = vld [vmem:[#allocation2 + $0x38] sm:$0xff] }
  0x41   :  { %v25584_v37 = vsel %vm509_vm3, %v31687_v28, %v31689_v29  ;;  %v4823_v41 = vsel %vm268_vm2, %v4821_v33, %v4822_v34  ;;  %v4825_v44 = vsel %vm268_vm2, %v4822_v34, %v4824_v38  ;;  %v274_v46 = vrot.slane %v25560_v9, 1  ;;  %v4614_v59 = vld [vmem:[#allocation2 + $0x168] sm:$0xff]  ;;  %v4615_v60 = vld [vmem:[#allocation2 + $0x170] sm:$0xff]  ;;  %v4616_v61 = vld [vmem:[#allocation2 + $0x178] sm:$0xff]  ;;  %s25498_s2 = smov [#allocation8]  }
  0x42   :  { %32440 = vst [vmem:[#allocation13_spill] sm:$0xff] %v25584_v37  ;;  %v5559_v40 = vand.u32 %v5461_v31, %v25567_v21  ;;  %20615 = vmatprep.subr.bf16.mxu0 %v1013_v36  ;;  %v276_v47 = vrot.slane %v60_v35, 1  ;;  %v5029_v49 = vpack.c.bf16 %v4825_v44, %v4823_v41  ;;  %v1401_v50 = vand.u32 %v25567_v21, %v898_v39  ;;  %v64_v1 = vld [vmem:[#allocation2 + $0x40] sm:$0xff]  ;;  %v65_v2 = vld [vmem:[#allocation2 + $0x48] sm:$0x3]  ;;  %v66_v20 = vld [vmem:[#allocation2 + $0x50] sm:$0xff] }
  0x43   :  { %20616 = vmatpush3.bf16.msra.mxu0 %v1013_v36  ;;  %v4826_v51 = vrot.slane %v25574_v30, 1  ;;  %v25601_v55 = vsel %vm509_vm3, %v31686_v42, %v31688_v45  ;;  %v275_v56 = vsel %vm268_vm2, %v272_v15, %v274_v46  ;;  %v4828_v58 = vrot.slane %v4613_v43, 1  ;;  %v4617_v7 = vld [vmem:[#allocation2 + $0x180] sm:$0xff]  ;;  %v4618_v15 = vld [vmem:[#allocation2 + $0x188] sm:$0x3]  ;;  %v67_v22 = vld [vmem:[#allocation2 + $0x58] sm:$0xff] }
  0x44   :  { %21209 = vmatprep.subr.bf16.mxu1 %v5559_v40  ;;  %32441 = vst [vmem:[#allocation14_spill] sm:$0xff] %v25601_v55  ;;  %v277_v57 = vsel %vm268_vm2, %v274_v46, %v276_v47  ;;  %21211 = vmatprep.mubr.msk.bf16.mxu1 %vm911_vm4, %v5029_v49  ;;  %v5947_v0 = vand.u32 %v5449_v48, %v25567_v21  ;;  %v278_v4 = vrot.slane %v61_v52, 1  ;;  %v279_v5 = vrot.slane %v62_v53, 1  ;;  %v68_v31 = vld [vmem:[#allocation2 + $0x60] sm:$0xff]  ;;  %v4619_v33 = vld [vmem:[#allocation2 + $0x190] sm:$0xff]  ;;  %v4620_v34 = vld [vmem:[#allocation2 + $0x198] sm:$0xff] }
  0x45   :  { %21210 = vmatpush3.bf16.msra.mxu1 %v5559_v40  ;;  %v478_v62 = vpack.c.bf16 %v277_v57, %v275_v56  ;;  %20681 = vmatprep.subr.bf16.mxu0 %v1401_v50  ;;  %v4827_v63 = vsel %vm268_vm2, %v4824_v38, %v4826_v51  ;;  %v4829_v3 = vsel %vm268_vm2, %v4826_v51, %v4828_v58  ;;  %v281_v6 = vrot.slane %v63_v54, 1  ;;  %v4621_v40 = vld [vmem:[#allocation2 + $0x1a0] sm:$0xff]  ;;  %v69_v41 = vld [vmem:[#allocation2 + $0x68] sm:$0xff]  ;;  %v70_v48 = vld [vmem:[#allocation2 + $0x70] sm:$0x3]  ;;  %s18233_s24 = sshll.u32 %s25498_s2, 4  ;;  %s18234_s24 = int_to_ptr.vmem [resolvable:$true] %s18233_s24 }
  0x46   :  { %v5030_v10 = vpack.c.bf16 %v4829_v3, %v4827_v63  ;;  %21275 = vmatprep.subr.bf16.mxu1 %v5947_v0  ;;  %v4830_v11 = vrot.slane %v4614_v59, 1  ;;  %v4831_v12 = vrot.slane %v4615_v60, 1  ;;  %v4833_v13 = vrot.slane %v4616_v61, 1  ;;  %v4622_v49 = vld [vmem:[#allocation2 + $0x1a8] sm:$0xff]  ;;  %v4623_v54 = vld [vmem:[#allocation2 + $0x1b0] sm:$0x3]  ;;  %p25467_p11 = scmp.lt.s32.totalorder %s18234_s24, %s18234_s24 }
  0x47   :  { %20618 = vmatmul.mubr.msk.bf16.vlgmr.msra.gmra.mrb[0].mxu0 %vm911_vm4, %v478_v62  ;;  %v280_v16 = vsel %vm268_vm2, %v278_v4, %v279_v5  ;;  %v282_v17 = vsel %vm268_vm2, %v279_v5, %v281_v6  ;;  %v283_v18 = vrot.slane %v64_v1, 1  ;;  %v285_v19 = vrot.slane %v65_v2, 1  ;;  %v71_v60 = vld [vmem:[#allocation2 + $0x78] sm:$0xff]  ;;  %v72_v1 = vld [vmem:[#allocation2 + $0x80] sm:$0xff]  ;;  %v73_v2 = vld [vmem:[#allocation2 + $0x88] sm:$0xff]  ;;  %s25462_s25 = scalar_lea.vmem %s18234_s24, 32768 }
  0x48   :  { %20682 = vmatpush3.bf16.msra.mxu0 %v1401_v50  ;;  %21212 = vmatmul.mubr.msk.bf16.vlgmr.msra.gmra.mrb[0].mxu1 %vm911_vm4, %v5030_v10  ;;  %v25613_v23 = vpack.c.bf16 %v282_v17, %v280_v16  ;;  %v4832_v24 = vsel %vm268_vm2, %v4830_v11, %v4831_v12  ;;  %v4834_v26 = vsel %vm268_vm2, %v4831_v12, %v4833_v13  ;;  %v4835_v27 = vrot.slane %v4617_v7, 1  ;;  %v4625_v7 = vld [vmem:[#allocation2 + $0x1c0] sm:$0xff]  ;;  %v4626_v10 = vld [vmem:[#allocation2 + $0x1c8] sm:$0xff]  ;;  %v74_v16 = vld [vmem:[#allocation2 + $0x90] sm:$0xff]  ;;  %p25463_p10 = scmp.ne.s32.totalorder %s18234_s24, %s25462_s25  ;;  %p25468_p12 = scmp.lt.s32.totalorder %s25462_s25, %s25462_s25 }
  0x49   :  { %21276 = vmatpush3.bf16.msra.mxu1 %v5947_v0  ;;  %v25617_v35 = vpack.c.bf16 %v4834_v26, %v4832_v24  ;;  %v284_v36 = vsel %vm268_vm2, %v281_v6, %v283_v18  ;;  %v286_v38 = vsel %vm268_vm2, %v283_v18, %v285_v19  ;;  %v4837_v39 = vrot.slane %v4618_v15, 1  ;;  %v4624_v6 = vld [vmem:[#allocation2 + $0x1b8] sm:$0xff]  ;;  %v25774_v28 = vld [vmem:[#allocation2 + $0x260] sm:$0xff]  ;;  %v25776_v32 = vld [vmem:[#allocation2 + $0x268] sm:$0xff] }
  0x4a   :  { %32442 = vst [vmem:[#allocation15_spill] sm:$0xff] %v25613_v23  ;;  %20621 = vmatprep.mubr.msk.bf16.mxu0 %vm911_vm4, %v25613_v23  ;;  %v25623_v43 = vpack.c.bf16 %v286_v38, %v284_v36  ;;  %v4836_v44 = vsel %vm268_vm2, %v4833_v13, %v4835_v27  ;;  %v287_v46 = vrot.slane %v66_v20, 1  ;;  %v288_v47 = vrot.slane %v67_v22, 1  ;;  %v75_v20 = vld [vmem:[#allocation2 + $0x98] sm:$0x3]  ;;  %p25469_p13 = por %p25468_p12, %p25467_p11 }
  0x4b   :  { %32443 = vst [vmem:[#allocation16_spill] sm:$0xff] %v25617_v35  ;;  %21215 = vmatprep.mubr.msk.bf16.mxu1 %vm911_vm4, %v25617_v35  ;;  %v4838_v50 = vsel %vm268_vm2, %v4835_v27, %v4837_v39  ;;  %v290_v51 = vrot.slane %v68_v31, 1  ;;  %v4839_v52 = vrot.slane %v4619_v33, 1  ;;  %v4840_v53 = vrot.slane %v4620_v34, 1  ;;  %v4627_v31 = vld [vmem:[#allocation2 + $0x1d0] sm:$0xff] }
  0x4c   :  { %32444 = vst [vmem:[#allocation17_spill] sm:$0xff] %v25623_v43  ;;  %v25629_v56 = vpack.c.bf16 %v4838_v50, %v4836_v44  ;;  %v289_v57 = vsel %vm268_vm2, %v287_v46, %v288_v47  ;;  %v4842_v58 = vrot.slane %v4621_v40, 1  ;;  %v292_v59 = vrot.slane %v69_v41, 1  ;;  %v4628_v39 = vld [vmem:[#allocation2 + $0x1d8] sm:$0x3]  ;;  %v76_v40 = vld [vmem:[#allocation2 + $0xa0] sm:$0xff]  ;;  %p25470_p0 = pnand %p25469_p13, %p25463_p10 }
  0x4d   :  { %v291_v61 = vsel %vm268_vm2, %v288_v47, %v290_v51  ;;  %v4841_v62 = vsel %vm268_vm2, %v4839_v52, %v4840_v53  ;;  %v294_v63 = vrot.slane %v70_v48, 1  ;;  %v4844_v0 = vrot.slane %v4622_v49, 1  ;;  %v77_v41 = vld [vmem:[#allocation2 + $0xa8] sm:$0xff]  ;;  %v78_v49 = vld [vmem:[#allocation2 + $0xb0] sm:$0xff]  ;;  %v4629_v50 = vld [vmem:[#allocation2 + $0x1e0] sm:$0xff] }
  0x4e   :  { %32445 = vst [vmem:[#allocation18_spill] sm:$0xff] %v25629_v56  ;;  %v25636_v3 = vpack.c.bf16 %v291_v61, %v289_v57  ;;  %v4843_v4 = vsel %vm268_vm2, %v4840_v53, %v4842_v58  ;;  %v4846_v5 = vrot.slane %v4623_v54, 1  ;;  %v293_v12 = vsel %vm268_vm2, %v290_v51, %v292_v59  ;;  %v4630_v51 = vld [vmem:[#allocation2 + $0x1e8] sm:$0xff]  ;;  %v4631_v54 = vld [vmem:[#allocation2 + $0x1f0] sm:$0xff] }
  0x4f   :  { %20622 = vmatmul.mubr.msk.bf16.gmra.mrb[4].mxu0 %vm911_vm4, %v25623_v43  ;;  %v25639_v11 = vpack.c.bf16 %v4843_v4, %v4841_v62  ;;  %v295_v13 = vsel %vm268_vm2, %v292_v59, %v294_v63  ;;  %v296_v15 = vrot.slane %v71_v60, 1  ;;  %v4845_v17 = vsel %vm268_vm2, %v4842_v58, %v4844_v0 }
  0x50   :  { %32446 = vst [vmem:[#allocation19_spill] sm:$0xff] %v25636_v3  ;;  %21216 = vmatmul.mubr.msk.bf16.gmra.mrb[4].mxu1 %vm911_vm4, %v25629_v56  ;;  %20625 = vmatprep.mubr.msk.bf16.mxu0 %vm911_vm4, %v25636_v3  ;;  %v297_v18 = vrot.slane %v72_v1, 1  ;;  %v299_v19 = vrot.slane %v73_v2, 1  ;;  %v4847_v22 = vsel %vm268_vm2, %v4844_v0, %v4846_v5  ;;  %v4848_v24 = vrot.slane %v4624_v6, 1  ;;  %v79_v6 = vld [vmem:[#allocation2 + $0xb8] sm:$0xff]  ;;  %v25870_v3 = vld [vmem:[#allocation2 + $0x6c8] sm:$0xff] }
  0x51   :  { %32447 = vst [vmem:[#allocation20_spill] sm:$0xff] %v25639_v11  ;;  %21219 = vmatprep.mubr.msk.bf16.mxu1 %vm911_vm4, %v25639_v11  ;;  %v4849_v26 = vrot.slane %v4625_v7, 1  ;;  %v4851_v27 = vrot.slane %v4626_v10, 1  ;;  %v25651_v33 = vpack.c.bf16 %v295_v13, %v293_v12  ;;  %v301_v38 = vrot.slane %v74_v16, 1  ;;  %v80_v7 = vld [vmem:[#allocation2 + $0xc0] sm:$0x3] }
  0x52   :  { %v298_v34 = vsel %vm268_vm2, %v296_v15, %v297_v18  ;;  %v300_v36 = vsel %vm268_vm2, %v297_v18, %v299_v19  ;;  %v303_v48 = vrot.slane %v75_v20, 1  ;;  %v25659_v52 = vpack.c.bf16 %v4847_v22, %v4845_v17  ;;  %v81_v13 = vld [vmem:[#allocation2 + $0xc8] sm:$0xff]  ;;  %v82_v15 = vld [vmem:[#allocation2 + $0xd0] sm:$0xff]  ;;  %v83_v16 = vld [vmem:[#allocation2 + $0xd8] sm:$0xff]  ;;  %32475 = vst [vmem:[#allocation48_spill] sm:$0xff] %v25870_v3 }
  0x53   :  { %32448 = vst [vmem:[#allocation21_spill] sm:$0xff] %v25651_v33  ;;  %v25655_v44 = vpack.c.bf16 %v300_v36, %v298_v34  ;;  %v4850_v46 = vsel %vm268_vm2, %v4848_v24, %v4849_v26  ;;  %v4852_v47 = vsel %vm268_vm2, %v4849_v26, %v4851_v27  ;;  %v4853_v53 = vrot.slane %v4627_v31, 1  ;;  %v4632_v20 = vld [vmem:[#allocation2 + $0x1f8] sm:$0xff]  ;;  %v4633_v22 = vld [vmem:[#allocation2 + $0x200] sm:$0x3]  ;;  %v25683_v34 = vld [vmem:[#allocation2 + $0x208] sm:$0xff] }
  0x54   :  { %32450 = vst [vmem:[#allocation23_spill] sm:$0xff] %v25659_v52  ;;  %v25661_v57 = vpack.c.bf16 %v4852_v47, %v4850_v46  ;;  %v4855_v58 = vrot.slane %v4628_v39, 1  ;;  %v305_v59 = vrot.slane %v76_v40, 1  ;;  %v306_v60 = vrot.slane %v77_v41, 1  ;;  %v4636_v36 = vld [vmem:[#allocation2 + $0x218] sm:$0xff] }
  0x55   :  { %32449 = vst [vmem:[#allocation22_spill] sm:$0xff] %v25655_v44  ;;  %v308_v61 = vrot.slane %v78_v49, 1  ;;  %v4857_v62 = vrot.slane %v4629_v50, 1  ;;  %v4858_v63 = vrot.slane %v4630_v51, 1  ;;  %v302_v0 = vsel %vm268_vm2, %v299_v19, %v301_v38  ;;  %v4663_v11 = vld [vmem:[#allocation2 + $0x6b0] sm:$0x3] }
  0x56   :  { %32451 = vst [vmem:[#allocation24_spill] sm:$0xff] %v25661_v57  ;;  %v304_v1 = vsel %vm268_vm2, %v301_v38, %v303_v48  ;;  %v4860_v2 = vrot.slane %v4631_v54, 1  ;;  %v307_v4 = vsel %vm268_vm2, %v305_v59, %v306_v60  ;;  %v4854_v10 = vsel %vm268_vm2, %v4851_v27, %v4853_v53  ;;  %v25685_v27 = vld [vmem:[#allocation2 + $0x210] sm:$0xff]  ;;  %v25857_v56 = vld [vmem:[#allocation2 + $0x6b8] sm:$0xff] }
  0x57   :  { %20626 = vmatmul.mubr.msk.bf16.gmra.mrb[8].mxu0 %vm911_vm4, %v25651_v33  ;;  %v309_v5 = vsel %vm268_vm2, %v306_v60, %v308_v61  ;;  %v4856_v12 = vsel %vm268_vm2, %v4853_v53, %v4855_v58  ;;  %v25677_v17 = vpack.c.bf16 %v304_v1, %v302_v0  ;;  %v4859_v18 = vsel %vm268_vm2, %v4857_v62, %v4858_v63  ;;  %v25703_v60 = vld [vmem:[#allocation2 + $0xe0] sm:$0xff]  ;;  %v85_v62 = vld [vmem:[#allocation2 + $0xe8] sm:$0x3]  ;;  %v25711_v1 = vld [vmem:[#allocation2 + $0xf8] sm:$0xff] }
  0x58   :  { %20629 = vmatprep.mubr.msk.bf16.mxu0 %vm911_vm4, %v25655_v44  ;;  %21220 = vmatmul.mubr.msk.bf16.gmra.mrb[8].mxu1 %vm911_vm4, %v25659_v52  ;;  %v4861_v19 = vsel %vm268_vm2, %v4858_v63, %v4860_v2  ;;  %v25681_v24 = vpack.c.bf16 %v309_v5, %v307_v4  ;;  %v310_v26 = vrot.slane %v79_v6, 1  ;;  %v312_v31 = vrot.slane %v80_v7, 1  ;;  %v25713_v4 = vld [vmem:[#allocation2 + $0x100] sm:$0xff]  ;;  %v25849_v52 = vld [vmem:[#allocation2 + $0x588] sm:$0xff]  ;;  %32472 = vst [vmem:[#allocation45_spill] sm:$0xff] %v25857_v56 }
  0x59   :  { %21223 = vmatprep.mubr.msk.bf16.mxu1 %vm911_vm4, %v25661_v57  ;;  %32452 = vst [vmem:[#allocation25_spill] sm:$0xff] %v25677_v17  ;;  %v25687_v38 = vpack.c.bf16 %v4856_v12, %v4854_v10  ;;  %v314_v39 = vrot.slane %v81_v13, 1  ;;  %v315_v40 = vrot.slane %v82_v15, 1  ;;  %v317_v41 = vrot.slane %v83_v16, 1  ;;  %v25719_v10 = vld [vmem:[#allocation2 + $0x220] sm:$0xff]  ;;  %v25724_v16 = vld [vmem:[#allocation2 + $0x230] sm:$0xff] }
  0x5a   :  { %32453 = vst [vmem:[#allocation26_spill] sm:$0xff] %v25681_v24  ;;  %v25689_v46 = vpack.c.bf16 %v4861_v19, %v4859_v18  ;;  %v4862_v47 = vrot.slane %v4632_v20, 1  ;;  %v4864_v48 = vrot.slane %v4633_v22, 1  ;;  %v4866_v49 = vrot.slane %v25683_v34, 1  ;;  %v4638_v12 = vld [vmem:[#allocation2 + $0x228] sm:$0x3] }
  0x5b   :  { %32454 = vst [vmem:[#allocation27_spill] sm:$0xff] %v25687_v38  ;;  %v4867_v50 = vrot.slane %v25685_v27, 1  ;;  %v4869_v51 = vrot.slane %v4636_v36, 1  ;;  %v311_v53 = vsel %vm268_vm2, %v308_v61, %v310_v26  ;;  %v313_v54 = vsel %vm268_vm2, %v310_v26, %v312_v31  ;;  %v25709_v61 = vld [vmem:[#allocation2 + $0xf0] sm:$0xff]  ;;  %v25726_v18 = vld [vmem:[#allocation2 + $0x238] sm:$0xff]  ;;  %v25728_v19 = vld [vmem:[#allocation2 + $0x240] sm:$0xff] }
  0x5c   :  { %32455 = vst [vmem:[#allocation28_spill] sm:$0xff] %v25689_v46  ;;  %v316_v58 = vsel %vm268_vm2, %v314_v39, %v315_v40  ;;  %v318_v59 = vsel %vm268_vm2, %v315_v40, %v317_v41  ;;  %v4863_v63 = vsel %vm268_vm2, %v4860_v2, %v4862_v47  ;;  %v4865_v0 = vsel %vm268_vm2, %v4862_v47, %v4864_v48  ;;  %v25841_v57 = vld [vmem:[#allocation2 + $0x578] sm:$0xff]  ;;  %v25855_v33 = vld [vmem:[#allocation2 + $0x6a8] sm:$0xff] }
  0x5d   :  { %v25715_v5 = vpack.c.bf16 %v313_v54, %v311_v53  ;;  %v4868_v6 = vsel %vm268_vm2, %v4866_v49, %v4867_v50  ;;  %v4870_v7 = vsel %vm268_vm2, %v4867_v50, %v4869_v51  ;;  %v25721_v13 = vpack.c.bf16 %v318_v59, %v316_v58  ;;  %v25751_v59 = vld [vmem:[#allocation2 + $0x108] sm:$0xff]  ;;  %32470 = vst [vmem:[#allocation43_spill] sm:$0xff] %v25849_v52 }
  0x5e   :  { %v319_v2 = vrot.slane %v25703_v60, 1  ;;  %v321_v15 = vrot.slane %v85_v62, 1  ;;  %v25730_v20 = vpack.c.bf16 %v4865_v0, %v4863_v63  ;;  %v323_v22 = vrot.slane %v25709_v61, 1  ;;  %v90_v62 = vld [vmem:[#allocation2 + $0x110] sm:$0x3]  ;;  %32471 = vst [vmem:[#allocation44_spill] sm:$0xff] %v25855_v33 }
  0x5f   :  { %20630 = vmatmul.mubr.msk.bf16.gmra.mrb[12].mxu0 %vm911_vm4, %v25677_v17  ;;  %32456 = vst [vmem:[#allocation29_spill] sm:$0xff] %v25715_v5  ;;  %32457 = vst [vmem:[#allocation30_spill] sm:$0xff] %v25721_v13  ;;  %v324_v26 = vrot.slane %v25711_v1, 1  ;;  %v326_v31 = vrot.slane %v25713_v4, 1  ;;  %v25735_v36 = vpack.c.bf16 %v4870_v7, %v4868_v6  ;;  %v4871_v39 = vrot.slane %v25719_v10, 1  ;;  %v25759_v6 = vld [vmem:[#allocation2 + $0x120] sm:$0xff] }
  0x60   :  { %20633 = vmatprep.mubr.msk.bf16.mxu0 %vm911_vm4, %v25681_v24  ;;  %21224 = vmatmul.mubr.msk.bf16.gmra.mrb[12].mxu1 %vm911_vm4, %v25687_v38  ;;  %32458 = vst [vmem:[#allocation31_spill] sm:$0xff] %v25730_v20  ;;  %v4873_v40 = vrot.slane %v4638_v12, 1  ;;  %v4875_v47 = vrot.slane %v25724_v16, 1  ;;  %v4876_v48 = vrot.slane %v25726_v18, 1  ;;  %v4878_v49 = vrot.slane %v25728_v19, 1  ;;  %v25761_v7 = vld [vmem:[#allocation2 + $0x128] sm:$0xff] }
  0x61   :  { %21227 = vmatprep.mubr.msk.bf16.mxu1 %vm911_vm4, %v25689_v46  ;;  %32459 = vst [vmem:[#allocation32_spill] sm:$0xff] %v25735_v36  ;;  %v320_v50 = vsel %vm268_vm2, %v317_v41, %v319_v2  ;;  %v322_v53 = vsel %vm268_vm2, %v319_v2, %v321_v15  ;;  %v325_v54 = vsel %vm268_vm2, %v323_v22, %v324_v26  ;;  %v25757_v41 = vld [vmem:[#allocation2 + $0x118] sm:$0xff]  ;;  %v25767_v22 = vld [vmem:[#allocation2 + $0x248] sm:$0xff]  ;;  %v4885_v45 = vrot.slane %v25774_v28, 1  ;;  %v25825_v38 = vld [vmem:[#allocation2 + $0x6a0] sm:$0xff] }
  0x62   :  { %v327_v58 = vsel %vm268_vm2, %v324_v26, %v326_v31  ;;  %v4872_v63 = vsel %vm268_vm2, %v4869_v51, %v4871_v39  ;;  %v4874_v0 = vsel %vm268_vm2, %v4871_v39, %v4873_v40  ;;  %v25763_v12 = vpack.c.bf16 %v322_v53, %v320_v50  ;;  %v4643_v26 = vld [vmem:[#allocation2 + $0x250] sm:$0x3]  ;;  %v25772_v40 = vld [vmem:[#allocation2 + $0x258] sm:$0xff]  ;;  %32466 = vst [vmem:[#allocation39_spill] sm:$0xff] %v25825_v38 }
  0x63   :  { %v4877_v2 = vsel %vm268_vm2, %v4875_v47, %v4876_v48  ;;  %v4879_v15 = vsel %vm268_vm2, %v4876_v48, %v4878_v49  ;;  %v25769_v42 = vpack.c.bf16 %v327_v58, %v325_v54  ;;  %v328_v51 = vrot.slane %v25751_v59, 1  ;;  %v25819_v46 = vld [vmem:[#allocation2 + $0x698] sm:$0xff] }
  0x64   :  { %32460 = vst [vmem:[#allocation33_spill] sm:$0xff] %v25763_v12  ;;  %v330_v39 = vrot.slane %v90_v62, 1  ;;  %v25778_v50 = vpack.c.bf16 %v4874_v0, %v4872_v63  ;;  %v332_v47 = vrot.slane %v25757_v41, 1  ;;  %v333_v48 = vrot.slane %v25759_v6, 1 }
  0x65   :  { %32461 = vst [vmem:[#allocation34_spill] sm:$0xff] %v25769_v42  ;;  %v335_v53 = vrot.slane %v25761_v7, 1  ;;  %v25783_v14 = vpack.c.bf16 %v4879_v15, %v4877_v2  ;;  %v4880_v54 = vrot.slane %v25767_v22, 1  ;;  %v4882_v58 = vrot.slane %v4643_v26, 1  ;;  %v25795_v15 = vld [vmem:[#allocation2 + $0x130] sm:$0xff] }
  0x66   :  { %32462 = vst [vmem:[#allocation35_spill] sm:$0xff] %v25778_v50  ;;  %v4884_v62 = vrot.slane %v25772_v40, 1  ;;  %v4887_v63 = vrot.slane %v25776_v32, 1  ;;  %v329_v0 = vsel %vm268_vm2, %v326_v31, %v328_v51  ;;  %v331_v2 = vsel %vm268_vm2, %v328_v51, %v330_v39  ;;  %v4648_v39 = vld [vmem:[#allocation2 + $0x278] sm:$0x3] }
  0x67   :  { %20634 = vmatmul.mubr.msk.bf16.gmra.mrb[16].mxu0 %vm911_vm4, %v25715_v5  ;;  %32463 = vst [vmem:[#allocation36_spill] sm:$0xff] %v25783_v14  ;;  %v334_v26 = vsel %vm268_vm2, %v332_v47, %v333_v48  ;;  %v336_v29 = vsel %vm268_vm2, %v333_v48, %v335_v53  ;;  %v4881_v31 = vsel %vm268_vm2, %v4878_v49, %v4880_v54  ;;  %v25817_v5 = vld [vmem:[#allocation2 + $0x690] sm:$0xff]  ;;  %v337_v49 = vrot.slane %v25795_v15, 1 }
  0x68   :  { %20637 = vmatprep.mubr.msk.bf16.mxu0 %vm911_vm4, %v25721_v13  ;;  %21228 = vmatmul.mubr.msk.bf16.gmra.mrb[16].mxu1 %vm911_vm4, %v25730_v20  ;;  %v25803_v20 = vld [vmem:[#allocation2 + $0x550] sm:$0xff]  ;;  %v4883_v51 = vsel %vm268_vm2, %v4880_v54, %v4882_v58  ;;  %v25813_v47 = vpack.c.bf16 %v331_v2, %v329_v0  ;;  %v4886_v48 = vsel %vm268_vm2, %v4884_v62, %v4885_v45  ;;  %v4891_v17 = vrot.slane %v4648_v39, 1 }
  0x69   :  { %21231 = vmatprep.mubr.msk.bf16.mxu1 %vm911_vm4, %v25735_v36  ;;  %v25801_v36 = vld [vmem:[#allocation2 + $0x270] sm:$0xff]  ;;  %v4888_v13 = vsel %vm268_vm2, %v4885_v45, %v4887_v63  ;;  %v341_v58 = vrot.slane %v25803_v20, 1  ;;  %v25827_v24 = vpack.c.bf16 %v4883_v51, %v4881_v31  ;;  %v4896_v31 = vrot.slane %v25825_v38, 1 }
  0x6a   :  { %32464 = vst [vmem:[#allocation37_spill] sm:$0xff] %v25813_v47  ;;  %v25831_v45 = vpack.c.bf16 %v4888_v13, %v4886_v48  ;;  %v4889_v2 = vrot.slane %v25801_v36, 1  ;;  %v110_v51 = vld [vmem:[#allocation2 + $0x570] sm:$0x3]  ;;  %v338_v13 = vsel %vm268_vm2, %v335_v53, %v337_v49  ;;  %v25847_v48 = vld [vmem:[#allocation2 + $0x580] sm:$0xff]  ;;  %vm4543_vm5 = vcmask 523264  }
  0x6b   :  { %32467 = vst [vmem:[#allocation40_spill] sm:$0xff] %v25827_v24  ;;  %32469 = vst [vmem:[#allocation42_spill] sm:$0xff] %v25847_v48  ;;  %v348_v35 = vrot.slane %v110_v51, 1  ;;  %v115_v51 = vld [vmem:[#allocation2 + $0x598] sm:$0x3] }
  0x6c   :  { %32468 = vst [vmem:[#allocation41_spill] sm:$0xff] %v25831_v45  ;;  %v4890_v53 = vsel %vm268_vm2, %v4887_v63, %v4889_v2  ;;  %v353_v63 = vrot.slane %v25849_v52, 1  ;;  %v25896_v52 = vld [vmem:[#allocation2 + $0x6d0] sm:$0xff] }
  0x6d   :  { %32479 = vst [vmem:[#allocation52_spill] sm:$0xff] %v25896_v52 }
  0x6f   :  { %20638 = vmatmul.mubr.msk.bf16.gmra.mrb[20].mxu0 %vm911_vm4, %v25763_v12  ;;  %v95_v12 = vld [vmem:[#allocation2 + $0x138] sm:$0x3] }
  0x70   :  { %20641 = vmatprep.mubr.msk.bf16.mxu0 %vm911_vm4, %v25769_v42  ;;  %21232 = vmatmul.mubr.msk.bf16.gmra.mrb[20].mxu1 %vm911_vm4, %v25778_v50  ;;  %v25809_v42 = vld [vmem:[#allocation2 + $0x558] sm:$0xff]  ;;  %v25811_v50 = vld [vmem:[#allocation2 + $0x560] sm:$0xff]  ;;  %v339_v54 = vrot.slane %v95_v12, 1  ;;  %v4894_v12 = vrot.slane %v25819_v46, 1 }
  0x71   :  { %21235 = vmatprep.mubr.msk.bf16.mxu1 %vm911_vm4, %v25783_v14  ;;  %v25821_v14 = vpack.c.bf16 %v336_v29, %v334_v26  ;;  %v342_v0 = vrot.slane %v25809_v42, 1  ;;  %v344_v62 = vrot.slane %v25811_v50, 1  ;;  %v4893_v29 = vrot.slane %v25817_v5, 1  ;;  %v25835_v26 = vld [vmem:[#allocation2 + $0x568] sm:$0xff] }
  0x72   :  { %v340_v39 = vsel %vm268_vm2, %v337_v49, %v339_v54  ;;  %v4892_v49 = vsel %vm268_vm2, %v4889_v2, %v4891_v17  ;;  %v25863_v54 = vld [vmem:[#allocation2 + $0x6c0] sm:$0xff]  ;;  %v351_v17 = vrot.slane %v25847_v48, 1 }
  0x73   :  { %32465 = vst [vmem:[#allocation38_spill] sm:$0xff] %v25821_v14  ;;  %v345_v44 = vsel %vm268_vm2, %v342_v0, %v344_v62  ;;  %32473 = vst [vmem:[#allocation46_spill] sm:$0xff] %v25863_v54  ;;  %v25873_v23 = vpack.c.bf16 %v4892_v49, %v4890_v53  ;;  %v25885_v53 = vld [vmem:[#allocation2 + $0x5a0] sm:$0xff] }
  0x74   :  { %32477 = vst [vmem:[#allocation50_spill] sm:$0xff] %v25885_v53 }
  0x75   :  { %32476 = vst [vmem:[#allocation49_spill] sm:$0xff] %v25873_v23 }
  0x77   :  { %20642 = vmatmul.mubr.msk.bf16.gmra.mrb[24].mxu0 %vm911_vm4, %v25813_v47  ;;  %v343_v47 = vsel %vm268_vm2, %v341_v58, %v342_v0  ;;  %v4895_v58 = vsel %vm268_vm2, %v4893_v29, %v4894_v12  ;;  %v4897_v0 = vsel %vm268_vm2, %v4894_v12, %v4896_v31  ;;  %v4900_v29 = vrot.slane %v4663_v11, 1 }
  0x78   :  { %20645 = vmatprep.mubr.msk.bf16.mxu0 %vm911_vm4, %v25821_v14  ;;  %21236 = vmatmul.mubr.msk.bf16.gmra.mrb[24].mxu1 %vm911_vm4, %v25827_v24  ;;  %v25865_v14 = vpack.c.bf16 %v340_v39, %v338_v13  ;;  %v346_v24 = vrot.slane %v25835_v26, 1  ;;  %v493_v43 = vpack.c.bf16 %v345_v44, %v343_v47  ;;  %v5045_v2 = vpack.c.bf16 %v4897_v0, %v4895_v58  ;;  %v25879_v39 = vld [vmem:[#allocation2 + $0x590] sm:$0xff]  ;;  %v25890_v58 = vld [vmem:[#allocation2 + $0x5a8] sm:$0xff] }
  0x79   :  { %21239 = vmatprep.mubr.msk.bf16.mxu1 %vm911_vm4, %v25831_v45  ;;  %v350_v45 = vrot.slane %v25841_v57, 1  ;;  %v4898_v13 = vrot.slane %v25855_v33, 1  ;;  %v4902_v12 = vrot.slane %v25857_v56, 1  ;;  %v4903_v44 = vrot.slane %v25863_v54, 1  ;;  %32478 = vst [vmem:[#allocation51_spill] sm:$0xff] %v25890_v58  ;;  %v25898_v54 = vld [vmem:[#allocation2 + $0x5b0] sm:$0xff] }
  0x7a   :  { %32474 = vst [vmem:[#allocation47_spill] sm:$0xff] %v25865_v14  ;;  %v4905_v47 = vrot.slane %v25870_v3, 1  ;;  %v347_v49 = vsel %vm268_vm2, %v344_v62, %v346_v24  ;;  %v349_v11 = vsel %vm268_vm2, %v346_v24, %v348_v35  ;;  %v4668_v3 = vld [vmem:[#allocation2 + $0x6d8] sm:$0x3]  ;;  %32480 = vst [vmem:[#allocation53_spill] sm:$0xff] %v25898_v54  ;;  %v25903_v24 = vld [vmem:[#allocation2 + $0x6e0] sm:$0xff] }
  0x7b   :  { %v352_v0 = vsel %vm268_vm2, %v350_v45, %v351_v17  ;;  %v4901_v35 = vsel %vm268_vm2, %v4898_v13, %v4900_v29  ;;  %32481 = vst [vmem:[#allocation54_spill] sm:$0xff] %v25903_v24  ;;  %v494_v62 = vpack.c.bf16 %v349_v11, %v347_v49  ;;  %v25908_v56 = vld [vmem:[#allocation2 + $0x6e8] sm:$0xff]  ;;  %v25910_v33 = vld [vmem:[#allocation2 + $0x6f0] sm:$0xff]  ;;  %v362_v29 = vrot.slane %v25898_v54, 1  ;;  %v4673_v54 = vld [vmem:[#allocation2 + $0x700] sm:$0x3] }
  0x7c   :  { %v4906_v45 = vsel %vm268_vm2, %v4903_v44, %v4905_v47  ;;  %32482 = vst [vmem:[#allocation55_spill] sm:$0xff] %v25908_v56  ;;  %32483 = vst [vmem:[#allocation56_spill] sm:$0xff] %v25910_v33  ;;  %v4911_v11 = vrot.slane %v25903_v24, 1  ;;  %v25956_v24 = vld [vmem:[#allocation2 + $0x718] sm:$0xff] }
  0x7d   :  { %32495 = vst [vmem:[#allocation68_spill] sm:$0xff] %v25956_v24 }
  0x7f   :  { %20646 = vmatmul.mubr.msk.bf16.gmra.mrb[28].mxu0 %vm911_vm4, %v25865_v14  ;;  %v354_v14 = vsel %vm268_vm2, %v351_v17, %v353_v63  ;;  %v355_v17 = vrot.slane %v25879_v39, 1 }
  0x80   :  { %20649 = vmatprep.mubr.msk.bf16.mxu0 %vm911_vm4, %v493_v43  ;;  %21240 = vmatmul.mubr.msk.bf16.gmra.mrb[28].mxu1 %vm911_vm4, %v25873_v23  ;;  %v4899_v43 = vsel %vm268_vm2, %v4896_v31, %v4898_v13  ;;  %v4904_v23 = vsel %vm268_vm2, %v4902_v12, %v4903_v44  ;;  %v25912_v38 = vpack.c.bf16 %v354_v14, %v352_v0  ;;  %v359_v31 = vrot.slane %v25885_v53, 1 }
  0x81   :  { %21243 = vmatprep.mubr.msk.bf16.mxu1 %vm911_vm4, %v5045_v2  ;;  %v357_v2 = vrot.slane %v115_v51, 1  ;;  %v5046_v48 = vpack.c.bf16 %v4901_v35, %v4899_v43  ;;  %v360_v13 = vrot.slane %v25890_v58, 1  ;;  %v25917_v49 = vpack.c.bf16 %v4906_v45, %v4904_v23  ;;  %v25931_v35 = vld [vmem:[#allocation2 + $0x5b8] sm:$0xff] }
  0x82   :  { %32484 = vst [vmem:[#allocation57_spill] sm:$0xff] %v25912_v38  ;;  %v4907_v12 = vrot.slane %v25896_v52, 1  ;;  %v4909_v44 = vrot.slane %v4668_v3, 1  ;;  %v4912_v14 = vrot.slane %v25908_v56, 1  ;;  %v4914_v51 = vrot.slane %v25910_v33, 1  ;;  %32486 = vst [vmem:[#allocation59_spill] sm:$0xff] %v25931_v35 }
  0x83   :  { %32485 = vst [vmem:[#allocation58_spill] sm:$0xff] %v25917_v49  ;;  %v356_v0 = vsel %vm268_vm2, %v353_v63, %v355_v17  ;;  %v358_v43 = vsel %vm268_vm2, %v355_v17, %v357_v2  ;;  %v361_v23 = vsel %vm268_vm2, %v359_v31, %v360_v13  ;;  %v363_v3 = vsel %vm268_vm2, %v360_v13, %v362_v29  ;;  %v25937_v33 = vld [vmem:[#allocation2 + $0x5c8] sm:$0xff]  ;;  %v25939_v63 = vld [vmem:[#allocation2 + $0x5d0] sm:$0xff]  ;;  %v25941_v17 = vld [vmem:[#allocation2 + $0x5d8] sm:$0xff] }
  0x84   :  { %v4908_v45 = vsel %vm268_vm2, %v4905_v47, %v4907_v12  ;;  %32487 = vst [vmem:[#allocation60_spill] sm:$0xff] %v25937_v33  ;;  %32488 = vst [vmem:[#allocation61_spill] sm:$0xff] %v25939_v63  ;;  %v4913_v2 = vsel %vm268_vm2, %v4911_v11, %v4912_v14  ;;  %v4915_v31 = vsel %vm268_vm2, %v4912_v14, %v4914_v51  ;;  %v25947_v13 = vld [vmem:[#allocation2 + $0x6f8] sm:$0xff]  ;;  %v364_v47 = vrot.slane %v25931_v35, 1  ;;  %v25954_v56 = vld [vmem:[#allocation2 + $0x710] sm:$0xff] }
  0x85   :  { %32489 = vst [vmem:[#allocation62_spill] sm:$0xff] %v25941_v17  ;;  %32491 = vst [vmem:[#allocation64_spill] sm:$0xff] %v25947_v13  ;;  %v368_v11 = vrot.slane %v25937_v33, 1  ;;  %v369_v14 = vrot.slane %v25939_v63, 1  ;;  %v25963_v52 = vpack.c.bf16 %v4915_v31, %v4913_v2  ;;  %v4921_v35 = vrot.slane %v25954_v56, 1 }
  0x86   :  { %32494 = vst [vmem:[#allocation67_spill] sm:$0xff] %v25954_v56  ;;  %v365_v2 = vsel %vm268_vm2, %v362_v29, %v364_v47  ;;  %v25986_v29 = vld [vmem:[#allocation2 + $0x5f0] sm:$0xff]  ;;  %v25050_v63 = vld [vmem:[#allocation5] sm:$0x18]  }
  0x87   :  { %20650 = vmatmul.mubr.msk.bf16.gmra.mrb[32].mxu0 %vm911_vm4, %v494_v62  ;;  %v120_v62 = vld [vmem:[#allocation2 + $0x5c0] sm:$0x3]  ;;  %32497 = vst [vmem:[#allocation70_spill] sm:$0xff] %v25963_v52  ;;  %32499 = vst [vmem:[#allocation72_spill] sm:$0xff] %v25986_v29 }
  0x88   :  { %20653 = vmatprep.mubr.msk.bf16.mxu0 %vm911_vm4, %v25912_v38  ;;  %21244 = vmatmul.mubr.msk.bf16.gmra.mrb[32].mxu1 %vm911_vm4, %v5046_v48  ;;  %v4910_v38 = vsel %vm268_vm2, %v4907_v12, %v4909_v44  ;;  %v25943_v48 = vpack.c.bf16 %v358_v43, %v356_v0  ;;  %v366_v12 = vrot.slane %v120_v62, 1  ;;  %v25952_v44 = vld [vmem:[#allocation2 + $0x708] sm:$0xff]  ;;  %v371_v43 = vrot.slane %v25941_v17, 1 }
  0x89   :  { %21247 = vmatprep.mubr.msk.bf16.mxu1 %vm911_vm4, %v25917_v49  ;;  %v25949_v49 = vpack.c.bf16 %v363_v3, %v361_v23  ;;  %32493 = vst [vmem:[#allocation66_spill] sm:$0xff] %v25952_v44  ;;  %v25958_v0 = vpack.c.bf16 %v4910_v38, %v4908_v45  ;;  %v4916_v23 = vrot.slane %v25947_v13, 1  ;;  %v4918_v3 = vrot.slane %v4673_v54, 1  ;;  %v25971_v45 = vld [vmem:[#allocation2 + $0x5e0] sm:$0xff]  ;;  %v125_v17 = vld [vmem:[#allocation2 + $0x5e8] sm:$0x3] }
  0x8a   :  { %32490 = vst [vmem:[#allocation63_spill] sm:$0xff] %v25943_v48  ;;  %v4920_v62 = vrot.slane %v25952_v44, 1  ;;  %v4923_v38 = vrot.slane %v25956_v24, 1  ;;  %32498 = vst [vmem:[#allocation71_spill] sm:$0xff] %v25971_v45  ;;  %v367_v31 = vsel %vm268_vm2, %v364_v47, %v366_v12  ;;  %v370_v54 = vsel %vm268_vm2, %v368_v11, %v369_v14  ;;  %v25988_v47 = vld [vmem:[#allocation2 + $0x5f8] sm:$0xff]  ;;  %v25990_v12 = vld [vmem:[#allocation2 + $0x600] sm:$0xff] }
  0x8b   :  { %32492 = vst [vmem:[#allocation65_spill] sm:$0xff] %v25949_v49  ;;  %32496 = vst [vmem:[#allocation69_spill] sm:$0xff] %v25958_v0  ;;  %v4917_v24 = vsel %vm268_vm2, %v4914_v51, %v4916_v23  ;;  %v4919_v56 = vsel %vm268_vm2, %v4916_v23, %v4918_v3  ;;  %v375_v44 = vrot.slane %v125_v17, 1  ;;  %v4678_v51 = vld [vmem:[#allocation2 + $0x728] sm:$0x3]  ;;  %v25998_v13 = vld [vmem:[#allocation2 + $0x730] sm:$0xff] }
  0x8c   :  { %32500 = vst [vmem:[#allocation73_spill] sm:$0xff] %v25988_v47  ;;  %32501 = vst [vmem:[#allocation74_spill] sm:$0xff] %v25990_v12  ;;  %v4922_v11 = vsel %vm268_vm2, %v4920_v62, %v4921_v35  ;;  %v26002_v3 = vld [vmem:[#allocation2 + $0x738] sm:$0xff]  ;;  %v26006_v33 = vpack.c.bf16 %v4919_v56, %v4917_v24  ;;  %v378_v62 = vrot.slane %v25988_v47, 1  ;;  %v25051_v17 = vld [vmem:[#allocation5] sm:$0x18]  }
  0x8d   :  { %32504 = vst [vmem:[#allocation77_spill] sm:$0xff] %v25998_v13  ;;  %32506 = vst [vmem:[#allocation79_spill] sm:$0xff] %v26002_v3  ;;  %v4929_v24 = vrot.slane %v25998_v13, 1  ;;  %v26056_v13 = vld [vmem:[#allocation2 + $0x760] sm:$0xff] }
  0x8e   :  { %32508 = vst [vmem:[#allocation81_spill] sm:$0xff] %v26006_v33  ;;  %32518 = vst [vmem:[#allocation91_spill] sm:$0xff] %v26056_v13 }
  0x8f   :  { %20654 = vmatmul.mubr.msk.bf16.gmra.mrb[36].mxu0 %vm911_vm4, %v25943_v48  ;;  %v372_v48 = vsel %vm268_vm2, %v369_v14, %v371_v43  ;;  %v4924_v14 = vsel %vm268_vm2, %v4921_v35, %v4923_v38  ;;  %v380_v35 = vrot.slane %v25990_v12, 1  ;;  %v26035_v12 = vld [vmem:[#allocation2 + $0x618] sm:$0xff] }
  0x90   :  { %20657 = vmatprep.mubr.msk.bf16.mxu0 %vm911_vm4, %v25949_v49  ;;  %21248 = vmatmul.mubr.msk.bf16.gmra.mrb[36].mxu1 %vm911_vm4, %v25958_v0  ;;  %v373_v49 = vrot.slane %v25971_v45, 1  ;;  %v25992_v0 = vpack.c.bf16 %v367_v31, %v365_v2  ;;  %v26000_v23 = vpack.c.bf16 %v372_v48, %v370_v54  ;;  %v26004_v45 = vld [vmem:[#allocation2 + $0x740] sm:$0xff]  ;;  %v377_v2 = vrot.slane %v25986_v29, 1  ;;  %32512 = vst [vmem:[#allocation85_spill] sm:$0xff] %v26035_v12 }
  0x91   :  { %21251 = vmatprep.mubr.msk.bf16.mxu1 %vm911_vm4, %v25963_v52  ;;  %v25996_v52 = vld [vmem:[#allocation2 + $0x720] sm:$0xff]  ;;  %32507 = vst [vmem:[#allocation80_spill] sm:$0xff] %v26004_v45  ;;  %v26011_v31 = vpack.c.bf16 %v4924_v14, %v4922_v11  ;;  %v4927_v54 = vrot.slane %v4678_v51, 1  ;;  %v4930_v29 = vrot.slane %v26002_v3, 1  ;;  %v4932_v47 = vrot.slane %v26004_v45, 1  ;;  %v26027_v14 = vld [vmem:[#allocation2 + $0x608] sm:$0xff] }
  0x92   :  { %32502 = vst [vmem:[#allocation75_spill] sm:$0xff] %v25992_v0  ;;  %32503 = vst [vmem:[#allocation76_spill] sm:$0xff] %v25996_v52  ;;  %v374_v58 = vsel %vm268_vm2, %v371_v43, %v373_v49  ;;  %v4925_v48 = vrot.slane %v25996_v52, 1  ;;  %v376_v56 = vsel %vm268_vm2, %v373_v49, %v375_v44  ;;  %v379_v43 = vsel %vm268_vm2, %v377_v2, %v378_v62  ;;  %v130_v51 = vld [vmem:[#allocation2 + $0x610] sm:$0x3]  ;;  %v26039_v2 = vld [vmem:[#allocation2 + $0x628] sm:$0xff] }
  0x93   :  { %32505 = vst [vmem:[#allocation78_spill] sm:$0xff] %v26000_v23  ;;  %32509 = vst [vmem:[#allocation82_spill] sm:$0xff] %v26011_v31  ;;  %v381_v11 = vsel %vm268_vm2, %v378_v62, %v380_v35  ;;  %v1699_v49 = vrot.slane %v25050_v63, 3  ;;  %v6245_v44 = vrot.slane %v25051_v17, 3  ;;  %v4931_v62 = vsel %vm268_vm2, %v4929_v24, %v4930_v29  ;;  %v26043_v17 = vld [vmem:[#allocation2 + $0x748] sm:$0xff] }
  0x94   :  { %32510 = vst [vmem:[#allocation83_spill] sm:$0xff] %v26027_v14  ;;  %v4926_v45 = vsel %vm268_vm2, %v4923_v38, %v4925_v48  ;;  %32514 = vst [vmem:[#allocation87_spill] sm:$0xff] %v26039_v2  ;;  %v4933_v63 = vsel %vm268_vm2, %v4930_v29, %v4932_v47  ;;  %v4683_v3 = vld [vmem:[#allocation2 + $0x750] sm:$0x3]  ;;  %v26058_v24 = vld [vmem:[#allocation2 + $0x768] sm:$0xff]  ;;  %v386_v52 = vrot.slane %v26035_v12, 1 }
  0x95   :  { %32515 = vst [vmem:[#allocation88_spill] sm:$0xff] %v26043_v17  ;;  %v26049_v38 = vand.u32 %v6245_v44, %v25567_v21  ;;  %32519 = vst [vmem:[#allocation92_spill] sm:$0xff] %v26058_v24  ;;  %v389_v44 = vrot.slane %v26039_v2, 1  ;;  %v26106_v12 = vld [vmem:[#allocation2 + $0x788] sm:$0xff] }
  0x96   :  { %32530 = vst [vmem:[#allocation103_spill] sm:$0xff] %v26106_v12 }
  0x97   :  { %20658 = vmatmul.mubr.msk.bf16.gmra.mrb[40].mxu0 %vm911_vm4, %v25992_v0  ;;  %v26031_v0 = vpack.c.bf16 %v376_v56, %v374_v58  ;;  %v26046_v58 = vand.u32 %v1699_v49, %v25567_v21  ;;  %v384_v56 = vrot.slane %v130_v51, 1  ;;  %21341 = vmatprep.subr.bf16.mxu1 %v26049_v38  ;;  %v4936_v51 = vrot.slane %v4683_v3, 1 }
  0x98   :  { %20661 = vmatprep.mubr.msk.bf16.mxu0 %vm911_vm4, %v26000_v23  ;;  %21252 = vmatmul.mubr.msk.bf16.gmra.mrb[40].mxu1 %vm911_vm4, %v26006_v33  ;;  %v4928_v23 = vsel %vm268_vm2, %v4925_v48, %v4927_v54  ;;  %v26037_v33 = vld [vmem:[#allocation2 + $0x620] sm:$0xff]  ;;  %v26051_v48 = vpack.c.bf16 %v381_v11, %v379_v43  ;;  %v382_v54 = vrot.slane %v26027_v14, 1  ;;  %v26067_v43 = vpack.c.bf16 %v4933_v63, %v4931_v62  ;;  %v26108_v14 = vld [vmem:[#allocation2 + $0x790] sm:$0xff] }
  0x99   :  { %21255 = vmatprep.mubr.msk.bf16.mxu1 %vm911_vm4, %v26011_v31  ;;  %32511 = vst [vmem:[#allocation84_spill] sm:$0xff] %v26031_v0  ;;  %32513 = vst [vmem:[#allocation86_spill] sm:$0xff] %v26037_v33  ;;  %v26054_v31 = vld [vmem:[#allocation2 + $0x758] sm:$0xff]  ;;  %v26060_v29 = vpack.c.bf16 %v4928_v23, %v4926_v45  ;;  %v387_v49 = vrot.slane %v26037_v33, 1  ;;  %20747 = vmatprep.subr.bf16.mxu0 %v26046_v58  ;;  %v4934_v11 = vrot.slane %v26043_v17, 1  ;;  %v4939_v23 = vrot.slane %v26056_v13, 1 }
  0x9a   :  { %32516 = vst [vmem:[#allocation89_spill] sm:$0xff] %v26051_v48  ;;  %32517 = vst [vmem:[#allocation90_spill] sm:$0xff] %v26054_v31  ;;  %v4938_v45 = vrot.slane %v26054_v31, 1  ;;  %v4941_v33 = vrot.slane %v26058_v24, 1  ;;  %v383_v2 = vsel %vm268_vm2, %v380_v35, %v382_v54  ;;  %v385_v62 = vsel %vm268_vm2, %v382_v54, %v384_v56  ;;  %v135_v31 = vld [vmem:[#allocation2 + $0x638] sm:$0x3] }
  0x9b   :  { %32520 = vst [vmem:[#allocation93_spill] sm:$0xff] %v26060_v29  ;;  %32521 = vst [vmem:[#allocation94_spill] sm:$0xff] %v26067_v43  ;;  %v388_v3 = vsel %vm268_vm2, %v386_v52, %v387_v49  ;;  %v390_v63 = vsel %vm268_vm2, %v387_v49, %v389_v44  ;;  %v4935_v24 = vsel %vm268_vm2, %v4932_v47, %v4934_v11  ;;  %v26089_v35 = vld [vmem:[#allocation2 + $0x640] sm:$0xff]  ;;  %v26091_v54 = vld [vmem:[#allocation2 + $0x648] sm:$0xff] }
  0x9c   :  { %32523 = vst [vmem:[#allocation96_spill] sm:$0xff] %v26089_v35  ;;  %32524 = vst [vmem:[#allocation97_spill] sm:$0xff] %v26091_v54  ;;  %v26093_v56 = vld [vmem:[#allocation2 + $0x650] sm:$0xff]  ;;  %v4940_v52 = vsel %vm268_vm2, %v4938_v45, %v4939_v23  ;;  %v4942_v49 = vsel %vm268_vm2, %v4939_v23, %v4941_v33  ;;  %v4688_v17 = vld [vmem:[#allocation2 + $0x778] sm:$0x3]  ;;  %v395_v45 = vrot.slane %v26089_v35, 1 }
  0x9d   :  { %32525 = vst [vmem:[#allocation98_spill] sm:$0xff] %v26093_v56  ;;  %v26099_v13 = vld [vmem:[#allocation2 + $0x770] sm:$0xff]  ;;  %32531 = vst [vmem:[#allocation104_spill] sm:$0xff] %v26108_v14  ;;  %v396_v23 = vrot.slane %v26091_v54, 1  ;;  %v26115_v53 = vpack.c.bf16 %v4942_v49, %v4940_v52  ;;  %v26156_v54 = vld [vmem:[#allocation2 + $0x7b8] sm:$0xff] }
  0x9e   :  { %32527 = vst [vmem:[#allocation100_spill] sm:$0xff] %v26099_v13  ;;  %32541 = vst [vmem:[#allocation114_spill] sm:$0xff] %v26156_v54 }
  0x9f   :  { %20662 = vmatmul.mubr.msk.bf16.gmra.mrb[44].mxu0 %vm911_vm4, %v26031_v0  ;;  %v26083_v0 = vld [vmem:[#allocation2 + $0x630] sm:$0xff]  ;;  %32533 = vst [vmem:[#allocation106_spill] sm:$0xff] %v26115_v53 }
  0xa0   :  { %20665 = vmatprep.mubr.msk.bf16.mxu0 %vm911_vm4, %v26051_v48  ;;  %21256 = vmatmul.mubr.msk.bf16.gmra.mrb[44].mxu1 %vm911_vm4, %v26060_v29  ;;  %32522 = vst [vmem:[#allocation95_spill] sm:$0xff] %v26083_v0  ;;  %v4937_v48 = vsel %vm268_vm2, %v4934_v11, %v4936_v51  ;;  %v26095_v29 = vpack.c.bf16 %v385_v62, %v383_v2  ;;  %v391_v47 = vrot.slane %v26083_v0, 1  ;;  %v393_v11 = vrot.slane %v135_v31, 1  ;;  %v26104_v51 = vld [vmem:[#allocation2 + $0x780] sm:$0xff] }
  0xa1   :  { %21259 = vmatprep.mubr.msk.bf16.mxu1 %vm911_vm4, %v26067_v43  ;;  %v26101_v43 = vpack.c.bf16 %v390_v63, %v388_v3  ;;  %32529 = vst [vmem:[#allocation102_spill] sm:$0xff] %v26104_v51  ;;  %v26110_v2 = vpack.c.bf16 %v4937_v48, %v4935_v24  ;;  %v398_v62 = vrot.slane %v26093_v56, 1  ;;  %v4943_v3 = vrot.slane %v26099_v13, 1  ;;  %v140_v56 = vld [vmem:[#allocation2 + $0x660] sm:$0x3]  ;;  %v26154_v13 = vld [vmem:[#allocation2 + $0x7b0] sm:$0xff] }
  0xa2   :  { %32526 = vst [vmem:[#allocation99_spill] sm:$0xff] %v26095_v29  ;;  %v4945_v63 = vrot.slane %v4688_v17, 1  ;;  %v4947_v31 = vrot.slane %v26104_v51, 1  ;;  %v4948_v0 = vrot.slane %v26106_v12, 1  ;;  %v4950_v48 = vrot.slane %v26108_v14, 1  ;;  %v26147_v12 = vld [vmem:[#allocation2 + $0x798] sm:$0xff] }
  0xa3   :  { %32528 = vst [vmem:[#allocation101_spill] sm:$0xff] %v26101_v43  ;;  %32532 = vst [vmem:[#allocation105_spill] sm:$0xff] %v26110_v2  ;;  %v392_v24 = vsel %vm268_vm2, %v389_v44, %v391_v47  ;;  %v394_v52 = vsel %vm268_vm2, %v391_v47, %v393_v11  ;;  %v397_v17 = vsel %vm268_vm2, %v395_v45, %v396_v23  ;;  %v26137_v44 = vld [vmem:[#allocation2 + $0x668] sm:$0xff]  ;;  %v26139_v47 = vld [vmem:[#allocation2 + $0x670] sm:$0xff] }
  0xa4   :  { %v399_v49 = vsel %vm268_vm2, %v396_v23, %v398_v62  ;;  %v4944_v14 = vsel %vm268_vm2, %v4941_v33, %v4943_v3  ;;  %v26141_v11 = vld [vmem:[#allocation2 + $0x678] sm:$0xff]  ;;  %v4949_v45 = vsel %vm268_vm2, %v4947_v31, %v4948_v0  ;;  %v4951_v23 = vsel %vm268_vm2, %v4948_v0, %v4950_v48  ;;  %32537 = vst [vmem:[#allocation110_spill] sm:$0xff] %v26147_v12  ;;  %v4693_v51 = vld [vmem:[#allocation2 + $0x7a0] sm:$0x3] }
  0xa5   :  { %32535 = vst [vmem:[#allocation108_spill] sm:$0xff] %v26141_v11  ;;  %32540 = vst [vmem:[#allocation113_spill] sm:$0xff] %v26154_v13  ;;  %v404_v31 = vrot.slane %v26137_v44, 1  ;;  %v405_v0 = vrot.slane %v26139_v47, 1  ;;  %v26163_v35 = vpack.c.bf16 %v4951_v23, %v4949_v45 }
  0xa7   :  { %20666 = vmatmul.mubr.msk.bf16.gmra.mrb[48].mxu0 %vm911_vm4, %v26095_v29  ;;  %v26131_v29 = vld [vmem:[#allocation2 + $0x658] sm:$0xff]  ;;  %32543 = vst [vmem:[#allocation116_spill] sm:$0xff] %v26163_v35 }
  0xa8   :  { %20669 = vmatprep.mubr.msk.bf16.mxu0 %vm911_vm4, %v26101_v43  ;;  %21260 = vmatmul.mubr.msk.bf16.gmra.mrb[48].mxu1 %vm911_vm4, %v26110_v2  ;;  %32534 = vst [vmem:[#allocation107_spill] sm:$0xff] %v26131_v29  ;;  %v4946_v43 = vsel %vm268_vm2, %v4943_v3, %v4945_v63  ;;  %v26143_v2 = vpack.c.bf16 %v394_v52, %v392_v24  ;;  %v400_v33 = vrot.slane %v26131_v29, 1  ;;  %v402_v3 = vrot.slane %v140_v56, 1  ;;  %v26152_v63 = vld [vmem:[#allocation2 + $0x7a8] sm:$0xff] }
  0xa9   :  { %21263 = vmatprep.mubr.msk.bf16.mxu1 %vm911_vm4, %v26115_v53  ;;  %v26149_v53 = vpack.c.bf16 %v399_v49, %v397_v17  ;;  %32539 = vst [vmem:[#allocation112_spill] sm:$0xff] %v26152_v63  ;;  %v26158_v24 = vpack.c.bf16 %v4946_v43, %v4944_v14  ;;  %v407_v52 = vrot.slane %v26141_v11, 1  ;;  %v4952_v17 = vrot.slane %v26147_v12, 1  ;;  %v145_v11 = vld [vmem:[#allocation2 + $0x688] sm:$0x3] }
  0xaa   :  { %32536 = vst [vmem:[#allocation109_spill] sm:$0xff] %v26143_v2  ;;  %v4954_v49 = vrot.slane %v4693_v51, 1  ;;  %v4956_v56 = vrot.slane %v26152_v63, 1  ;;  %v4957_v29 = vrot.slane %v26154_v13, 1  ;;  %v4959_v14 = vrot.slane %v26156_v54, 1 }
  0xab   :  { %32538 = vst [vmem:[#allocation111_spill] sm:$0xff] %v26149_v53  ;;  %32542 = vst [vmem:[#allocation115_spill] sm:$0xff] %v26158_v24  ;;  %v401_v43 = vsel %vm268_vm2, %v398_v62, %v400_v33  ;;  %v403_v45 = vsel %vm268_vm2, %v400_v33, %v402_v3  ;;  %v406_v51 = vsel %vm268_vm2, %v404_v31, %v405_v0  ;;  %v4698_v31 = vld [vmem:[#allocation2 + $0x7c8] sm:$0x3]  ;;  %v411_v63 = vrot.slane %v145_v11, 1 }
  0xac   :  { %v408_v23 = vsel %vm268_vm2, %v405_v0, %v407_v52  ;;  %v4953_v54 = vsel %vm268_vm2, %v4950_v48, %v4952_v17  ;;  %v26185_v62 = vpack.c.bf16 %v403_v45, %v401_v43  ;;  %v4958_v33 = vsel %vm268_vm2, %v4956_v56, %v4957_v29  ;;  %v26213_v56 = vld [vmem:[#allocation2] sm:$0xff]  ;;  %v26215_v43 = vld [vmem:[#allocation2 + $0x8] sm:$0xff] }
  0xad   :  { %v4960_v3 = vsel %vm268_vm2, %v4957_v29, %v4959_v14  ;;  %v26191_v0 = vpack.c.bf16 %v408_v23, %v406_v51  ;;  %v26221_v51 = vld [vmem:[#allocation2 + $0x140] sm:$0xff]  ;;  %v26223_v23 = vld [vmem:[#allocation2 + $0x148] sm:$0xff] }
  0xae   :  { %32544 = vst [vmem:[#allocation117_spill] sm:$0xff] %v26185_v62 }
  0xaf   :  { %20670 = vmatmul.mubr.msk.bf16.gmra.mrb[52].mxu0 %vm911_vm4, %v26143_v2  ;;  %v26179_v2 = vld [vmem:[#allocation2 + $0x680] sm:$0xff]  ;;  %32545 = vst [vmem:[#allocation118_spill] sm:$0xff] %v26191_v0 }
  0xb0   :  { %20673 = vmatprep.mubr.msk.bf16.mxu0 %vm911_vm4, %v26149_v53  ;;  %21264 = vmatmul.mubr.msk.bf16.gmra.mrb[52].mxu1 %vm911_vm4, %v26158_v24  ;;  %v4955_v53 = vsel %vm268_vm2, %v4952_v17, %v4954_v49  ;;  %v26189_v24 = vld [vmem:[#allocation2 + $0x7c0] sm:$0xff]  ;;  %v409_v13 = vrot.slane %v26179_v2, 1  ;;  %v4963_v17 = vrot.slane %v4698_v31, 1  ;;  %v32550_v31 = vrot.slane %v25560_v9, 2 }
  0xb1   :  { %21267 = vmatprep.mubr.msk.bf16.mxu1 %vm911_vm4, %v26163_v35  ;;  %v26194_v12 = vpack.c.bf16 %v4955_v53, %v4953_v54  ;;  %v26196_v35 = vpack.c.bf16 %v4960_v3, %v4958_v33  ;;  %v4961_v48 = vrot.slane %v26189_v24, 1  ;;  %v25081_v33 = vld [vmem:[#allocation2 + $0x160] sm:$0x3] }
  0xb2   :  { %v410_v29 = vsel %vm268_vm2, %v407_v52, %v409_v13  ;;  %v412_v49 = vsel %vm268_vm2, %v409_v13, %v411_v63  ;;  %v156_v52 = vpack.c.bf16 %v26215_v43, %v26213_v56  ;;  %v25078_v63 = vld [vmem:[#allocation2 + $0x20] sm:$0x3]  ;;  %v5068_v3 = vrot.slane %v25081_v33, 2 }
  0xb3   :  { %32546 = vst [vmem:[#allocation119_spill] sm:$0xff] %v26194_v12  ;;  %32547 = vst [vmem:[#allocation120_spill] sm:$0xff] %v26196_v35  ;;  %v4962_v53 = vsel %vm268_vm2, %v4959_v14, %v4961_v48  ;;  %v4964_v54 = vsel %vm268_vm2, %v4961_v48, %v4963_v17  ;;  %v26211_v11 = vpack.c.bf16 %v412_v49, %v410_v29  ;;  %v517_v45 = vrot.slane %v25078_v63, 2  ;;  %v26240_v29 = vld [vmem:[#allocation2 + $0x28] sm:$0xff]  ;;  %v26242_v49 = vld [vmem:[#allocation2 + $0x30] sm:$0xff] }
  0xb4   :  { %v26219_v13 = vpack.c.bf16 %v4964_v54, %v4962_v53  ;;  %v4709_v14 = vpack.c.bf16 %v26223_v23, %v26221_v51  ;;  %v26246_v53 = vpack.c.bf16 %v26242_v49, %v26240_v29  ;;  %v26248_v54 = vld [vmem:[#allocation2 + $0x168] sm:$0xff]  ;;  %v32555_v33 = vpack.c.bf16 %v25560_v9, %v25558_v8  ;;  %v26277_v9 = vld [vmem:[#allocation2 + $0x38] sm:$0xff] }
  0xb5   :  { %32548 = vst [vmem:[#allocation121_spill] sm:$0xff] %v26211_v11  ;;  %v26236_v48 = vsel %vm509_vm3, %v32550_v31, %v517_v45  ;;  %v32553_v45 = vrot.slane %v25574_v30, 2  ;;  %v25052_v31 = vld [vmem:[#allocation5 + $0x4] ss:$0 sps:$4 sm:$0x33]  }
  0xb6   :  { %32549 = vst [vmem:[#allocation122_spill] sm:$0xff] %v26219_v13  ;;  %32551 = vst [vmem:[#allocation123_spill] sm:$0xff] %v26246_v53 }
  0xb7   :  { %20674 = vmatmul.mubr.msk.bf16.gmra.mrb[56].mxu0 %vm911_vm4, %v26185_v62 }
  0xb8   :  { %20677 = vmatprep.mubr.msk.bf16.mxu0 %vm911_vm4, %v26191_v0  ;;  %21268 = vmatmul.mubr.msk.bf16.gmra.mrb[56].mxu1 %vm911_vm4, %v26194_v12  ;;  %v26293_v12 = vld [vmem:[#allocation2 + $0x178] sm:$0xff]  ;;  %v26295_v0 = vld [vmem:[#allocation2 + $0x180] sm:$0xff] }
  0xb9   :  { %21271 = vmatprep.mubr.msk.bf16.mxu1 %vm911_vm4, %v26196_v35  ;;  %v26299_v62 = vpack.c.bf16 %v26295_v0, %v26293_v12 }
  0xbb   :  { %32559 = vst [vmem:[#allocation128_spill] sm:$0xff] %v26299_v62 }
  0xbf   :  { %20678 = vmatmul.mubr.msk.bf16.gmra.mrb[60].mxu0 %vm911_vm4, %v26211_v11  ;;  %v25053_v11 = vld [vmem:[#allocation5 + $0x4] ss:$0 sps:$4 sm:$0x33]  }
  0xc0   :  { %20683 = vmatprep.mubr.msk.bf16.mxu0 %vm911_vm4, %v156_v52  ;;  %21272 = vmatmul.mubr.msk.bf16.gmra.mrb[60].mxu1 %vm911_vm4, %v26219_v13  ;;  %v26250_v52 = vld [vmem:[#allocation2 + $0x170] sm:$0xff]  ;;  %v32556_v13 = vpack.c.bf16 %v25574_v30, %v25570_v25  ;;  %v6703_v30 = vshrl.u32 %v25053_v11, 16  ;;  %v6705_v35 = vshll.u32 %v25053_v11, 16  ;;  %v26303_v11 = vld [vmem:[#allocation2 + $0x198] sm:$0xff] }
  0xc1   :  { %21277 = vmatprep.mubr.msk.bf16.mxu1 %vm911_vm4, %v4709_v14  ;;  %v26254_v63 = vpack.c.bf16 %v26250_v52, %v26248_v54  ;;  %v26259_v14 = vsel %vm509_vm3, %v32553_v45, %v5068_v3  ;;  %v2157_v3 = vshrl.u32 %v25052_v31, 16  ;;  %v2159_v45 = vshll.u32 %v25052_v31, 16  ;;  %v26287_v31 = vld [vmem:[#allocation2 + $0x58] sm:$0xff] }
  0xc2   :  { %32554 = vst [vmem:[#allocation125_spill] sm:$0xff] %v26259_v14 }
  0xc3   :  { %32552 = vst [vmem:[#allocation124_spill] sm:$0xff] %v26254_v63  ;;  %v2161_v17 = vrot.slane %v2159_v45, 1  ;;  %v6707_v45 = vrot.slane %v6705_v35, 1 }
  0xc5   :  { %v6708_v37 = vor.u32 %v6707_v45, %v6703_v30  ;;  %v26333_v30 = vld [vmem:[#allocation2 + $0x78] sm:$0xff]  ;;  %v26335_v45 = vld [vmem:[#allocation2 + $0x80] sm:$0xff] }
  0xc6   :  { %32564 = vst [vmem:[#allocation133_spill] sm:$0xff] %v26333_v30  ;;  %32565 = vst [vmem:[#allocation134_spill] sm:$0xff] %v26335_v45 }
  0xc7   :  { %20684 = vmatmul.mubr.msk.bf16.vlgmr.msra.gmra.mrb[0].mxu0 %vm911_vm4, %v32555_v33  ;;  %v26279_v33 = vld [vmem:[#allocation2 + $0x40] sm:$0xff]  ;;  %v26320_v35 = vand.u32 %v6708_v37, %v25567_v21  ;;  %v26339_v37 = vpack.c.bf16 %v26335_v45, %v26333_v30  ;;  %v26367_v45 = vld [vmem:[#allocation2 + $0x90] sm:$0xff] }
  0xc8   :  { %20748 = vmatpush3.bf16.msra.mxu0 %v26046_v58  ;;  %20687 = vmatprep.mubr.msk.bf16.mxu0 %vm911_vm4, %v26246_v53  ;;  %v26283_v58 = vpack.c.bf16 %v26279_v33, %v26277_v9  ;;  %v26301_v53 = vld [vmem:[#allocation2 + $0x190] sm:$0xff]  ;;  %32573 = vst [vmem:[#allocation142_spill] sm:$0xff] %v26367_v45 }
  0xc9   :  { %21278 = vmatmul.mubr.msk.bf16.vlgmr.msra.gmra.mrb[0].mxu1 %vm911_vm4, %v32556_v13  ;;  %v26285_v13 = vld [vmem:[#allocation2 + $0x50] sm:$0xff]  ;;  %v26307_v55 = vpack.c.bf16 %v26303_v11, %v26301_v53  ;;  %32561 = vst [vmem:[#allocation130_spill] sm:$0xff] %v26320_v35  ;;  %32566 = vst [vmem:[#allocation135_spill] sm:$0xff] %v26339_v37 }
  0xca   :  { %21342 = vmatpush3.bf16.msra.mxu1 %v26049_v38  ;;  %21281 = vmatprep.mubr.msk.bf16.mxu1 %vm911_vm4, %v26254_v63  ;;  %32557 = vst [vmem:[#allocation126_spill] sm:$0xff] %v26283_v58  ;;  %v26291_v38 = vpack.c.bf16 %v26287_v31, %v26285_v13  ;;  %v2162_v63 = vor.u32 %v2161_v17, %v2157_v3  ;;  %v26324_v17 = vld [vmem:[#allocation2 + $0x60] sm:$0xff]  ;;  %v26326_v3 = vld [vmem:[#allocation2 + $0x68] sm:$0xff]  ;;  %v26383_v30 = vld [vmem:[#allocation2 + $0x1d0] sm:$0xff] }
  0xcb   :  { %32560 = vst [vmem:[#allocation129_spill] sm:$0xff] %v26307_v55  ;;  %32562 = vst [vmem:[#allocation131_spill] sm:$0xff] %v26326_v3  ;;  %21407 = vmatprep.subr.bf16.mxu1 %v26320_v35  ;;  %v26389_v35 = vld [vmem:[#allocation2 + $0x1e0] sm:$0xff] }
  0xcc   :  { %32558 = vst [vmem:[#allocation127_spill] sm:$0xff] %v26291_v38  ;;  %v26312_v14 = vand.u32 %v2162_v63, %v25567_v21  ;;  %v26330_v63 = vpack.c.bf16 %v26326_v3, %v26324_v17  ;;  %v26351_v3 = vld [vmem:[#allocation2 + $0x1c0] sm:$0xff]  ;;  %32578 = vst [vmem:[#allocation147_spill] sm:$0xff] %v26383_v30 }
  0xcd   :  { %32570 = vst [vmem:[#allocation139_spill] sm:$0xff] %v26351_v3  ;;  %32580 = vst [vmem:[#allocation149_spill] sm:$0xff] %v26389_v35 }
  0xce   :  { %20813 = vmatprep.subr.bf16.mxu0 %v26312_v14  ;;  %32563 = vst [vmem:[#allocation132_spill] sm:$0xff] %v26330_v63 }
  0xcf   :  { %20688 = vmatmul.mubr.msk.bf16.gmra.mrb[4].mxu0 %vm911_vm4, %v26283_v58  ;;  %v26349_v58 = vld [vmem:[#allocation2 + $0x1b8] sm:$0xff] }
  0xd0   :  { %20691 = vmatprep.mubr.msk.bf16.mxu0 %vm911_vm4, %v26291_v38  ;;  %32569 = vst [vmem:[#allocation138_spill] sm:$0xff] %v26349_v58  ;;  %v26355_v21 = vpack.c.bf16 %v26351_v3, %v26349_v58  ;;  %v26373_v58 = vld [vmem:[#allocation2 + $0xa0] sm:$0xff] }
  0xd1   :  { %21282 = vmatmul.mubr.msk.bf16.gmra.mrb[4].mxu1 %vm911_vm4, %v26299_v62  ;;  %v26341_v62 = vld [vmem:[#allocation2 + $0x1a0] sm:$0xff]  ;;  %32575 = vst [vmem:[#allocation144_spill] sm:$0xff] %v26373_v58 }
  0xd2   :  { %21285 = vmatprep.mubr.msk.bf16.mxu1 %vm911_vm4, %v26307_v55  ;;  %v26343_v55 = vld [vmem:[#allocation2 + $0x1a8] sm:$0xff]  ;;  %32571 = vst [vmem:[#allocation140_spill] sm:$0xff] %v26355_v21 }
  0xd3   :  { %32567 = vst [vmem:[#allocation136_spill] sm:$0xff] %v26343_v55  ;;  %v26347_v38 = vpack.c.bf16 %v26343_v55, %v26341_v62  ;;  %v26365_v55 = vld [vmem:[#allocation2 + $0x88] sm:$0xff] }
  0xd4   :  { %32572 = vst [vmem:[#allocation141_spill] sm:$0xff] %v26365_v55  ;;  %v26371_v3 = vpack.c.bf16 %v26367_v45, %v26365_v55  ;;  %v26391_v45 = vld [vmem:[#allocation2 + $0x1e8] sm:$0xff] }
  0xd5   :  { %32568 = vst [vmem:[#allocation137_spill] sm:$0xff] %v26347_v38  ;;  %32581 = vst [vmem:[#allocation150_spill] sm:$0xff] %v26391_v45  ;;  %v26395_v55 = vpack.c.bf16 %v26391_v45, %v26389_v35  ;;  %v26413_v35 = vld [vmem:[#allocation2 + $0xc8] sm:$0xff] }
  0xd6   :  { %32574 = vst [vmem:[#allocation143_spill] sm:$0xff] %v26371_v3 }
  0xd7   :  { %20692 = vmatmul.mubr.msk.bf16.gmra.mrb[8].mxu0 %vm911_vm4, %v26330_v63  ;;  %v26375_v63 = vld [vmem:[#allocation2 + $0xa8] sm:$0xff]  ;;  %32582 = vst [vmem:[#allocation151_spill] sm:$0xff] %v26395_v55 }
  0xd8   :  { %20695 = vmatprep.mubr.msk.bf16.mxu0 %vm911_vm4, %v26339_v37  ;;  %32576 = vst [vmem:[#allocation145_spill] sm:$0xff] %v26375_v63  ;;  %v26379_v37 = vpack.c.bf16 %v26375_v63, %v26373_v58  ;;  %v26407_v63 = vld [vmem:[#allocation2 + $0xb8] sm:$0xff] }
  0xd9   :  { %21286 = vmatmul.mubr.msk.bf16.gmra.mrb[8].mxu1 %vm911_vm4, %v26347_v38  ;;  %v26381_v38 = vld [vmem:[#allocation2 + $0x1c8] sm:$0xff]  ;;  %32583 = vst [vmem:[#allocation152_spill] sm:$0xff] %v26407_v63  ;;  %v26423_v58 = vld [vmem:[#allocation2 + $0x1f8] sm:$0xff] }
  0xda   :  { %21289 = vmatprep.mubr.msk.bf16.mxu1 %vm911_vm4, %v26355_v21  ;;  %32577 = vst [vmem:[#allocation146_spill] sm:$0xff] %v26379_v37  ;;  %v26387_v21 = vpack.c.bf16 %v26383_v30, %v26381_v38  ;;  %v26405_v30 = vld [vmem:[#allocation2 + $0xb0] sm:$0xff]  ;;  %32587 = vst [vmem:[#allocation156_spill] sm:$0xff] %v26423_v58 }
  0xdb   :  { %v26411_v45 = vpack.c.bf16 %v26407_v63, %v26405_v30  ;;  %v26431_v63 = vpack.c.bf16 %v25685_v27, %v25683_v34  ;;  %v26449_v34 = vpack.c.bf16 %v25711_v1, %v25709_v61  ;;  %v26451_v27 = vld [vmem:[#allocation2 + $0x218] sm:$0xff]  ;;  %v26475_v61 = vpack.c.bf16 %v25759_v6, %v25757_v41  ;;  %v32605_v6 = vld [vmem:[#allocation43_spill] sm:$0xff] }
  0xdc   :  { %32579 = vst [vmem:[#allocation148_spill] sm:$0xff] %v26387_v21  ;;  %v26479_v1 = vpack.c.bf16 %v25767_v22, %v25728_v19  ;;  %v32600_v19 = vld [vmem:[#allocation42_spill] sm:$0xff]  ;;  %v32607_v22 = vld [vmem:[#allocation51_spill] sm:$0xff] }
  0xdd   :  { %32584 = vst [vmem:[#allocation153_spill] sm:$0xff] %v26411_v45  ;;  %32589 = vst [vmem:[#allocation158_spill] sm:$0xff] %v26431_v63 }
  0xde   :  { %32591 = vst [vmem:[#allocation160_spill] sm:$0xff] %v26449_v34  ;;  %32595 = vst [vmem:[#allocation164_spill] sm:$0xff] %v26475_v61 }
  0xdf   :  { %20696 = vmatmul.mubr.msk.bf16.gmra.mrb[12].mxu0 %vm911_vm4, %v26371_v3  ;;  %v26415_v3 = vld [vmem:[#allocation2 + $0xd0] sm:$0xff]  ;;  %32596 = vst [vmem:[#allocation165_spill] sm:$0xff] %v26479_v1 }
  0xe0   :  { %20699 = vmatprep.mubr.msk.bf16.mxu0 %vm911_vm4, %v26379_v37  ;;  %32585 = vst [vmem:[#allocation154_spill] sm:$0xff] %v26415_v3  ;;  %v26419_v37 = vpack.c.bf16 %v26415_v3, %v26413_v35  ;;  %v26441_v3 = vld [vmem:[#allocation2 + $0xd8] sm:$0xff] }
  0xe1   :  { %21290 = vmatmul.mubr.msk.bf16.gmra.mrb[12].mxu1 %vm911_vm4, %v26387_v21  ;;  %v26421_v21 = vld [vmem:[#allocation2 + $0x1f0] sm:$0xff] }
  0xe2   :  { %21293 = vmatprep.mubr.msk.bf16.mxu1 %vm911_vm4, %v26395_v55  ;;  %32586 = vst [vmem:[#allocation155_spill] sm:$0xff] %v26419_v37  ;;  %v26427_v55 = vpack.c.bf16 %v26423_v58, %v26421_v21  ;;  %v26445_v58 = vpack.c.bf16 %v25703_v60, %v26441_v3  ;;  %v26471_v60 = vpack.c.bf16 %v25751_v59, %v25713_v4  ;;  %v32604_v59 = vld [vmem:[#allocation46_spill] sm:$0xff] }
  0xe3   :  { %v26495_v4 = vpack.c.bf16 %v25795_v15, %v25761_v7  ;;  %v32606_v7 = vld [vmem:[#allocation50_spill] sm:$0xff]  ;;  %v32610_v15 = vld [vmem:[#allocation52_spill] sm:$0xff] }
  0xe4   :  { %32588 = vst [vmem:[#allocation157_spill] sm:$0xff] %v26427_v55  ;;  %32590 = vst [vmem:[#allocation159_spill] sm:$0xff] %v26445_v58 }
  0xe5   :  { %32594 = vst [vmem:[#allocation163_spill] sm:$0xff] %v26471_v60  ;;  %32598 = vst [vmem:[#allocation167_spill] sm:$0xff] %v26495_v4 }
  0xe7   :  { %20700 = vmatmul.mubr.msk.bf16.gmra.mrb[16].mxu0 %vm911_vm4, %v26411_v45 }
  0xe8   :  { %20703 = vmatprep.mubr.msk.bf16.mxu0 %vm911_vm4, %v26419_v37  ;;  %v26455_v37 = vpack.c.bf16 %v25719_v10, %v26451_v27  ;;  %v26483_v10 = vpack.c.bf16 %v25774_v28, %v25772_v40  ;;  %v172_v28 = vpack.c.bf16 %v25809_v42, %v25803_v20  ;;  %v173_v42 = vpack.c.bf16 %v25835_v26, %v25811_v50  ;;  %v32601_v20 = vld [vmem:[#allocation39_spill] sm:$0xff]  ;;  %v32609_v50 = vld [vmem:[#allocation48_spill] sm:$0xff] }
  0xe9   :  { %21294 = vmatmul.mubr.msk.bf16.gmra.mrb[16].mxu1 %vm911_vm4, %v26427_v55  ;;  %v26459_v55 = vpack.c.bf16 %v25726_v18, %v25724_v16  ;;  %v26501_v16 = vpack.c.bf16 %v25801_v36, %v25776_v32  ;;  %v4725_v18 = vpack.c.bf16 %v25819_v46, %v25817_v5  ;;  %v26515_v32 = vpack.c.bf16 %v32600_v19, %v25841_v57  ;;  %v32602_v36 = vld [vmem:[#allocation44_spill] sm:$0xff]  ;;  %v32603_v5 = vld [vmem:[#allocation45_spill] sm:$0xff]  ;;  %v32615_v19 = vld [vmem:[#allocation59_spill] sm:$0xff] }
  0xea   :  { %21297 = vmatprep.mubr.msk.bf16.mxu1 %vm911_vm4, %v26431_v63  ;;  %32592 = vst [vmem:[#allocation161_spill] sm:$0xff] %v26455_v37  ;;  %32597 = vst [vmem:[#allocation166_spill] sm:$0xff] %v26483_v10  ;;  %v4726_v46 = vpack.c.bf16 %v32602_v36, %v32601_v20  ;;  %v26521_v41 = vpack.c.bf16 %v32604_v59, %v32603_v5  ;;  %v26531_v57 = vpack.c.bf16 %v25879_v39, %v32605_v6  ;;  %v32614_v39 = vld [vmem:[#allocation53_spill] sm:$0xff]  ;;  %v32617_v36 = vld [vmem:[#allocation60_spill] sm:$0xff] }
  0xeb   :  { %32593 = vst [vmem:[#allocation162_spill] sm:$0xff] %v26459_v55  ;;  %32599 = vst [vmem:[#allocation168_spill] sm:$0xff] %v26501_v16  ;;  %v26535_v40 = vpack.c.bf16 %v32607_v22, %v32606_v7  ;;  %v26539_v26 = vpack.c.bf16 %v32610_v15, %v32609_v50  ;;  %v26555_v20 = vpack.c.bf16 %v32615_v19, %v32614_v39  ;;  %v32620_v59 = vld [vmem:[#allocation56_spill] sm:$0xff]  ;;  %v32623_v22 = vld [vmem:[#allocation66_spill] sm:$0xff] }
  0xec   :  { %v32621_v6 = vld [vmem:[#allocation64_spill] sm:$0xff]  ;;  %v32624_v50 = vld [vmem:[#allocation67_spill] sm:$0xff] }
  0xed   :  { %32608 = vst [vmem:[#allocation42_spill] sm:$0xff] %v26535_v40  ;;  %32616 = vst [vmem:[#allocation44_spill] sm:$0xff] %v26555_v20  ;;  %v26563_v7 = vpack.c.bf16 %v32621_v6, %v32620_v59  ;;  %v26567_v15 = vpack.c.bf16 %v32624_v50, %v32623_v22  ;;  %v32629_v19 = vld [vmem:[#allocation72_spill] sm:$0xff]  ;;  %v32635_v50 = vld [vmem:[#allocation77_spill] sm:$0xff] }
  0xee   :  { %v32632_v59 = vld [vmem:[#allocation68_spill] sm:$0xff] }
  0xef   :  { %20704 = vmatmul.mubr.msk.bf16.gmra.mrb[20].mxu0 %vm911_vm4, %v26445_v58  ;;  %32622 = vst [vmem:[#allocation46_spill] sm:$0xff] %v26563_v7  ;;  %32625 = vst [vmem:[#allocation43_spill] sm:$0xff] %v26567_v15  ;;  %v32633_v6 = vld [vmem:[#allocation76_spill] sm:$0xff] }
  0xf0   :  { %20707 = vmatprep.mubr.msk.bf16.mxu0 %vm911_vm4, %v26449_v34  ;;  %v26587_v22 = vpack.c.bf16 %v32633_v6, %v32632_v59  ;;  %v32642_v59 = vld [vmem:[#allocation86_spill] sm:$0xff]  ;;  %v32644_v6 = vld [vmem:[#allocation80_spill] sm:$0xff] }
  0xf1   :  { %21298 = vmatmul.mubr.msk.bf16.gmra.mrb[20].mxu1 %vm911_vm4, %v26455_v37 }
  0xf2   :  { %21301 = vmatprep.mubr.msk.bf16.mxu1 %vm911_vm4, %v26459_v55  ;;  %32634 = vst [vmem:[#allocation48_spill] sm:$0xff] %v26587_v22 }
  0xf7   :  { %20708 = vmatmul.mubr.msk.bf16.gmra.mrb[24].mxu0 %vm911_vm4, %v26471_v60 }
  0xf8   :  { %20711 = vmatprep.mubr.msk.bf16.mxu0 %vm911_vm4, %v26475_v61 }
  0xf9   :  { %21302 = vmatmul.mubr.msk.bf16.gmra.mrb[24].mxu1 %vm911_vm4, %v26479_v1 }
  0xfa   :  { %21305 = vmatprep.mubr.msk.bf16.mxu1 %vm911_vm4, %v26483_v10 }
  0xff   :  { %20712 = vmatmul.mubr.msk.bf16.gmra.mrb[28].mxu0 %vm911_vm4, %v26495_v4 }
 0x100   :  { %20715 = vmatprep.mubr.msk.bf16.mxu0 %vm911_vm4, %v172_v28  ;;  %v32611_v28 = vld [vmem:[#allocation54_spill] sm:$0xff] }
 0x101   :  { %21306 = vmatmul.mubr.msk.bf16.gmra.mrb[28].mxu1 %vm911_vm4, %v26501_v16 }
 0x102   :  { %21309 = vmatprep.mubr.msk.bf16.mxu1 %vm911_vm4, %v4725_v18  ;;  %v32612_v18 = vld [vmem:[#allocation55_spill] sm:$0xff] }
 0x107   :  { %20716 = vmatmul.mubr.msk.bf16.gmra.mrb[32].mxu0 %vm911_vm4, %v173_v42  ;;  %v26543_v42 = vpack.c.bf16 %v32612_v18, %v32611_v28  ;;  %v32626_v28 = vld [vmem:[#allocation62_spill] sm:$0xff]  ;;  %v32627_v18 = vld [vmem:[#allocation71_spill] sm:$0xff] }
 0x108   :  { %20719 = vmatprep.mubr.msk.bf16.mxu0 %vm911_vm4, %v26515_v32  ;;  %v26579_v39 = vpack.c.bf16 %v32627_v18, %v32626_v28  ;;  %v32638_v28 = vld [vmem:[#allocation74_spill] sm:$0xff]  ;;  %v32639_v18 = vld [vmem:[#allocation83_spill] sm:$0xff] }
 0x109   :  { %21310 = vmatmul.mubr.msk.bf16.gmra.mrb[32].mxu1 %vm911_vm4, %v4726_v46  ;;  %32613 = vst [vmem:[#allocation39_spill] sm:$0xff] %v26543_v42  ;;  %v32618_v46 = vld [vmem:[#allocation61_spill] sm:$0xff] }
 0x10a   :  { %21313 = vmatprep.mubr.msk.bf16.mxu1 %vm911_vm4, %v26521_v41  ;;  %v26559_v5 = vpack.c.bf16 %v32618_v46, %v32617_v36  ;;  %32628 = vst [vmem:[#allocation50_spill] sm:$0xff] %v26579_v39  ;;  %v32630_v36 = vld [vmem:[#allocation73_spill] sm:$0xff] }
 0x10b   :  { %v26583_v46 = vpack.c.bf16 %v32630_v36, %v32629_v19  ;;  %v26603_v19 = vpack.c.bf16 %v32639_v18, %v32638_v28  ;;  %v32641_v36 = vld [vmem:[#allocation85_spill] sm:$0xff]  ;;  %v32650_v28 = vld [vmem:[#allocation87_spill] sm:$0xff] }
 0x10c   :  { %32619 = vst [vmem:[#allocation45_spill] sm:$0xff] %v26559_v5  ;;  %v32651_v18 = vld [vmem:[#allocation95_spill] sm:$0xff] }
 0x10d   :  { %32631 = vst [vmem:[#allocation51_spill] sm:$0xff] %v26583_v46  ;;  %32640 = vst [vmem:[#allocation54_spill] sm:$0xff] %v26603_v19 }
 0x10f   :  { %20720 = vmatmul.mubr.msk.bf16.gmra.mrb[36].mxu0 %vm911_vm4, %v26531_v57 }
 0x110   :  { %20723 = vmatprep.mubr.msk.bf16.mxu0 %vm911_vm4, %v26535_v40 }
 0x111   :  { %21314 = vmatmul.mubr.msk.bf16.gmra.mrb[36].mxu1 %vm911_vm4, %v26539_v26 }
 0x112   :  { %21317 = vmatprep.mubr.msk.bf16.mxu1 %vm911_vm4, %v26543_v42 }
 0x117   :  { %20724 = vmatmul.mubr.msk.bf16.gmra.mrb[40].mxu0 %vm911_vm4, %v26555_v20 }
 0x118   :  { %20727 = vmatprep.mubr.msk.bf16.mxu0 %vm911_vm4, %v26559_v5  ;;  %v32636_v5 = vld [vmem:[#allocation79_spill] sm:$0xff] }
 0x119   :  { %21318 = vmatmul.mubr.msk.bf16.gmra.mrb[40].mxu1 %vm911_vm4, %v26563_v7  ;;  %v26591_v20 = vpack.c.bf16 %v32636_v5, %v32635_v50  ;;  %v26607_v5 = vpack.c.bf16 %v32642_v59, %v32641_v36  ;;  %v32645_v50 = vld [vmem:[#allocation88_spill] sm:$0xff]  ;;  %v26627_v36 = vpack.c.bf16 %v32651_v18, %v32650_v28  ;;  %v32662_v28 = vld [vmem:[#allocation98_spill] sm:$0xff]  ;;  %v32663_v18 = vld [vmem:[#allocation107_spill] sm:$0xff] }
 0x11a   :  { %21321 = vmatprep.mubr.msk.bf16.mxu1 %vm911_vm4, %v26567_v15  ;;  %v32647_v15 = vld [vmem:[#allocation90_spill] sm:$0xff]  ;;  %v32653_v59 = vld [vmem:[#allocation96_spill] sm:$0xff] }
 0x11b   :  { %32637 = vst [vmem:[#allocation52_spill] sm:$0xff] %v26591_v20  ;;  %32643 = vst [vmem:[#allocation55_spill] sm:$0xff] %v26607_v5 }
 0x11c   :  { %32652 = vst [vmem:[#allocation60_spill] sm:$0xff] %v26627_v36 }
 0x11f   :  { %20728 = vmatmul.mubr.msk.bf16.gmra.mrb[44].mxu0 %vm911_vm4, %v26579_v39  ;;  %v26611_v39 = vpack.c.bf16 %v32645_v50, %v32644_v6  ;;  %v32654_v6 = vld [vmem:[#allocation97_spill] sm:$0xff]  ;;  %v32657_v50 = vld [vmem:[#allocation100_spill] sm:$0xff] }
 0x120   :  { %20731 = vmatprep.mubr.msk.bf16.mxu0 %vm911_vm4, %v26583_v46  ;;  %v32648_v46 = vld [vmem:[#allocation91_spill] sm:$0xff] }
 0x121   :  { %21322 = vmatmul.mubr.msk.bf16.gmra.mrb[44].mxu1 %vm911_vm4, %v26587_v22  ;;  %32646 = vst [vmem:[#allocation53_spill] sm:$0xff] %v26611_v39  ;;  %v26615_v7 = vpack.c.bf16 %v32648_v46, %v32647_v15  ;;  %v26631_v15 = vpack.c.bf16 %v32654_v6, %v32653_v59  ;;  %v32656_v46 = vld [vmem:[#allocation92_spill] sm:$0xff]  ;;  %v26651_v59 = vpack.c.bf16 %v32663_v18, %v32662_v28  ;;  %v511_v6 = vrot.slane %v26215_v43, 2 }
 0x122   :  { %21325 = vmatprep.mubr.msk.bf16.mxu1 %vm911_vm4, %v26591_v20  ;;  %v32659_v20 = vld [vmem:[#allocation102_spill] sm:$0xff]  ;;  %v5062_v28 = vrot.slane %v26223_v23, 2  ;;  %v32673_v43 = vld [vmem:[#allocation108_spill] sm:$0xff] }
 0x123   :  { %32649 = vst [vmem:[#allocation59_spill] sm:$0xff] %v26615_v7  ;;  %32655 = vst [vmem:[#allocation61_spill] sm:$0xff] %v26631_v15 }
 0x124   :  { %32664 = vst [vmem:[#allocation66_spill] sm:$0xff] %v26651_v59 }
 0x127   :  { %20732 = vmatmul.mubr.msk.bf16.gmra.mrb[48].mxu0 %vm911_vm4, %v26603_v19  ;;  %v26635_v19 = vpack.c.bf16 %v32657_v50, %v32656_v46  ;;  %v32666_v46 = vld [vmem:[#allocation104_spill] sm:$0xff]  ;;  %v32667_v50 = vld [vmem:[#allocation110_spill] sm:$0xff] }
 0x128   :  { %20735 = vmatprep.mubr.msk.bf16.mxu0 %vm911_vm4, %v26607_v5  ;;  %v32660_v5 = vld [vmem:[#allocation103_spill] sm:$0xff] }
 0x129   :  { %21326 = vmatmul.mubr.msk.bf16.gmra.mrb[48].mxu1 %vm911_vm4, %v26611_v39  ;;  %32658 = vst [vmem:[#allocation56_spill] sm:$0xff] %v26635_v19  ;;  %v26639_v22 = vpack.c.bf16 %v32660_v5, %v32659_v20  ;;  %v26655_v20 = vpack.c.bf16 %v26139_v47, %v26137_v44  ;;  %v510_v5 = vrot.slane %v26213_v56, 2  ;;  %v32672_v47 = vrot.slane %v25558_v8, 2 }
 0x12a   :  { %21329 = vmatprep.mubr.msk.bf16.mxu1 %vm911_vm4, %v26615_v7  ;;  %v519_v8 = vrot.slane %v26240_v29, 2 }
 0x12b   :  { %32661 = vst [vmem:[#allocation64_spill] sm:$0xff] %v26639_v22  ;;  %32665 = vst [vmem:[#allocation67_spill] sm:$0xff] %v26655_v20  ;;  %v512_v44 = vsel %vm509_vm3, %v510_v5, %v511_v6  ;;  %v514_v56 = vsel %vm509_vm3, %v511_v6, %v32672_v47  ;;  %v520_v6 = vrot.slane %v26242_v49, 2  ;;  %v524_v49 = vrot.slane %v26279_v33, 2 }
 0x12c   :  { %v718_v18 = vpack.c.bf16 %v514_v56, %v512_v44  ;;  %v5075_v44 = vrot.slane %v26295_v0, 2  ;;  %v25119_v56 = vld [vmem:[#allocation2 + $0x188] sm:$0x3]  ;;  %v5079_v0 = vrot.slane %v26301_v53, 2 }
 0x12f   :  { %20736 = vmatmul.mubr.msk.bf16.gmra.mrb[52].mxu0 %vm911_vm4, %v26627_v36  ;;  %v32670_v36 = vld [vmem:[#allocation113_spill] sm:$0xff] }
 0x130   :  { %20739 = vmatprep.mubr.msk.bf16.mxu0 %vm911_vm4, %v26631_v15  ;;  %v26661_v15 = vpack.c.bf16 %v32667_v50, %v32666_v46  ;;  %v32676_v46 = vld [vmem:[#allocation114_spill] sm:$0xff]  ;;  %v522_v50 = vrot.slane %v26277_v9, 2 }
 0x131   :  { %21330 = vmatmul.mubr.msk.bf16.gmra.mrb[52].mxu1 %vm911_vm4, %v26635_v19  ;;  %v32669_v19 = vld [vmem:[#allocation112_spill] sm:$0xff]  ;;  %v26691_v5 = vpack.c.bf16 %v26189_v24, %v32676_v46  ;;  %v521_v24 = vsel %vm509_vm3, %v519_v8, %v520_v6  ;;  %v32678_v46 = vld [vmem:[#allocation13_spill] sm:$0xff] }
 0x132   :  { %21333 = vmatprep.mubr.msk.bf16.mxu1 %vm911_vm4, %v26639_v22  ;;  %32668 = vst [vmem:[#allocation62_spill] sm:$0xff] %v26661_v15  ;;  %v26665_v7 = vpack.c.bf16 %v32670_v36, %v32669_v19  ;;  %v5061_v22 = vrot.slane %v26221_v51, 2  ;;  %v26683_v51 = vpack.c.bf16 %v26179_v2, %v32673_v43  ;;  %v32675_v19 = vrot.slane %v25570_v25, 2 }
 0x133   :  { %32677 = vst [vmem:[#allocation73_spill] sm:$0xff] %v26691_v5  ;;  %v5070_v2 = vrot.slane %v26248_v54, 2  ;;  %v5071_v25 = vrot.slane %v26250_v52, 2  ;;  %v523_v29 = vsel %vm509_vm3, %v520_v6, %v522_v50  ;;  %v25118_v52 = vld [vmem:[#allocation2 + $0x48] sm:$0x3]  ;;  %v5077_v43 = vrot.slane %v25119_v56, 2 }
 0x134   :  { %32671 = vst [vmem:[#allocation71_spill] sm:$0xff] %v26665_v7  ;;  %32674 = vst [vmem:[#allocation72_spill] sm:$0xff] %v26683_v51  ;;  %v5063_v23 = vsel %vm509_vm3, %v5061_v22, %v5062_v28  ;;  %v5065_v36 = vsel %vm509_vm3, %v5062_v28, %v32675_v19  ;;  %v5073_v22 = vrot.slane %v26293_v12, 2  ;;  %v526_v28 = vrot.slane %v25118_v52, 2  ;;  %v32685_v56 = vld [vmem:[#allocation131_spill] sm:$0xff] }
 0x135   :  { %v5269_v47 = vpack.c.bf16 %v5065_v36, %v5063_v23  ;;  %v5072_v9 = vsel %vm509_vm3, %v5070_v2, %v5071_v25  ;;  %v26710_v12 = vpack.c.bf16 %v523_v29, %v521_v24  ;;  %v528_v23 = vrot.slane %v26285_v13, 2  ;;  %v25055_v24 = vld [vmem:[#allocation5 + $0x4] ss:$0 sps:$4 sm:$0xcc]  }
 0x136   :  { %v5074_v54 = vsel %vm509_vm3, %v5071_v25, %v5073_v22  ;;  %v529_v19 = vrot.slane %v26287_v31, 2  ;;  %v531_v36 = vrot.slane %v26324_v17, 2  ;;  %v525_v33 = vsel %vm509_vm3, %v522_v50, %v524_v49  ;;  %v25054_v31 = vld [vmem:[#allocation5 + $0x4] ss:$0 sps:$4 sm:$0xcc]   ;;  %v32680_v50 = vld [vmem:[#allocation125_spill] sm:$0xff] }
 0x137   :  { %20740 = vmatmul.mubr.msk.bf16.gmra.mrb[56].mxu0 %vm911_vm4, %v26651_v59  ;;  %v32679_v8 = vpack.c.bf16 %v26236_v48, %v32678_v46  ;;  %v527_v6 = vsel %vm509_vm3, %v524_v49, %v526_v28  ;;  %v5082_v13 = vrot.slane %v26341_v62, 2  ;;  %v5076_v17 = vsel %vm509_vm3, %v5073_v22, %v5075_v44  ;;  %v32681_v48 = vld [vmem:[#allocation14_spill] sm:$0xff]  ;;  %v32686_v46 = vld [vmem:[#allocation133_spill] sm:$0xff] }
 0x138   :  { %20743 = vmatprep.mubr.msk.bf16.mxu0 %vm911_vm4, %v26655_v20  ;;  %v32682_v2 = vpack.c.bf16 %v32680_v50, %v32681_v48  ;;  %v5078_v25 = vsel %vm509_vm3, %v5075_v44, %v5077_v43  ;;  %v530_v53 = vsel %vm509_vm3, %v528_v23, %v529_v19  ;;  %v2535_v62 = vrot.slane %v25054_v31, 2  ;;  %v32683_v29 = vld [vmem:[#allocation130_spill] sm:$0xff]  ;;  %v25120_v23 = vld [vmem:[#allocation2 + $0x70] sm:$0x3]  ;;  %v32688_v31 = vld [vmem:[#allocation141_spill] sm:$0xff] }
 0x139   :  { %21334 = vmatmul.mubr.msk.bf16.gmra.mrb[56].mxu1 %vm911_vm4, %v26661_v15  ;;  %v7081_v52 = vrot.slane %v25055_v24, 2  ;;  %v26748_v28 = vpack.c.bf16 %v5078_v25, %v5076_v17  ;;  %v533_v43 = vrot.slane %v32685_v56, 2  ;;  %v32690_v17 = vld [vmem:[#allocation136_spill] sm:$0xff] }
 0x13a   :  { %21337 = vmatprep.mubr.msk.bf16.mxu1 %vm911_vm4, %v26665_v7  ;;  %v5084_v48 = vrot.slane %v32690_v17, 2 }
 0x13f   :  { %20744 = vmatmul.mubr.msk.bf16.gmra.mrb[60].mxu0 %vm911_vm4, %v26683_v51 }
 0x140   :  { %20749 = vmatprep.mubr.msk.bf16.mxu0 %vm911_vm4, %v718_v18  ;;  %v26716_v18 = vpack.c.bf16 %v5074_v54, %v5072_v9  ;;  %v32684_v9 = vld [vmem:[#allocation12_spill] sm:$0xff] }
 0x141   :  { %21338 = vmatmul.mubr.msk.bf16.gmra.mrb[60].mxu1 %vm911_vm4, %v26691_v5  ;;  %v26746_v54 = vand.u32 %v2535_v62, %v32684_v9  ;;  %v32692_v62 = vld [vmem:[#allocation139_spill] sm:$0xff] }
 0x142   :  { %21343 = vmatprep.mubr.msk.bf16.mxu1 %vm911_vm4, %v5269_v47  ;;  %v5080_v47 = vrot.slane %v26303_v11, 2  ;;  %v532_v11 = vsel %vm509_vm3, %v529_v19, %v531_v36  ;;  %v535_v19 = vrot.slane %v25120_v23, 2  ;;  %v5089_v24 = vrot.slane %v32692_v62, 2  ;;  %v32698_v62 = vld [vmem:[#allocation145_spill] sm:$0xff] }
 0x143   :  { %v26750_v44 = vpack.c.bf16 %v532_v11, %v530_v53  ;;  %v32691_v53 = vld [vmem:[#allocation138_spill] sm:$0xff] }
 0x144   :  { %v5081_v22 = vsel %vm509_vm3, %v5079_v0, %v5080_v47  ;;  %v5083_v49 = vsel %vm509_vm3, %v5080_v47, %v5082_v13  ;;  %v540_v0 = vrot.slane %v32688_v31, 2  ;;  %v26758_v47 = vand.u32 %v7081_v52, %v32684_v9 }
 0x145   :  { %v26760_v50 = vpack.c.bf16 %v5083_v49, %v5081_v22  ;;  %v5088_v11 = vrot.slane %v32691_v53, 2  ;;  %v534_v22 = vsel %vm509_vm3, %v531_v36, %v533_v43  ;;  %v536_v49 = vsel %vm509_vm3, %v533_v43, %v535_v19 }
 0x147   :  { %20750 = vmatmul.mubr.msk.bf16.vlgmr.msra.gmra.mrb[0].mxu0 %vm911_vm4, %v32679_v8  ;;  %v537_v8 = vrot.slane %v32686_v46, 2  ;;  %32689 = vst [vmem:[#allocation68_spill] sm:$0xff] %v26760_v50  ;;  %v26781_v46 = vpack.c.bf16 %v536_v49, %v534_v22  ;;  %v5090_v36 = vsel %vm509_vm3, %v5088_v11, %v5089_v24  ;;  %v32700_v22 = vld [vmem:[#allocation147_spill] sm:$0xff]  ;;  %v25123_v49 = vld [vmem:[#allocation2 + $0x1d8] sm:$0x3] }
 0x148   :  { %20814 = vmatpush3.bf16.msra.mxu0 %v26312_v14  ;;  %20753 = vmatprep.mubr.msk.bf16.mxu0 %vm911_vm4, %v26710_v12  ;;  %v26741_v14 = vpack.c.bf16 %v527_v6, %v525_v33  ;;  %v32687_v33 = vld [vmem:[#allocation134_spill] sm:$0xff]  ;;  %v5093_v11 = vrot.slane %v32700_v22, 2  ;;  %v32705_v22 = vld [vmem:[#allocation152_spill] sm:$0xff] }
 0x149   :  { %21344 = vmatmul.mubr.msk.bf16.vlgmr.msra.gmra.mrb[0].mxu1 %vm911_vm4, %v32682_v2  ;;  %v538_v6 = vrot.slane %v32687_v33, 2  ;;  %20879 = vmatprep.subr.bf16.mxu0 %v26746_v54  ;;  %v25121_v2 = vld [vmem:[#allocation2 + $0x1b0] sm:$0x3]  ;;  %32693 = vst [vmem:[#allocation76_spill] sm:$0xff] %v26781_v46  ;;  %v32695_v33 = vld [vmem:[#allocation142_spill] sm:$0xff] }
 0x14a   :  { %21408 = vmatpush3.bf16.msra.mxu1 %v32683_v29  ;;  %21347 = vmatprep.mubr.msk.bf16.mxu1 %vm911_vm4, %v26716_v18  ;;  %v5086_v25 = vrot.slane %v25121_v2, 2  ;;  %v5091_v29 = vrot.slane %v26381_v38, 2  ;;  %v5085_v38 = vsel %vm509_vm3, %v5082_v13, %v5084_v48  ;;  %v542_v31 = vrot.slane %v32695_v33, 2  ;;  %v32697_v2 = vld [vmem:[#allocation144_spill] sm:$0xff]  ;;  %v32702_v33 = vld [vmem:[#allocation150_spill] sm:$0xff] }
 0x14b   :  { %21473 = vmatprep.subr.bf16.mxu1 %v26758_v47  ;;  %v539_v52 = vsel %vm509_vm3, %v537_v8, %v538_v6  ;;  %v541_v56 = vsel %vm509_vm3, %v538_v6, %v540_v0  ;;  %v25122_v8 = vld [vmem:[#allocation2 + $0x98] sm:$0x3]  ;;  %v546_v53 = vrot.slane %v32697_v2, 2  ;;  %v547_v13 = vrot.slane %v32698_v62, 2 }
 0x14c   :  { %v5087_v23 = vsel %vm509_vm3, %v5084_v48, %v5086_v25  ;;  %v5092_v43 = vsel %vm509_vm3, %v5089_v24, %v5091_v29  ;;  %v26785_v19 = vpack.c.bf16 %v541_v56, %v539_v52  ;;  %v544_v17 = vrot.slane %v25122_v8, 2  ;;  %v32701_v52 = vld [vmem:[#allocation149_spill] sm:$0xff] }
 0x14d   :  { %v26788_v6 = vpack.c.bf16 %v5087_v23, %v5085_v38  ;;  %v549_v48 = vrot.slane %v26405_v30, 2  ;;  %v26793_v25 = vpack.c.bf16 %v5092_v43, %v5090_v36  ;;  %v5095_v24 = vrot.slane %v25123_v49, 2 }
 0x14e   :  { %32694 = vst [vmem:[#allocation77_spill] sm:$0xff] %v26785_v19  ;;  %v5097_v56 = vrot.slane %v32701_v52, 2  ;;  %v5098_v38 = vrot.slane %v32702_v33, 2  ;;  %v5100_v23 = vrot.slane %v26421_v21, 2  ;;  %v543_v30 = vsel %vm509_vm3, %v540_v0, %v542_v31 }
 0x14f   :  { %20754 = vmatmul.mubr.msk.bf16.gmra.mrb[4].mxu0 %vm911_vm4, %v26741_v14  ;;  %32696 = vst [vmem:[#allocation79_spill] sm:$0xff] %v26788_v6  ;;  %32699 = vst [vmem:[#allocation74_spill] sm:$0xff] %v26793_v25  ;;  %v545_v36 = vsel %vm509_vm3, %v542_v31, %v544_v17  ;;  %v548_v43 = vsel %vm509_vm3, %v546_v53, %v547_v13  ;;  %v550_v8 = vsel %vm509_vm3, %v547_v13, %v549_v48  ;;  %v25124_v53 = vld [vmem:[#allocation2 + $0xc0] sm:$0x3] }
 0x150   :  { %20757 = vmatprep.mubr.msk.bf16.mxu0 %vm911_vm4, %v26750_v44  ;;  %v5094_v2 = vsel %vm509_vm3, %v5091_v29, %v5093_v11  ;;  %v5096_v21 = vsel %vm509_vm3, %v5093_v11, %v5095_v24  ;;  %v26813_v62 = vpack.c.bf16 %v545_v36, %v543_v30  ;;  %v5099_v0 = vsel %vm509_vm3, %v5097_v56, %v5098_v38  ;;  %v32709_v30 = vld [vmem:[#allocation156_spill] sm:$0xff]  ;;  %v25125_v36 = vld [vmem:[#allocation2 + $0x200] sm:$0x3] }
 0x151   :  { %21348 = vmatmul.mubr.msk.bf16.gmra.mrb[4].mxu1 %vm911_vm4, %v26748_v28  ;;  %v5101_v31 = vsel %vm509_vm3, %v5098_v38, %v5100_v23  ;;  %v26817_v17 = vpack.c.bf16 %v550_v8, %v548_v43  ;;  %v551_v49 = vrot.slane %v32705_v22, 2  ;;  %v553_v52 = vrot.slane %v25124_v53, 2  ;;  %v25126_v43 = vld [vmem:[#allocation2 + $0x208] sm:$0xff]  ;;  %v25127_v22 = vld [vmem:[#allocation2 + $0x210] sm:$0xff] }
 0x152   :  { %21351 = vmatprep.mubr.msk.bf16.mxu1 %vm911_vm4, %v26760_v50  ;;  %32703 = vst [vmem:[#allocation83_spill] sm:$0xff] %v26813_v62  ;;  %v26820_v13 = vpack.c.bf16 %v5096_v21, %v5094_v2  ;;  %v555_v33 = vrot.slane %v26413_v35, 2  ;;  %v558_v11 = vrot.slane %v26441_v3, 2  ;;  %v26825_v24 = vpack.c.bf16 %v5101_v31, %v5099_v0 }
 0x153   :  { %32704 = vst [vmem:[#allocation85_spill] sm:$0xff] %v26817_v17  ;;  %v5102_v56 = vrot.slane %v32709_v30, 2  ;;  %v5104_v38 = vrot.slane %v25125_v36, 2  ;;  %v5106_v8 = vrot.slane %v25126_v43, 2  ;;  %v5107_v2 = vrot.slane %v25127_v22, 2  ;;  %v25128_v30 = vld [vmem:[#allocation2 + $0xe0] sm:$0xff] }
 0x154   :  { %32706 = vst [vmem:[#allocation86_spill] sm:$0xff] %v26820_v13  ;;  %32708 = vst [vmem:[#allocation80_spill] sm:$0xff] %v26825_v24  ;;  %v5109_v21 = vrot.slane %v26451_v27, 2  ;;  %v552_v35 = vsel %vm509_vm3, %v549_v48, %v551_v49  ;;  %v554_v3 = vsel %vm509_vm3, %v551_v49, %v553_v52  ;;  %v560_v36 = vrot.slane %v25128_v30, 2  ;;  %v25130_v22 = vld [vmem:[#allocation2 + $0xf0] sm:$0xff]  ;;  %v25136_v30 = vld [vmem:[#allocation2 + $0x238] sm:$0xff] }
 0x155   :  { %v5103_v31 = vsel %vm509_vm3, %v5100_v23, %v5102_v56  ;;  %v5105_v27 = vsel %vm509_vm3, %v5102_v56, %v5104_v38  ;;  %v26843_v53 = vpack.c.bf16 %v554_v3, %v552_v35  ;;  %v5108_v48 = vsel %vm509_vm3, %v5106_v8, %v5107_v2  ;;  %v25133_v35 = vld [vmem:[#allocation2 + $0x220] sm:$0xff]  ;;  %v25134_v3 = vld [vmem:[#allocation2 + $0x228] sm:$0x3] }
 0x156   :  { %v5110_v49 = vsel %vm509_vm3, %v5107_v2, %v5109_v21  ;;  %v5111_v8 = vrot.slane %v25133_v35, 2  ;;  %v5113_v2 = vrot.slane %v25134_v3, 2 }
 0x157   :  { %20758 = vmatmul.mubr.msk.bf16.gmra.mrb[8].mxu0 %vm911_vm4, %v26781_v46  ;;  %32710 = vst [vmem:[#allocation88_spill] sm:$0xff] %v26843_v53  ;;  %v26851_v38 = vpack.c.bf16 %v5110_v49, %v5108_v48 }
 0x158   :  { %20761 = vmatprep.mubr.msk.bf16.mxu0 %vm911_vm4, %v26785_v19  ;;  %v5114_v35 = vsel %vm509_vm3, %v5111_v8, %v5113_v2 }
 0x159   :  { %21352 = vmatmul.mubr.msk.bf16.gmra.mrb[8].mxu1 %vm911_vm4, %v26788_v6  ;;  %32713 = vst [vmem:[#allocation87_spill] sm:$0xff] %v26851_v38 }
 0x15a   :  { %21355 = vmatprep.mubr.msk.bf16.mxu1 %vm911_vm4, %v26793_v25  ;;  %v32707_v25 = vld [vmem:[#allocation154_spill] sm:$0xff] }
 0x15b   :  { %v556_v29 = vrot.slane %v32707_v25, 2 }
 0x15d   :  { %v557_v25 = vsel %vm509_vm3, %v555_v33, %v556_v29  ;;  %v559_v0 = vsel %vm509_vm3, %v556_v29, %v558_v11  ;;  %v25129_v33 = vld [vmem:[#allocation2 + $0xe8] sm:$0x3]  ;;  %v26849_v29 = vpack.c.bf16 %v5105_v27, %v5103_v31  ;;  %v5116_v31 = vrot.slane %v25136_v30, 2  ;;  %v25137_v27 = vld [vmem:[#allocation2 + $0x240] sm:$0xff] }
 0x15e   :  { %v26847_v52 = vpack.c.bf16 %v559_v0, %v557_v25  ;;  %v562_v43 = vrot.slane %v25129_v33, 2  ;;  %v25135_v25 = vld [vmem:[#allocation2 + $0x230] sm:$0xff]  ;;  %v5118_v33 = vrot.slane %v25137_v27, 2 }
 0x15f   :  { %20762 = vmatmul.mubr.msk.bf16.gmra.mrb[12].mxu0 %vm911_vm4, %v26813_v62  ;;  %32712 = vst [vmem:[#allocation91_spill] sm:$0xff] %v26849_v29  ;;  %v5115_v0 = vrot.slane %v25135_v25, 2  ;;  %v25138_v25 = vld [vmem:[#allocation2 + $0x108] sm:$0xff] }
 0x160   :  { %20765 = vmatprep.mubr.msk.bf16.mxu0 %vm911_vm4, %v26817_v17  ;;  %32711 = vst [vmem:[#allocation90_spill] sm:$0xff] %v26847_v52  ;;  %v25132_v17 = vld [vmem:[#allocation2 + $0x100] sm:$0xff]  ;;  %v569_v30 = vrot.slane %v25138_v25, 2 }
 0x161   :  { %21356 = vmatmul.mubr.msk.bf16.gmra.mrb[12].mxu1 %vm911_vm4, %v26820_v13  ;;  %v25131_v13 = vld [vmem:[#allocation2 + $0xf8] sm:$0xff]  ;;  %v567_v56 = vrot.slane %v25132_v17, 2  ;;  %v561_v17 = vsel %vm509_vm3, %v558_v11, %v560_v36  ;;  %v5117_v11 = vsel %vm509_vm3, %v5115_v0, %v5116_v31  ;;  %v25146_v25 = vld [vmem:[#allocation2 + $0x260] sm:$0xff] }
 0x162   :  { %21359 = vmatprep.mubr.msk.bf16.mxu1 %vm911_vm4, %v26825_v24  ;;  %v564_v24 = vrot.slane %v25130_v22, 2  ;;  %v565_v23 = vrot.slane %v25131_v13, 2  ;;  %v563_v13 = vsel %vm509_vm3, %v560_v36, %v562_v43  ;;  %v5112_v22 = vsel %vm509_vm3, %v5109_v21, %v5111_v8 }
 0x163   :  { %v26867_v3 = vpack.c.bf16 %v563_v13, %v561_v17  ;;  %v5119_v36 = vsel %vm509_vm3, %v5116_v31, %v5118_v33  ;;  %v25143_v17 = vld [vmem:[#allocation2 + $0x248] sm:$0xff]  ;;  %v25144_v13 = vld [vmem:[#allocation2 + $0x250] sm:$0x3] }
 0x164   :  { %v566_v48 = vsel %vm509_vm3, %v564_v24, %v565_v23  ;;  %v568_v49 = vsel %vm509_vm3, %v565_v23, %v567_v56  ;;  %v25139_v24 = vld [vmem:[#allocation2 + $0x110] sm:$0x3]  ;;  %v26873_v23 = vpack.c.bf16 %v5114_v35, %v5112_v22  ;;  %v26875_v2 = vpack.c.bf16 %v5119_v36, %v5117_v11  ;;  %v25147_v35 = vld [vmem:[#allocation2 + $0x268] sm:$0xff] }
 0x165   :  { %32714 = vst [vmem:[#allocation95_spill] sm:$0xff] %v26867_v3  ;;  %v26871_v43 = vpack.c.bf16 %v568_v49, %v566_v48  ;;  %v571_v27 = vrot.slane %v25139_v24, 2  ;;  %v5120_v0 = vrot.slane %v25143_v17, 2  ;;  %v5122_v31 = vrot.slane %v25144_v13, 2  ;;  %v25145_v48 = vld [vmem:[#allocation2 + $0x258] sm:$0xff] }
 0x166   :  { %32716 = vst [vmem:[#allocation97_spill] sm:$0xff] %v26873_v23  ;;  %32717 = vst [vmem:[#allocation92_spill] sm:$0xff] %v26875_v2  ;;  %v5124_v49 = vrot.slane %v25145_v48, 2  ;;  %v5125_v22 = vrot.slane %v25146_v25, 2  ;;  %v5127_v24 = vrot.slane %v25147_v35, 2  ;;  %v25148_v48 = vld [vmem:[#allocation2 + $0x130] sm:$0xff] }
 0x167   :  { %20766 = vmatmul.mubr.msk.bf16.gmra.mrb[16].mxu0 %vm911_vm4, %v26843_v53  ;;  %32715 = vst [vmem:[#allocation96_spill] sm:$0xff] %v26871_v43  ;;  %v25142_v53 = vld [vmem:[#allocation2 + $0x128] sm:$0xff]  ;;  %v5121_v36 = vsel %vm509_vm3, %v5118_v33, %v5120_v0  ;;  %v5123_v17 = vsel %vm509_vm3, %v5120_v0, %v5122_v31  ;;  %v578_v25 = vrot.slane %v25148_v48, 2  ;;  %v25156_v48 = vld [vmem:[#allocation2 + $0x698] sm:$0xff] }
 0x168   :  { %20769 = vmatprep.mubr.msk.bf16.mxu0 %vm911_vm4, %v26847_v52  ;;  %v25141_v52 = vld [vmem:[#allocation2 + $0x120] sm:$0xff]  ;;  %v576_v8 = vrot.slane %v25142_v53, 2  ;;  %v570_v53 = vsel %vm509_vm3, %v567_v56, %v569_v30  ;;  %v5126_v56 = vsel %vm509_vm3, %v5124_v49, %v5125_v22 }
 0x169   :  { %21360 = vmatmul.mubr.msk.bf16.gmra.mrb[16].mxu1 %vm911_vm4, %v26849_v29  ;;  %v25140_v29 = vld [vmem:[#allocation2 + $0x118] sm:$0xff]  ;;  %v574_v21 = vrot.slane %v25141_v52, 2  ;;  %v572_v52 = vsel %vm509_vm3, %v569_v30, %v571_v27  ;;  %v5128_v30 = vsel %vm509_vm3, %v5125_v22, %v5127_v24 }
 0x16a   :  { %21363 = vmatprep.mubr.msk.bf16.mxu1 %vm911_vm4, %v26851_v38  ;;  %v573_v38 = vrot.slane %v25140_v29, 2  ;;  %v26891_v13 = vpack.c.bf16 %v572_v52, %v570_v53  ;;  %v26899_v31 = vpack.c.bf16 %v5128_v30, %v5126_v56  ;;  %v25153_v53 = vld [vmem:[#allocation2 + $0x270] sm:$0xff]  ;;  %v25154_v52 = vld [vmem:[#allocation2 + $0x278] sm:$0x3] }
 0x16b   :  { %v577_v11 = vsel %vm509_vm3, %v574_v21, %v576_v8  ;;  %v5129_v49 = vrot.slane %v25153_v53, 2  ;;  %v5131_v22 = vrot.slane %v25154_v52, 2 }
 0x16c   :  { %v575_v29 = vsel %vm509_vm3, %v573_v38, %v574_v21  ;;  %32718 = vst [vmem:[#allocation100_spill] sm:$0xff] %v26891_v13  ;;  %v25149_v38 = vld [vmem:[#allocation2 + $0x138] sm:$0x3]  ;;  %v26897_v21 = vpack.c.bf16 %v5123_v17, %v5121_v36  ;;  %32721 = vst [vmem:[#allocation98_spill] sm:$0xff] %v26899_v31  ;;  %v5134_v36 = vrot.slane %v25156_v48, 2  ;;  %v25157_v17 = vld [vmem:[#allocation2 + $0x6a0] sm:$0xff] }
 0x16d   :  { %v26895_v27 = vpack.c.bf16 %v577_v11, %v575_v29  ;;  %v580_v35 = vrot.slane %v25149_v38, 2  ;;  %v25155_v29 = vld [vmem:[#allocation2 + $0x690] sm:$0xff]  ;;  %v5136_v38 = vrot.slane %v25157_v17, 2  ;;  %v5130_v30 = vsel %vm509_vm3, %v5127_v24, %v5129_v49  ;;  %v25162_v24 = vld [vmem:[#allocation2 + $0x588] sm:$0xff] }
 0x16e   :  { %32720 = vst [vmem:[#allocation103_spill] sm:$0xff] %v26897_v21  ;;  %v5133_v11 = vrot.slane %v25155_v29, 2  ;;  %v5132_v53 = vsel %vm509_vm3, %v5129_v49, %v5131_v22  ;;  %v25158_v29 = vld [vmem:[#allocation2 + $0x568] sm:$0xff]  ;;  %v25159_v17 = vld [vmem:[#allocation2 + $0x570] sm:$0x3]  ;;  %v594_v62 = vrot.slane %v25162_v24, 2 }
 0x16f   :  { %20770 = vmatmul.mubr.msk.bf16.gmra.mrb[20].mxu0 %vm911_vm4, %v26867_v3  ;;  %32719 = vst [vmem:[#allocation102_spill] sm:$0xff] %v26895_v27  ;;  %v25152_v3 = vld [vmem:[#allocation2 + $0x560] sm:$0xff]  ;;  %v587_v48 = vrot.slane %v25158_v29, 2  ;;  %v25163_v22 = vld [vmem:[#allocation2 + $0x6a8] sm:$0xff] }
 0x170   :  { %20773 = vmatprep.mubr.msk.bf16.mxu0 %vm911_vm4, %v26871_v43  ;;  %v25151_v43 = vld [vmem:[#allocation2 + $0x558] sm:$0xff]  ;;  %v585_v0 = vrot.slane %v25152_v3, 2  ;;  %v579_v3 = vsel %vm509_vm3, %v576_v8, %v578_v25  ;;  %v5135_v8 = vsel %vm509_vm3, %v5133_v11, %v5134_v36 }
 0x171   :  { %21364 = vmatmul.mubr.msk.bf16.gmra.mrb[20].mxu1 %vm911_vm4, %v26873_v23  ;;  %v25150_v23 = vld [vmem:[#allocation2 + $0x550] sm:$0xff]  ;;  %v583_v33 = vrot.slane %v25151_v43, 2  ;;  %v581_v43 = vsel %vm509_vm3, %v578_v25, %v580_v35  ;;  %v5137_v25 = vsel %vm509_vm3, %v5134_v36, %v5136_v38  ;;  %v25165_v36 = vld [vmem:[#allocation2 + $0x6b8] sm:$0xff] }
 0x172   :  { %21367 = vmatprep.mubr.msk.bf16.mxu1 %vm911_vm4, %v26875_v2  ;;  %v582_v2 = vrot.slane %v25150_v23, 2  ;;  %v26915_v52 = vpack.c.bf16 %v581_v43, %v579_v3  ;;  %v5285_v49 = vpack.c.bf16 %v5137_v25, %v5135_v8  ;;  %v5138_v3 = vrot.slane %v25163_v22, 2  ;;  %v25164_v43 = vld [vmem:[#allocation2 + $0x6b0] sm:$0x3] }
 0x173   :  { %v586_v56 = vsel %vm509_vm3, %v583_v33, %v585_v0  ;;  %v5140_v11 = vrot.slane %v25164_v43, 2 }
 0x174   :  { %v584_v23 = vsel %vm509_vm3, %v582_v2, %v583_v33  ;;  %32722 = vst [vmem:[#allocation107_spill] sm:$0xff] %v26915_v52  ;;  %v589_v2 = vrot.slane %v25159_v17, 2  ;;  %v25160_v33 = vld [vmem:[#allocation2 + $0x578] sm:$0xff] }
 0x175   :  { %v734_v35 = vpack.c.bf16 %v586_v56, %v584_v23  ;;  %v5142_v23 = vrot.slane %v25165_v36, 2  ;;  %v25166_v56 = vld [vmem:[#allocation2 + $0x6c0] sm:$0xff]  ;;  %v5141_v24 = vsel %vm509_vm3, %v5138_v3, %v5140_v11  ;;  %v25169_v36 = vld [vmem:[#allocation2 + $0x598] sm:$0x3] }
 0x176   :  { %v5143_v29 = vrot.slane %v25166_v56, 2  ;;  %v590_v17 = vsel %vm509_vm3, %v587_v48, %v589_v2  ;;  %v598_v56 = vrot.slane %v25169_v36, 2 }
 0x177   :  { %20774 = vmatmul.mubr.msk.bf16.gmra.mrb[24].mxu0 %vm911_vm4, %v26891_v13 }
 0x178   :  { %20777 = vmatprep.mubr.msk.bf16.mxu0 %vm911_vm4, %v26895_v27  ;;  %v591_v27 = vrot.slane %v25160_v33, 2  ;;  %v5139_v33 = vsel %vm509_vm3, %v5136_v38, %v5138_v3  ;;  %v25173_v3 = vld [vmem:[#allocation2 + $0x6d0] sm:$0xff] }
 0x179   :  { %21368 = vmatmul.mubr.msk.bf16.gmra.mrb[24].mxu1 %vm911_vm4, %v26897_v21  ;;  %v26919_v21 = vpack.c.bf16 %v5132_v53, %v5130_v30  ;;  %v25167_v30 = vld [vmem:[#allocation2 + $0x6c8] sm:$0xff]  ;;  %v5147_v11 = vrot.slane %v25173_v3, 2 }
 0x17a   :  { %21371 = vmatprep.mubr.msk.bf16.mxu1 %vm911_vm4, %v26899_v31  ;;  %v25161_v31 = vld [vmem:[#allocation2 + $0x580] sm:$0xff]  ;;  %v5145_v53 = vrot.slane %v25167_v30, 2 }
 0x17b   :  { %32723 = vst [vmem:[#allocation104_spill] sm:$0xff] %v26919_v21  ;;  %v592_v13 = vrot.slane %v25161_v31, 2  ;;  %v588_v31 = vsel %vm509_vm3, %v585_v0, %v587_v48  ;;  %v25168_v48 = vld [vmem:[#allocation2 + $0x590] sm:$0xff]  ;;  %v25170_v30 = vld [vmem:[#allocation2 + $0x5a0] sm:$0xff] }
 0x17c   :  { %v735_v22 = vpack.c.bf16 %v590_v17, %v588_v31  ;;  %v5146_v0 = vsel %vm509_vm3, %v5143_v29, %v5145_v53  ;;  %v596_v2 = vrot.slane %v25168_v48, 2  ;;  %v25177_v48 = vld [vmem:[#allocation2 + $0x6f0] sm:$0xff] }
 0x17d   :  { %v593_v8 = vsel %vm509_vm3, %v591_v27, %v592_v13  ;;  %v595_v25 = vsel %vm509_vm3, %v592_v13, %v594_v62  ;;  %v5286_v27 = vpack.c.bf16 %v5141_v24, %v5139_v33  ;;  %v600_v13 = vrot.slane %v25170_v30, 2 }
 0x17e   :  { %v26935_v43 = vpack.c.bf16 %v595_v25, %v593_v8  ;;  %v25176_v8 = vld [vmem:[#allocation2 + $0x6e8] sm:$0xff]  ;;  %v5154_v33 = vrot.slane %v25177_v48, 2  ;;  %v25182_v48 = vld [vmem:[#allocation2 + $0x5d8] sm:$0xff] }
 0x17f   :  { %20778 = vmatmul.mubr.msk.bf16.gmra.mrb[28].mxu0 %vm911_vm4, %v26915_v52  ;;  %v25172_v52 = vld [vmem:[#allocation2 + $0x5b0] sm:$0xff]  ;;  %v5152_v25 = vrot.slane %v25176_v8, 2 }
 0x180   :  { %20781 = vmatprep.mubr.msk.bf16.mxu0 %vm911_vm4, %v734_v35  ;;  %v5144_v35 = vsel %vm509_vm3, %v5142_v23, %v5143_v29  ;;  %v603_v38 = vrot.slane %v25172_v52, 2  ;;  %v25174_v23 = vld [vmem:[#allocation2 + $0x6d8] sm:$0x3]  ;;  %v25175_v29 = vld [vmem:[#allocation2 + $0x6e0] sm:$0xff]  ;;  %v599_v52 = vsel %vm509_vm3, %v596_v2, %v598_v56  ;;  %v25181_v8 = vld [vmem:[#allocation2 + $0x5d0] sm:$0xff] }
 0x181   :  { %21372 = vmatmul.mubr.msk.bf16.gmra.mrb[28].mxu1 %vm911_vm4, %v26919_v21  ;;  %v25171_v21 = vld [vmem:[#allocation2 + $0x5a8] sm:$0xff]  ;;  %v26937_v6 = vpack.c.bf16 %v5146_v0, %v5144_v35  ;;  %v5149_v31 = vrot.slane %v25174_v23, 2  ;;  %v5151_v17 = vrot.slane %v25175_v29, 2  ;;  %v25178_v56 = vld [vmem:[#allocation2 + $0x5b8] sm:$0xff] }
 0x182   :  { %21375 = vmatprep.mubr.msk.bf16.mxu1 %vm911_vm4, %v5285_v49  ;;  %v601_v49 = vrot.slane %v25171_v21, 2  ;;  %v597_v21 = vsel %vm509_vm3, %v594_v62, %v596_v2  ;;  %v5155_v62 = vsel %vm509_vm3, %v5152_v25, %v5154_v33  ;;  %v25180_v23 = vld [vmem:[#allocation2 + $0x5c8] sm:$0xff] }
 0x183   :  { %v5150_v0 = vsel %vm509_vm3, %v5147_v11, %v5149_v31  ;;  %v26951_v36 = vpack.c.bf16 %v599_v52, %v597_v21  ;;  %v5153_v30 = vsel %vm509_vm3, %v5151_v17, %v5152_v25  ;;  %v609_v29 = vrot.slane %v25180_v23, 2  ;;  %v25183_v21 = vld [vmem:[#allocation2 + $0x6f8] sm:$0xff]  ;;  %v25184_v52 = vld [vmem:[#allocation2 + $0x700] sm:$0x3] }
 0x184   :  { %v602_v24 = vsel %vm509_vm3, %v600_v13, %v601_v49  ;;  %v604_v35 = vsel %vm509_vm3, %v601_v49, %v603_v38  ;;  %v25179_v13 = vld [vmem:[#allocation2 + $0x5c0] sm:$0x3]  ;;  %v26959_v31 = vpack.c.bf16 %v5155_v62, %v5153_v30  ;;  %v5156_v17 = vrot.slane %v25183_v21, 2 }
 0x185   :  { %32724 = vst [vmem:[#allocation110_spill] sm:$0xff] %v26951_v36  ;;  %v26955_v2 = vpack.c.bf16 %v604_v35, %v602_v24  ;;  %v607_v3 = vrot.slane %v25179_v13, 2  ;;  %v5158_v25 = vrot.slane %v25184_v52, 2  ;;  %v25185_v24 = vld [vmem:[#allocation2 + $0x708] sm:$0xff] }
 0x186   :  { %32727 = vst [vmem:[#allocation108_spill] sm:$0xff] %v26959_v31  ;;  %v5160_v35 = vrot.slane %v25185_v24, 2  ;;  %v25188_v24 = vld [vmem:[#allocation2 + $0x5e0] sm:$0xff] }
 0x187   :  { %20782 = vmatmul.mubr.msk.bf16.gmra.mrb[32].mxu0 %vm911_vm4, %v735_v22  ;;  %v5148_v22 = vsel %vm509_vm3, %v5145_v53, %v5147_v11  ;;  %32725 = vst [vmem:[#allocation112_spill] sm:$0xff] %v26955_v2  ;;  %v610_v53 = vrot.slane %v25181_v8, 2  ;;  %v612_v11 = vrot.slane %v25182_v48, 2  ;;  %v5157_v48 = vsel %vm509_vm3, %v5154_v33, %v5156_v17 }
 0x188   :  { %20785 = vmatprep.mubr.msk.bf16.mxu0 %vm911_vm4, %v26935_v43  ;;  %v26957_v49 = vpack.c.bf16 %v5150_v0, %v5148_v22  ;;  %v25187_v0 = vld [vmem:[#allocation2 + $0x718] sm:$0xff]  ;;  %v5159_v21 = vsel %vm509_vm3, %v5156_v17, %v5158_v25 }
 0x189   :  { %21376 = vmatmul.mubr.msk.bf16.gmra.mrb[32].mxu1 %vm911_vm4, %v5286_v27  ;;  %v605_v27 = vrot.slane %v25178_v56, 2  ;;  %v25186_v56 = vld [vmem:[#allocation2 + $0x710] sm:$0xff]  ;;  %v5163_v13 = vrot.slane %v25187_v0, 2  ;;  %v611_v62 = vsel %vm509_vm3, %v609_v29, %v610_v53  ;;  %v613_v8 = vsel %vm509_vm3, %v610_v53, %v612_v11  ;;  %v25189_v29 = vld [vmem:[#allocation2 + $0x5e8] sm:$0x3] }
 0x18a   :  { %21379 = vmatprep.mubr.msk.bf16.mxu1 %vm911_vm4, %v26937_v6  ;;  %32726 = vst [vmem:[#allocation113_spill] sm:$0xff] %v26957_v49  ;;  %v5161_v22 = vrot.slane %v25186_v56, 2  ;;  %v614_v56 = vrot.slane %v25188_v24, 2  ;;  %v616_v0 = vrot.slane %v25189_v29, 2  ;;  %v26981_v53 = vpack.c.bf16 %v5159_v21, %v5157_v48  ;;  %v25196_v24 = vld [vmem:[#allocation2 + $0x738] sm:$0xff]  ;;  %v25197_v21 = vld [vmem:[#allocation2 + $0x740] sm:$0xff] }
 0x18b   :  { %v606_v23 = vsel %vm509_vm3, %v603_v38, %v605_v27  ;;  %v608_v30 = vsel %vm509_vm3, %v605_v27, %v607_v3  ;;  %v26979_v3 = vpack.c.bf16 %v613_v8, %v611_v62  ;;  %v25195_v62 = vld [vmem:[#allocation2 + $0x730] sm:$0xff]  ;;  %v5170_v48 = vrot.slane %v25196_v24, 2 }
 0x18c   :  { %v26975_v52 = vpack.c.bf16 %v608_v30, %v606_v23  ;;  %v5162_v38 = vsel %vm509_vm3, %v5160_v35, %v5161_v22  ;;  %v5164_v27 = vsel %vm509_vm3, %v5161_v22, %v5163_v13  ;;  %32730 = vst [vmem:[#allocation125_spill] sm:$0xff] %v26981_v53  ;;  %v25193_v23 = vld [vmem:[#allocation2 + $0x720] sm:$0xff]  ;;  %v25194_v30 = vld [vmem:[#allocation2 + $0x728] sm:$0x3]  ;;  %v5169_v8 = vrot.slane %v25195_v62, 2 }
 0x18d   :  { %32729 = vst [vmem:[#allocation13_spill] sm:$0xff] %v26979_v3  ;;  %v26983_v25 = vpack.c.bf16 %v5164_v27, %v5162_v38  ;;  %v5165_v35 = vrot.slane %v25193_v23, 2  ;;  %v5167_v22 = vrot.slane %v25194_v30, 2  ;;  %v5172_v29 = vrot.slane %v25197_v21, 2  ;;  %v25198_v62 = vld [vmem:[#allocation2 + $0x608] sm:$0xff] }
 0x18e   :  { %32728 = vst [vmem:[#allocation114_spill] sm:$0xff] %v26975_v52  ;;  %v623_v24 = vrot.slane %v25198_v62, 2  ;;  %v25206_v62 = vld [vmem:[#allocation2 + $0x760] sm:$0xff] }
 0x18f   :  { %20786 = vmatmul.mubr.msk.bf16.gmra.mrb[36].mxu0 %vm911_vm4, %v26951_v36  ;;  %v25192_v36 = vld [vmem:[#allocation2 + $0x600] sm:$0xff]  ;;  %32731 = vst [vmem:[#allocation14_spill] sm:$0xff] %v26983_v25  ;;  %v5166_v27 = vsel %vm509_vm3, %v5163_v13, %v5165_v35  ;;  %v5168_v23 = vsel %vm509_vm3, %v5165_v35, %v5167_v22 }
 0x190   :  { %20789 = vmatprep.mubr.msk.bf16.mxu0 %vm911_vm4, %v26955_v2  ;;  %v25191_v2 = vld [vmem:[#allocation2 + $0x5f8] sm:$0xff]  ;;  %v621_v17 = vrot.slane %v25192_v36, 2  ;;  %v615_v36 = vsel %vm509_vm3, %v612_v11, %v614_v56  ;;  %v5171_v11 = vsel %vm509_vm3, %v5169_v8, %v5170_v48 }
 0x191   :  { %21380 = vmatmul.mubr.msk.bf16.gmra.mrb[36].mxu1 %vm911_vm4, %v26957_v49  ;;  %v25190_v49 = vld [vmem:[#allocation2 + $0x5f0] sm:$0xff]  ;;  %v619_v33 = vrot.slane %v25191_v2, 2  ;;  %v617_v2 = vsel %vm509_vm3, %v614_v56, %v616_v0  ;;  %v5173_v56 = vsel %vm509_vm3, %v5170_v48, %v5172_v29 }
 0x192   :  { %21383 = vmatprep.mubr.msk.bf16.mxu1 %vm911_vm4, %v26959_v31  ;;  %v618_v31 = vrot.slane %v25190_v49, 2  ;;  %v26999_v30 = vpack.c.bf16 %v617_v2, %v615_v36  ;;  %v27007_v22 = vpack.c.bf16 %v5173_v56, %v5171_v11  ;;  %v25203_v36 = vld [vmem:[#allocation2 + $0x748] sm:$0xff]  ;;  %v25204_v2 = vld [vmem:[#allocation2 + $0x750] sm:$0x3] }
 0x193   :  { %v622_v38 = vsel %vm509_vm3, %v619_v33, %v621_v17  ;;  %v5174_v8 = vrot.slane %v25203_v36, 2  ;;  %v5176_v48 = vrot.slane %v25204_v2, 2 }
 0x194   :  { %v620_v49 = vsel %vm509_vm3, %v618_v31, %v619_v33  ;;  %32732 = vst [vmem:[#allocation130_spill] sm:$0xff] %v26999_v30  ;;  %v25199_v31 = vld [vmem:[#allocation2 + $0x610] sm:$0x3]  ;;  %v27005_v33 = vpack.c.bf16 %v5168_v23, %v5166_v27  ;;  %32735 = vst [vmem:[#allocation133_spill] sm:$0xff] %v27007_v22  ;;  %v5179_v27 = vrot.slane %v25206_v62, 2  ;;  %v25207_v23 = vld [vmem:[#allocation2 + $0x768] sm:$0xff] }
 0x195   :  { %v27003_v0 = vpack.c.bf16 %v622_v38, %v620_v49  ;;  %v625_v21 = vrot.slane %v25199_v31, 2  ;;  %v25205_v49 = vld [vmem:[#allocation2 + $0x758] sm:$0xff]  ;;  %v5181_v31 = vrot.slane %v25207_v23, 2  ;;  %v5175_v56 = vsel %vm509_vm3, %v5172_v29, %v5174_v8 }
 0x196   :  { %32734 = vst [vmem:[#allocation131_spill] sm:$0xff] %v27005_v33  ;;  %v5178_v38 = vrot.slane %v25205_v49, 2  ;;  %v5177_v36 = vsel %vm509_vm3, %v5174_v8, %v5176_v48  ;;  %v25208_v49 = vld [vmem:[#allocation2 + $0x630] sm:$0xff] }
 0x197   :  { %20790 = vmatmul.mubr.msk.bf16.gmra.mrb[40].mxu0 %vm911_vm4, %v26975_v52  ;;  %32733 = vst [vmem:[#allocation12_spill] sm:$0xff] %v27003_v0  ;;  %v25202_v52 = vld [vmem:[#allocation2 + $0x628] sm:$0xff]  ;;  %v632_v62 = vrot.slane %v25208_v49, 2 }
 0x198   :  { %20793 = vmatprep.mubr.msk.bf16.mxu0 %vm911_vm4, %v26979_v3  ;;  %v25201_v3 = vld [vmem:[#allocation2 + $0x620] sm:$0xff]  ;;  %v630_v35 = vrot.slane %v25202_v52, 2  ;;  %v624_v52 = vsel %vm509_vm3, %v621_v17, %v623_v24  ;;  %v5180_v17 = vsel %vm509_vm3, %v5178_v38, %v5179_v27  ;;  %v25216_v49 = vld [vmem:[#allocation2 + $0x788] sm:$0xff] }
 0x199   :  { %21384 = vmatmul.mubr.msk.bf16.gmra.mrb[40].mxu1 %vm911_vm4, %v26981_v53  ;;  %v25200_v53 = vld [vmem:[#allocation2 + $0x618] sm:$0xff]  ;;  %v628_v13 = vrot.slane %v25201_v3, 2  ;;  %v626_v3 = vsel %vm509_vm3, %v623_v24, %v625_v21  ;;  %v5182_v24 = vsel %vm509_vm3, %v5179_v27, %v5181_v31 }
 0x19a   :  { %21387 = vmatprep.mubr.msk.bf16.mxu1 %vm911_vm4, %v26983_v25  ;;  %v627_v25 = vrot.slane %v25200_v53, 2  ;;  %v27023_v2 = vpack.c.bf16 %v626_v3, %v624_v52  ;;  %v27031_v48 = vpack.c.bf16 %v5182_v24, %v5180_v17  ;;  %v25213_v52 = vld [vmem:[#allocation2 + $0x770] sm:$0xff]  ;;  %v25214_v3 = vld [vmem:[#allocation2 + $0x778] sm:$0x3] }
 0x19b   :  { %v631_v11 = vsel %vm509_vm3, %v628_v13, %v630_v35  ;;  %v5183_v38 = vrot.slane %v25213_v52, 2  ;;  %v5185_v27 = vrot.slane %v25214_v3, 2 }
 0x19c   :  { %v629_v53 = vsel %vm509_vm3, %v627_v25, %v628_v13  ;;  %32736 = vst [vmem:[#allocation134_spill] sm:$0xff] %v27023_v2  ;;  %v25209_v25 = vld [vmem:[#allocation2 + $0x638] sm:$0x3]  ;;  %v27029_v13 = vpack.c.bf16 %v5177_v36, %v5175_v56  ;;  %32739 = vst [vmem:[#allocation138_spill] sm:$0xff] %v27031_v48  ;;  %v5188_v56 = vrot.slane %v25216_v49, 2  ;;  %v25217_v36 = vld [vmem:[#allocation2 + $0x790] sm:$0xff] }
 0x19d   :  { %v27027_v21 = vpack.c.bf16 %v631_v11, %v629_v53  ;;  %v634_v23 = vrot.slane %v25209_v25, 2  ;;  %v25215_v53 = vld [vmem:[#allocation2 + $0x780] sm:$0xff]  ;;  %v5190_v25 = vrot.slane %v25217_v36, 2  ;;  %v5184_v24 = vsel %vm509_vm3, %v5181_v31, %v5183_v38 }
 0x19e   :  { %32738 = vst [vmem:[#allocation136_spill] sm:$0xff] %v27029_v13  ;;  %v5187_v11 = vrot.slane %v25215_v53, 2  ;;  %v5186_v52 = vsel %vm509_vm3, %v5183_v38, %v5185_v27  ;;  %v25218_v53 = vld [vmem:[#allocation2 + $0x658] sm:$0xff] }
 0x19f   :  { %20794 = vmatmul.mubr.msk.bf16.gmra.mrb[44].mxu0 %vm911_vm4, %v26999_v30  ;;  %32737 = vst [vmem:[#allocation141_spill] sm:$0xff] %v27027_v21  ;;  %v25212_v30 = vld [vmem:[#allocation2 + $0x650] sm:$0xff]  ;;  %v641_v49 = vrot.slane %v25218_v53, 2 }
 0x1a0   :  { %20797 = vmatprep.mubr.msk.bf16.mxu0 %vm911_vm4, %v27003_v0  ;;  %v25211_v0 = vld [vmem:[#allocation2 + $0x648] sm:$0xff]  ;;  %v639_v8 = vrot.slane %v25212_v30, 2  ;;  %v633_v30 = vsel %vm509_vm3, %v630_v35, %v632_v62  ;;  %v5189_v35 = vsel %vm509_vm3, %v5187_v11, %v5188_v56  ;;  %v25226_v53 = vld [vmem:[#allocation2 + $0x7b0] sm:$0xff] }
 0x1a1   :  { %21388 = vmatmul.mubr.msk.bf16.gmra.mrb[44].mxu1 %vm911_vm4, %v27005_v33  ;;  %v25210_v33 = vld [vmem:[#allocation2 + $0x640] sm:$0xff]  ;;  %v637_v29 = vrot.slane %v25211_v0, 2  ;;  %v635_v0 = vsel %vm509_vm3, %v632_v62, %v634_v23  ;;  %v5191_v62 = vsel %vm509_vm3, %v5188_v56, %v5190_v25 }
 0x1a2   :  { %21391 = vmatprep.mubr.msk.bf16.mxu1 %vm911_vm4, %v27007_v22  ;;  %v636_v22 = vrot.slane %v25210_v33, 2  ;;  %v27047_v3 = vpack.c.bf16 %v635_v0, %v633_v30  ;;  %v27055_v27 = vpack.c.bf16 %v5191_v62, %v5189_v35  ;;  %v25223_v30 = vld [vmem:[#allocation2 + $0x798] sm:$0xff]  ;;  %v25224_v0 = vld [vmem:[#allocation2 + $0x7a0] sm:$0x3] }
 0x1a3   :  { %v640_v17 = vsel %vm509_vm3, %v637_v29, %v639_v8  ;;  %v5192_v11 = vrot.slane %v25223_v30, 2  ;;  %v5194_v56 = vrot.slane %v25224_v0, 2 }
 0x1a4   :  { %v638_v33 = vsel %vm509_vm3, %v636_v22, %v637_v29  ;;  %32740 = vst [vmem:[#allocation139_spill] sm:$0xff] %v27047_v3  ;;  %v25219_v22 = vld [vmem:[#allocation2 + $0x660] sm:$0x3]  ;;  %v27053_v29 = vpack.c.bf16 %v5186_v52, %v5184_v24  ;;  %32743 = vst [vmem:[#allocation145_spill] sm:$0xff] %v27055_v27  ;;  %v5197_v24 = vrot.slane %v25226_v53, 2  ;;  %v25227_v52 = vld [vmem:[#allocation2 + $0x7b8] sm:$0xff] }
 0x1a5   :  { %v27051_v23 = vpack.c.bf16 %v640_v17, %v638_v33  ;;  %v643_v36 = vrot.slane %v25219_v22, 2  ;;  %v25225_v33 = vld [vmem:[#allocation2 + $0x7a8] sm:$0xff]  ;;  %v5199_v22 = vrot.slane %v25227_v52, 2  ;;  %v5193_v62 = vsel %vm509_vm3, %v5190_v25, %v5192_v11 }
 0x1a6   :  { %32742 = vst [vmem:[#allocation144_spill] sm:$0xff] %v27053_v29  ;;  %v5196_v17 = vrot.slane %v25225_v33, 2  ;;  %v5195_v30 = vsel %vm509_vm3, %v5192_v11, %v5194_v56  ;;  %v25228_v33 = vld [vmem:[#allocation2 + $0x680] sm:$0xff] }
 0x1a7   :  { %20798 = vmatmul.mubr.msk.bf16.gmra.mrb[48].mxu0 %vm911_vm4, %v27023_v2  ;;  %32741 = vst [vmem:[#allocation142_spill] sm:$0xff] %v27051_v23  ;;  %v25222_v2 = vld [vmem:[#allocation2 + $0x678] sm:$0xff]  ;;  %v650_v53 = vrot.slane %v25228_v33, 2 }
 0x1a8   :  { %20801 = vmatprep.mubr.msk.bf16.mxu0 %vm911_vm4, %v27027_v21  ;;  %v25221_v21 = vld [vmem:[#allocation2 + $0x670] sm:$0xff]  ;;  %v648_v38 = vrot.slane %v25222_v2, 2  ;;  %v642_v2 = vsel %vm509_vm3, %v639_v8, %v641_v49  ;;  %v5198_v8 = vsel %vm509_vm3, %v5196_v17, %v5197_v24  ;;  %v32755_v33 = vld [vmem:[#allocation129_spill] sm:$0xff] }
 0x1a9   :  { %21392 = vmatmul.mubr.msk.bf16.gmra.mrb[48].mxu1 %vm911_vm4, %v27029_v13  ;;  %v25220_v13 = vld [vmem:[#allocation2 + $0x668] sm:$0xff]  ;;  %v646_v31 = vrot.slane %v25221_v21, 2  ;;  %v644_v21 = vsel %vm509_vm3, %v641_v49, %v643_v36  ;;  %v5200_v49 = vsel %vm509_vm3, %v5197_v24, %v5199_v22 }
 0x1aa   :  { %21395 = vmatprep.mubr.msk.bf16.mxu1 %vm911_vm4, %v27031_v48  ;;  %v645_v48 = vrot.slane %v25220_v13, 2  ;;  %v27071_v0 = vpack.c.bf16 %v644_v21, %v642_v2  ;;  %v651_v56 = vsel %vm509_vm3, %v648_v38, %v650_v53  ;;  %v32751_v21 = vld [vmem:[#allocation124_spill] sm:$0xff] }
 0x1ab   :  { %v649_v35 = vsel %vm509_vm3, %v646_v31, %v648_v38  ;;  %v32750_v38 = vld [vmem:[#allocation123_spill] sm:$0xff] }
 0x1ac   :  { %v647_v13 = vsel %vm509_vm3, %v645_v48, %v646_v31  ;;  %32744 = vst [vmem:[#allocation147_spill] sm:$0xff] %v27071_v0  ;;  %v25229_v48 = vld [vmem:[#allocation2 + $0x688] sm:$0x3]  ;;  %v27077_v31 = vpack.c.bf16 %v5195_v30, %v5193_v62  ;;  %v32754_v62 = vld [vmem:[#allocation128_spill] sm:$0xff] }
 0x1ad   :  { %v27075_v36 = vpack.c.bf16 %v649_v35, %v647_v13  ;;  %v652_v52 = vrot.slane %v25229_v48, 2  ;;  %v32752_v13 = vld [vmem:[#allocation126_spill] sm:$0xff]  ;;  %v32753_v35 = vld [vmem:[#allocation127_spill] sm:$0xff] }
 0x1ae   :  { %32746 = vst [vmem:[#allocation150_spill] sm:$0xff] %v27077_v31 }
 0x1af   :  { %20802 = vmatmul.mubr.msk.bf16.gmra.mrb[52].mxu0 %vm911_vm4, %v27047_v3  ;;  %32745 = vst [vmem:[#allocation149_spill] sm:$0xff] %v27075_v36  ;;  %v653_v17 = vsel %vm509_vm3, %v650_v53, %v652_v52 }
 0x1b0   :  { %20805 = vmatprep.mubr.msk.bf16.mxu0 %vm911_vm4, %v27051_v23  ;;  %v25231_v23 = vld [vmem:[#allocation2 + $0x7c8] sm:$0x3]  ;;  %v27093_v24 = vpack.c.bf16 %v653_v17, %v651_v56  ;;  %v32756_v17 = vld [vmem:[#allocation132_spill] sm:$0xff] }
 0x1b1   :  { %21396 = vmatmul.mubr.msk.bf16.gmra.mrb[52].mxu1 %vm911_vm4, %v27053_v29  ;;  %v27079_v29 = vpack.c.bf16 %v5200_v49, %v5198_v8  ;;  %v5203_v11 = vrot.slane %v25231_v23, 2  ;;  %v25057_v49 = vld [vmem:[#allocation5 + $0x4] sm:$0x18]  }
 0x1b2   :  { %21399 = vmatprep.mubr.msk.bf16.mxu1 %vm911_vm4, %v27055_v27  ;;  %v25230_v27 = vld [vmem:[#allocation2 + $0x7c0] sm:$0xff]  ;;  %32748 = vst [vmem:[#allocation154_spill] sm:$0xff] %v27093_v24  ;;  %v7458_v52 = vshrl.u32 %v25057_v49, 16 }
 0x1b3   :  { %32747 = vst [vmem:[#allocation152_spill] sm:$0xff] %v27079_v29  ;;  %v5201_v25 = vrot.slane %v25230_v27, 2 }
 0x1b5   :  { %v5202_v27 = vsel %vm509_vm3, %v5199_v22, %v5201_v25  ;;  %v5204_v23 = vsel %vm509_vm3, %v5201_v25, %v5203_v11  ;;  %v25056_v22 = vld [vmem:[#allocation5 + $0x4] sm:$0x18]   ;;  %v7461_v25 = vshll.u32 %v25057_v49, 16  ;;  %v32764_v49 = vld [vmem:[#allocation155_spill] sm:$0xff] }
 0x1b6   :  { %v27095_v2 = vpack.c.bf16 %v5204_v23, %v5202_v27  ;;  %v2912_v30 = vshrl.u32 %v25056_v22, 16  ;;  %v2915_v8 = vshll.u32 %v25056_v22, 16  ;;  %v32760_v22 = vld [vmem:[#allocation143_spill] sm:$0xff] }
 0x1b7   :  { %20806 = vmatmul.mubr.msk.bf16.gmra.mrb[56].mxu0 %vm911_vm4, %v27071_v0  ;;  %v7463_v56 = vrot.slane %v7461_v25, 4  ;;  %v27167_v25 = vld [vmem:[#allocation2 + $0x280] sm:$0xff] }
 0x1b8   :  { %20809 = vmatprep.mubr.msk.bf16.mxu0 %vm911_vm4, %v27075_v36  ;;  %32749 = vst [vmem:[#allocation156_spill] sm:$0xff] %v27095_v2  ;;  %v2914_v53 = vrot.slane %v2912_v30, 3  ;;  %v2917_v48 = vrot.slane %v2915_v8, 4  ;;  %v32762_v30 = vld [vmem:[#allocation148_spill] sm:$0xff]  ;;  %v32763_v8 = vld [vmem:[#allocation151_spill] sm:$0xff] }
 0x1b9   :  { %21400 = vmatmul.mubr.msk.bf16.gmra.mrb[56].mxu1 %vm911_vm4, %v27077_v31 }
 0x1ba   :  { %21403 = vmatprep.mubr.msk.bf16.mxu1 %vm911_vm4, %v27079_v29  ;;  %v2918_v11 = vor.u32 %v2917_v48, %v2914_v53  ;;  %v32765_v53 = vld [vmem:[#allocation157_spill] sm:$0xff] }
 0x1bb   :  { %v27161_v48 = vld [vmem:[#allocation2 + $0x140] sm:$0xff] }
 0x1bc   :  { %v27118_v27 = vand.u32 %v2918_v11, %v32684_v9  ;;  %v27169_v11 = vld [vmem:[#allocation2 + $0x288] sm:$0xff] }
 0x1bf   :  { %20810 = vmatmul.mubr.msk.bf16.gmra.mrb[60].mxu0 %vm911_vm4, %v27093_v24 }
 0x1c0   :  { %20815 = vmatprep.mubr.msk.bf16.mxu0 %vm911_vm4, %v32750_v38  ;;  %v32757_v38 = vld [vmem:[#allocation135_spill] sm:$0xff] }
 0x1c1   :  { %21404 = vmatmul.mubr.msk.bf16.gmra.mrb[60].mxu1 %vm911_vm4, %v27095_v2 }
 0x1c2   :  { %21409 = vmatprep.mubr.msk.bf16.mxu1 %vm911_vm4, %v32751_v21 }
 0x1c7   :  { %20816 = vmatmul.mubr.msk.bf16.vlgmr.msra.gmra.mrb[0].mxu0 %vm911_vm4, %v32752_v13  ;;  %v32759_v13 = vld [vmem:[#allocation140_spill] sm:$0xff] }
 0x1c8   :  { %20880 = vmatpush3.bf16.msra.mxu0 %v26746_v54  ;;  %20819 = vmatprep.mubr.msk.bf16.mxu0 %vm911_vm4, %v32753_v35  ;;  %v7460_v54 = vrot.slane %v7458_v52, 3  ;;  %v27163_v52 = vld [vmem:[#allocation2 + $0x148] sm:$0xff] }
 0x1c9   :  { %21410 = vmatmul.mubr.msk.bf16.vlgmr.msra.gmra.mrb[0].mxu1 %vm911_vm4, %v32754_v62  ;;  %20945 = vmatprep.subr.bf16.mxu0 %v27118_v27  ;;  %v32761_v62 = vld [vmem:[#allocation146_spill] sm:$0xff] }
 0x1ca   :  { %21474 = vmatpush3.bf16.msra.mxu1 %v26758_v47  ;;  %21413 = vmatprep.mubr.msk.bf16.mxu1 %vm911_vm4, %v32755_v33  ;;  %v7464_v23 = vor.u32 %v7463_v56, %v7460_v54  ;;  %v32758_v47 = vld [vmem:[#allocation137_spill] sm:$0xff]  ;;  %v27173_v54 = vpack.c.bf16 %v27163_v52, %v27161_v48  ;;  %v764_v56 = vrot.slane %v27161_v48, 1 }
 0x1cc   :  { %v27126_v21 = vand.u32 %v7464_v23, %v32684_v9  ;;  %32766 = vst [vmem:[#allocation123_spill] sm:$0xff] %v27173_v54  ;;  %v765_v23 = vrot.slane %v27163_v52, 1 }
 0x1ce   :  { %21539 = vmatprep.subr.bf16.mxu1 %v27126_v21 }
 0x1cf   :  { %20820 = vmatmul.mubr.msk.bf16.gmra.mrb[4].mxu0 %vm911_vm4, %v32756_v17 }
 0x1d0   :  { %20823 = vmatprep.mubr.msk.bf16.mxu0 %vm911_vm4, %v32757_v38  ;;  %v32790_v38 = vld [vmem:[#allocation16_spill] sm:$0xff] }
 0x1d1   :  { %21414 = vmatmul.mubr.msk.bf16.gmra.mrb[4].mxu1 %vm911_vm4, %v32758_v47  ;;  %v32789_v47 = vld [vmem:[#allocation15_spill] sm:$0xff] }
 0x1d2   :  { %21417 = vmatprep.mubr.msk.bf16.mxu1 %vm911_vm4, %v32759_v13 }
 0x1d7   :  { %20824 = vmatmul.mubr.msk.bf16.gmra.mrb[8].mxu0 %vm911_vm4, %v32760_v22 }
 0x1d8   :  { %20827 = vmatprep.mubr.msk.bf16.mxu0 %vm911_vm4, %v32761_v62 }
 0x1d9   :  { %21418 = vmatmul.mubr.msk.bf16.gmra.mrb[8].mxu1 %vm911_vm4, %v32762_v30 }
 0x1da   :  { %21421 = vmatprep.mubr.msk.bf16.mxu1 %vm911_vm4, %v32763_v8 }
 0x1df   :  { %20828 = vmatmul.mubr.msk.bf16.gmra.mrb[12].mxu0 %vm911_vm4, %v26411_v45 }
 0x1e0   :  { %20831 = vmatprep.mubr.msk.bf16.mxu0 %vm911_vm4, %v32764_v49  ;;  %v766_v49 = vsel %vm268_vm2, %v764_v56, %v765_v23 }
 0x1e1   :  { %21422 = vmatmul.mubr.msk.bf16.gmra.mrb[12].mxu1 %vm911_vm4, %v32765_v53  ;;  %v27198_v53 = vld [vmem:[#allocation2 + $0x298] sm:$0xff] }
 0x1e2   :  { %21425 = vmatprep.mubr.msk.bf16.mxu1 %vm911_vm4, %v26431_v63 }
 0x1e7   :  { %20832 = vmatmul.mubr.msk.bf16.gmra.mrb[16].mxu0 %vm911_vm4, %v26445_v58  ;;  %v27189_v58 = vpack.c.bf16 %v27169_v11, %v27167_v25 }
 0x1e8   :  { %20835 = vmatprep.mubr.msk.bf16.mxu0 %vm911_vm4, %v26449_v34 }
 0x1e9   :  { %21426 = vmatmul.mubr.msk.bf16.gmra.mrb[16].mxu1 %vm911_vm4, %v26455_v37  ;;  %32767 = vst [vmem:[#allocation124_spill] sm:$0xff] %v27189_v58 }
 0x1ea   :  { %21429 = vmatprep.mubr.msk.bf16.mxu1 %vm911_vm4, %v26459_v55  ;;  %v27183_v55 = vld [vmem:[#allocation2 + $0x158] sm:$0xff] }
 0x1eb   :  { %v769_v63 = vrot.slane %v27183_v55, 1 }
 0x1ef   :  { %20836 = vmatmul.mubr.msk.bf16.gmra.mrb[20].mxu0 %vm911_vm4, %v26471_v60  ;;  %v5315_v60 = vrot.slane %v27167_v25, 1 }
 0x1f0   :  { %20839 = vmatprep.mubr.msk.bf16.mxu0 %vm911_vm4, %v26475_v61  ;;  %v27179_v61 = vld [vmem:[#allocation2 + $0x290] sm:$0xff] }
 0x1f1   :  { %21430 = vmatmul.mubr.msk.bf16.gmra.mrb[20].mxu1 %vm911_vm4, %v26479_v1  ;;  %v27177_v1 = vld [vmem:[#allocation2 + $0x150] sm:$0xff]  ;;  %v5318_v34 = vrot.slane %v27179_v61, 1 }
 0x1f2   :  { %21433 = vmatprep.mubr.msk.bf16.mxu1 %vm911_vm4, %v26483_v10  ;;  %v5316_v10 = vrot.slane %v27169_v11, 1  ;;  %v767_v37 = vrot.slane %v27177_v1, 1  ;;  %v27216_v56 = vpack.c.bf16 %v27183_v55, %v27177_v1 }
 0x1f4   :  { %v768_v45 = vsel %vm268_vm2, %v765_v23, %v767_v37  ;;  %v5317_v8 = vsel %vm268_vm2, %v5315_v60, %v5316_v10  ;;  %v5319_v30 = vsel %vm268_vm2, %v5316_v10, %v5318_v34  ;;  %v770_v22 = vsel %vm268_vm2, %v767_v37, %v769_v63  ;;  %32769 = vst [vmem:[#allocation127_spill] sm:$0xff] %v27216_v56  ;;  %v27219_v10 = vld [vmem:[#allocation2 + $0x2a0] sm:$0x3] }
 0x1f5   :  { %v27207_v62 = vpack.c.bf16 %v768_v45, %v766_v49  ;;  %v5322_v23 = vrot.slane %v27219_v10, 1  ;;  %v27224_v45 = vpack.c.bf16 %v27198_v53, %v27179_v61 }
 0x1f7   :  { %20840 = vmatmul.mubr.msk.bf16.gmra.mrb[24].mxu0 %vm911_vm4, %v26495_v4  ;;  %v5320_v4 = vrot.slane %v27198_v53, 1  ;;  %32768 = vst [vmem:[#allocation126_spill] sm:$0xff] %v27207_v62  ;;  %32770 = vst [vmem:[#allocation128_spill] sm:$0xff] %v27224_v45 }
 0x1f8   :  { %20843 = vmatprep.mubr.msk.bf16.mxu0 %vm911_vm4, %v27173_v54  ;;  %v27209_v54 = vpack.c.bf16 %v5319_v30, %v5317_v8 }
 0x1f9   :  { %21434 = vmatmul.mubr.msk.bf16.gmra.mrb[24].mxu1 %vm911_vm4, %v26501_v16  ;;  %v27211_v16 = vld [vmem:[#allocation2 + $0x160] sm:$0x3]  ;;  %v5321_v37 = vsel %vm268_vm2, %v5318_v34, %v5320_v4  ;;  %v5323_v49 = vsel %vm268_vm2, %v5320_v4, %v5322_v23  ;;  %v32773_v4 = vld [vmem:[#allocation46_spill] sm:$0xff]  ;;  %v32780_v23 = vld [vmem:[#allocation55_spill] sm:$0xff] }
 0x1fa   :  { %21437 = vmatprep.mubr.msk.bf16.mxu1 %vm911_vm4, %v27189_v58  ;;  %v771_v60 = vrot.slane %v27211_v16, 1  ;;  %v27233_v58 = vpack.c.bf16 %v5323_v49, %v5321_v37  ;;  %v32772_v34 = vld [vmem:[#allocation45_spill] sm:$0xff]  ;;  %v32782_v37 = vld [vmem:[#allocation60_spill] sm:$0xff] }
 0x1fb   :  { %v32783_v49 = vld [vmem:[#allocation61_spill] sm:$0xff] }
 0x1fc   :  { %v772_v30 = vsel %vm268_vm2, %v769_v63, %v771_v60  ;;  %v32771_v63 = vld [vmem:[#allocation44_spill] sm:$0xff]  ;;  %v32779_v60 = vld [vmem:[#allocation54_spill] sm:$0xff] }
 0x1fd   :  { %v27227_v8 = vpack.c.bf16 %v772_v30, %v770_v22  ;;  %v32778_v22 = vld [vmem:[#allocation52_spill] sm:$0xff]  ;;  %v32781_v30 = vld [vmem:[#allocation59_spill] sm:$0xff] }
 0x1ff   :  { %20844 = vmatmul.mubr.msk.bf16.gmra.mrb[28].mxu0 %vm911_vm4, %v27216_v56 }
 0x200   :  { %20847 = vmatprep.mubr.msk.bf16.mxu0 %vm911_vm4, %v26515_v32  ;;  %v32774_v32 = vld [vmem:[#allocation43_spill] sm:$0xff] }
 0x201   :  { %21438 = vmatmul.mubr.msk.bf16.gmra.mrb[28].mxu1 %vm911_vm4, %v27224_v45 }
 0x202   :  { %21441 = vmatprep.mubr.msk.bf16.mxu1 %vm911_vm4, %v26521_v41  ;;  %v32775_v41 = vld [vmem:[#allocation50_spill] sm:$0xff] }
 0x207   :  { %20848 = vmatmul.mubr.msk.bf16.gmra.mrb[32].mxu0 %vm911_vm4, %v26531_v57  ;;  %v32776_v57 = vld [vmem:[#allocation51_spill] sm:$0xff] }
 0x208   :  { %20851 = vmatprep.mubr.msk.bf16.mxu0 %vm911_vm4, %v26535_v40 }
 0x209   :  { %21442 = vmatmul.mubr.msk.bf16.gmra.mrb[32].mxu1 %vm911_vm4, %v26539_v26  ;;  %v32777_v26 = vld [vmem:[#allocation48_spill] sm:$0xff] }
 0x20a   :  { %21445 = vmatprep.mubr.msk.bf16.mxu1 %vm911_vm4, %v26543_v42 }
 0x20f   :  { %20852 = vmatmul.mubr.msk.bf16.gmra.mrb[36].mxu0 %vm911_vm4, %v32771_v63 }
 0x210   :  { %20855 = vmatprep.mubr.msk.bf16.mxu0 %vm911_vm4, %v32772_v34  ;;  %v27324_v34 = vld [vmem:[#allocation2 + $0x7e8] sm:$0xff] }
 0x211   :  { %21446 = vmatmul.mubr.msk.bf16.gmra.mrb[36].mxu1 %vm911_vm4, %v32773_v4 }
 0x212   :  { %21449 = vmatprep.mubr.msk.bf16.mxu1 %vm911_vm4, %v32774_v32 }
 0x217   :  { %20856 = vmatmul.mubr.msk.bf16.gmra.mrb[40].mxu0 %vm911_vm4, %v32775_v41 }
 0x218   :  { %20859 = vmatprep.mubr.msk.bf16.mxu0 %vm911_vm4, %v32776_v57 }
 0x219   :  { %21450 = vmatmul.mubr.msk.bf16.gmra.mrb[40].mxu1 %vm911_vm4, %v32777_v26  ;;  %v32784_v26 = vld [vmem:[#allocation56_spill] sm:$0xff] }
 0x21a   :  { %21453 = vmatprep.mubr.msk.bf16.mxu1 %vm911_vm4, %v32778_v22  ;;  %v32785_v22 = vld [vmem:[#allocation64_spill] sm:$0xff] }
 0x21f   :  { %20860 = vmatmul.mubr.msk.bf16.gmra.mrb[44].mxu0 %vm911_vm4, %v32779_v60  ;;  %v27309_v60 = vld [vmem:[#allocation2 + $0x6a8] sm:$0xff] }
 0x220   :  { %20863 = vmatprep.mubr.msk.bf16.mxu0 %vm911_vm4, %v32780_v23  ;;  %v778_v4 = vrot.slane %v27309_v60, 1 }
 0x221   :  { %21454 = vmatmul.mubr.msk.bf16.gmra.mrb[44].mxu1 %vm911_vm4, %v26611_v39  ;;  %v27305_v39 = vld [vmem:[#allocation2 + $0x7e0] sm:$0xff] }
 0x222   :  { %21457 = vmatprep.mubr.msk.bf16.mxu1 %vm911_vm4, %v32781_v30  ;;  %v27287_v30 = vld [vmem:[#allocation2 + $0x690] sm:$0xff]  ;;  %v5327_v41 = vrot.slane %v27305_v39, 1 }
 0x227   :  { %20864 = vmatmul.mubr.msk.bf16.gmra.mrb[48].mxu0 %vm911_vm4, %v32782_v37  ;;  %v27289_v37 = vld [vmem:[#allocation2 + $0x698] sm:$0xff] }
 0x228   :  { %20867 = vmatprep.mubr.msk.bf16.mxu0 %vm911_vm4, %v32783_v49  ;;  %v27295_v49 = vld [vmem:[#allocation2 + $0x7d8] sm:$0xff] }
 0x229   :  { %21458 = vmatmul.mubr.msk.bf16.gmra.mrb[48].mxu1 %vm911_vm4, %v32784_v26  ;;  %v27293_v26 = vld [vmem:[#allocation2 + $0x7d0] sm:$0xff] }
 0x22a   :  { %21461 = vmatprep.mubr.msk.bf16.mxu1 %vm911_vm4, %v32785_v22  ;;  %v774_v22 = vrot.slane %v27289_v37, 1  ;;  %v5324_v23 = vrot.slane %v27293_v26, 1  ;;  %v27315_v32 = vpack.c.bf16 %v27295_v49, %v27293_v26 }
 0x22c   :  { %32787 = vst [vmem:[#allocation132_spill] sm:$0xff] %v27315_v32 }
 0x22f   :  { %20868 = vmatmul.mubr.msk.bf16.gmra.mrb[52].mxu0 %vm911_vm4, %v26651_v59  ;;  %v27299_v59 = vpack.c.bf16 %v27289_v37, %v27287_v30 }
 0x230   :  { %20871 = vmatprep.mubr.msk.bf16.mxu0 %vm911_vm4, %v26655_v20  ;;  %v773_v20 = vrot.slane %v27287_v30, 1 }
 0x231   :  { %21462 = vmatmul.mubr.msk.bf16.gmra.mrb[52].mxu1 %vm911_vm4, %v26661_v15  ;;  %32786 = vst [vmem:[#allocation129_spill] sm:$0xff] %v27299_v59  ;;  %v27303_v15 = vld [vmem:[#allocation2 + $0x6a0] sm:$0xff] }
 0x232   :  { %21465 = vmatprep.mubr.msk.bf16.mxu1 %vm911_vm4, %v26665_v7  ;;  %v5325_v7 = vrot.slane %v27295_v49, 1  ;;  %v776_v57 = vrot.slane %v27303_v15, 1  ;;  %v775_v63 = vsel %vm268_vm2, %v773_v20, %v774_v22  ;;  %v27342_v20 = vpack.c.bf16 %v27309_v60, %v27303_v15 }
 0x234   :  { %v777_v42 = vsel %vm268_vm2, %v774_v22, %v776_v57  ;;  %v5326_v40 = vsel %vm268_vm2, %v5324_v23, %v5325_v7  ;;  %v5328_v45 = vsel %vm268_vm2, %v5325_v7, %v5327_v41  ;;  %v779_v13 = vsel %vm268_vm2, %v776_v57, %v778_v4  ;;  %v27345_v7 = vld [vmem:[#allocation2 + $0x7f0] sm:$0x3] }
 0x235   :  { %v27333_v56 = vpack.c.bf16 %v777_v42, %v775_v63  ;;  %v5331_v23 = vrot.slane %v27345_v7, 1  ;;  %v27350_v42 = vpack.c.bf16 %v27324_v34, %v27305_v39 }
 0x237   :  { %20872 = vmatmul.mubr.msk.bf16.gmra.mrb[56].mxu0 %vm911_vm4, %v26683_v51  ;;  %v5329_v51 = vrot.slane %v27324_v34, 1  ;;  %32788 = vst [vmem:[#allocation169_spill] sm:$0xff] %v27333_v56 }
 0x238   :  { %20875 = vmatprep.mubr.msk.bf16.mxu0 %vm911_vm4, %v27299_v59  ;;  %v27335_v59 = vpack.c.bf16 %v5328_v45, %v5326_v40 }
 0x239   :  { %21466 = vmatmul.mubr.msk.bf16.gmra.mrb[56].mxu1 %vm911_vm4, %v26691_v5  ;;  %v27337_v5 = vld [vmem:[#allocation2 + $0x6b0] sm:$0x3]  ;;  %v5330_v63 = vsel %vm268_vm2, %v5327_v41, %v5329_v51  ;;  %v5332_v57 = vsel %vm268_vm2, %v5329_v51, %v5331_v23  ;;  %v32793_v41 = vld [vmem:[#allocation18_spill] sm:$0xff]  ;;  %v32794_v23 = vld [vmem:[#allocation20_spill] sm:$0xff] }
 0x23a   :  { %21469 = vmatprep.mubr.msk.bf16.mxu1 %vm911_vm4, %v27315_v32  ;;  %v780_v22 = vrot.slane %v27337_v5, 1  ;;  %v27359_v32 = vpack.c.bf16 %v5332_v57, %v5330_v63  ;;  %v32792_v51 = vld [vmem:[#allocation19_spill] sm:$0xff]  ;;  %v32795_v63 = vld [vmem:[#allocation21_spill] sm:$0xff]  ;;  %v32796_v57 = vld [vmem:[#allocation22_spill] sm:$0xff] }
 0x23c   :  { %v781_v40 = vsel %vm268_vm2, %v778_v4, %v780_v22  ;;  %v25058_v4 = vld [vmem:[#allocation5 + $0x8] ss:$0 sps:$4 sm:$0x66]  }
 0x23d   :  { %v27353_v45 = vpack.c.bf16 %v781_v40, %v779_v13  ;;  %v32791_v13 = vld [vmem:[#allocation17_spill] sm:$0xff]  ;;  %v3291_v22 = vrot.slane %v25058_v4, 1 }
 0x23e   :  { %v32799_v4 = vld [vmem:[#allocation25_spill] sm:$0xff] }
 0x23f   :  { %20876 = vmatmul.mubr.msk.bf16.gmra.mrb[60].mxu0 %vm911_vm4, %v27342_v20 }
 0x240   :  { %20881 = vmatprep.mubr.msk.bf16.mxu0 %vm911_vm4, %v32789_v47  ;;  %v25059_v47 = vld [vmem:[#allocation5 + $0x8] ss:$0 sps:$4 sm:$0x66]  }
 0x241   :  { %21470 = vmatmul.mubr.msk.bf16.gmra.mrb[60].mxu1 %vm911_vm4, %v27350_v42  ;;  %v7837_v40 = vrot.slane %v25059_v47, 1  ;;  %v32802_v47 = vld [vmem:[#allocation28_spill] sm:$0xff] }
 0x242   :  { %21475 = vmatprep.mubr.msk.bf16.mxu1 %vm911_vm4, %v32790_v38  ;;  %v27378_v38 = vand.u32 %v3291_v22, %v32684_v9  ;;  %v32801_v22 = vld [vmem:[#allocation27_spill] sm:$0xff] }
 0x247   :  { %20882 = vmatmul.mubr.msk.bf16.vlgmr.msra.gmra.mrb[0].mxu0 %vm911_vm4, %v32791_v13  ;;  %v32798_v13 = vld [vmem:[#allocation24_spill] sm:$0xff] }
 0x248   :  { %20946 = vmatpush3.bf16.msra.mxu0 %v27118_v27  ;;  %20885 = vmatprep.mubr.msk.bf16.mxu0 %vm911_vm4, %v32792_v51  ;;  %v27382_v27 = vand.u32 %v7837_v40, %v32684_v9  ;;  %v32803_v40 = vld [vmem:[#allocation29_spill] sm:$0xff] }
 0x249   :  { %21476 = vmatmul.mubr.msk.bf16.vlgmr.msra.gmra.mrb[0].mxu1 %vm911_vm4, %v32793_v41  ;;  %21011 = vmatprep.subr.bf16.mxu0 %v27378_v38  ;;  %v32800_v41 = vld [vmem:[#allocation26_spill] sm:$0xff] }
 0x24a   :  { %21540 = vmatpush3.bf16.msra.mxu1 %v27126_v21  ;;  %21479 = vmatprep.mubr.msk.bf16.mxu1 %vm911_vm4, %v32794_v23  ;;  %v32797_v21 = vld [vmem:[#allocation23_spill] sm:$0xff] }
 0x24b   :  { %21605 = vmatprep.subr.bf16.mxu1 %v27382_v27  ;;  %v32815_v23 = vld [vmem:[#allocation47_spill] sm:$0xff] }
 0x24f   :  { %20886 = vmatmul.mubr.msk.bf16.gmra.mrb[4].mxu0 %vm911_vm4, %v32795_v63  ;;  %v797_v63 = vrot.slane %v27177_v1, 2 }
 0x250   :  { %20889 = vmatprep.mubr.msk.bf16.mxu0 %vm911_vm4, %v32796_v57  ;;  %v32804_v57 = vld [vmem:[#allocation30_spill] sm:$0xff] }
 0x251   :  { %21480 = vmatmul.mubr.msk.bf16.gmra.mrb[4].mxu1 %vm911_vm4, %v32797_v21  ;;  %v32805_v21 = vld [vmem:[#allocation31_spill] sm:$0xff] }
 0x252   :  { %21483 = vmatprep.mubr.msk.bf16.mxu1 %vm911_vm4, %v32798_v13  ;;  %v32806_v13 = vld [vmem:[#allocation32_spill] sm:$0xff] }
 0x257   :  { %20890 = vmatmul.mubr.msk.bf16.gmra.mrb[8].mxu0 %vm911_vm4, %v32799_v4  ;;  %v32807_v4 = vld [vmem:[#allocation33_spill] sm:$0xff] }
 0x258   :  { %20893 = vmatprep.mubr.msk.bf16.mxu0 %vm911_vm4, %v32800_v41  ;;  %v32808_v41 = vld [vmem:[#allocation34_spill] sm:$0xff] }
 0x259   :  { %21484 = vmatmul.mubr.msk.bf16.gmra.mrb[8].mxu1 %vm911_vm4, %v32801_v22  ;;  %v32809_v22 = vld [vmem:[#allocation35_spill] sm:$0xff] }
 0x25a   :  { %21487 = vmatprep.mubr.msk.bf16.mxu1 %vm911_vm4, %v32802_v47  ;;  %v32810_v47 = vld [vmem:[#allocation36_spill] sm:$0xff] }
 0x25f   :  { %20894 = vmatmul.mubr.msk.bf16.gmra.mrb[12].mxu0 %vm911_vm4, %v32803_v40  ;;  %v32811_v40 = vld [vmem:[#allocation37_spill] sm:$0xff] }
 0x260   :  { %20897 = vmatprep.mubr.msk.bf16.mxu0 %vm911_vm4, %v32804_v57  ;;  %v32812_v57 = vld [vmem:[#allocation38_spill] sm:$0xff] }
 0x261   :  { %21488 = vmatmul.mubr.msk.bf16.gmra.mrb[12].mxu1 %vm911_vm4, %v32805_v21  ;;  %v32813_v21 = vld [vmem:[#allocation40_spill] sm:$0xff] }
 0x262   :  { %21491 = vmatprep.mubr.msk.bf16.mxu1 %vm911_vm4, %v32806_v13  ;;  %v32814_v13 = vld [vmem:[#allocation41_spill] sm:$0xff] }
 0x267   :  { %20898 = vmatmul.mubr.msk.bf16.gmra.mrb[16].mxu0 %vm911_vm4, %v32807_v4  ;;  %v795_v4 = vrot.slane %v27163_v52, 2 }
 0x268   :  { %20901 = vmatprep.mubr.msk.bf16.mxu0 %vm911_vm4, %v32808_v41  ;;  %v794_v41 = vrot.slane %v27161_v48, 2  ;;  %v32816_v48 = vld [vmem:[#allocation49_spill] sm:$0xff] }
 0x269   :  { %21492 = vmatmul.mubr.msk.bf16.gmra.mrb[16].mxu1 %vm911_vm4, %v32809_v22  ;;  %v5345_v22 = vrot.slane %v27167_v25, 2  ;;  %v798_v25 = vsel %vm509_vm3, %v795_v4, %v797_v63 }
 0x26a   :  { %21495 = vmatprep.mubr.msk.bf16.mxu1 %vm911_vm4, %v32810_v47  ;;  %v5346_v47 = vrot.slane %v27169_v11, 2  ;;  %v796_v52 = vsel %vm509_vm3, %v794_v41, %v795_v4  ;;  %v5352_v41 = vrot.slane %v27219_v10, 2  ;;  %v32824_v10 = vld [vmem:[#allocation65_spill] sm:$0xff] }
 0x26c   :  { %v5347_v1 = vsel %vm509_vm3, %v5345_v22, %v5346_v47 }
 0x26f   :  { %20902 = vmatmul.mubr.msk.bf16.gmra.mrb[20].mxu0 %vm911_vm4, %v32811_v40  ;;  %v5348_v40 = vrot.slane %v27179_v61, 2 }
 0x270   :  { %20905 = vmatprep.mubr.msk.bf16.mxu0 %vm911_vm4, %v32812_v57  ;;  %v799_v57 = vrot.slane %v27183_v55, 2  ;;  %v27445_v55 = vpack.c.bf16 %v798_v25, %v796_v52  ;;  %v32821_v25 = vld [vmem:[#allocation57_spill] sm:$0xff] }
 0x271   :  { %21496 = vmatmul.mubr.msk.bf16.gmra.mrb[20].mxu1 %vm911_vm4, %v32813_v21  ;;  %v5350_v21 = vrot.slane %v27198_v53, 2  ;;  %v5349_v61 = vsel %vm509_vm3, %v5346_v47, %v5348_v40 }
 0x272   :  { %21499 = vmatprep.mubr.msk.bf16.mxu1 %vm911_vm4, %v32814_v13  ;;  %32817 = vst [vmem:[#allocation15_spill] sm:$0xff] %v27445_v55  ;;  %v27447_v53 = vpack.c.bf16 %v5349_v61, %v5347_v1  ;;  %v800_v11 = vsel %vm509_vm3, %v797_v63, %v799_v57  ;;  %v32825_v63 = vld [vmem:[#allocation69_spill] sm:$0xff]  ;;  %v32830_v1 = vld [vmem:[#allocation82_spill] sm:$0xff]  ;;  %v32831_v61 = vld [vmem:[#allocation84_spill] sm:$0xff] }
 0x273   :  { %v5351_v22 = vsel %vm509_vm3, %v5348_v40, %v5350_v21  ;;  %v5353_v47 = vsel %vm509_vm3, %v5350_v21, %v5352_v41  ;;  %v32827_v21 = vld [vmem:[#allocation75_spill] sm:$0xff]  ;;  %v32828_v40 = vld [vmem:[#allocation78_spill] sm:$0xff]  ;;  %v32833_v41 = vld [vmem:[#allocation93_spill] sm:$0xff] }
 0x274   :  { %32818 = vst [vmem:[#allocation16_spill] sm:$0xff] %v27447_v53  ;;  %v27459_v52 = vpack.c.bf16 %v5353_v47, %v5351_v22  ;;  %v32834_v22 = vld [vmem:[#allocation94_spill] sm:$0xff]  ;;  %v32835_v47 = vld [vmem:[#allocation99_spill] sm:$0xff] }
 0x276   :  { %32820 = vst [vmem:[#allocation19_spill] sm:$0xff] %v27459_v52 }
 0x277   :  { %20906 = vmatmul.mubr.msk.bf16.gmra.mrb[24].mxu0 %vm911_vm4, %v32815_v23 }
 0x278   :  { %20909 = vmatprep.mubr.msk.bf16.mxu0 %vm911_vm4, %v27207_v62  ;;  %v801_v62 = vrot.slane %v27211_v16, 2  ;;  %v32822_v16 = vld [vmem:[#allocation58_spill] sm:$0xff] }
 0x279   :  { %21500 = vmatmul.mubr.msk.bf16.gmra.mrb[24].mxu1 %vm911_vm4, %v32816_v48 }
 0x27a   :  { %21503 = vmatprep.mubr.msk.bf16.mxu1 %vm911_vm4, %v27209_v54  ;;  %v802_v48 = vsel %vm509_vm3, %v799_v57, %v801_v62  ;;  %v32823_v62 = vld [vmem:[#allocation63_spill] sm:$0xff]  ;;  %v32826_v57 = vld [vmem:[#allocation70_spill] sm:$0xff] }
 0x27b   :  { %v27453_v4 = vpack.c.bf16 %v802_v48, %v800_v11  ;;  %v32829_v48 = vld [vmem:[#allocation81_spill] sm:$0xff] }
 0x27c   :  { %v32832_v11 = vld [vmem:[#allocation89_spill] sm:$0xff] }
 0x27d   :  { %32819 = vst [vmem:[#allocation17_spill] sm:$0xff] %v27453_v4 }
 0x27f   :  { %20910 = vmatmul.mubr.msk.bf16.gmra.mrb[28].mxu0 %vm911_vm4, %v27227_v8 }
 0x280   :  { %20913 = vmatprep.mubr.msk.bf16.mxu0 %vm911_vm4, %v32821_v25  ;;  %v32836_v25 = vld [vmem:[#allocation101_spill] sm:$0xff] }
 0x281   :  { %21504 = vmatmul.mubr.msk.bf16.gmra.mrb[28].mxu1 %vm911_vm4, %v27233_v58 }
 0x282   :  { %21507 = vmatprep.mubr.msk.bf16.mxu1 %vm911_vm4, %v32822_v16  ;;  %v32837_v16 = vld [vmem:[#allocation105_spill] sm:$0xff] }
 0x287   :  { %20914 = vmatmul.mubr.msk.bf16.gmra.mrb[32].mxu0 %vm911_vm4, %v32823_v62  ;;  %v32838_v62 = vld [vmem:[#allocation106_spill] sm:$0xff] }
 0x288   :  { %20917 = vmatprep.mubr.msk.bf16.mxu0 %vm911_vm4, %v32824_v10 }
 0x289   :  { %21508 = vmatmul.mubr.msk.bf16.gmra.mrb[32].mxu1 %vm911_vm4, %v32825_v63  ;;  %v32839_v63 = vld [vmem:[#allocation109_spill] sm:$0xff] }
 0x28a   :  { %21511 = vmatprep.mubr.msk.bf16.mxu1 %vm911_vm4, %v32826_v57 }
 0x28f   :  { %20918 = vmatmul.mubr.msk.bf16.gmra.mrb[36].mxu0 %vm911_vm4, %v32827_v21 }
 0x290   :  { %20921 = vmatprep.mubr.msk.bf16.mxu0 %vm911_vm4, %v32828_v40 }
 0x291   :  { %21512 = vmatmul.mubr.msk.bf16.gmra.mrb[36].mxu1 %vm911_vm4, %v32829_v48 }
 0x292   :  { %21515 = vmatprep.mubr.msk.bf16.mxu1 %vm911_vm4, %v32830_v1  ;;  %v32847_v1 = vld [vmem:[#allocation121_spill] sm:$0xff] }
 0x297   :  { %20922 = vmatmul.mubr.msk.bf16.gmra.mrb[40].mxu0 %vm911_vm4, %v32831_v61  ;;  %v806_v61 = vrot.slane %v27303_v15, 2 }
 0x298   :  { %20925 = vmatprep.mubr.msk.bf16.mxu0 %vm911_vm4, %v32832_v11  ;;  %v32840_v11 = vld [vmem:[#allocation111_spill] sm:$0xff] }
 0x299   :  { %21516 = vmatmul.mubr.msk.bf16.gmra.mrb[40].mxu1 %vm911_vm4, %v32833_v41  ;;  %v32841_v41 = vld [vmem:[#allocation115_spill] sm:$0xff] }
 0x29a   :  { %21519 = vmatprep.mubr.msk.bf16.mxu1 %vm911_vm4, %v32834_v22  ;;  %v32842_v22 = vld [vmem:[#allocation116_spill] sm:$0xff] }
 0x29f   :  { %20926 = vmatmul.mubr.msk.bf16.gmra.mrb[44].mxu0 %vm911_vm4, %v32835_v47  ;;  %v32843_v47 = vld [vmem:[#allocation117_spill] sm:$0xff] }
 0x2a0   :  { %20929 = vmatprep.mubr.msk.bf16.mxu0 %vm911_vm4, %v32836_v25  ;;  %v32844_v25 = vld [vmem:[#allocation118_spill] sm:$0xff] }
 0x2a1   :  { %21520 = vmatmul.mubr.msk.bf16.gmra.mrb[44].mxu1 %vm911_vm4, %v32837_v16  ;;  %v32845_v16 = vld [vmem:[#allocation119_spill] sm:$0xff] }
 0x2a2   :  { %21523 = vmatprep.mubr.msk.bf16.mxu1 %vm911_vm4, %v32838_v62  ;;  %v32846_v62 = vld [vmem:[#allocation120_spill] sm:$0xff] }
 0x2a7   :  { %20930 = vmatmul.mubr.msk.bf16.gmra.mrb[48].mxu0 %vm911_vm4, %v32839_v63  ;;  %v804_v63 = vrot.slane %v27289_v37, 2 }
 0x2a8   :  { %20933 = vmatprep.mubr.msk.bf16.mxu0 %vm911_vm4, %v32840_v11  ;;  %v803_v11 = vrot.slane %v27287_v30, 2  ;;  %v32848_v30 = vld [vmem:[#allocation122_spill] sm:$0xff] }
 0x2a9   :  { %21524 = vmatmul.mubr.msk.bf16.gmra.mrb[48].mxu1 %vm911_vm4, %v32841_v41  ;;  %v5354_v41 = vrot.slane %v27293_v26, 2  ;;  %v807_v37 = vsel %vm509_vm3, %v804_v63, %v806_v61 }
 0x2aa   :  { %21527 = vmatprep.mubr.msk.bf16.mxu1 %vm911_vm4, %v32842_v22  ;;  %v5355_v22 = vrot.slane %v27295_v49, 2  ;;  %v805_v26 = vsel %vm509_vm3, %v803_v11, %v804_v63  ;;  %v5361_v11 = vrot.slane %v27345_v7, 2  ;;  %v25061_v7 = vld [vmem:[#allocation5 + $0x8] ss:$0 sps:$4 sm:$0xcc]  }
 0x2ac   :  { %v5356_v15 = vsel %vm509_vm3, %v5354_v41, %v5355_v22 }
 0x2af   :  { %20934 = vmatmul.mubr.msk.bf16.gmra.mrb[52].mxu0 %vm911_vm4, %v32843_v47  ;;  %v5357_v47 = vrot.slane %v27305_v39, 2 }
 0x2b0   :  { %20937 = vmatprep.mubr.msk.bf16.mxu0 %vm911_vm4, %v32844_v25  ;;  %v808_v25 = vrot.slane %v27309_v60, 2  ;;  %v27535_v60 = vpack.c.bf16 %v807_v37, %v805_v26 }
 0x2b1   :  { %21528 = vmatmul.mubr.msk.bf16.gmra.mrb[52].mxu1 %vm911_vm4, %v32845_v16  ;;  %v5359_v16 = vrot.slane %v27324_v34, 2  ;;  %v5358_v39 = vsel %vm509_vm3, %v5355_v22, %v5357_v47 }
 0x2b2   :  { %21531 = vmatprep.mubr.msk.bf16.mxu1 %vm911_vm4, %v32846_v62  ;;  %32849 = vst [vmem:[#allocation18_spill] sm:$0xff] %v27535_v60  ;;  %v27537_v34 = vpack.c.bf16 %v5358_v39, %v5356_v15  ;;  %v809_v49 = vsel %vm509_vm3, %v806_v61, %v808_v25  ;;  %v32854_v15 = vld [vmem:[#allocation74_spill] sm:$0xff]  ;;  %v32855_v39 = vld [vmem:[#allocation83_spill] sm:$0xff] }
 0x2b3   :  { %v5360_v41 = vsel %vm509_vm3, %v5357_v47, %v5359_v16  ;;  %v5362_v22 = vsel %vm509_vm3, %v5359_v16, %v5361_v11  ;;  %v8214_v47 = vshll.u32 %v25061_v7, 16  ;;  %v32857_v11 = vld [vmem:[#allocation86_spill] sm:$0xff] }
 0x2b4   :  { %32850 = vst [vmem:[#allocation41_spill] sm:$0xff] %v27537_v34  ;;  %v27549_v26 = vpack.c.bf16 %v5362_v22, %v5360_v41  ;;  %v32858_v41 = vld [vmem:[#allocation80_spill] sm:$0xff] }
 0x2b5   :  { %v8216_v16 = vrot.slane %v8214_v47, 3  ;;  %v32859_v22 = vld [vmem:[#allocation88_spill] sm:$0xff] }
 0x2b6   :  { %32852 = vst [vmem:[#allocation57_spill] sm:$0xff] %v27549_v26  ;;  %v32867_v47 = vld [vmem:[#allocation100_spill] sm:$0xff] }
 0x2b7   :  { %20938 = vmatmul.mubr.msk.bf16.gmra.mrb[56].mxu0 %vm911_vm4, %v32847_v1 }
 0x2b8   :  { %20941 = vmatprep.mubr.msk.bf16.mxu0 %vm911_vm4, %v27333_v56  ;;  %v810_v56 = vrot.slane %v27337_v5, 2  ;;  %v25060_v5 = vld [vmem:[#allocation5 + $0x8] ss:$0 sps:$4 sm:$0xcc]  }
 0x2b9   :  { %21532 = vmatmul.mubr.msk.bf16.gmra.mrb[56].mxu1 %vm911_vm4, %v32848_v30 }
 0x2ba   :  { %21535 = vmatprep.mubr.msk.bf16.mxu1 %vm911_vm4, %v27335_v59  ;;  %v811_v30 = vsel %vm509_vm3, %v808_v25, %v810_v56  ;;  %v3665_v56 = vshrl.u32 %v25060_v5, 16 }
 0x2bb   :  { %v27543_v63 = vpack.c.bf16 %v811_v30, %v809_v49  ;;  %v32856_v49 = vld [vmem:[#allocation85_spill] sm:$0xff] }
 0x2bd   :  { %32851 = vst [vmem:[#allocation47_spill] sm:$0xff] %v27543_v63 }
 0x2bf   :  { %20942 = vmatmul.mubr.msk.bf16.gmra.mrb[60].mxu0 %vm911_vm4, %v27353_v45 }
 0x2c0   :  { %20947 = vmatprep.mubr.msk.bf16.mxu0 %vm911_vm4, %v26710_v12  ;;  %v3668_v12 = vshll.u32 %v25060_v5, 16  ;;  %v32860_v5 = vld [vmem:[#allocation90_spill] sm:$0xff] }
 0x2c1   :  { %21536 = vmatmul.mubr.msk.bf16.gmra.mrb[60].mxu1 %vm911_vm4, %v27359_v32 }
 0x2c2   :  { %21541 = vmatprep.mubr.msk.bf16.mxu1 %vm911_vm4, %v26716_v18  ;;  %v3667_v18 = vrot.slane %v3665_v56, 2  ;;  %v3670_v61 = vrot.slane %v3668_v12, 3  ;;  %v32861_v56 = vld [vmem:[#allocation91_spill] sm:$0xff] }
 0x2c3   :  { %v32862_v12 = vld [vmem:[#allocation87_spill] sm:$0xff] }
 0x2c4   :  { %v3671_v25 = vor.u32 %v3670_v61, %v3667_v18  ;;  %v32864_v18 = vld [vmem:[#allocation96_spill] sm:$0xff]  ;;  %v32865_v61 = vld [vmem:[#allocation97_spill] sm:$0xff] }
 0x2c7   :  { %20948 = vmatmul.mubr.msk.bf16.vlgmr.msra.gmra.mrb[0].mxu0 %vm911_vm4, %v26741_v14  ;;  %v8211_v14 = vshrl.u32 %v25061_v7, 16  ;;  %v32863_v7 = vld [vmem:[#allocation95_spill] sm:$0xff] }
 0x2c8   :  { %21012 = vmatpush3.bf16.msra.mxu0 %v27378_v38  ;;  %20951 = vmatprep.mubr.msk.bf16.mxu0 %vm911_vm4, %v26750_v44 }
 0x2c9   :  { %21542 = vmatmul.mubr.msk.bf16.vlgmr.msra.gmra.mrb[0].mxu1 %vm911_vm4, %v26748_v28  ;;  %v8213_v38 = vrot.slane %v8211_v14, 2  ;;  %v27570_v28 = vand.u32 %v3671_v25, %v32684_v9  ;;  %v32866_v14 = vld [vmem:[#allocation92_spill] sm:$0xff]  ;;  %v32868_v25 = vld [vmem:[#allocation102_spill] sm:$0xff] }
 0x2ca   :  { %21606 = vmatpush3.bf16.msra.mxu1 %v27382_v27  ;;  %21545 = vmatprep.mubr.msk.bf16.mxu1 %vm911_vm4, %v26760_v50  ;;  %v32853_v27 = vld [vmem:[#allocation79_spill] sm:$0xff]  ;;  %v32949_v50 = vld [vmem:[#allocation26_spill] sm:$0xff] }
 0x2cb   :  { %v8217_v30 = vor.u32 %v8216_v16, %v8213_v38  ;;  %21077 = vmatprep.subr.bf16.mxu0 %v27570_v28  ;;  %v32869_v38 = vld [vmem:[#allocation103_spill] sm:$0xff]  ;;  %v32870_v16 = vld [vmem:[#allocation98_spill] sm:$0xff] }
 0x2cd   :  { %v27578_v37 = vand.u32 %v8217_v30, %v32684_v9  ;;  %v32871_v30 = vld [vmem:[#allocation107_spill] sm:$0xff] }
 0x2cf   :  { %20952 = vmatmul.mubr.msk.bf16.gmra.mrb[4].mxu0 %vm911_vm4, %v26781_v46  ;;  %21671 = vmatprep.subr.bf16.mxu1 %v27578_v37  ;;  %v32948_v46 = vld [vmem:[#allocation25_spill] sm:$0xff] }
 0x2d0   :  { %20955 = vmatprep.mubr.msk.bf16.mxu0 %vm911_vm4, %v26785_v19 }
 0x2d1   :  { %21546 = vmatmul.mubr.msk.bf16.gmra.mrb[4].mxu1 %vm911_vm4, %v32853_v27 }
 0x2d2   :  { %21549 = vmatprep.mubr.msk.bf16.mxu1 %vm911_vm4, %v32854_v15 }
 0x2d7   :  { %20956 = vmatmul.mubr.msk.bf16.gmra.mrb[8].mxu0 %vm911_vm4, %v32855_v39 }
 0x2d8   :  { %20959 = vmatprep.mubr.msk.bf16.mxu0 %vm911_vm4, %v32856_v49 }
 0x2d9   :  { %21550 = vmatmul.mubr.msk.bf16.gmra.mrb[8].mxu1 %vm911_vm4, %v32857_v11  ;;  %v27918_v11 = vld [vmem:[#allocation2 + $0x818] sm:$0x3] }
 0x2da   :  { %21553 = vmatprep.mubr.msk.bf16.mxu1 %vm911_vm4, %v32858_v41 }
 0x2df   :  { %20960 = vmatmul.mubr.msk.bf16.gmra.mrb[12].mxu0 %vm911_vm4, %v32859_v22 }
 0x2e0   :  { %20963 = vmatprep.mubr.msk.bf16.mxu0 %vm911_vm4, %v32860_v5 }
 0x2e1   :  { %21554 = vmatmul.mubr.msk.bf16.gmra.mrb[12].mxu1 %vm911_vm4, %v32861_v56 }
 0x2e2   :  { %21557 = vmatprep.mubr.msk.bf16.mxu1 %vm911_vm4, %v32862_v12  ;;  %v27890_v12 = vld [vmem:[#allocation2 + $0x810] sm:$0xff] }
 0x2e7   :  { %20964 = vmatmul.mubr.msk.bf16.gmra.mrb[16].mxu0 %vm911_vm4, %v32863_v7 }
 0x2e8   :  { %20967 = vmatprep.mubr.msk.bf16.mxu0 %vm911_vm4, %v32864_v18 }
 0x2e9   :  { %21558 = vmatmul.mubr.msk.bf16.gmra.mrb[16].mxu1 %vm911_vm4, %v32865_v61  ;;  %v32872_v61 = vld [vmem:[#allocation104_spill] sm:$0xff] }
 0x2ea   :  { %21561 = vmatprep.mubr.msk.bf16.mxu1 %vm911_vm4, %v32866_v14 }
 0x2ef   :  { %20968 = vmatmul.mubr.msk.bf16.gmra.mrb[20].mxu0 %vm911_vm4, %v32867_v47 }
 0x2f0   :  { %20971 = vmatprep.mubr.msk.bf16.mxu0 %vm911_vm4, %v32868_v25 }
 0x2f1   :  { %21562 = vmatmul.mubr.msk.bf16.gmra.mrb[20].mxu1 %vm911_vm4, %v32869_v38 }
 0x2f2   :  { %21565 = vmatprep.mubr.msk.bf16.mxu1 %vm911_vm4, %v32870_v16  ;;  %v27872_v16 = vld [vmem:[#allocation2 + $0x6c8] sm:$0xff] }
 0x2f3   :  { %v850_v47 = vrot.slane %v27872_v16, 1 }
 0x2f7   :  { %20972 = vmatmul.mubr.msk.bf16.gmra.mrb[24].mxu0 %vm911_vm4, %v32871_v30  ;;  %v32873_v30 = vld [vmem:[#allocation110_spill] sm:$0xff] }
 0x2f8   :  { %20975 = vmatprep.mubr.msk.bf16.mxu0 %vm911_vm4, %v27445_v55  ;;  %v32874_v55 = vld [vmem:[#allocation112_spill] sm:$0xff] }
 0x2f9   :  { %21566 = vmatmul.mubr.msk.bf16.gmra.mrb[24].mxu1 %vm911_vm4, %v32872_v61  ;;  %v32875_v61 = vld [vmem:[#allocation113_spill] sm:$0xff] }
 0x2fa   :  { %21569 = vmatprep.mubr.msk.bf16.mxu1 %vm911_vm4, %v27447_v53  ;;  %v32876_v53 = vld [vmem:[#allocation108_spill] sm:$0xff] }
 0x2ff   :  { %20976 = vmatmul.mubr.msk.bf16.gmra.mrb[28].mxu0 %vm911_vm4, %v27453_v4  ;;  %v32877_v4 = vld [vmem:[#allocation114_spill] sm:$0xff] }
 0x300   :  { %20979 = vmatprep.mubr.msk.bf16.mxu0 %vm911_vm4, %v26935_v43  ;;  %v32878_v43 = vld [vmem:[#allocation13_spill] sm:$0xff] }
 0x301   :  { %21570 = vmatmul.mubr.msk.bf16.gmra.mrb[28].mxu1 %vm911_vm4, %v27459_v52  ;;  %v32879_v52 = vld [vmem:[#allocation125_spill] sm:$0xff] }
 0x302   :  { %21573 = vmatprep.mubr.msk.bf16.mxu1 %vm911_vm4, %v26937_v6  ;;  %v32880_v6 = vld [vmem:[#allocation14_spill] sm:$0xff] }
 0x307   :  { %20980 = vmatmul.mubr.msk.bf16.gmra.mrb[32].mxu0 %vm911_vm4, %v32873_v30  ;;  %v32881_v30 = vld [vmem:[#allocation130_spill] sm:$0xff] }
 0x308   :  { %20983 = vmatprep.mubr.msk.bf16.mxu0 %vm911_vm4, %v32874_v55  ;;  %v32882_v55 = vld [vmem:[#allocation12_spill] sm:$0xff] }
 0x309   :  { %21574 = vmatmul.mubr.msk.bf16.gmra.mrb[32].mxu1 %vm911_vm4, %v32875_v61  ;;  %v32883_v61 = vld [vmem:[#allocation131_spill] sm:$0xff] }
 0x30a   :  { %21577 = vmatprep.mubr.msk.bf16.mxu1 %vm911_vm4, %v32876_v53  ;;  %v32884_v53 = vld [vmem:[#allocation133_spill] sm:$0xff] }
 0x30f   :  { %20984 = vmatmul.mubr.msk.bf16.gmra.mrb[36].mxu0 %vm911_vm4, %v32877_v4  ;;  %v32885_v4 = vld [vmem:[#allocation134_spill] sm:$0xff] }
 0x310   :  { %20987 = vmatprep.mubr.msk.bf16.mxu0 %vm911_vm4, %v32878_v43  ;;  %v32886_v43 = vld [vmem:[#allocation141_spill] sm:$0xff] }
 0x311   :  { %21578 = vmatmul.mubr.msk.bf16.gmra.mrb[36].mxu1 %vm911_vm4, %v32879_v52  ;;  %v32887_v52 = vld [vmem:[#allocation136_spill] sm:$0xff] }
 0x312   :  { %21581 = vmatprep.mubr.msk.bf16.mxu1 %vm911_vm4, %v32880_v6  ;;  %v32888_v6 = vld [vmem:[#allocation138_spill] sm:$0xff] }
 0x317   :  { %20988 = vmatmul.mubr.msk.bf16.gmra.mrb[40].mxu0 %vm911_vm4, %v32881_v30  ;;  %v32920_v30 = vld [vmem:[#allocation45_spill] sm:$0xff] }
 0x318   :  { %20991 = vmatprep.mubr.msk.bf16.mxu0 %vm911_vm4, %v32882_v55  ;;  %v32889_v55 = vld [vmem:[#allocation142_spill] sm:$0xff] }
 0x319   :  { %21582 = vmatmul.mubr.msk.bf16.gmra.mrb[40].mxu1 %vm911_vm4, %v32883_v61  ;;  %v32890_v61 = vld [vmem:[#allocation144_spill] sm:$0xff] }
 0x31a   :  { %21585 = vmatprep.mubr.msk.bf16.mxu1 %vm911_vm4, %v32884_v53  ;;  %v32891_v53 = vld [vmem:[#allocation145_spill] sm:$0xff] }
 0x31f   :  { %20992 = vmatmul.mubr.msk.bf16.gmra.mrb[44].mxu0 %vm911_vm4, %v32885_v4  ;;  %v32919_v4 = vld [vmem:[#allocation44_spill] sm:$0xff] }
 0x320   :  { %20995 = vmatprep.mubr.msk.bf16.mxu0 %vm911_vm4, %v32886_v43  ;;  %v27866_v43 = vld [vmem:[#allocation2 + $0x800] sm:$0xff] }
 0x321   :  { %21586 = vmatmul.mubr.msk.bf16.gmra.mrb[44].mxu1 %vm911_vm4, %v32887_v52  ;;  %v27791_v52 = vld [vmem:[#allocation2 + $0x188] sm:$0x3]  ;;  %v5399_v25 = vrot.slane %v27866_v43, 1 }
 0x322   :  { %21589 = vmatprep.mubr.msk.bf16.mxu1 %vm911_vm4, %v32888_v6  ;;  %v27787_v6 = vld [vmem:[#allocation2 + $0x2c0] sm:$0xff] }
 0x327   :  { %20996 = vmatmul.mubr.msk.bf16.gmra.mrb[48].mxu0 %vm911_vm4, %v27047_v3  ;;  %v27785_v3 = vld [vmem:[#allocation2 + $0x2b8] sm:$0xff] }
 0x328   :  { %20999 = vmatprep.mubr.msk.bf16.mxu0 %vm911_vm4, %v32889_v55 }
 0x329   :  { %21590 = vmatmul.mubr.msk.bf16.gmra.mrb[48].mxu1 %vm911_vm4, %v32890_v61 }
 0x32a   :  { %21593 = vmatprep.mubr.msk.bf16.mxu1 %vm911_vm4, %v32891_v53  ;;  %v32916_v53 = vld [vmem:[#allocation128_spill] sm:$0xff] }
 0x32f   :  { %21000 = vmatmul.mubr.msk.bf16.gmra.mrb[52].mxu0 %vm911_vm4, %v27071_v0  ;;  %v32915_v0 = vld [vmem:[#allocation127_spill] sm:$0xff] }
 0x330   :  { %21003 = vmatprep.mubr.msk.bf16.mxu0 %vm911_vm4, %v27075_v36 }
 0x331   :  { %21594 = vmatmul.mubr.msk.bf16.gmra.mrb[52].mxu1 %vm911_vm4, %v27077_v31 }
 0x332   :  { %21597 = vmatprep.mubr.msk.bf16.mxu1 %vm911_vm4, %v27079_v29  ;;  %v27767_v29 = vld [vmem:[#allocation2 + $0x180] sm:$0xff] }
 0x333   :  { %v843_v36 = vrot.slane %v27767_v29, 1 }
 0x337   :  { %21004 = vmatmul.mubr.msk.bf16.gmra.mrb[56].mxu0 %vm911_vm4, %v27093_v24  ;;  %v27759_v24 = vld [vmem:[#allocation2 + $0x2b0] sm:$0xff] }
 0x338   :  { %21007 = vmatprep.mubr.msk.bf16.mxu0 %vm911_vm4, %v27535_v60  ;;  %v4040_v60 = vld [vmem:[#allocation5 + $0xc] sm:$0x3] }
 0x339   :  { %21598 = vmatmul.mubr.msk.bf16.gmra.mrb[56].mxu1 %vm911_vm4, %v27095_v2  ;;  %v32892_v2 = vld [vmem:[#allocation135_spill] sm:$0xff] }
 0x33a   :  { %21601 = vmatprep.mubr.msk.bf16.mxu1 %vm911_vm4, %v27537_v34  ;;  %v32893_v34 = vld [vmem:[#allocation137_spill] sm:$0xff] }
 0x33f   :  { %21008 = vmatmul.mubr.msk.bf16.gmra.mrb[60].mxu0 %vm911_vm4, %v27543_v63  ;;  %v27701_v63 = vand.u32 %v4040_v60, %v32684_v9  ;;  %v32897_v60 = vld [vmem:[#allocation148_spill] sm:$0xff] }
 0x340   :  { %21013 = vmatprep.mubr.msk.bf16.mxu0 %vm911_vm4, %v32753_v35  ;;  %v8586_v35 = vld [vmem:[#allocation5 + $0xc] sm:$0x3] }
 0x341   :  { %21602 = vmatmul.mubr.msk.bf16.gmra.mrb[60].mxu1 %vm911_vm4, %v27549_v26  ;;  %v32894_v26 = vld [vmem:[#allocation140_spill] sm:$0xff] }
 0x342   :  { %21607 = vmatprep.mubr.msk.bf16.mxu1 %vm911_vm4, %v32755_v33  ;;  %v27709_v33 = vand.u32 %v8586_v35, %v32684_v9  ;;  %v32902_v35 = vld [vmem:[#allocation158_spill] sm:$0xff] }
 0x347   :  { %21014 = vmatmul.mubr.msk.bf16.vlgmr.msra.gmra.mrb[0].mxu0 %vm911_vm4, %v32756_v17  ;;  %v32896_v17 = vld [vmem:[#allocation146_spill] sm:$0xff] }
 0x348   :  { %21078 = vmatpush3.bf16.msra.mxu0 %v27570_v28  ;;  %21017 = vmatprep.mubr.msk.bf16.mxu0 %vm911_vm4, %v32892_v2  ;;  %v32895_v2 = vld [vmem:[#allocation143_spill] sm:$0xff] }
 0x349   :  { %21608 = vmatmul.mubr.msk.bf16.vlgmr.msra.gmra.mrb[0].mxu1 %vm911_vm4, %v32893_v34  ;;  %21143 = vmatprep.subr.bf16.mxu0 %v27701_v63  ;;  %v32898_v34 = vld [vmem:[#allocation151_spill] sm:$0xff] }
 0x34a   :  { %21672 = vmatpush3.bf16.msra.mxu1 %v27578_v37  ;;  %21611 = vmatprep.mubr.msk.bf16.mxu1 %vm911_vm4, %v32894_v26  ;;  %v32899_v26 = vld [vmem:[#allocation153_spill] sm:$0xff]  ;;  %v32900_v28 = vld [vmem:[#allocation155_spill] sm:$0xff] }
 0x34b   :  { %21737 = vmatprep.subr.bf16.mxu1 %v27709_v33  ;;  %v32901_v37 = vld [vmem:[#allocation157_spill] sm:$0xff] }
 0x34f   :  { %21018 = vmatmul.mubr.msk.bf16.gmra.mrb[4].mxu0 %vm911_vm4, %v32895_v2  ;;  %v32903_v2 = vld [vmem:[#allocation159_spill] sm:$0xff] }
 0x350   :  { %21021 = vmatprep.mubr.msk.bf16.mxu0 %vm911_vm4, %v32896_v17  ;;  %v32904_v17 = vld [vmem:[#allocation160_spill] sm:$0xff] }
 0x351   :  { %21612 = vmatmul.mubr.msk.bf16.gmra.mrb[4].mxu1 %vm911_vm4, %v32897_v60  ;;  %v32905_v60 = vld [vmem:[#allocation161_spill] sm:$0xff] }
 0x352   :  { %21615 = vmatprep.mubr.msk.bf16.mxu1 %vm911_vm4, %v32898_v34  ;;  %v32906_v34 = vld [vmem:[#allocation162_spill] sm:$0xff] }
 0x357   :  { %21022 = vmatmul.mubr.msk.bf16.gmra.mrb[8].mxu0 %vm911_vm4, %v32899_v26  ;;  %v32907_v26 = vld [vmem:[#allocation163_spill] sm:$0xff] }
 0x358   :  { %21025 = vmatprep.mubr.msk.bf16.mxu0 %vm911_vm4, %v32900_v28  ;;  %v32908_v28 = vld [vmem:[#allocation164_spill] sm:$0xff] }
 0x359   :  { %21616 = vmatmul.mubr.msk.bf16.gmra.mrb[8].mxu1 %vm911_vm4, %v32901_v37  ;;  %v32909_v37 = vld [vmem:[#allocation165_spill] sm:$0xff] }
 0x35a   :  { %21619 = vmatprep.mubr.msk.bf16.mxu1 %vm911_vm4, %v32902_v35  ;;  %v32910_v35 = vld [vmem:[#allocation166_spill] sm:$0xff] }
 0x35f   :  { %21026 = vmatmul.mubr.msk.bf16.gmra.mrb[12].mxu0 %vm911_vm4, %v32903_v2  ;;  %v32911_v2 = vld [vmem:[#allocation167_spill] sm:$0xff] }
 0x360   :  { %21029 = vmatprep.mubr.msk.bf16.mxu0 %vm911_vm4, %v32904_v17  ;;  %v32912_v17 = vld [vmem:[#allocation123_spill] sm:$0xff] }
 0x361   :  { %21620 = vmatmul.mubr.msk.bf16.gmra.mrb[12].mxu1 %vm911_vm4, %v32905_v60  ;;  %v32913_v60 = vld [vmem:[#allocation168_spill] sm:$0xff] }
 0x362   :  { %21623 = vmatprep.mubr.msk.bf16.mxu1 %vm911_vm4, %v32906_v34  ;;  %v27751_v34 = vld [vmem:[#allocation2 + $0x168] sm:$0xff] }
 0x367   :  { %21030 = vmatmul.mubr.msk.bf16.gmra.mrb[16].mxu0 %vm911_vm4, %v32907_v26  ;;  %v27753_v26 = vld [vmem:[#allocation2 + $0x170] sm:$0xff] }
 0x368   :  { %21033 = vmatprep.mubr.msk.bf16.mxu0 %vm911_vm4, %v32908_v28  ;;  %v32914_v28 = vld [vmem:[#allocation124_spill] sm:$0xff] }
 0x369   :  { %21624 = vmatmul.mubr.msk.bf16.gmra.mrb[16].mxu1 %vm911_vm4, %v32909_v37  ;;  %v27757_v37 = vld [vmem:[#allocation2 + $0x2a8] sm:$0xff] }
 0x36a   :  { %21627 = vmatprep.mubr.msk.bf16.mxu1 %vm911_vm4, %v32910_v35  ;;  %v824_v35 = vpack.c.bf16 %v27753_v26, %v27751_v34 }
 0x36f   :  { %21034 = vmatmul.mubr.msk.bf16.gmra.mrb[20].mxu0 %vm911_vm4, %v32911_v2  ;;  %v27763_v2 = vld [vmem:[#allocation2 + $0x178] sm:$0xff] }
 0x370   :  { %21037 = vmatprep.mubr.msk.bf16.mxu0 %vm911_vm4, %v32912_v17  ;;  %v838_v17 = vrot.slane %v27751_v34, 1  ;;  %v841_v31 = vrot.slane %v27763_v2, 1 }
 0x371   :  { %21628 = vmatmul.mubr.msk.bf16.gmra.mrb[20].mxu1 %vm911_vm4, %v32913_v60  ;;  %v839_v60 = vrot.slane %v27753_v26, 1 }
 0x372   :  { %21631 = vmatprep.mubr.msk.bf16.mxu1 %vm911_vm4, %v32914_v28  ;;  %v5375_v28 = vpack.c.bf16 %v27759_v24, %v27757_v37 }
 0x373   :  { %v27779_v61 = vsel %vm268_vm2, %v838_v17, %v839_v60  ;;  %v27782_v55 = vsel %vm268_vm2, %v839_v60, %v841_v31  ;;  %v845_v17 = vrot.slane %v27791_v52, 1  ;;  %v5376_v60 = vpack.c.bf16 %v27787_v6, %v27785_v3 }
 0x377   :  { %21038 = vmatmul.mubr.msk.bf16.gmra.mrb[24].mxu0 %vm911_vm4, %v32915_v0  ;;  %v32917_v0 = vld [vmem:[#allocation42_spill] sm:$0xff] }
 0x378   :  { %21041 = vmatprep.mubr.msk.bf16.mxu0 %vm911_vm4, %v824_v35  ;;  %v27794_v35 = vsel %vm268_vm2, %v841_v31, %v843_v36  ;;  %v32918_v31 = vld [vmem:[#allocation39_spill] sm:$0xff] }
 0x379   :  { %21632 = vmatmul.mubr.msk.bf16.gmra.mrb[24].mxu1 %vm911_vm4, %v32916_v53  ;;  %v825_v53 = vpack.c.bf16 %v27767_v29, %v27763_v2 }
 0x37a   :  { %21635 = vmatprep.mubr.msk.bf16.mxu1 %vm911_vm4, %v5375_v28  ;;  %v27802_v28 = vsel %vm268_vm2, %v843_v36, %v845_v17  ;;  %v32921_v36 = vld [vmem:[#allocation46_spill] sm:$0xff]  ;;  %v32922_v17 = vld [vmem:[#allocation43_spill] sm:$0xff] }
 0x37f   :  { %21042 = vmatmul.mubr.msk.bf16.gmra.mrb[28].mxu0 %vm911_vm4, %v825_v53  ;;  %v32923_v53 = vld [vmem:[#allocation50_spill] sm:$0xff] }
 0x380   :  { %21045 = vmatprep.mubr.msk.bf16.mxu0 %vm911_vm4, %v32917_v0  ;;  %v32924_v0 = vld [vmem:[#allocation51_spill] sm:$0xff] }
 0x381   :  { %21636 = vmatmul.mubr.msk.bf16.gmra.mrb[28].mxu1 %vm911_vm4, %v5376_v60  ;;  %v32925_v60 = vld [vmem:[#allocation48_spill] sm:$0xff] }
 0x382   :  { %21639 = vmatprep.mubr.msk.bf16.mxu1 %vm911_vm4, %v32918_v31  ;;  %v32926_v31 = vld [vmem:[#allocation52_spill] sm:$0xff] }
 0x387   :  { %21046 = vmatmul.mubr.msk.bf16.gmra.mrb[32].mxu0 %vm911_vm4, %v32919_v4  ;;  %v32927_v4 = vld [vmem:[#allocation54_spill] sm:$0xff] }
 0x388   :  { %21049 = vmatprep.mubr.msk.bf16.mxu0 %vm911_vm4, %v32920_v30  ;;  %v32928_v30 = vld [vmem:[#allocation55_spill] sm:$0xff] }
 0x389   :  { %21640 = vmatmul.mubr.msk.bf16.gmra.mrb[32].mxu1 %vm911_vm4, %v32921_v36  ;;  %v32929_v36 = vld [vmem:[#allocation53_spill] sm:$0xff] }
 0x38a   :  { %21643 = vmatprep.mubr.msk.bf16.mxu1 %vm911_vm4, %v32922_v17  ;;  %v32930_v17 = vld [vmem:[#allocation59_spill] sm:$0xff] }
 0x38f   :  { %21050 = vmatmul.mubr.msk.bf16.gmra.mrb[36].mxu0 %vm911_vm4, %v32923_v53  ;;  %v32931_v53 = vld [vmem:[#allocation60_spill] sm:$0xff] }
 0x390   :  { %21053 = vmatprep.mubr.msk.bf16.mxu0 %vm911_vm4, %v32924_v0  ;;  %v32932_v0 = vld [vmem:[#allocation61_spill] sm:$0xff] }
 0x391   :  { %21644 = vmatmul.mubr.msk.bf16.gmra.mrb[36].mxu1 %vm911_vm4, %v32925_v60  ;;  %v32933_v60 = vld [vmem:[#allocation56_spill] sm:$0xff] }
 0x392   :  { %21647 = vmatprep.mubr.msk.bf16.mxu1 %vm911_vm4, %v32926_v31  ;;  %v32934_v31 = vld [vmem:[#allocation64_spill] sm:$0xff] }
 0x397   :  { %21054 = vmatmul.mubr.msk.bf16.gmra.mrb[40].mxu0 %vm911_vm4, %v32927_v4  ;;  %v32935_v4 = vld [vmem:[#allocation66_spill] sm:$0xff] }
 0x398   :  { %21057 = vmatprep.mubr.msk.bf16.mxu0 %vm911_vm4, %v32928_v30  ;;  %v32936_v30 = vld [vmem:[#allocation67_spill] sm:$0xff] }
 0x399   :  { %21648 = vmatmul.mubr.msk.bf16.gmra.mrb[40].mxu1 %vm911_vm4, %v32929_v36  ;;  %v32937_v36 = vld [vmem:[#allocation62_spill] sm:$0xff] }
 0x39a   :  { %21651 = vmatprep.mubr.msk.bf16.mxu1 %vm911_vm4, %v32930_v17  ;;  %v32938_v17 = vld [vmem:[#allocation71_spill] sm:$0xff] }
 0x39f   :  { %21058 = vmatmul.mubr.msk.bf16.gmra.mrb[44].mxu0 %vm911_vm4, %v32931_v53  ;;  %v32939_v53 = vld [vmem:[#allocation72_spill] sm:$0xff] }
 0x3a0   :  { %21061 = vmatprep.mubr.msk.bf16.mxu0 %vm911_vm4, %v32932_v0  ;;  %v32940_v0 = vld [vmem:[#allocation129_spill] sm:$0xff] }
 0x3a1   :  { %21652 = vmatmul.mubr.msk.bf16.gmra.mrb[44].mxu1 %vm911_vm4, %v32933_v60  ;;  %v32941_v60 = vld [vmem:[#allocation73_spill] sm:$0xff] }
 0x3a2   :  { %21655 = vmatprep.mubr.msk.bf16.mxu1 %vm911_vm4, %v32934_v31  ;;  %v27858_v31 = vld [vmem:[#allocation2 + $0x6b8] sm:$0xff] }
 0x3a7   :  { %21062 = vmatmul.mubr.msk.bf16.gmra.mrb[48].mxu0 %vm911_vm4, %v32935_v4  ;;  %v27860_v4 = vld [vmem:[#allocation2 + $0x6c0] sm:$0xff] }
 0x3a8   :  { %21065 = vmatprep.mubr.msk.bf16.mxu0 %vm911_vm4, %v32936_v30  ;;  %v32942_v30 = vld [vmem:[#allocation132_spill] sm:$0xff] }
 0x3a9   :  { %21656 = vmatmul.mubr.msk.bf16.gmra.mrb[48].mxu1 %vm911_vm4, %v32937_v36  ;;  %v27864_v36 = vld [vmem:[#allocation2 + $0x7f8] sm:$0xff] }
 0x3aa   :  { %21659 = vmatprep.mubr.msk.bf16.mxu1 %vm911_vm4, %v32938_v17  ;;  %v826_v17 = vpack.c.bf16 %v27860_v4, %v27858_v31  ;;  %v5398_v38 = vrot.slane %v27864_v36, 1  ;;  %v5377_v18 = vpack.c.bf16 %v27866_v43, %v27864_v36 }
 0x3ac   :  { %v27899_v22 = vsel %vm268_vm2, %v5398_v38, %v5399_v25 }
 0x3af   :  { %21066 = vmatmul.mubr.msk.bf16.gmra.mrb[52].mxu0 %vm911_vm4, %v32939_v53  ;;  %v847_v53 = vrot.slane %v27858_v31, 1 }
 0x3b0   :  { %21069 = vmatprep.mubr.msk.bf16.mxu0 %vm911_vm4, %v32940_v0  ;;  %v848_v0 = vrot.slane %v27860_v4, 1 }
 0x3b1   :  { %21660 = vmatmul.mubr.msk.bf16.gmra.mrb[52].mxu1 %vm911_vm4, %v32941_v60  ;;  %v27874_v60 = vld [vmem:[#allocation2 + $0x808] sm:$0xff] }
 0x3b2   :  { %21663 = vmatprep.mubr.msk.bf16.mxu1 %vm911_vm4, %v32942_v30  ;;  %v27878_v30 = vld [vmem:[#allocation2 + $0x6d0] sm:$0xff]  ;;  %v5401_v14 = vrot.slane %v27874_v60, 1  ;;  %v27893_v56 = vsel %vm268_vm2, %v847_v53, %v848_v0  ;;  %v27896_v5 = vsel %vm268_vm2, %v848_v0, %v850_v47  ;;  %v27910_v53 = vld [vmem:[#allocation2 + $0x6d8] sm:$0x3] }
 0x3b3   :  { %v852_v7 = vrot.slane %v27878_v30, 1  ;;  %v827_v38 = vpack.c.bf16 %v27878_v30, %v27872_v16 }
 0x3b4   :  { %v27902_v41 = vsel %vm268_vm2, %v5399_v25, %v5401_v14  ;;  %v854_v25 = vrot.slane %v27910_v53, 1 }
 0x3b5   :  { %v27913_v0 = vsel %vm268_vm2, %v850_v47, %v852_v7 }
 0x3b6   :  { %v27924_v49 = vsel %vm268_vm2, %v852_v7, %v854_v25  ;;  %v32943_v7 = vld [vmem:[#allocation20_spill] sm:$0xff]  ;;  %v32944_v25 = vld [vmem:[#allocation21_spill] sm:$0xff] }
 0x3b7   :  { %21070 = vmatmul.mubr.msk.bf16.gmra.mrb[56].mxu0 %vm911_vm4, %v27342_v20  ;;  %v5403_v20 = vrot.slane %v27890_v12, 1 }
 0x3b8   :  { %21073 = vmatprep.mubr.msk.bf16.mxu0 %vm911_vm4, %v826_v17 }
 0x3b9   :  { %21664 = vmatmul.mubr.msk.bf16.gmra.mrb[56].mxu1 %vm911_vm4, %v27350_v42  ;;  %v5378_v42 = vpack.c.bf16 %v27890_v12, %v27874_v60  ;;  %v27929_v47 = vsel %vm268_vm2, %v5401_v14, %v5403_v20  ;;  %v32945_v14 = vld [vmem:[#allocation22_spill] sm:$0xff] }
 0x3ba   :  { %21667 = vmatprep.mubr.msk.bf16.mxu1 %vm911_vm4, %v5377_v18  ;;  %v5405_v18 = vrot.slane %v27918_v11, 1 }
 0x3bc   :  { %v27932_v39 = vsel %vm268_vm2, %v5403_v20, %v5405_v18  ;;  %v32946_v20 = vld [vmem:[#allocation23_spill] sm:$0xff]  ;;  %v25063_v18 = vld [vmem:[#allocation5] ss:$0 sps:$4 sm:$0x66]  }
 0x3bd   :  { %v14535_v15 = vshrl.u32 %v25063_v18, 16  ;;  %v14538_v17 = vshll.u32 %v25063_v18, 16  ;;  %v32951_v18 = vld [vmem:[#allocation28_spill] sm:$0xff] }
 0x3bf   :  { %21074 = vmatmul.mubr.msk.bf16.gmra.mrb[60].mxu0 %vm911_vm4, %v827_v38  ;;  %v25062_v38 = vld [vmem:[#allocation5] ss:$0 sps:$4 sm:$0x66]   ;;  %v14540_v19 = vrot.slane %v14538_v17, 2  ;;  %v32957_v17 = vld [vmem:[#allocation34_spill] sm:$0xff] }
 0x3c0   :  { %21079 = vmatprep.mubr.msk.bf16.mxu0 %vm911_vm4, %v32792_v51  ;;  %v32947_v51 = vld [vmem:[#allocation24_spill] sm:$0xff] }
 0x3c1   :  { %21668 = vmatmul.mubr.msk.bf16.gmra.mrb[60].mxu1 %vm911_vm4, %v5378_v42  ;;  %v9995_v42 = vshrl.u32 %v25062_v38, 16 }
 0x3c2   :  { %21673 = vmatprep.mubr.msk.bf16.mxu1 %vm911_vm4, %v32943_v7  ;;  %v9998_v7 = vshll.u32 %v25062_v38, 16 }
 0x3c4   :  { %v10000_v27 = vrot.slane %v9998_v7, 2  ;;  %v32959_v7 = vld [vmem:[#allocation36_spill] sm:$0xff] }
 0x3c7   :  { %21080 = vmatmul.mubr.msk.bf16.vlgmr.msra.gmra.mrb[0].mxu0 %vm911_vm4, %v32944_v25  ;;  %v9997_v25 = vrot.slane %v9995_v42, 1  ;;  %v32958_v42 = vld [vmem:[#allocation35_spill] sm:$0xff] }
 0x3c8   :  { %21144 = vmatpush3.bf16.msra.mxu0 %v27701_v63  ;;  %21083 = vmatprep.mubr.msk.bf16.mxu0 %vm911_vm4, %v32945_v14  ;;  %v14537_v63 = vrot.slane %v14535_v15, 1  ;;  %v32956_v15 = vld [vmem:[#allocation33_spill] sm:$0xff] }
 0x3c9   :  { %21674 = vmatmul.mubr.msk.bf16.vlgmr.msra.gmra.mrb[0].mxu1 %vm911_vm4, %v32946_v20  ;;  %v10001_v14 = vor.u32 %v10000_v27, %v9997_v25  ;;  %v32955_v27 = vld [vmem:[#allocation32_spill] sm:$0xff]  ;;  %v32960_v25 = vld [vmem:[#allocation37_spill] sm:$0xff] }
 0x3ca   :  { %21738 = vmatpush3.bf16.msra.mxu1 %v27709_v33  ;;  %21677 = vmatprep.mubr.msk.bf16.mxu1 %vm911_vm4, %v32947_v51  ;;  %v14541_v20 = vor.u32 %v14540_v19, %v14537_v63  ;;  %v32950_v33 = vld [vmem:[#allocation27_spill] sm:$0xff]  ;;  %v32961_v63 = vld [vmem:[#allocation38_spill] sm:$0xff] }
 0x3cb   :  { %v27959_v51 = vand.u32 %v10001_v14, %v32684_v9  ;;  %v32954_v19 = vld [vmem:[#allocation31_spill] sm:$0xff]  ;;  %v32962_v14 = vld [vmem:[#allocation40_spill] sm:$0xff] }
 0x3cc   :  { %v27962_v38 = vand.u32 %v14541_v20, %v32684_v9  ;;  %v5389_v20 = vrot.slane %v27757_v37, 1 }
 0x3cd   :  { %21803 = vmatprep.subr.bf16.mxu0 %v27959_v51 }
 0x3ce   :  { %22397 = vmatprep.subr.bf16.mxu1 %v27962_v38 }
 0x3cf   :  { %21084 = vmatmul.mubr.msk.bf16.gmra.mrb[4].mxu0 %vm911_vm4, %v32948_v46  ;;  %v32952_v46 = vld [vmem:[#allocation29_spill] sm:$0xff] }
 0x3d0   :  { %21087 = vmatprep.mubr.msk.bf16.mxu0 %vm911_vm4, %v32949_v50  ;;  %v32953_v50 = vld [vmem:[#allocation30_spill] sm:$0xff] }
 0x3d1   :  { %21678 = vmatmul.mubr.msk.bf16.gmra.mrb[4].mxu1 %vm911_vm4, %v32950_v33  ;;  %v5390_v33 = vrot.slane %v27759_v24, 1 }
 0x3d2   :  { %21681 = vmatprep.mubr.msk.bf16.mxu1 %vm911_vm4, %v32951_v18  ;;  %v5392_v18 = vrot.slane %v27785_v3, 1 }
 0x3d7   :  { %21088 = vmatmul.mubr.msk.bf16.gmra.mrb[8].mxu0 %vm911_vm4, %v32952_v46  ;;  %v32963_v46 = vld [vmem:[#allocation126_spill] sm:$0xff] }
 0x3d8   :  { %21091 = vmatprep.mubr.msk.bf16.mxu0 %vm911_vm4, %v32953_v50  ;;  %v32964_v50 = vld [vmem:[#allocation49_spill] sm:$0xff] }
 0x3d9   :  { %21682 = vmatmul.mubr.msk.bf16.gmra.mrb[8].mxu1 %vm911_vm4, %v32954_v19  ;;  %v5393_v19 = vsel %vm268_vm2, %v5390_v33, %v5392_v18 }
 0x3da   :  { %21685 = vmatprep.mubr.msk.bf16.mxu1 %vm911_vm4, %v32955_v27  ;;  %v28005_v27 = vld [vmem:[#allocation2 + $0x2c8] sm:$0x3] }
 0x3df   :  { %21092 = vmatmul.mubr.msk.bf16.gmra.mrb[12].mxu0 %vm911_vm4, %v32956_v15  ;;  %v868_v15 = vrot.slane %v27751_v34, 2 }
 0x3e0   :  { %21095 = vmatprep.mubr.msk.bf16.mxu0 %vm911_vm4, %v32957_v17  ;;  %v869_v17 = vrot.slane %v27753_v26, 2 }
 0x3e1   :  { %21686 = vmatmul.mubr.msk.bf16.gmra.mrb[12].mxu1 %vm911_vm4, %v32958_v42  ;;  %v28011_v42 = vrot.slane %v27787_v6, 1 }
 0x3e2   :  { %21689 = vmatprep.mubr.msk.bf16.mxu1 %vm911_vm4, %v32959_v7  ;;  %v873_v7 = vrot.slane %v27767_v29, 2  ;;  %v28030_v29 = vsel %vm509_vm3, %v868_v15, %v869_v17  ;;  %v32981_v15 = vld [vmem:[#allocation117_spill] sm:$0xff] }
 0x3e3   :  { %v28027_v34 = vsel %vm268_vm2, %v5392_v18, %v28011_v42  ;;  %v32976_v18 = vld [vmem:[#allocation106_spill] sm:$0xff] }
 0x3e7   :  { %21096 = vmatmul.mubr.msk.bf16.gmra.mrb[16].mxu0 %vm911_vm4, %v32960_v25 }
 0x3e8   :  { %21099 = vmatprep.mubr.msk.bf16.mxu0 %vm911_vm4, %v32961_v63  ;;  %v32966_v63 = vpack.c.bf16 %v27782_v55, %v27779_v61  ;;  %v875_v61 = vrot.slane %v27791_v52, 2  ;;  %v32968_v52 = vld [vmem:[#allocation82_spill] sm:$0xff] }
 0x3e9   :  { %21690 = vmatmul.mubr.msk.bf16.gmra.mrb[16].mxu1 %vm911_vm4, %v32962_v14 }
 0x3ea   :  { %21693 = vmatprep.mubr.msk.bf16.mxu1 %vm911_vm4, %v32814_v13  ;;  %v5391_v13 = vsel %vm268_vm2, %v5389_v20, %v5390_v33  ;;  %v32967_v33 = vpack.c.bf16 %v27802_v28, %v27794_v35  ;;  %v32969_v35 = vld [vmem:[#allocation84_spill] sm:$0xff]  ;;  %v32971_v28 = vld [vmem:[#allocation93_spill] sm:$0xff] }
 0x3eb   :  { %v28014_v25 = vpack.c.bf16 %v5393_v19, %v5391_v13  ;;  %v32979_v13 = vld [vmem:[#allocation115_spill] sm:$0xff]  ;;  %v32980_v19 = vld [vmem:[#allocation116_spill] sm:$0xff] }
 0x3ed   :  { %32965 = vst [vmem:[#allocation58_spill] sm:$0xff] %v28014_v25 }
 0x3ef   :  { %21100 = vmatmul.mubr.msk.bf16.gmra.mrb[20].mxu0 %vm911_vm4, %v32815_v23  ;;  %v871_v23 = vrot.slane %v27763_v2, 2  ;;  %v28046_v2 = vsel %vm509_vm3, %v873_v7, %v875_v61  ;;  %v5428_v61 = vrot.slane %v27864_v36, 2 }
 0x3f0   :  { %21103 = vmatprep.mubr.msk.bf16.mxu0 %vm911_vm4, %v32963_v46  ;;  %v32977_v46 = vld [vmem:[#allocation109_spill] sm:$0xff] }
 0x3f1   :  { %21694 = vmatmul.mubr.msk.bf16.gmra.mrb[20].mxu1 %vm911_vm4, %v32964_v50  ;;  %v28033_v26 = vsel %vm509_vm3, %v869_v17, %v871_v23  ;;  %v32978_v50 = vld [vmem:[#allocation111_spill] sm:$0xff]  ;;  %v32982_v17 = vld [vmem:[#allocation118_spill] sm:$0xff] }
 0x3f2   :  { %21697 = vmatprep.mubr.msk.bf16.mxu1 %vm911_vm4, %v27209_v54  ;;  %v5396_v54 = vrot.slane %v28005_v27, 1  ;;  %v894_v55 = vpack.c.bf16 %v28033_v26, %v28030_v29  ;;  %v33018_v29 = vld [vmem:[#allocation108_spill] sm:$0xff]  ;;  %v33019_v26 = vld [vmem:[#allocation114_spill] sm:$0xff] }
 0x3f7   :  { %21104 = vmatmul.mubr.msk.bf16.gmra.mrb[24].mxu0 %vm911_vm4, %v27227_v8  ;;  %v5397_v8 = vsel %vm268_vm2, %v28011_v42, %v5396_v54  ;;  %v32985_v54 = vld [vmem:[#allocation122_spill] sm:$0xff] }
 0x3f8   :  { %21107 = vmatprep.mubr.msk.bf16.mxu0 %vm911_vm4, %v32966_v63  ;;  %v5416_v14 = vpack.c.bf16 %v5397_v8, %v28027_v34  ;;  %v877_v63 = vrot.slane %v27858_v31, 2  ;;  %v878_v8 = vrot.slane %v27860_v4, 2  ;;  %v884_v4 = vrot.slane %v27910_v53, 2 }
 0x3f9   :  { %21698 = vmatmul.mubr.msk.bf16.gmra.mrb[24].mxu1 %vm911_vm4, %v27233_v58  ;;  %v28042_v58 = vsel %vm509_vm3, %v871_v23, %v873_v7  ;;  %v32983_v23 = vld [vmem:[#allocation119_spill] sm:$0xff]  ;;  %v32984_v7 = vld [vmem:[#allocation169_spill] sm:$0xff] }
 0x3fa   :  { %21701 = vmatprep.mubr.msk.bf16.mxu1 %vm911_vm4, %v28014_v25  ;;  %v895_v20 = vpack.c.bf16 %v28046_v2, %v28042_v58  ;;  %v33022_v58 = vld [vmem:[#allocation14_spill] sm:$0xff] }
 0x3fb   :  { %v33023_v2 = vld [vmem:[#allocation130_spill] sm:$0xff] }
 0x3ff   :  { %21108 = vmatmul.mubr.msk.bf16.gmra.mrb[28].mxu0 %vm911_vm4, %v32967_v33  ;;  %v882_v33 = vrot.slane %v27878_v30, 2 }
 0x400   :  { %21111 = vmatprep.mubr.msk.bf16.mxu0 %vm911_vm4, %v32824_v10  ;;  %v32970_v10 = vld [vmem:[#allocation89_spill] sm:$0xff] }
 0x401   :  { %21702 = vmatmul.mubr.msk.bf16.gmra.mrb[28].mxu1 %vm911_vm4, %v5416_v14  ;;  %v880_v14 = vrot.slane %v27872_v16, 2  ;;  %v28149_v36 = vsel %vm509_vm3, %v882_v33, %v884_v4 }
 0x402   :  { %21705 = vmatprep.mubr.msk.bf16.mxu1 %vm911_vm4, %v32826_v57  ;;  %v32972_v57 = vld [vmem:[#allocation94_spill] sm:$0xff] }
 0x403   :  { %v28128_v16 = vsel %vm509_vm3, %v878_v8, %v880_v14 }
 0x407   :  { %21112 = vmatmul.mubr.msk.bf16.gmra.mrb[32].mxu0 %vm911_vm4, %v32827_v21  ;;  %v32973_v21 = vld [vmem:[#allocation99_spill] sm:$0xff] }
 0x408   :  { %21115 = vmatprep.mubr.msk.bf16.mxu0 %vm911_vm4, %v32828_v40  ;;  %v32974_v40 = vld [vmem:[#allocation101_spill] sm:$0xff] }
 0x409   :  { %21706 = vmatmul.mubr.msk.bf16.gmra.mrb[32].mxu1 %vm911_vm4, %v32829_v48  ;;  %v32975_v48 = vld [vmem:[#allocation105_spill] sm:$0xff] }
 0x40a   :  { %21709 = vmatprep.mubr.msk.bf16.mxu1 %vm911_vm4, %v32968_v52  ;;  %v5433_v52 = vrot.slane %v27890_v12, 2  ;;  %v28145_v12 = vsel %vm509_vm3, %v880_v14, %v882_v33  ;;  %v5422_v14 = vrot.slane %v27785_v3, 2  ;;  %v33012_v33 = vld [vmem:[#allocation15_spill] sm:$0xff]  ;;  %v5426_v3 = vrot.slane %v28005_v27, 2  ;;  %v33017_v27 = vld [vmem:[#allocation112_spill] sm:$0xff] }
 0x40f   :  { %21116 = vmatmul.mubr.msk.bf16.gmra.mrb[36].mxu0 %vm911_vm4, %v32969_v35  ;;  %v32988_v35 = vpack.c.bf16 %v27924_v49, %v27913_v0  ;;  %v9989_v49 = vld [vmem:[#allocation5] sm:$0x3] }
 0x410   :  { %21119 = vmatprep.mubr.msk.bf16.mxu0 %vm911_vm4, %v32970_v10  ;;  %v32990_v10 = vld [vmem:[#allocation68_spill] sm:$0xff]  ;;  %v32992_v0 = vld [vmem:[#allocation77_spill] sm:$0xff] }
 0x411   :  { %21710 = vmatmul.mubr.msk.bf16.gmra.mrb[36].mxu1 %vm911_vm4, %v32971_v28  ;;  %v32991_v28 = vld [vmem:[#allocation76_spill] sm:$0xff] }
 0x412   :  { %21713 = vmatprep.mubr.msk.bf16.mxu1 %vm911_vm4, %v32972_v57  ;;  %v28180_v57 = vand.u32 %v9989_v49, %v32684_v9  ;;  %v33025_v49 = vld [vmem:[#allocation131_spill] sm:$0xff] }
 0x417   :  { %21120 = vmatmul.mubr.msk.bf16.gmra.mrb[40].mxu0 %vm911_vm4, %v32973_v21 }
 0x418   :  { %21123 = vmatprep.mubr.msk.bf16.mxu0 %vm911_vm4, %v32974_v40  ;;  %v32996_v40 = vld [vmem:[#allocation85_spill] sm:$0xff] }
 0x419   :  { %21714 = vmatmul.mubr.msk.bf16.gmra.mrb[40].mxu1 %vm911_vm4, %v32975_v48  ;;  %v32997_v48 = vld [vmem:[#allocation86_spill] sm:$0xff] }
 0x41a   :  { %21717 = vmatprep.mubr.msk.bf16.mxu1 %vm911_vm4, %v32976_v18  ;;  %v32999_v18 = vld [vmem:[#allocation88_spill] sm:$0xff] }
 0x41f   :  { %21124 = vmatmul.mubr.msk.bf16.gmra.mrb[44].mxu0 %vm911_vm4, %v32977_v46  ;;  %v33000_v46 = vld [vmem:[#allocation90_spill] sm:$0xff] }
 0x420   :  { %21127 = vmatprep.mubr.msk.bf16.mxu0 %vm911_vm4, %v32978_v50  ;;  %v33001_v50 = vld [vmem:[#allocation91_spill] sm:$0xff] }
 0x421   :  { %21718 = vmatmul.mubr.msk.bf16.gmra.mrb[44].mxu1 %vm911_vm4, %v32979_v13  ;;  %v33002_v13 = vld [vmem:[#allocation87_spill] sm:$0xff] }
 0x422   :  { %21721 = vmatprep.mubr.msk.bf16.mxu1 %vm911_vm4, %v32980_v19  ;;  %v33003_v19 = vld [vmem:[#allocation95_spill] sm:$0xff] }
 0x427   :  { %21128 = vmatmul.mubr.msk.bf16.gmra.mrb[48].mxu0 %vm911_vm4, %v32981_v15  ;;  %v33004_v15 = vld [vmem:[#allocation96_spill] sm:$0xff] }
 0x428   :  { %21131 = vmatprep.mubr.msk.bf16.mxu0 %vm911_vm4, %v32982_v17  ;;  %v33005_v17 = vld [vmem:[#allocation97_spill] sm:$0xff] }
 0x429   :  { %21722 = vmatmul.mubr.msk.bf16.gmra.mrb[48].mxu1 %vm911_vm4, %v32983_v23  ;;  %v33006_v23 = vld [vmem:[#allocation92_spill] sm:$0xff] }
 0x42a   :  { %21725 = vmatprep.mubr.msk.bf16.mxu1 %vm911_vm4, %v32846_v62  ;;  %v5429_v62 = vrot.slane %v27866_v43, 2  ;;  %v28125_v43 = vsel %vm509_vm3, %v877_v63, %v878_v8  ;;  %v33009_v63 = vld [vmem:[#allocation103_spill] sm:$0xff]  ;;  %v33010_v8 = vld [vmem:[#allocation98_spill] sm:$0xff] }
 0x42c   :  { %v28131_v31 = vsel %vm509_vm3, %v5428_v61, %v5429_v62  ;;  %v5419_v61 = vrot.slane %v27757_v37, 2 }
 0x42f   :  { %21132 = vmatmul.mubr.msk.bf16.gmra.mrb[52].mxu0 %vm911_vm4, %v32847_v1  ;;  %v5431_v1 = vrot.slane %v27874_v60, 2  ;;  %v5435_v60 = vrot.slane %v27918_v11, 2  ;;  %v32989_v11 = vpack.c.bf16 %v27932_v39, %v27929_v47  ;;  %v14529_v39 = vld [vmem:[#allocation5] sm:$0x3]  ;;  %v32994_v47 = vld [vmem:[#allocation74_spill] sm:$0xff] }
 0x430   :  { %21135 = vmatprep.mubr.msk.bf16.mxu0 %vm911_vm4, %v32984_v7  ;;  %v28188_v21 = vand.u32 %v14529_v39, %v32684_v9  ;;  %v33007_v7 = vld [vmem:[#allocation100_spill] sm:$0xff]  ;;  %v33028_v39 = vld [vmem:[#allocation141_spill] sm:$0xff] }
 0x431   :  { %21726 = vmatmul.mubr.msk.bf16.gmra.mrb[52].mxu1 %vm911_vm4, %v32985_v54  ;;  %v28158_v30 = vsel %vm509_vm3, %v5433_v52, %v5435_v60  ;;  %v33008_v54 = vld [vmem:[#allocation102_spill] sm:$0xff]  ;;  %v33015_v60 = vld [vmem:[#allocation17_spill] sm:$0xff] }
 0x432   :  { %21729 = vmatprep.mubr.msk.bf16.mxu1 %vm911_vm4, %v27335_v59  ;;  %v32986_v59 = vpack.c.bf16 %v27896_v5, %v27893_v56  ;;  %v32987_v5 = vpack.c.bf16 %v27902_v41, %v27899_v22  ;;  %v897_v41 = vpack.c.bf16 %v28149_v36, %v28145_v12  ;;  %v28155_v22 = vsel %vm509_vm3, %v5431_v1, %v5433_v52  ;;  %v33013_v52 = vld [vmem:[#allocation104_spill] sm:$0xff]  ;;  %v9158_v36 = vld [vmem:[#allocation2 + $0x2c8] sm:$0x3] }
 0x433   :  { %v5448_v53 = vpack.c.bf16 %v28158_v30, %v28155_v22 }
 0x437   :  { %21136 = vmatmul.mubr.msk.bf16.gmra.mrb[56].mxu0 %vm911_vm4, %v27353_v45  ;;  %v28134_v45 = vsel %vm509_vm3, %v5429_v62, %v5431_v1  ;;  %v5420_v62 = vrot.slane %v27759_v24, 2  ;;  %v33011_v1 = vld [vmem:[#allocation107_spill] sm:$0xff]  ;;  %v5424_v24 = vrot.slane %v27787_v6, 2 }
 0x438   :  { %21139 = vmatprep.mubr.msk.bf16.mxu0 %vm911_vm4, %v32986_v59  ;;  %v5447_v56 = vpack.c.bf16 %v28134_v45, %v28131_v31  ;;  %v33014_v59 = vld [vmem:[#allocation16_spill] sm:$0xff] }
 0x439   :  { %21730 = vmatmul.mubr.msk.bf16.gmra.mrb[56].mxu1 %vm911_vm4, %v27359_v32  ;;  %v896_v32 = vpack.c.bf16 %v28128_v16, %v28125_v43  ;;  %v5423_v37 = vsel %vm509_vm3, %v5420_v62, %v5422_v14  ;;  %v5427_v6 = vsel %vm509_vm3, %v5424_v24, %v5426_v3  ;;  %v9152_v3 = vld [vmem:[#allocation2 + $0x298] sm:$0xff] }
 0x43a   :  { %21733 = vmatprep.mubr.msk.bf16.mxu1 %vm911_vm4, %v32987_v5  ;;  %v5421_v5 = vsel %vm509_vm3, %v5419_v61, %v5420_v62  ;;  %v13689_v61 = vld [vmem:[#allocation2 + $0x3c0] sm:$0xff]  ;;  %v13690_v62 = vld [vmem:[#allocation2 + $0x3c8] sm:$0xff] }
 0x43b   :  { %v5445_v4 = vpack.c.bf16 %v5423_v37, %v5421_v5  ;;  %v13901_v5 = vrot.slane %v13689_v61, 1  ;;  %v13902_v37 = vrot.slane %v13690_v62, 1  ;;  %v9162_v62 = vld [vmem:[#allocation2 + $0x2e8] sm:$0xff] }
 0x43d   :  { %v13903_v43 = vsel %vm268_vm2, %v13901_v5, %v13902_v37  ;;  %v13702_v5 = vld [vmem:[#allocation2 + $0x428] sm:$0xff] }
 0x43f   :  { %21140 = vmatmul.mubr.msk.bf16.gmra.mrb[60].mxu0 %vm911_vm4, %v32988_v35  ;;  %v33016_v35 = vld [vmem:[#allocation19_spill] sm:$0xff] }
 0x440   :  { %21145 = vmatprep.mubr.msk.bf16.mxu0 %vm911_vm4, %v26750_v44  ;;  %v32993_v44 = vld [vmem:[#allocation79_spill] sm:$0xff] }
 0x441   :  { %21734 = vmatmul.mubr.msk.bf16.gmra.mrb[60].mxu1 %vm911_vm4, %v32989_v11  ;;  %v5425_v11 = vsel %vm509_vm3, %v5422_v14, %v5424_v24  ;;  %v13691_v14 = vld [vmem:[#allocation2 + $0x3d0] sm:$0xff] }
 0x442   :  { %21739 = vmatprep.mubr.msk.bf16.mxu1 %vm911_vm4, %v32990_v10  ;;  %v5446_v10 = vpack.c.bf16 %v5427_v6, %v5425_v11  ;;  %v13904_v24 = vrot.slane %v13691_v14, 1  ;;  %v9153_v11 = vld [vmem:[#allocation2 + $0x2a0] sm:$0x3]  ;;  %v13692_v6 = vld [vmem:[#allocation2 + $0x3d8] sm:$0xff] }
 0x444   :  { %v13905_v16 = vsel %vm268_vm2, %v13902_v37, %v13904_v24  ;;  %v28361_v37 = vld [vmem:[#allocation2 + $0x308] sm:$0xff] }
 0x447   :  { %21146 = vmatmul.mubr.msk.bf16.vlgmr.msra.gmra.mrb[0].mxu0 %vm911_vm4, %v32991_v28  ;;  %v33021_v28 = vld [vmem:[#allocation125_spill] sm:$0xff] }
 0x448   :  { %21804 = vmatpush3.bf16.msra.mxu0 %v27959_v51  ;;  %21149 = vmatprep.mubr.msk.bf16.mxu0 %vm911_vm4, %v32992_v0  ;;  %v32995_v51 = vld [vmem:[#allocation83_spill] sm:$0xff]  ;;  %v33026_v0 = vld [vmem:[#allocation133_spill] sm:$0xff] }
 0x449   :  { %21740 = vmatmul.mubr.msk.bf16.vlgmr.msra.gmra.mrb[0].mxu1 %vm911_vm4, %v32993_v44  ;;  %21869 = vmatprep.subr.bf16.mxu0 %v28180_v57  ;;  %v33027_v44 = vld [vmem:[#allocation134_spill] sm:$0xff] }
 0x44a   :  { %22398 = vmatpush3.bf16.msra.mxu1 %v27962_v38  ;;  %21743 = vmatprep.mubr.msk.bf16.mxu1 %vm911_vm4, %v32994_v47  ;;  %v32998_v38 = vld [vmem:[#allocation80_spill] sm:$0xff] }
 0x44b   :  { %22463 = vmatprep.subr.bf16.mxu1 %v28188_v21  ;;  %v33029_v47 = vld [vmem:[#allocation136_spill] sm:$0xff] }
 0x44f   :  { %21150 = vmatmul.mubr.msk.bf16.gmra.mrb[4].mxu0 %vm911_vm4, %v32995_v51  ;;  %v33030_v51 = vld [vmem:[#allocation138_spill] sm:$0xff] }
 0x450   :  { %21153 = vmatprep.mubr.msk.bf16.mxu0 %vm911_vm4, %v32996_v40  ;;  %v33031_v40 = vld [vmem:[#allocation139_spill] sm:$0xff] }
 0x451   :  { %21744 = vmatmul.mubr.msk.bf16.gmra.mrb[4].mxu1 %vm911_vm4, %v32997_v48  ;;  %v33032_v48 = vld [vmem:[#allocation142_spill] sm:$0xff] }
 0x452   :  { %21747 = vmatprep.mubr.msk.bf16.mxu1 %vm911_vm4, %v32998_v38  ;;  %v33033_v38 = vld [vmem:[#allocation144_spill] sm:$0xff] }
 0x457   :  { %21154 = vmatmul.mubr.msk.bf16.gmra.mrb[8].mxu0 %vm911_vm4, %v32999_v18  ;;  %v33034_v18 = vld [vmem:[#allocation145_spill] sm:$0xff] }
 0x458   :  { %21157 = vmatprep.mubr.msk.bf16.mxu0 %vm911_vm4, %v33000_v46  ;;  %v33035_v46 = vld [vmem:[#allocation147_spill] sm:$0xff] }
 0x459   :  { %21748 = vmatmul.mubr.msk.bf16.gmra.mrb[8].mxu1 %vm911_vm4, %v33001_v50  ;;  %v33036_v50 = vld [vmem:[#allocation149_spill] sm:$0xff] }
 0x45a   :  { %21751 = vmatprep.mubr.msk.bf16.mxu1 %vm911_vm4, %v33002_v13  ;;  %v33037_v13 = vld [vmem:[#allocation150_spill] sm:$0xff] }
 0x45f   :  { %21158 = vmatmul.mubr.msk.bf16.gmra.mrb[12].mxu0 %vm911_vm4, %v33003_v19  ;;  %v33038_v19 = vld [vmem:[#allocation152_spill] sm:$0xff] }
 0x460   :  { %21161 = vmatprep.mubr.msk.bf16.mxu0 %vm911_vm4, %v33004_v15  ;;  %v33039_v15 = vld [vmem:[#allocation154_spill] sm:$0xff] }
 0x461   :  { %21752 = vmatmul.mubr.msk.bf16.gmra.mrb[12].mxu1 %vm911_vm4, %v33005_v17  ;;  %v33040_v17 = vld [vmem:[#allocation18_spill] sm:$0xff] }
 0x462   :  { %21755 = vmatprep.mubr.msk.bf16.mxu1 %vm911_vm4, %v33006_v23  ;;  %v33041_v23 = vld [vmem:[#allocation156_spill] sm:$0xff] }
 0x467   :  { %21162 = vmatmul.mubr.msk.bf16.gmra.mrb[16].mxu0 %vm911_vm4, %v33007_v7  ;;  %v33042_v7 = vld [vmem:[#allocation41_spill] sm:$0xff] }
 0x468   :  { %21165 = vmatprep.mubr.msk.bf16.mxu0 %vm911_vm4, %v33008_v54  ;;  %v9149_v54 = vld [vmem:[#allocation2 + $0x280] sm:$0xff] }
 0x469   :  { %21756 = vmatmul.mubr.msk.bf16.gmra.mrb[16].mxu1 %vm911_vm4, %v33009_v63  ;;  %v9150_v63 = vld [vmem:[#allocation2 + $0x288] sm:$0xff] }
 0x46a   :  { %21759 = vmatprep.mubr.msk.bf16.mxu1 %vm911_vm4, %v33010_v8  ;;  %v9151_v8 = vld [vmem:[#allocation2 + $0x290] sm:$0xff] }
 0x46f   :  { %21166 = vmatmul.mubr.msk.bf16.gmra.mrb[20].mxu0 %vm911_vm4, %v33011_v1  ;;  %v9361_v1 = vrot.slane %v9149_v54, 1 }
 0x470   :  { %21169 = vmatprep.mubr.msk.bf16.mxu0 %vm911_vm4, %v33012_v33  ;;  %v9362_v33 = vrot.slane %v9150_v63, 1 }
 0x471   :  { %21760 = vmatmul.mubr.msk.bf16.gmra.mrb[20].mxu1 %vm911_vm4, %v33013_v52  ;;  %v9364_v52 = vrot.slane %v9151_v8, 1 }
 0x472   :  { %21763 = vmatprep.mubr.msk.bf16.mxu1 %vm911_vm4, %v33014_v59  ;;  %v33043_v59 = vld [vmem:[#allocation47_spill] sm:$0xff] }
 0x477   :  { %21170 = vmatmul.mubr.msk.bf16.gmra.mrb[24].mxu0 %vm911_vm4, %v33015_v60  ;;  %v9363_v60 = vsel %vm268_vm2, %v9361_v1, %v9362_v33 }
 0x478   :  { %21173 = vmatprep.mubr.msk.bf16.mxu0 %vm911_vm4, %v894_v55  ;;  %v33020_v55 = vld [vmem:[#allocation13_spill] sm:$0xff] }
 0x479   :  { %21764 = vmatmul.mubr.msk.bf16.gmra.mrb[24].mxu1 %vm911_vm4, %v33016_v35  ;;  %v9365_v35 = vsel %vm268_vm2, %v9362_v33, %v9364_v52 }
 0x47a   :  { %21767 = vmatprep.mubr.msk.bf16.mxu1 %vm911_vm4, %v5445_v4  ;;  %v33044_v4 = vld [vmem:[#allocation57_spill] sm:$0xff] }
 0x47f   :  { %21174 = vmatmul.mubr.msk.bf16.gmra.mrb[28].mxu0 %vm911_vm4, %v895_v20  ;;  %v33024_v20 = vld [vmem:[#allocation12_spill] sm:$0xff] }
 0x480   :  { %21177 = vmatprep.mubr.msk.bf16.mxu0 %vm911_vm4, %v33017_v27  ;;  %v9569_v27 = vpack.c.bf16 %v9365_v35, %v9363_v60  ;;  %v9384_v60 = vrot.slane %v9162_v62, 1  ;;  %v13703_v35 = vld [vmem:[#allocation2 + $0x430] sm:$0x3] }
 0x481   :  { %21768 = vmatmul.mubr.msk.bf16.gmra.mrb[28].mxu1 %vm911_vm4, %v5446_v10  ;;  %v13693_v10 = vld [vmem:[#allocation2 + $0x3e0] sm:$0x3] }
 0x482   :  { %21771 = vmatprep.mubr.msk.bf16.mxu1 %vm911_vm4, %v33018_v29  ;;  %v9368_v29 = vrot.slane %v9153_v11, 1  ;;  %v13704_v11 = vld [vmem:[#allocation2 + $0x438] sm:$0xff] }
 0x487   :  { %21178 = vmatmul.mubr.msk.bf16.gmra.mrb[32].mxu0 %vm911_vm4, %v33019_v26  ;;  %v13694_v26 = vld [vmem:[#allocation2 + $0x3e8] sm:$0xff] }
 0x488   :  { %21181 = vmatprep.mubr.msk.bf16.mxu0 %vm911_vm4, %v33020_v55  ;;  %v13695_v55 = vld [vmem:[#allocation2 + $0x3f0] sm:$0xff]  ;;  %v13910_v31 = vrot.slane %v13694_v26, 1 }
 0x489   :  { %21772 = vmatmul.mubr.msk.bf16.gmra.mrb[32].mxu1 %vm911_vm4, %v33021_v28  ;;  %v13696_v28 = vld [vmem:[#allocation2 + $0x3f8] sm:$0xff]  ;;  %v13911_v45 = vrot.slane %v13695_v55, 1  ;;  %v9391_v55 = vrot.slane %v28361_v37, 1 }
 0x48a   :  { %21775 = vmatprep.mubr.msk.bf16.mxu1 %vm911_vm4, %v33022_v58  ;;  %v13906_v58 = vrot.slane %v13692_v6, 1  ;;  %v13705_v6 = vld [vmem:[#allocation2 + $0x440] sm:$0xff] }
 0x48f   :  { %21182 = vmatmul.mubr.msk.bf16.gmra.mrb[36].mxu0 %vm911_vm4, %v33023_v2  ;;  %v13908_v2 = vrot.slane %v13693_v10, 1 }
 0x490   :  { %21185 = vmatprep.mubr.msk.bf16.mxu0 %vm911_vm4, %v33024_v20  ;;  %v14109_v20 = vpack.c.bf16 %v13905_v16, %v13903_v43  ;;  %v28372_v16 = vld [vmem:[#allocation2 + $0x448] sm:$0xff] }
 0x491   :  { %21776 = vmatmul.mubr.msk.bf16.gmra.mrb[36].mxu1 %vm911_vm4, %v33025_v49  ;;  %v13909_v12 = vsel %vm268_vm2, %v13906_v58, %v13908_v2 }
 0x492   :  { %21779 = vmatprep.mubr.msk.bf16.mxu1 %vm911_vm4, %v33026_v0 }
 0x497   :  { %21186 = vmatmul.mubr.msk.bf16.gmra.mrb[40].mxu0 %vm911_vm4, %v33027_v44  ;;  %v13907_v44 = vsel %vm268_vm2, %v13904_v24, %v13906_v58  ;;  %v13926_v58 = vrot.slane %v13703_v35, 1 }
 0x498   :  { %21189 = vmatprep.mubr.msk.bf16.mxu0 %vm911_vm4, %v33028_v39  ;;  %v13698_v39 = vld [vmem:[#allocation2 + $0x408] sm:$0x3]  ;;  %v14110_v30 = vpack.c.bf16 %v13909_v12, %v13907_v44 }
 0x499   :  { %21780 = vmatmul.mubr.msk.bf16.gmra.mrb[40].mxu1 %vm911_vm4, %v33029_v47  ;;  %v9159_v47 = vld [vmem:[#allocation2 + $0x2d0] sm:$0xff] }
 0x49a   :  { %21783 = vmatprep.mubr.msk.bf16.mxu1 %vm911_vm4, %v33030_v51  ;;  %v9160_v51 = vld [vmem:[#allocation2 + $0x2d8] sm:$0xff] }
 0x49f   :  { %21190 = vmatmul.mubr.msk.bf16.gmra.mrb[44].mxu0 %vm911_vm4, %v33031_v40  ;;  %v28337_v40 = vld [vmem:[#allocation2 + $0x2e0] sm:$0xff] }
 0x4a0   :  { %21193 = vmatprep.mubr.msk.bf16.mxu0 %vm911_vm4, %v33032_v48 }
 0x4a1   :  { %21784 = vmatmul.mubr.msk.bf16.gmra.mrb[44].mxu1 %vm911_vm4, %v33033_v38  ;;  %v13912_v38 = vsel %vm268_vm2, %v13910_v31, %v13911_v45  ;;  %v13928_v31 = vrot.slane %v13704_v11, 1 }
 0x4a2   :  { %21787 = vmatprep.mubr.msk.bf16.mxu1 %vm911_vm4, %v33034_v18 }
 0x4a7   :  { %21194 = vmatmul.mubr.msk.bf16.gmra.mrb[48].mxu0 %vm911_vm4, %v33035_v46  ;;  %v13699_v46 = vld [vmem:[#allocation2 + $0x410] sm:$0xff] }
 0x4a8   :  { %21197 = vmatprep.mubr.msk.bf16.mxu0 %vm911_vm4, %v33036_v50  ;;  %v13700_v50 = vld [vmem:[#allocation2 + $0x418] sm:$0xff]  ;;  %v13919_v54 = vrot.slane %v13699_v46, 1  ;;  %v13707_v46 = vld [vmem:[#allocation2 + $0x450] sm:$0xff] }
 0x4a9   :  { %21788 = vmatmul.mubr.msk.bf16.gmra.mrb[48].mxu1 %vm911_vm4, %v33037_v13  ;;  %v28341_v13 = vld [vmem:[#allocation2 + $0x420] sm:$0xff]  ;;  %v13920_v63 = vrot.slane %v13700_v50, 1  ;;  %v13708_v50 = vld [vmem:[#allocation2 + $0x458] sm:$0x3] }
 0x4aa   :  { %21791 = vmatprep.mubr.msk.bf16.mxu1 %vm911_vm4, %v33038_v19  ;;  %v13917_v19 = vrot.slane %v13698_v39, 1  ;;  %v13922_v8 = vrot.slane %v28341_v13, 1  ;;  %v9167_v39 = vld [vmem:[#allocation2 + $0x310] sm:$0xff] }
 0x4af   :  { %21198 = vmatmul.mubr.msk.bf16.gmra.mrb[52].mxu0 %vm911_vm4, %v33039_v15  ;;  %v9379_v15 = vrot.slane %v9159_v47, 1  ;;  %v9168_v47 = vld [vmem:[#allocation2 + $0x318] sm:$0x3] }
 0x4b0   :  { %21201 = vmatprep.mubr.msk.bf16.mxu0 %vm911_vm4, %v33040_v17  ;;  %v9380_v17 = vrot.slane %v9160_v51, 1 }
 0x4b1   :  { %21792 = vmatmul.mubr.msk.bf16.gmra.mrb[52].mxu1 %vm911_vm4, %v33041_v23  ;;  %v9382_v23 = vrot.slane %v28337_v40, 1 }
 0x4b2   :  { %21795 = vmatprep.mubr.msk.bf16.mxu1 %vm911_vm4, %v33042_v7  ;;  %v9381_v33 = vsel %vm268_vm2, %v9379_v15, %v9380_v17  ;;  %v9395_v15 = vrot.slane %v9168_v47, 1 }
 0x4b7   :  { %21202 = vmatmul.mubr.msk.bf16.gmra.mrb[56].mxu0 %vm911_vm4, %v33043_v59  ;;  %v9163_v59 = vld [vmem:[#allocation2 + $0x2f0] sm:$0x3] }
 0x4b8   :  { %21205 = vmatprep.mubr.msk.bf16.mxu0 %vm911_vm4, %v896_v32  ;;  %v9366_v32 = vrot.slane %v9152_v3, 1  ;;  %v13923_v3 = vsel %vm268_vm2, %v13920_v63, %v13922_v8  ;;  %v9386_v43 = vrot.slane %v9163_v59, 1 }
 0x4b9   :  { %21796 = vmatmul.mubr.msk.bf16.gmra.mrb[56].mxu1 %vm911_vm4, %v33044_v4  ;;  %v13921_v4 = vsel %vm268_vm2, %v13919_v54, %v13920_v63  ;;  %v13711_v54 = vld [vmem:[#allocation2 + $0x470] sm:$0xff] }
 0x4ba   :  { %21799 = vmatprep.mubr.msk.bf16.mxu1 %vm911_vm4, %v5447_v56  ;;  %v13913_v56 = vrot.slane %v13696_v28, 1  ;;  %v9367_v49 = vsel %vm268_vm2, %v9364_v52, %v9366_v32  ;;  %v9369_v0 = vsel %vm268_vm2, %v9366_v32, %v9368_v29  ;;  %v9383_v52 = vsel %vm268_vm2, %v9380_v17, %v9382_v23  ;;  %v25064_v32 = vld [vmem:[#allocation5] sm:$0x18]  }
 0x4bb   :  { %v9570_v48 = vpack.c.bf16 %v9369_v0, %v9367_v49  ;;  %v13924_v29 = vrot.slane %v13702_v5, 1  ;;  %v28375_v28 = vpack.c.bf16 %v13923_v3, %v13921_v4  ;;  %v10785_v2 = vrot.slane %v25064_v32, 3  ;;  %v13709_v17 = vld [vmem:[#allocation2 + $0x460] sm:$0xff]  ;;  %v9172_v3 = vld [vmem:[#allocation2 + $0x338] sm:$0xff] }
 0x4bc   :  { %v13914_v22 = vsel %vm268_vm2, %v13911_v45, %v13913_v56  ;;  %v13929_v45 = vrot.slane %v13705_v6, 1  ;;  %v9385_v49 = vsel %vm268_vm2, %v9382_v23, %v9384_v60  ;;  %v9387_v0 = vsel %vm268_vm2, %v9384_v60, %v9386_v43  ;;  %v13710_v23 = vld [vmem:[#allocation2 + $0x468] sm:$0xff]  ;;  %v9173_v60 = vld [vmem:[#allocation2 + $0x340] sm:$0x3]  ;;  %v9175_v43 = vld [vmem:[#allocation2 + $0x350] sm:$0xff] }
 0x4bd   :  { %v28344_v7 = vpack.c.bf16 %v13914_v22, %v13912_v38  ;;  %33049 = vst [vmem:[#allocation75_spill] sm:$0xff] %v28375_v28  ;;  %v28385_v44 = vand.u32 %v10785_v2, %v32684_v9  ;;  %v13925_v51 = vsel %vm268_vm2, %v13922_v8, %v13924_v29  ;;  %v13927_v40 = vsel %vm268_vm2, %v13924_v29, %v13926_v58  ;;  %v9170_v38 = vld [vmem:[#allocation2 + $0x328] sm:$0xff]  ;;  %v28398_v22 = vld [vmem:[#allocation2 + $0x330] sm:$0xff] }
 0x4be   :  { %v28408_v63 = vpack.c.bf16 %v13927_v40, %v13925_v51  ;;  %v9400_v62 = vrot.slane %v28398_v22, 1  ;;  %v13938_v59 = vrot.slane %v13710_v23, 1  ;;  %v13940_v5 = vrot.slane %v13711_v54, 1  ;;  %v9174_v6 = vld [vmem:[#allocation2 + $0x348] sm:$0xff]  ;;  %v9180_v23 = vld [vmem:[#allocation2 + $0x378] sm:$0xff]  ;;  %v9181_v54 = vld [vmem:[#allocation2 + $0x380] sm:$0xff] }
 0x4bf   :  { %21206 = vmatmul.mubr.msk.bf16.gmra.mrb[60].mxu0 %vm911_vm4, %v897_v41  ;;  %v13697_v41 = vld [vmem:[#allocation2 + $0x400] sm:$0xff]  ;;  %33045 = vst [vmem:[#allocation63_spill] sm:$0xff] %v28344_v7  ;;  %v9402_v58 = vrot.slane %v9172_v3, 1  ;;  %v9404_v2 = vrot.slane %v9173_v60, 1  ;;  %v9416_v60 = vrot.slane %v9180_v23, 1 }
 0x4c0   :  { %21805 = vmatprep.mubr.msk.bf16.mxu0 %vm911_vm4, %v9569_v27  ;;  %v13915_v18 = vrot.slane %v13697_v41, 1  ;;  %v25065_v27 = vld [vmem:[#allocation5] sm:$0x18]   ;;  %33052 = vst [vmem:[#allocation120_spill] sm:$0xff] %v28408_v63  ;;  %v13941_v29 = vsel %vm268_vm2, %v13938_v59, %v13940_v5 }
 0x4c1   :  { %21800 = vmatmul.mubr.msk.bf16.gmra.mrb[60].mxu1 %vm911_vm4, %v5448_v53  ;;  %v9377_v53 = vrot.slane %v9158_v36, 1  ;;  %v9405_v22 = vsel %vm268_vm2, %v9402_v58, %v9404_v2 }
 0x4c2   :  { %22399 = vmatprep.mubr.msk.bf16.mxu1 %vm911_vm4, %v14109_v20  ;;  %v13916_v14 = vsel %vm268_vm2, %v13913_v56, %v13915_v18  ;;  %v13918_v1 = vsel %vm268_vm2, %v13915_v18, %v13917_v19  ;;  %v15325_v20 = vrot.slane %v25065_v27, 3  ;;  %v13931_v56 = vrot.slane %v28372_v16, 1  ;;  %v9176_v16 = vld [vmem:[#allocation2 + $0x358] sm:$0xff] }
 0x4c3   :  { %v9378_v61 = vsel %vm268_vm2, %v28011_v42, %v9377_v53  ;;  %v9165_v42 = vld [vmem:[#allocation2 + $0x300] sm:$0xff]  ;;  %v28368_v10 = vpack.c.bf16 %v13918_v1, %v13916_v14  ;;  %v13930_v53 = vsel %vm268_vm2, %v13928_v31, %v13929_v45  ;;  %v9393_v19 = vrot.slane %v9167_v39, 1  ;;  %v13715_v31 = vld [vmem:[#allocation2 + $0x490] sm:$0xff] }
 0x4c4   :  { %v28364_v24 = vpack.c.bf16 %v9378_v61, %v28027_v34  ;;  %v9389_v26 = vrot.slane %v9165_v42, 1  ;;  %v28388_v12 = vand.u32 %v15325_v20, %v32684_v9  ;;  %v13932_v18 = vsel %vm268_vm2, %v13929_v45, %v13931_v56  ;;  %v13714_v20 = vld [vmem:[#allocation2 + $0x488] sm:$0xff]  ;;  %v13716_v45 = vld [vmem:[#allocation2 + $0x498] sm:$0xff] }
 0x4c5   :  { %33047 = vst [vmem:[#allocation69_spill] sm:$0xff] %v28368_v10  ;;  %v9398_v61 = vrot.slane %v9170_v38, 1  ;;  %v28411_v14 = vpack.c.bf16 %v13932_v18, %v13930_v53  ;;  %v13933_v1 = vrot.slane %v13707_v46, 1  ;;  %v9396_v42 = vsel %vm268_vm2, %v9393_v19, %v9395_v15  ;;  %v9177_v46 = vld [vmem:[#allocation2 + $0x360] sm:$0xff] }
 0x4c6   :  { %33046 = vst [vmem:[#allocation65_spill] sm:$0xff] %v28364_v24  ;;  %v9392_v41 = vsel %vm268_vm2, %v9389_v26, %v9391_v55  ;;  %v13946_v51 = vrot.slane %v13714_v20, 1  ;;  %v13947_v40 = vrot.slane %v13715_v31, 1  ;;  %v9403_v38 = vsel %vm268_vm2, %v9400_v62, %v9402_v58  ;;  %v9182_v20 = vld [vmem:[#allocation2 + $0x388] sm:$0xff]  ;;  %v9183_v31 = vld [vmem:[#allocation2 + $0x390] sm:$0x3] }
 0x4c7   :  { %21806 = vmatmul.mubr.msk.bf16.vlgmr.msra.gmra.mrb[64].mxu0 %vm911_vm4, %v9570_v48  ;;  %v9169_v48 = vld [vmem:[#allocation2 + $0x320] sm:$0xff]  ;;  %33053 = vst [vmem:[#allocation121_spill] sm:$0xff] %v28411_v14  ;;  %v9401_v4 = vsel %vm268_vm2, %v9398_v61, %v9400_v62  ;;  %v13934_v35 = vsel %vm268_vm2, %v13931_v56, %v13933_v1 }
 0x4c8   :  { %21870 = vmatpush3.bf16.msra.mxu0 %v28180_v57  ;;  %21809 = vmatprep.mubr.msk.bf16.mxu0 %vm911_vm4, %v28014_v25  ;;  %v9164_v57 = vld [vmem:[#allocation2 + $0x2f8] sm:$0xff]  ;;  %v9397_v8 = vrot.slane %v9169_v48, 1  ;;  %v13949_v48 = vrot.slane %v13716_v45, 1 }
 0x4c9   :  { %22400 = vmatmul.mubr.msk.bf16.vlgmr.msra.gmra.mrb[64].mxu1 %vm911_vm4, %v14110_v30  ;;  %v9388_v34 = vrot.slane %v9164_v57, 1  ;;  %21935 = vmatprep.subr.bf16.mxu0 %v28385_v44  ;;  %v28401_v30 = vpack.c.bf16 %v9387_v0, %v9385_v49  ;;  %v9394_v57 = vsel %vm268_vm2, %v9391_v55, %v9393_v19  ;;  %v9406_v49 = vrot.slane %v9174_v6, 1 }
 0x4ca   :  { %22464 = vmatpush3.bf16.msra.mxu1 %v28188_v21  ;;  %22403 = vmatprep.mubr.msk.bf16.mxu1 %vm911_vm4, %v28344_v7  ;;  %v28370_v21 = vpack.c.bf16 %v9383_v52, %v9381_v33  ;;  %v13935_v33 = vrot.slane %v13708_v50, 1  ;;  %v13937_v52 = vrot.slane %v13709_v17, 1  ;;  %v9399_v37 = vsel %vm268_vm2, %v9397_v8, %v9398_v61  ;;  %v9178_v50 = vld [vmem:[#allocation2 + $0x368] sm:$0x3]  ;;  %v9179_v17 = vld [vmem:[#allocation2 + $0x370] sm:$0xff] }
 0x4cb   :  { %v9390_v36 = vsel %vm268_vm2, %v9388_v34, %v9389_v26  ;;  %33050 = vst [vmem:[#allocation78_spill] sm:$0xff] %v28401_v30  ;;  %22529 = vmatprep.subr.bf16.mxu1 %v28388_v12  ;;  %v28427_v32 = vpack.c.bf16 %v9396_v42, %v9394_v57  ;;  %v13712_v34 = vld [vmem:[#allocation2 + $0x478] sm:$0xff]  ;;  %v13713_v26 = vld [vmem:[#allocation2 + $0x480] sm:$0x3]  ;;  %v28431_v55 = vpack.c.bf16 %v9401_v4, %v9399_v37  ;;  %v9407_v0 = vrot.slane %v9175_v43, 1  ;;  %v13719_v42 = vld [vmem:[#allocation2 + $0x4b0] sm:$0xff] }
 0x4cc   :  { %33048 = vst [vmem:[#allocation70_spill] sm:$0xff] %v28370_v21  ;;  %v28406_v13 = vpack.c.bf16 %v9392_v41, %v9390_v36  ;;  %v13936_v11 = vsel %vm268_vm2, %v13933_v1, %v13935_v33  ;;  %v13939_v27 = vsel %vm268_vm2, %v13937_v52, %v13938_v59  ;;  %v9409_v36 = vrot.slane %v9176_v16, 1  ;;  %v13717_v1 = vld [vmem:[#allocation2 + $0x4a0] sm:$0xff]  ;;  %v13718_v33 = vld [vmem:[#allocation2 + $0x4a8] sm:$0x3]  ;;  %v13720_v37 = vld [vmem:[#allocation2 + $0x4b8] sm:$0xff] }
 0x4cd   :  { %33054 = vst [vmem:[#allocation110_spill] sm:$0xff] %v28427_v32  ;;  %33055 = vst [vmem:[#allocation113_spill] sm:$0xff] %v28431_v55  ;;  %v28433_v56 = vpack.c.bf16 %v13936_v11, %v13934_v35  ;;  %v28435_v41 = vpack.c.bf16 %v13941_v29, %v13939_v27  ;;  %v13942_v39 = vrot.slane %v13712_v34, 1  ;;  %v13944_v47 = vrot.slane %v13713_v26, 1 }
 0x4ce   :  { %33051 = vst [vmem:[#allocation81_spill] sm:$0xff] %v28406_v13  ;;  %v9408_v53 = vsel %vm268_vm2, %v9406_v49, %v9407_v0  ;;  %v9410_v18 = vsel %vm268_vm2, %v9407_v0, %v9409_v36  ;;  %v28451_v8 = vpack.c.bf16 %v9405_v22, %v9403_v38  ;;  %v13948_v61 = vsel %vm268_vm2, %v13946_v51, %v13947_v40  ;;  %v9184_v0 = vld [vmem:[#allocation2 + $0x398] sm:$0xff]  ;;  %v13722_v38 = vld [vmem:[#allocation2 + $0x4c8] sm:$0xff]  ;;  %v13723_v22 = vld [vmem:[#allocation2 + $0x4d0] sm:$0x3] }
 0x4cf   :  { %21810 = vmatmul.mubr.msk.bf16.gmra.mrb[68].mxu0 %vm911_vm4, %v28364_v24  ;;  %33056 = vst [vmem:[#allocation135_spill] sm:$0xff] %v28433_v56  ;;  %33057 = vst [vmem:[#allocation137_spill] sm:$0xff] %v28435_v41  ;;  %v13943_v19 = vsel %vm268_vm2, %v13940_v5, %v13942_v39  ;;  %v13945_v15 = vsel %vm268_vm2, %v13942_v39, %v13944_v47  ;;  %v13950_v62 = vsel %vm268_vm2, %v13947_v40, %v13949_v48  ;;  %v13721_v5 = vld [vmem:[#allocation2 + $0x4c0] sm:$0xff]  ;;  %v28475_v39 = vld [vmem:[#allocation2 + $0x3a8] sm:$0xff] }
 0x4d0   :  { %21813 = vmatprep.mubr.msk.bf16.mxu0 %vm911_vm4, %v28370_v21  ;;  %33058 = vst [vmem:[#allocation140_spill] sm:$0xff] %v28451_v8  ;;  %v28455_v52 = vpack.c.bf16 %v9410_v18, %v9408_v53  ;;  %v9411_v59 = vrot.slane %v9177_v46, 1  ;;  %v9413_v57 = vrot.slane %v9178_v50, 1  ;;  %v28457_v4 = vpack.c.bf16 %v13945_v15, %v13943_v19  ;;  %v13724_v50 = vld [vmem:[#allocation2 + $0x4d8] sm:$0xff]  ;;  %v13726_v19 = vld [vmem:[#allocation2 + $0x4e8] sm:$0xff]  ;;  %v29091_v24 = vld [vmem:[#allocation2 + $0x460] sm:$0xff] }
 0x4d1   :  { %22404 = vmatmul.mubr.msk.bf16.gmra.mrb[68].mxu1 %vm911_vm4, %v28368_v10  ;;  %v9415_v3 = vrot.slane %v9179_v17, 1  ;;  %v9418_v35 = vrot.slane %v9181_v54, 1  ;;  %v28459_v11 = vpack.c.bf16 %v13950_v62, %v13948_v61  ;;  %v13951_v6 = vrot.slane %v13717_v1, 1 }
 0x4d2   :  { %22407 = vmatprep.mubr.msk.bf16.mxu1 %vm911_vm4, %v28375_v28  ;;  %33059 = vst [vmem:[#allocation143_spill] sm:$0xff] %v28455_v52  ;;  %33060 = vst [vmem:[#allocation146_spill] sm:$0xff] %v28457_v4  ;;  %v13953_v43 = vrot.slane %v13718_v33, 1  ;;  %v13955_v16 = vrot.slane %v13719_v42, 1  ;;  %v13956_v27 = vrot.slane %v13720_v37, 1  ;;  %v13958_v29 = vrot.slane %v13721_v5, 1 }
 0x4d3   :  { %33061 = vst [vmem:[#allocation148_spill] sm:$0xff] %v28459_v11  ;;  %v9412_v34 = vsel %vm268_vm2, %v9409_v36, %v9411_v59  ;;  %v9414_v26 = vsel %vm268_vm2, %v9411_v59, %v9413_v57  ;;  %v9417_v58 = vsel %vm268_vm2, %v9415_v3, %v9416_v60  ;;  %v9419_v2 = vsel %vm268_vm2, %v9416_v60, %v9418_v35  ;;  %v9185_v36 = vld [vmem:[#allocation2 + $0x3a0] sm:$0xff]  ;;  %v9187_v60 = vld [vmem:[#allocation2 + $0x3b0] sm:$0xff] }
 0x4d4   :  { %v13952_v45 = vsel %vm268_vm2, %v13949_v48, %v13951_v6  ;;  %v13954_v49 = vsel %vm268_vm2, %v13951_v6, %v13953_v43  ;;  %v28477_v47 = vpack.c.bf16 %v9414_v26, %v9412_v34  ;;  %v13957_v51 = vsel %vm268_vm2, %v13955_v16, %v13956_v27  ;;  %v13725_v48 = vld [vmem:[#allocation2 + $0x4e0] sm:$0xff]  ;;  %v9188_v6 = vld [vmem:[#allocation2 + $0x3b8] sm:$0x3] }
 0x4d5   :  { %v13959_v40 = vsel %vm268_vm2, %v13956_v27, %v13958_v29  ;;  %v28481_v53 = vpack.c.bf16 %v9419_v2, %v9417_v58  ;;  %v9420_v18 = vrot.slane %v9182_v20, 1  ;;  %v9422_v46 = vrot.slane %v9183_v31, 1  ;;  %v9199_v27 = vld [vmem:[#allocation2 + $0x7d0] sm:$0xff]  ;;  %v9201_v34 = vld [vmem:[#allocation2 + $0x7e0] sm:$0xff]  ;;  %v13728_v31 = vld [vmem:[#allocation2 + $0x4f8] sm:$0x3] }
 0x4d6   :  { %33062 = vst [vmem:[#allocation151_spill] sm:$0xff] %v28477_v47  ;;  %v28483_v15 = vpack.c.bf16 %v13954_v49, %v13952_v45  ;;  %v9424_v17 = vrot.slane %v9184_v0, 1  ;;  %v9425_v23 = vrot.slane %v9185_v36, 1  ;;  %v9427_v54 = vrot.slane %v28475_v39, 1  ;;  %v13727_v20 = vld [vmem:[#allocation2 + $0x4f0] sm:$0xff]  ;;  %v13740_v39 = vld [vmem:[#allocation2 + $0x918] sm:$0xff] }
 0x4d7   :  { %21814 = vmatmul.mubr.msk.bf16.gmra.mrb[72].mxu0 %vm911_vm4, %v28401_v30  ;;  %33063 = vst [vmem:[#allocation153_spill] sm:$0xff] %v28481_v53  ;;  %v28486_v61 = vpack.c.bf16 %v13959_v40, %v13957_v51  ;;  %v13960_v62 = vrot.slane %v13722_v38, 1  ;;  %v13962_v1 = vrot.slane %v13723_v22, 1  ;;  %v13964_v33 = vrot.slane %v13724_v50, 1  ;;  %v13739_v36 = vld [vmem:[#allocation2 + $0x910] sm:$0xff] }
 0x4d8   :  { %21817 = vmatprep.mubr.msk.bf16.mxu0 %vm911_vm4, %v28406_v13  ;;  %33064 = vst [vmem:[#allocation155_spill] sm:$0xff] %v28483_v15  ;;  %v13965_v59 = vrot.slane %v13725_v48, 1  ;;  %v13967_v57 = vrot.slane %v13726_v19, 1  ;;  %v9421_v42 = vsel %vm268_vm2, %v9418_v35, %v9420_v18  ;;  %v9423_v37 = vsel %vm268_vm2, %v9420_v18, %v9422_v46  ;;  %v9200_v35 = vld [vmem:[#allocation2 + $0x7d8] sm:$0xff]  ;;  %v29083_v30 = vld [vmem:[#allocation2 + $0x450] sm:$0xff] }
 0x4d9   :  { %22408 = vmatmul.mubr.msk.bf16.gmra.mrb[72].mxu1 %vm911_vm4, %v28408_v63  ;;  %33065 = vst [vmem:[#allocation157_spill] sm:$0xff] %v28486_v61  ;;  %v9426_v5 = vsel %vm268_vm2, %v9424_v17, %v9425_v23  ;;  %v9428_v3 = vsel %vm268_vm2, %v9425_v23, %v9427_v54  ;;  %v13961_v43 = vsel %vm268_vm2, %v13958_v29, %v13960_v62  ;;  %v9429_v49 = vrot.slane %v9187_v60, 1  ;;  %v28508_v29 = vld [vmem:[#allocation2 + $0x920] sm:$0xff]  ;;  %v9202_v23 = vld [vmem:[#allocation2 + $0x7e8] sm:$0xff] }
 0x4da   :  { %22411 = vmatprep.mubr.msk.bf16.mxu1 %vm911_vm4, %v28411_v14  ;;  %v13963_v16 = vsel %vm268_vm2, %v13960_v62, %v13962_v1  ;;  %v28502_v26 = vpack.c.bf16 %v9423_v37, %v9421_v42  ;;  %v13966_v58 = vsel %vm268_vm2, %v13964_v33, %v13965_v59  ;;  %v13968_v2 = vsel %vm268_vm2, %v13965_v59, %v13967_v57  ;;  %v9203_v62 = vld [vmem:[#allocation2 + $0x7f0] sm:$0x3]  ;;  %v9204_v37 = vld [vmem:[#allocation2 + $0x7f8] sm:$0xff] }
 0x4db   :  { %v28506_v45 = vpack.c.bf16 %v9428_v3, %v9426_v5  ;;  %v9431_v0 = vrot.slane %v9188_v6, 1  ;;  %v28510_v51 = vpack.c.bf16 %v13963_v16, %v13961_v43  ;;  %v9433_v40 = vrot.slane %v9199_v27, 1  ;;  %v9205_v5 = vld [vmem:[#allocation2 + $0x800] sm:$0xff]  ;;  %v28525_v3 = vld [vmem:[#allocation2 + $0x808] sm:$0xff] }
 0x4dc   :  { %33066 = vst [vmem:[#allocation158_spill] sm:$0xff] %v28502_v26  ;;  %v9434_v38 = vrot.slane %v9200_v35, 1  ;;  %v9436_v22 = vrot.slane %v9201_v34, 1  ;;  %v28512_v18 = vpack.c.bf16 %v13968_v2, %v13966_v58  ;;  %v13969_v46 = vrot.slane %v13727_v20, 1  ;;  %v13742_v16 = vld [vmem:[#allocation2 + $0x928] sm:$0xff] }
 0x4dd   :  { %33067 = vst [vmem:[#allocation159_spill] sm:$0xff] %v28506_v45  ;;  %33068 = vst [vmem:[#allocation160_spill] sm:$0xff] %v28510_v51  ;;  %v13971_v50 = vrot.slane %v13728_v31, 1  ;;  %v13973_v48 = vrot.slane %v13739_v36, 1  ;;  %v13974_v19 = vrot.slane %v13740_v39, 1  ;;  %v13976_v17 = vrot.slane %v28508_v29, 1 }
 0x4de   :  { %33069 = vst [vmem:[#allocation161_spill] sm:$0xff] %v28512_v18  ;;  %v9430_v1 = vsel %vm268_vm2, %v9427_v54, %v9429_v49  ;;  %v9432_v33 = vsel %vm268_vm2, %v9429_v49, %v9431_v0  ;;  %v9435_v59 = vsel %vm268_vm2, %v9433_v40, %v9434_v38  ;;  %v9437_v42 = vsel %vm268_vm2, %v9434_v38, %v9436_v22  ;;  %v13743_v58 = vld [vmem:[#allocation2 + $0x930] sm:$0x3]  ;;  %v13744_v0 = vld [vmem:[#allocation2 + $0x938] sm:$0xff]  ;;  %v13745_v36 = vld [vmem:[#allocation2 + $0x940] sm:$0xff] }
 0x4df   :  { %21818 = vmatmul.mubr.msk.bf16.gmra.mrb[76].mxu0 %vm911_vm4, %v28427_v32  ;;  %v13970_v60 = vsel %vm268_vm2, %v13967_v57, %v13969_v46  ;;  %v13972_v54 = vsel %vm268_vm2, %v13969_v46, %v13971_v50  ;;  %v9438_v6 = vrot.slane %v9202_v23, 1  ;;  %v9440_v43 = vrot.slane %v9203_v62, 1  ;;  %v13746_v57 = vld [vmem:[#allocation2 + $0x948] sm:$0xff]  ;;  %v9207_v62 = vld [vmem:[#allocation2 + $0x810] sm:$0xff] }
 0x4e0   :  { %21821 = vmatprep.mubr.msk.bf16.mxu0 %vm911_vm4, %v28431_v55  ;;  %v28531_v27 = vpack.c.bf16 %v9432_v33, %v9430_v1  ;;  %v13975_v35 = vsel %vm268_vm2, %v13973_v48, %v13974_v19  ;;  %v13977_v34 = vsel %vm268_vm2, %v13974_v19, %v13976_v17  ;;  %v9585_v2 = vpack.c.bf16 %v9437_v42, %v9435_v59  ;;  %v9208_v1 = vld [vmem:[#allocation2 + $0x818] sm:$0x3]  ;;  %v13747_v42 = vld [vmem:[#allocation2 + $0x950] sm:$0xff] }
 0x4e1   :  { %22412 = vmatmul.mubr.msk.bf16.gmra.mrb[76].mxu1 %vm911_vm4, %v28433_v56  ;;  %v9442_v20 = vrot.slane %v9204_v37, 1  ;;  %v9443_v31 = vrot.slane %v9205_v5, 1  ;;  %v9445_v49 = vrot.slane %v28525_v3, 1  ;;  %v28536_v39 = vpack.c.bf16 %v13972_v54, %v13970_v60  ;;  %v13748_v37 = vld [vmem:[#allocation2 + $0x958] sm:$0x3]  ;;  %v9209_v5 = vld [vmem:[#allocation2 + $0x820] sm:$0xff] }
 0x4e2   :  { %22415 = vmatprep.mubr.msk.bf16.mxu1 %vm911_vm4, %v28435_v41  ;;  %33070 = vst [vmem:[#allocation162_spill] sm:$0xff] %v28531_v27  ;;  %v13978_v29 = vrot.slane %v13742_v16, 1  ;;  %v14125_v40 = vpack.c.bf16 %v13977_v34, %v13975_v35  ;;  %v9439_v38 = vsel %vm268_vm2, %v9436_v22, %v9438_v6  ;;  %v9441_v46 = vsel %vm268_vm2, %v9438_v6, %v9440_v43  ;;  %v9210_v3 = vld [vmem:[#allocation2 + $0x828] sm:$0xff]  ;;  %v28547_v60 = vld [vmem:[#allocation2 + $0x830] sm:$0xff]  ;;  %v13749_v35 = vld [vmem:[#allocation2 + $0x960] sm:$0xff] }
 0x4e3   :  { %33071 = vst [vmem:[#allocation163_spill] sm:$0xff] %v28536_v39  ;;  %v13980_v50 = vrot.slane %v13743_v58, 1  ;;  %v13982_v48 = vrot.slane %v13744_v0, 1  ;;  %v13983_v19 = vrot.slane %v13745_v36, 1  ;;  %v13985_v23 = vrot.slane %v13746_v57, 1  ;;  %v13750_v34 = vld [vmem:[#allocation2 + $0x968] sm:$0xff] }
 0x4e4   :  { %v9444_v33 = vsel %vm268_vm2, %v9442_v20, %v9443_v31  ;;  %v9446_v59 = vsel %vm268_vm2, %v9443_v31, %v9445_v49  ;;  %v9586_v22 = vpack.c.bf16 %v9441_v46, %v9439_v38  ;;  %v13979_v54 = vsel %vm268_vm2, %v13976_v17, %v13978_v29  ;;  %v13751_v58 = vld [vmem:[#allocation2 + $0x970] sm:$0xff] }
 0x4e5   :  { %v13981_v6 = vsel %vm268_vm2, %v13978_v29, %v13980_v50  ;;  %v9447_v43 = vrot.slane %v9207_v62, 1  ;;  %v9449_v16 = vrot.slane %v9208_v1, 1  ;;  %v13984_v20 = vsel %vm268_vm2, %v13982_v48, %v13983_v19  ;;  %v9212_v1 = vld [vmem:[#allocation2 + $0x838] sm:$0xff] }
 0x4e6   :  { %v13986_v31 = vsel %vm268_vm2, %v13983_v19, %v13985_v23  ;;  %v13987_v0 = vrot.slane %v13747_v42, 1  ;;  %v13989_v36 = vrot.slane %v13748_v37, 1  ;;  %v9451_v57 = vrot.slane %v9209_v5, 1  ;;  %v9214_v42 = vld [vmem:[#allocation2 + $0x848] sm:$0xff]  ;;  %v9215_v37 = vld [vmem:[#allocation2 + $0x850] sm:$0xff] }
 0x4e7   :  { %21822 = vmatmul.mubr.msk.bf16.gmra.mrb[80].mxu0 %vm911_vm4, %v28451_v8  ;;  %v9452_v38 = vrot.slane %v9210_v3, 1  ;;  %v14126_v17 = vpack.c.bf16 %v13981_v6, %v13979_v54  ;;  %v13991_v46 = vrot.slane %v13749_v35, 1  ;;  %v13992_v29 = vrot.slane %v13750_v34, 1  ;;  %v28568_v6 = vld [vmem:[#allocation2 + $0x858] sm:$0xff]  ;;  %v29031_v8 = vld [vmem:[#allocation2 + $0x440] sm:$0xff] }
 0x4e8   :  { %21825 = vmatprep.mubr.msk.bf16.mxu0 %vm911_vm4, %v28455_v52  ;;  %v13994_v50 = vrot.slane %v13751_v58, 1  ;;  %v28557_v62 = vpack.c.bf16 %v13986_v31, %v13984_v20  ;;  %v9448_v48 = vsel %vm268_vm2, %v9445_v49, %v9447_v43  ;;  %v9450_v19 = vsel %vm268_vm2, %v9447_v43, %v9449_v16  ;;  %v13755_v49 = vld [vmem:[#allocation2 + $0x990] sm:$0xff]  ;;  %v28573_v58 = vld [vmem:[#allocation2 + $0x998] sm:$0xff] }
 0x4e9   :  { %22416 = vmatmul.mubr.msk.bf16.gmra.mrb[80].mxu1 %vm911_vm4, %v28457_v4  ;;  %v13988_v5 = vsel %vm268_vm2, %v13985_v23, %v13987_v0  ;;  %v13990_v3 = vsel %vm268_vm2, %v13987_v0, %v13989_v36  ;;  %v13993_v43 = vsel %vm268_vm2, %v13991_v46, %v13992_v29  ;;  %v9456_v35 = vrot.slane %v9212_v1, 1  ;;  %v9217_v46 = vld [vmem:[#allocation2 + $0x860] sm:$0xff]  ;;  %v29029_v52 = vld [vmem:[#allocation2 + $0x438] sm:$0xff] }
 0x4ea   :  { %22419 = vmatprep.mubr.msk.bf16.mxu1 %vm911_vm4, %v28459_v11  ;;  %33073 = vst [vmem:[#allocation165_spill] sm:$0xff] %v28557_v62  ;;  %v13995_v16 = vsel %vm268_vm2, %v13992_v29, %v13994_v50  ;;  %v9460_v31 = vrot.slane %v9214_v42, 1  ;;  %v9461_v0 = vrot.slane %v9215_v37, 1  ;;  %v28577_v36 = vpack.c.bf16 %v9450_v19, %v9448_v48  ;;  %v9218_v29 = vld [vmem:[#allocation2 + $0x868] sm:$0x3]  ;;  %v13757_v1 = vld [vmem:[#allocation2 + $0x9a0] sm:$0xff] }
 0x4eb   :  { %v9219_v48 = vld [vmem:[#allocation2 + $0x870] sm:$0xff]  ;;  %v9220_v19 = vld [vmem:[#allocation2 + $0x878] sm:$0xff]  ;;  %v29035_v41 = vpack.c.bf16 %v29031_v8, %v29029_v52 }
 0x4ec   :  { %33074 = vst [vmem:[#allocation166_spill] sm:$0xff] %v28577_v36 }
 0x4ed   :  { %33116 = vst [vmem:[#allocation22_spill] sm:$0xff] %v29035_v41 }
 0x4ef   :  { %21826 = vmatmul.mubr.msk.bf16.gmra.mrb[84].mxu0 %vm911_vm4, %v28477_v47 }
 0x4f0   :  { %21829 = vmatprep.mubr.msk.bf16.mxu0 %vm911_vm4, %v28481_v53 }
 0x4f1   :  { %22420 = vmatmul.mubr.msk.bf16.gmra.mrb[84].mxu1 %vm911_vm4, %v28483_v15 }
 0x4f2   :  { %22423 = vmatprep.mubr.msk.bf16.mxu1 %vm911_vm4, %v28486_v61 }
 0x4f7   :  { %21830 = vmatmul.mubr.msk.bf16.gmra.mrb[88].mxu0 %vm911_vm4, %v28502_v26  ;;  %v9224_v26 = vld [vmem:[#allocation2 + $0x898] sm:$0xff] }
 0x4f8   :  { %21833 = vmatprep.mubr.msk.bf16.mxu0 %vm911_vm4, %v28506_v45 }
 0x4f9   :  { %22424 = vmatmul.mubr.msk.bf16.gmra.mrb[88].mxu1 %vm911_vm4, %v28510_v51 }
 0x4fa   :  { %22427 = vmatprep.mubr.msk.bf16.mxu1 %vm911_vm4, %v28512_v18  ;;  %v28583_v18 = vpack.c.bf16 %v13990_v3, %v13988_v5  ;;  %v9465_v5 = vrot.slane %v9217_v46, 1  ;;  %v9467_v3 = vrot.slane %v9218_v29, 1  ;;  %v9470_v46 = vrot.slane %v9220_v19, 1 }
 0x4fc   :  { %33076 = vst [vmem:[#allocation123_spill] sm:$0xff] %v28583_v18 }
 0x4ff   :  { %21834 = vmatmul.mubr.msk.bf16.gmra.mrb[92].mxu0 %vm911_vm4, %v28531_v27  ;;  %v13758_v27 = vld [vmem:[#allocation2 + $0x9a8] sm:$0x3] }
 0x500   :  { %21837 = vmatprep.mubr.msk.bf16.mxu0 %vm911_vm4, %v9585_v2  ;;  %v28552_v2 = vpack.c.bf16 %v9446_v59, %v9444_v33  ;;  %v13752_v33 = vld [vmem:[#allocation2 + $0x978] sm:$0xff]  ;;  %v13753_v59 = vld [vmem:[#allocation2 + $0x980] sm:$0x3] }
 0x501   :  { %22428 = vmatmul.mubr.msk.bf16.gmra.mrb[92].mxu1 %vm911_vm4, %v28536_v39  ;;  %v9213_v39 = vld [vmem:[#allocation2 + $0x840] sm:$0x3]  ;;  %v13996_v23 = vrot.slane %v13752_v33, 1  ;;  %v13998_v20 = vrot.slane %v13753_v59, 1  ;;  %v28585_v33 = vpack.c.bf16 %v13995_v16, %v13993_v43  ;;  %v14005_v43 = vrot.slane %v13757_v1, 1 }
 0x502   :  { %22431 = vmatprep.mubr.msk.bf16.mxu1 %vm911_vm4, %v14125_v40  ;;  %33072 = vst [vmem:[#allocation164_spill] sm:$0xff] %v28552_v2  ;;  %v9454_v40 = vrot.slane %v28547_v60, 1  ;;  %v9453_v60 = vsel %vm268_vm2, %v9451_v57, %v9452_v38  ;;  %v9458_v34 = vrot.slane %v9213_v39, 1  ;;  %v9463_v57 = vrot.slane %v28568_v6, 1  ;;  %v9221_v6 = vld [vmem:[#allocation2 + $0x880] sm:$0xff] }
 0x503   :  { %v14003_v39 = vrot.slane %v28573_v58, 1  ;;  %33077 = vst [vmem:[#allocation168_spill] sm:$0xff] %v28585_v33  ;;  %v13997_v37 = vsel %vm268_vm2, %v13994_v50, %v13996_v23  ;;  %v13761_v16 = vld [vmem:[#allocation2 + $0x9c0] sm:$0xff]  ;;  %v9222_v58 = vld [vmem:[#allocation2 + $0x888] sm:$0xff] }
 0x504   :  { %v9455_v54 = vsel %vm268_vm2, %v9452_v38, %v9454_v40  ;;  %v9457_v59 = vsel %vm268_vm2, %v9454_v40, %v9456_v35  ;;  %v9459_v42 = vsel %vm268_vm2, %v9456_v35, %v9458_v34  ;;  %v14007_v40 = vrot.slane %v13758_v27, 1 }
 0x505   :  { %v9464_v50 = vsel %vm268_vm2, %v9461_v0, %v9463_v57  ;;  %v9472_v27 = vrot.slane %v9221_v6, 1  ;;  %v9466_v6 = vsel %vm268_vm2, %v9463_v57, %v9465_v5 }
 0x507   :  { %21838 = vmatmul.mubr.msk.bf16.gmra.mrb[96].mxu0 %vm911_vm4, %v9586_v22  ;;  %v13754_v22 = vld [vmem:[#allocation2 + $0x988] sm:$0xff] }
 0x508   :  { %21841 = vmatprep.mubr.msk.bf16.mxu0 %vm911_vm4, %v28552_v2  ;;  %v14000_v38 = vrot.slane %v13754_v22, 1  ;;  %v28580_v2 = vpack.c.bf16 %v9455_v54, %v9453_v60  ;;  %v13999_v60 = vsel %vm268_vm2, %v13996_v23, %v13998_v20  ;;  %v9462_v54 = vsel %vm268_vm2, %v9460_v31, %v9461_v0  ;;  %v13759_v22 = vld [vmem:[#allocation2 + $0x9b0] sm:$0xff]  ;;  %v13762_v31 = vld [vmem:[#allocation2 + $0x9c8] sm:$0xff] }
 0x509   :  { %22432 = vmatmul.mubr.msk.bf16.gmra.mrb[96].mxu1 %vm911_vm4, %v14126_v17  ;;  %v14001_v17 = vrot.slane %v13755_v49, 1  ;;  %v13760_v49 = vld [vmem:[#allocation2 + $0x9b8] sm:$0xff]  ;;  %v9469_v23 = vrot.slane %v9219_v48, 1  ;;  %v9223_v20 = vld [vmem:[#allocation2 + $0x890] sm:$0x3]  ;;  %v14009_v29 = vrot.slane %v13759_v22, 1  ;;  %v28605_v0 = vpack.c.bf16 %v13999_v60, %v13997_v37 }
 0x50a   :  { %22435 = vmatprep.mubr.msk.bf16.mxu1 %vm911_vm4, %v28557_v62  ;;  %33075 = vst [vmem:[#allocation167_spill] sm:$0xff] %v28580_v2  ;;  %v13763_v62 = vld [vmem:[#allocation2 + $0x9d0] sm:$0x3]  ;;  %v14010_v1 = vrot.slane %v13760_v49, 1  ;;  %v28607_v48 = vpack.c.bf16 %v9464_v50, %v9462_v54  ;;  %v14014_v51 = vrot.slane %v13762_v31, 1  ;;  %v9468_v22 = vsel %vm268_vm2, %v9465_v5, %v9467_v3  ;;  %v13764_v49 = vld [vmem:[#allocation2 + $0x9d8] sm:$0xff] }
 0x50b   :  { %v14002_v35 = vsel %vm268_vm2, %v14000_v38, %v14001_v17  ;;  %v14004_v34 = vsel %vm268_vm2, %v14001_v17, %v14003_v39  ;;  %33079 = vst [vmem:[#allocation127_spill] sm:$0xff] %v28605_v0  ;;  %v14012_v38 = vrot.slane %v13761_v16, 1  ;;  %v9474_v17 = vrot.slane %v9222_v58, 1  ;;  %v13765_v16 = vld [vmem:[#allocation2 + $0x9e0] sm:$0xff]  ;;  %v28620_v58 = vld [vmem:[#allocation2 + $0x9e8] sm:$0xff] }
 0x50c   :  { %33080 = vst [vmem:[#allocation128_spill] sm:$0xff] %v28607_v48  ;;  %v14016_v45 = vrot.slane %v13763_v62, 1  ;;  %v28609_v19 = vpack.c.bf16 %v14004_v34, %v14002_v35  ;;  %v14008_v37 = vsel %vm268_vm2, %v14005_v43, %v14007_v40  ;;  %v9471_v60 = vsel %vm268_vm2, %v9469_v23, %v9470_v46  ;;  %v28637_v31 = vld [vmem:[#allocation2 + $0x8b8] sm:$0x3] }
 0x50d   :  { %v9473_v54 = vsel %vm268_vm2, %v9470_v46, %v9472_v27  ;;  %v14011_v62 = vsel %vm268_vm2, %v14009_v29, %v14010_v1  ;;  %v14013_v57 = vsel %vm268_vm2, %v14010_v1, %v14012_v38  ;;  %v9475_v5 = vsel %vm268_vm2, %v9472_v27, %v9474_v17  ;;  %v28647_v46 = vld [vmem:[#allocation2 + $0x9f0] sm:$0xff] }
 0x50e   :  { %33081 = vst [vmem:[#allocation42_spill] sm:$0xff] %v28609_v19  ;;  %v9478_v3 = vrot.slane %v9224_v26, 1  ;;  %v14015_v50 = vsel %vm268_vm2, %v14012_v38, %v14014_v51  ;;  %v14017_v35 = vsel %vm268_vm2, %v14014_v51, %v14016_v45  ;;  %v14018_v23 = vrot.slane %v13764_v49, 1 }
 0x50f   :  { %21842 = vmatmul.mubr.msk.bf16.gmra.mrb[100].mxu0 %vm911_vm4, %v28577_v36  ;;  %v9476_v36 = vrot.slane %v9223_v20, 1  ;;  %v14019_v20 = vrot.slane %v13765_v16, 1  ;;  %v32072_v26 = vrot.slane %v28620_v58, 1  ;;  %v28645_v51 = vpack.c.bf16 %v9473_v54, %v9471_v60 }
 0x510   :  { %21845 = vmatprep.mubr.msk.bf16.mxu0 %vm911_vm4, %v28580_v2  ;;  %v28603_v2 = vpack.c.bf16 %v9459_v42, %v9457_v59  ;;  %v14006_v59 = vsel %vm268_vm2, %v14003_v39, %v14005_v43  ;;  %v28614_v42 = vld [vmem:[#allocation2 + $0x8a8] sm:$0xff]  ;;  %v28626_v43 = vld [vmem:[#allocation7] ss:$0 sm:$0xff]  ;;  %v28651_v29 = vpack.c.bf16 %v14013_v57, %v14011_v62  ;;  %v28655_v38 = vpack.c.bf16 %v14017_v35, %v14015_v50  ;;  %v28666_v62 = vld [vmem:[#allocation2 + $0x8c0] sm:$0xff] }
 0x511   :  { %22436 = vmatmul.mubr.msk.bf16.gmra.mrb[100].mxu1 %vm911_vm4, %v28583_v18  ;;  %v9225_v18 = vld [vmem:[#allocation2 + $0x8a0] sm:$0xff]  ;;  %v9477_v40 = vsel %vm268_vm2, %v9474_v17, %v9476_v36  ;;  %v32067_v34 = vrot.slane %v28614_v42, 1  ;;  %v28641_v36 = vpack.c.bf16 %v9468_v22, %v9466_v6  ;;  %v28643_v45 = vpack.c.bf16 %v14008_v37, %v14006_v59  ;;  %33084 = vst [vmem:[#allocation45_spill] sm:$0xff] %v28645_v51  ;;  %v28658_v6 = vld [vmem:[#allocation2 + $0x9f8] sm:$0x3]  ;;  %v9230_v50 = vld [vmem:[#allocation2 + $0x8c8] sm:$0xff] }
 0x512   :  { %22439 = vmatprep.mubr.msk.bf16.mxu1 %vm911_vm4, %v28585_v33  ;;  %33078 = vst [vmem:[#allocation124_spill] sm:$0xff] %v28603_v2  ;;  %v9479_v39 = vrot.slane %v9225_v18, 1  ;;  %v28635_v18 = vld [vmem:[#allocation2 + $0x8b0] sm:$0xff]  ;;  %33085 = vst [vmem:[#allocation46_spill] sm:$0xff] %v28651_v29  ;;  %v28653_v1 = vpack.c.bf16 %v9477_v40, %v9475_v5  ;;  %v9485_v54 = vrot.slane %v28637_v31, 1  ;;  %v14020_v5 = vsel %vm268_vm2, %v14018_v23, %v14019_v20 }
 0x513   :  { %33082 = vst [vmem:[#allocation39_spill] sm:$0xff] %v28641_v36  ;;  %33083 = vst [vmem:[#allocation44_spill] sm:$0xff] %v28643_v45  ;;  %v9483_v60 = vrot.slane %v28635_v18, 1  ;;  %v14023_v40 = vrot.slane %v28647_v46, 1  ;;  %v9487_v46 = vrot.slane %v28666_v62, 1 }
 0x514   :  { %33086 = vst [vmem:[#allocation43_spill] sm:$0xff] %v28653_v1  ;;  %33087 = vst [vmem:[#allocation50_spill] sm:$0xff] %v28655_v38  ;;  %v9480_v17 = vsel %vm268_vm2, %v9478_v3, %v9479_v39  ;;  %v9482_v37 = vsel %vm268_vm2, %v9479_v39, %v32067_v34  ;;  %v14022_v3 = vsel %vm268_vm2, %v14019_v20, %v32072_v26  ;;  %v14025_v34 = vrot.slane %v28658_v6, 1 }
 0x515   :  { %v9488_v6 = vrot.slane %v9230_v50, 1  ;;  %v28699_v50 = vpack.c.bf16 %v14022_v3, %v14020_v5  ;;  %v28711_v5 = vld [vmem:[#allocation2 + $0x8e0] sm:$0x3] }
 0x517   :  { %21846 = vmatmul.mubr.msk.bf16.gmra.mrb[104].mxu0 %vm911_vm4, %v28603_v2  ;;  %33089 = vst [vmem:[#allocation48_spill] sm:$0xff] %v28699_v50 }
 0x518   :  { %21849 = vmatprep.mubr.msk.bf16.mxu0 %vm911_vm4, %v28607_v48  ;;  %v13769_v48 = vld [vmem:[#allocation2 + $0xa00] sm:$0xff] }
 0x519   :  { %22440 = vmatmul.mubr.msk.bf16.gmra.mrb[104].mxu1 %vm911_vm4, %v28605_v0 }
 0x51a   :  { %v21147_v27 = vpop.f32.mrb[0].mxu0  ;;  %22443 = vmatprep.mubr.msk.bf16.mxu1 %vm911_vm4, %v28609_v19 }
 0x51b   :  { %v4417_v22 = vadd.f32 %v21147_v27, %v28626_v43  ;;  %v4090_v59 = vpop.f32.mrb[1].mxu0 }
 0x51c   :  { %v21741_v49 = vpop.f32.mrb[0].mxu1  ;;  %v4415_v16 = vadd.f32 %v28626_v43, %v4090_v59  ;;  %v21148_v57 = vpop.f32.mrb[2].mxu0  ;;  %v28677_v59 = vld [vmem:[#allocation2 + $0x8d0] sm:$0xff] }
 0x51d   :  { %v4481_v39 = vmax.f32 %v4417_v22, 0.0  ;;  %v8957_v35 = vadd.f32 %v21741_v49, %v28626_v43  ;;  %v8636_v18 = vpop.f32.mrb[1].mxu1  ;;  %v4418_v31 = vadd.f32 %v21148_v57, %v28626_v43  ;;  %v4093_v27 = vpop.f32.mrb[3].mxu0  ;;  %v9490_v62 = vrot.slane %v28677_v59, 1 }
 0x51e   :  { %v4479_v19 = vmax.f32 %v4415_v16, 0.0  ;;  %v8955_v23 = vadd.f32 %v28626_v43, %v8636_v18  ;;  %v21742_v0 = vpop.f32.mrb[2].mxu1  ;;  %v4416_v20 = vadd.f32 %v28626_v43, %v4093_v27  ;;  %v13770_v16 = vld [vmem:[#allocation2 + $0xa08] sm:$0xff] }
 0x51f   :  { %4546 = vst.msk [vmem:[#allocation8 + $0x10] sm:$0xff] %vm4543_vm5, %v4481_v39  ;;  %v9021_v22 = vmax.f32 %v8957_v35, 0.0  ;;  %v4482_v49 = vmax.f32 %v4418_v31, 0.0  ;;  %v8958_v26 = vadd.f32 %v21742_v0, %v28626_v43  ;;  %v8639_v57 = vpop.f32.mrb[3].mxu1  ;;  %21850 = vmatmul.mubr.msk.bf16.gmra.mrb[108].mxu0 %vm911_vm4, %v28641_v36  ;;  %v28691_v39 = vld [vmem:[#allocation2 + $0xa10] sm:$0xff]  ;;  %v33090_v35 = vrot.slane %v28614_v42, 1 }
 0x520   :  { %4544 = vst.msk [vmem:[#allocation8] sm:$0xff] %vm4543_vm5, %v4479_v19  ;;  %v9019_v18 = vmax.f32 %v8955_v23, 0.0  ;;  %v4480_v2 = vmax.f32 %v4416_v20, 0.0  ;;  %v8956_v27 = vadd.f32 %v28626_v43, %v8639_v57  ;;  %21853 = vmatprep.mubr.msk.bf16.mxu0 %vm911_vm4, %v28645_v51  ;;  %v28697_v19 = vpack.c.bf16 %v9482_v37, %v9480_v17  ;;  %v28704_v23 = vld [vmem:[#allocation2 + $0x8d8] sm:$0xff] }
 0x521   :  { %9086 = vst.msk [vmem:[#allocation8 + $0x110] sm:$0xff] %vm4543_vm5, %v9021_v22  ;;  %4547 = vst.msk [vmem:[#allocation8 + $0x18] sm:$0xff] %vm4543_vm5, %v4482_v49  ;;  %v9022_v0 = vmax.f32 %v8958_v26, 0.0  ;;  %22444 = vmatmul.mubr.msk.bf16.gmra.mrb[108].mxu1 %vm911_vm4, %v28643_v45  ;;  %v9484_v31 = vsel %vm268_vm2, %v33090_v35, %v9483_v60  ;;  %v9486_v26 = vsel %vm268_vm2, %v9483_v60, %v9485_v54  ;;  %v14027_v17 = vrot.slane %v13769_v48, 1 }
 0x522   :  { %33088 = vst [vmem:[#allocation51_spill] sm:$0xff] %v28697_v19  ;;  %9084 = vst.msk [vmem:[#allocation8 + $0x100] sm:$0xff] %vm4543_vm5, %v9019_v18  ;;  %v9020_v20 = vmax.f32 %v8956_v27, 0.0  ;;  %v21151_v22 = vpop.f32.mrb[4].mxu0  ;;  %22447 = vmatprep.mubr.msk.bf16.mxu1 %vm911_vm4, %v28651_v29  ;;  %v14028_v37 = vrot.slane %v13770_v16, 1  ;;  %v33091_v49 = vrot.slane %v28620_v58, 1  ;;  %v14026_v57 = vsel %vm268_vm2, %v14023_v40, %v14025_v34 }
 0x523   :  { %4545 = vst.msk [vmem:[#allocation8 + $0x8] sm:$0xff] %vm4543_vm5, %v4480_v2  ;;  %9087 = vst.msk [vmem:[#allocation8 + $0x118] sm:$0xff] %vm4543_vm5, %v9022_v0  ;;  %v4421_v42 = vadd.f32 %v21151_v22, %v28626_v43  ;;  %v4106_v3 = vpop.f32.mrb[5].mxu0  ;;  %v9489_v16 = vsel %vm268_vm2, %v9487_v46, %v9488_v6  ;;  %v9491_v27 = vsel %vm268_vm2, %v9488_v6, %v9490_v62  ;;  %v9492_v58 = vrot.slane %v28704_v23, 1 }
 0x524   :  { %v14024_v2 = vsel %vm268_vm2, %v33091_v49, %v14023_v40  ;;  %9085 = vst.msk [vmem:[#allocation8 + $0x108] sm:$0xff] %vm4543_vm5, %v9020_v20  ;;  %v21745_v60 = vpop.f32.mrb[4].mxu1  ;;  %v4419_v48 = vadd.f32 %v28626_v43, %v4106_v3  ;;  %v21152_v54 = vpop.f32.mrb[6].mxu0  ;;  %v9494_v20 = vrot.slane %v28711_v5, 1  ;;  %v14029_v29 = vsel %vm268_vm2, %v14027_v17, %v14028_v37 }
 0x525   :  { %v4485_v0 = vmax.f32 %v4421_v42, 0.0  ;;  %v8961_v35 = vadd.f32 %v21745_v60, %v28626_v43  ;;  %v8652_v34 = vpop.f32.mrb[5].mxu1  ;;  %v4422_v40 = vadd.f32 %v21152_v54, %v28626_v43  ;;  %v4109_v22 = vpop.f32.mrb[7].mxu0  ;;  %v33092_v5 = vrot.slane %v28691_v39, 1  ;;  %v28740_v54 = vld [vmem:[#allocation2 + $0xa18] sm:$0xff] }
 0x526   :  { %v4483_v49 = vmax.f32 %v4419_v48, 0.0  ;;  %v8959_v3 = vadd.f32 %v28626_v43, %v8652_v34  ;;  %v21746_v18 = vpop.f32.mrb[6].mxu1  ;;  %v4420_v46 = vadd.f32 %v28626_v43, %v4109_v22  ;;  %v28754_v22 = vpack.c.bf16 %v14026_v57, %v14024_v2  ;;  %v13775_v57 = vld [vmem:[#allocation2 + $0xa30] sm:$0xff] }
 0x527   :  { %4550 = vst.msk [vmem:[#allocation8 + $0x30] sm:$0xff] %vm4543_vm5, %v4485_v0  ;;  %v9025_v6 = vmax.f32 %v8961_v35, 0.0  ;;  %v4486_v23 = vmax.f32 %v4422_v40, 0.0  ;;  %v8962_v42 = vadd.f32 %v21746_v18, %v28626_v43  ;;  %v8655_v60 = vpop.f32.mrb[7].mxu1  ;;  %21854 = vmatmul.mubr.msk.bf16.gmra.mrb[112].mxu0 %vm911_vm4, %v28653_v1  ;;  %v14031_v48 = vsel %vm268_vm2, %v14028_v37, %v33092_v5  ;;  %v13773_v18 = vld [vmem:[#allocation2 + $0xa20] sm:$0x3] }
 0x528   :  { %4548 = vst.msk [vmem:[#allocation8 + $0x20] sm:$0xff] %vm4543_vm5, %v4483_v49  ;;  %v9023_v34 = vmax.f32 %v8959_v3, 0.0  ;;  %v4484_v17 = vmax.f32 %v4420_v46, 0.0  ;;  %v8960_v0 = vadd.f32 %v28626_v43, %v8655_v60  ;;  %21857 = vmatprep.mubr.msk.bf16.mxu0 %vm911_vm4, %v28697_v19  ;;  %v28746_v35 = vld [vmem:[#allocation2 + $0x8e8] sm:$0xff]  ;;  %v28752_v37 = vpack.c.bf16 %v9486_v26, %v9484_v31  ;;  %33094 = vst [vmem:[#allocation54_spill] sm:$0xff] %v28754_v22  ;;  %v9235_v3 = vld [vmem:[#allocation2 + $0x8f0] sm:$0xff] }
 0x529   :  { %9090 = vst.msk [vmem:[#allocation8 + $0x130] sm:$0xff] %vm4543_vm5, %v9025_v6  ;;  %4551 = vst.msk [vmem:[#allocation8 + $0x38] sm:$0xff] %vm4543_vm5, %v4486_v23  ;;  %v9026_v40 = vmax.f32 %v8962_v42, 0.0  ;;  %22448 = vmatmul.mubr.msk.bf16.gmra.mrb[112].mxu1 %vm911_vm4, %v28655_v38  ;;  %v28756_v49 = vpack.c.bf16 %v9491_v27, %v9489_v16  ;;  %v28758_v46 = vld [vmem:[#allocation2 + $0x8f8] sm:$0xff]  ;;  %v28760_v60 = vld [vmem:[#allocation2 + $0xa28] sm:$0xff]  ;;  %v28766_v31 = vpack.c.bf16 %v14031_v48, %v14029_v29  ;;  %v14032_v2 = vrot.slane %v28740_v54, 1 }
 0x52a   :  { %33093 = vst [vmem:[#allocation52_spill] sm:$0xff] %v28752_v37  ;;  %9088 = vst.msk [vmem:[#allocation8 + $0x120] sm:$0xff] %vm4543_vm5, %v9023_v34  ;;  %v9024_v6 = vmax.f32 %v8960_v0, 0.0  ;;  %v21155_v23 = vpop.f32.mrb[8].mxu0  ;;  %22451 = vmatprep.mubr.msk.bf16.mxu1 %vm911_vm4, %v28699_v50  ;;  %v9493_v26 = vsel %vm268_vm2, %v9490_v62, %v9492_v58  ;;  %v9495_v42 = vsel %vm268_vm2, %v9492_v58, %v9494_v20  ;;  %v14034_v5 = vrot.slane %v13773_v18, 1 }
 0x52b   :  { %33095 = vst [vmem:[#allocation55_spill] sm:$0xff] %v28756_v49  ;;  %4549 = vst.msk [vmem:[#allocation8 + $0x28] sm:$0xff] %vm4543_vm5, %v4484_v17  ;;  %v4425_v16 = vadd.f32 %v21155_v23, %v28626_v43  ;;  %v4122_v27 = vpop.f32.mrb[9].mxu0  ;;  %v9496_v34 = vrot.slane %v28746_v35, 1  ;;  %v28776_v17 = vld [vmem:[#allocation2 + $0xa38] sm:$0xff]  ;;  %v9497_v48 = vrot.slane %v9235_v3, 1 }
 0x52c   :  { %33096 = vst [vmem:[#allocation53_spill] sm:$0xff] %v28766_v31  ;;  %9091 = vst.msk [vmem:[#allocation8 + $0x138] sm:$0xff] %vm4543_vm5, %v9026_v40  ;;  %v21749_v29 = vpop.f32.mrb[8].mxu1  ;;  %v4423_v59 = vadd.f32 %v28626_v43, %v4122_v27  ;;  %v21156_v62 = vpop.f32.mrb[10].mxu0  ;;  %v14036_v0 = vrot.slane %v28760_v60, 1  ;;  %v14037_v35 = vrot.slane %v13775_v57, 1 }
 0x52d   :  { %9089 = vst.msk [vmem:[#allocation8 + $0x128] sm:$0xff] %vm4543_vm5, %v9024_v6  ;;  %v4489_v40 = vmax.f32 %v4425_v16, 0.0  ;;  %v8965_v23 = vadd.f32 %v21749_v29, %v28626_v43  ;;  %v8668_v58 = vpop.f32.mrb[9].mxu1  ;;  %v4426_v20 = vadd.f32 %v21156_v62, %v28626_v43  ;;  %v4125_v18 = vpop.f32.mrb[11].mxu0  ;;  %v32083_v3 = vrot.slane %v28776_v17, 1 }
 0x52e   :  { %v4487_v50 = vmax.f32 %v4423_v59, 0.0  ;;  %v8963_v6 = vadd.f32 %v28626_v43, %v8668_v58  ;;  %v21750_v38 = vpop.f32.mrb[10].mxu1  ;;  %v4424_v27 = vadd.f32 %v28626_v43, %v4125_v18  ;;  %v33097_v57 = vrot.slane %v28691_v39, 1 }
 0x52f   :  { %4554 = vst.msk [vmem:[#allocation8 + $0x50] sm:$0xff] %vm4543_vm5, %v4489_v40  ;;  %v9029_v54 = vmax.f32 %v8965_v23, 0.0  ;;  %v4490_v60 = vmax.f32 %v4426_v20, 0.0  ;;  %v8966_v16 = vadd.f32 %v21750_v38, %v28626_v43  ;;  %v8671_v29 = vpop.f32.mrb[11].mxu1  ;;  %21858 = vmatmul.mubr.msk.bf16.gmra.mrb[116].mxu0 %vm911_vm4, %v28752_v37  ;;  %v14035_v40 = vsel %vm268_vm2, %v14032_v2, %v14034_v5  ;;  %v9237_v38 = vld [vmem:[#allocation2 + $0x900] sm:$0xff] }
 0x530   :  { %v14033_v59 = vsel %vm268_vm2, %v33097_v57, %v14032_v2  ;;  %4552 = vst.msk [vmem:[#allocation8 + $0x40] sm:$0xff] %vm4543_vm5, %v4487_v50  ;;  %v9027_v62 = vmax.f32 %v8963_v6, 0.0  ;;  %v4488_v58 = vmax.f32 %v4424_v27, 0.0  ;;  %v8964_v18 = vadd.f32 %v28626_v43, %v8671_v29  ;;  %21861 = vmatprep.mubr.msk.bf16.mxu0 %vm911_vm4, %v28756_v49  ;;  %v9238_v6 = vld [vmem:[#allocation2 + $0x908] sm:$0x3]  ;;  %v13777_v27 = vld [vmem:[#allocation2 + $0xa40] sm:$0xff] }
 0x531   :  { %9094 = vst.msk [vmem:[#allocation8 + $0x150] sm:$0xff] %vm4543_vm5, %v9029_v54  ;;  %4555 = vst.msk [vmem:[#allocation8 + $0x58] sm:$0xff] %vm4543_vm5, %v4490_v60  ;;  %v9030_v23 = vmax.f32 %v8966_v16, 0.0  ;;  %22452 = vmatmul.mubr.msk.bf16.gmra.mrb[116].mxu1 %vm911_vm4, %v28754_v22  ;;  %v9498_v39 = vsel %vm268_vm2, %v9496_v34, %v9497_v48  ;;  %v33098_v50 = vrot.slane %v28758_v46, 1  ;;  %v14038_v54 = vsel %vm268_vm2, %v14036_v0, %v14037_v35 }
 0x532   :  { %9092 = vst.msk [vmem:[#allocation8 + $0x140] sm:$0xff] %vm4543_vm5, %v9027_v62  ;;  %4553 = vst.msk [vmem:[#allocation8 + $0x48] sm:$0xff] %vm4543_vm5, %v4488_v58  ;;  %v9028_v2 = vmax.f32 %v8964_v18, 0.0  ;;  %v21159_v5 = vpop.f32.mrb[12].mxu0  ;;  %22455 = vmatprep.mubr.msk.bf16.mxu1 %vm911_vm4, %v28766_v31  ;;  %v14040_v34 = vsel %vm268_vm2, %v14037_v35, %v32083_v3  ;;  %v28817_v16 = vpack.c.bf16 %v9495_v42, %v9493_v26  ;;  %v9501_v57 = vrot.slane %v9237_v38, 1 }
 0x533   :  { %v9500_v20 = vsel %vm268_vm2, %v9497_v48, %v33098_v50  ;;  %9095 = vst.msk [vmem:[#allocation8 + $0x158] sm:$0xff] %vm4543_vm5, %v9030_v23  ;;  %v4429_v48 = vadd.f32 %v21159_v5, %v28626_v43  ;;  %v4138_v60 = vpop.f32.mrb[13].mxu0  ;;  %v28819_v29 = vpack.c.bf16 %v14035_v40, %v14033_v59  ;;  %v13778_v62 = vld [vmem:[#allocation2 + $0xa48] sm:$0x3]  ;;  %v9503_v35 = vrot.slane %v9238_v6, 1 }
 0x534   :  { %33099 = vst [vmem:[#allocation59_spill] sm:$0xff] %v28817_v16  ;;  %9093 = vst.msk [vmem:[#allocation8 + $0x148] sm:$0xff] %vm4543_vm5, %v9028_v2  ;;  %v21753_v58 = vpop.f32.mrb[12].mxu1  ;;  %v4427_v0 = vadd.f32 %v28626_v43, %v4138_v60  ;;  %v21160_v18 = vpop.f32.mrb[14].mxu0  ;;  %v28823_v50 = vpack.c.bf16 %v9500_v20, %v9498_v39  ;;  %v14041_v3 = vrot.slane %v13777_v27, 1  ;;  %v28827_v59 = vpack.c.bf16 %v14040_v34, %v14038_v54 }
 0x535   :  { %33100 = vst [vmem:[#allocation60_spill] sm:$0xff] %v28819_v29  ;;  %v4493_v23 = vmax.f32 %v4429_v48, 0.0  ;;  %v8969_v5 = vadd.f32 %v21753_v58, %v28626_v43  ;;  %v8684_v31 = vpop.f32.mrb[13].mxu1  ;;  %v4430_v26 = vadd.f32 %v21160_v18, %v28626_v43  ;;  %v4141_v42 = vpop.f32.mrb[15].mxu0  ;;  %v14043_v22 = vrot.slane %v13778_v62, 1 }
 0x536   :  { %33101 = vst [vmem:[#allocation61_spill] sm:$0xff] %v28823_v50  ;;  %33102 = vst [vmem:[#allocation56_spill] sm:$0xff] %v28827_v59  ;;  %v4491_v40 = vmax.f32 %v4427_v0, 0.0  ;;  %v8967_v38 = vadd.f32 %v28626_v43, %v8684_v31  ;;  %v21754_v2 = vpop.f32.mrb[14].mxu1  ;;  %v4428_v60 = vadd.f32 %v28626_v43, %v4141_v42  ;;  %v33103_v54 = vrot.slane %v28758_v46, 1 }
 0x537   :  { %4558 = vst.msk [vmem:[#allocation8 + $0x70] sm:$0xff] %vm4543_vm5, %v4493_v23  ;;  %v9033_v39 = vmax.f32 %v8969_v5, 0.0  ;;  %v4494_v20 = vmax.f32 %v4430_v26, 0.0  ;;  %v8970_v6 = vadd.f32 %v21754_v2, %v28626_v43  ;;  %v8687_v27 = vpop.f32.mrb[15].mxu1  ;;  %21862 = vmatmul.mubr.msk.bf16.gmra.mrb[120].mxu0 %vm911_vm4, %v28817_v16  ;;  %v9504_v58 = vsel %vm268_vm2, %v9501_v57, %v9503_v35 }
 0x538   :  { %v9502_v34 = vsel %vm268_vm2, %v33103_v54, %v9501_v57  ;;  %4556 = vst.msk [vmem:[#allocation8 + $0x60] sm:$0xff] %vm4543_vm5, %v4491_v40  ;;  %v9031_v31 = vmax.f32 %v8967_v38, 0.0  ;;  %v4492_v48 = vmax.f32 %v4428_v60, 0.0  ;;  %v8968_v62 = vadd.f32 %v28626_v43, %v8687_v27  ;;  %21865 = vmatprep.mubr.msk.bf16.mxu0 %vm911_vm4, %v28823_v50  ;;  %v25232_v60 = vld [vmem:[#allocation2 + $0x280] sm:$0xff] }
 0x539   :  { %9098 = vst.msk [vmem:[#allocation8 + $0x170] sm:$0xff] %vm4543_vm5, %v9033_v39  ;;  %4559 = vst.msk [vmem:[#allocation8 + $0x78] sm:$0xff] %vm4543_vm5, %v4494_v20  ;;  %v9034_v0 = vmax.f32 %v8970_v6, 0.0  ;;  %22456 = vmatmul.mubr.msk.bf16.gmra.mrb[120].mxu1 %vm911_vm4, %v28819_v29  ;;  %v33104_v23 = vrot.slane %v28776_v17, 1  ;;  %v14044_v35 = vsel %vm268_vm2, %v14041_v3, %v14043_v22  ;;  %v28857_v42 = vpack.c.bf16 %v9504_v58, %v9502_v34  ;;  %v25233_v39 = vld [vmem:[#allocation2 + $0x288] sm:$0xff]  ;;  %v28867_v58 = vld [vmem:[#allocation2 + $0x3c0] sm:$0xff] }
 0x53a   :  { %9096 = vst.msk [vmem:[#allocation8 + $0x160] sm:$0xff] %vm4543_vm5, %v9031_v31  ;;  %4557 = vst.msk [vmem:[#allocation8 + $0x68] sm:$0xff] %vm4543_vm5, %v4492_v48  ;;  %v9032_v46 = vmax.f32 %v8968_v62, 0.0  ;;  %v21163_v18 = vpop.f32.mrb[16].mxu0  ;;  %22459 = vmatprep.mubr.msk.bf16.mxu1 %vm911_vm4, %v28827_v59  ;;  %v9249_v17 = vpack.c.bf16 %v25233_v39, %v25232_v60 }
 0x53b   :  { %v14042_v57 = vsel %vm268_vm2, %v33104_v23, %v14041_v3  ;;  %9099 = vst.msk [vmem:[#allocation8 + $0x178] sm:$0xff] %vm4543_vm5, %v9034_v0  ;;  %v4433_v5 = vadd.f32 %v21163_v18, %v28626_v43  ;;  %v4154_v26 = vpop.f32.mrb[17].mxu0  ;;  %33105 = vst [vmem:[#allocation64_spill] sm:$0xff] %v28857_v42  ;;  %v28869_v0 = vld [vmem:[#allocation2 + $0x3c8] sm:$0xff] }
 0x53c   :  { %9097 = vst.msk [vmem:[#allocation8 + $0x168] sm:$0xff] %vm4543_vm5, %v9032_v46  ;;  %v21757_v40 = vpop.f32.mrb[16].mxu1  ;;  %v4431_v38 = vadd.f32 %v28626_v43, %v4154_v26  ;;  %v21164_v2 = vpop.f32.mrb[18].mxu0  ;;  %v28863_v54 = vpack.c.bf16 %v14044_v35, %v14042_v57  ;;  %v13789_v46 = vpack.c.bf16 %v28869_v0, %v28867_v58 }
 0x53d   :  { %v4497_v20 = vmax.f32 %v4433_v5, 0.0  ;;  %v8973_v6 = vadd.f32 %v21757_v40, %v28626_v43  ;;  %v8700_v22 = vpop.f32.mrb[17].mxu1  ;;  %v4434_v3 = vadd.f32 %v21164_v2, %v28626_v43  ;;  %v4157_v27 = vpop.f32.mrb[19].mxu0 }
 0x53e   :  { %33106 = vst [vmem:[#allocation66_spill] sm:$0xff] %v28863_v54  ;;  %v4495_v34 = vmax.f32 %v4431_v38, 0.0  ;;  %v8971_v31 = vadd.f32 %v28626_v43, %v8700_v22  ;;  %v21758_v48 = vpop.f32.mrb[18].mxu1  ;;  %v4432_v62 = vadd.f32 %v28626_v43, %v4157_v27 }
 0x53f   :  { %4562 = vst.msk [vmem:[#allocation8 + $0x90] sm:$0xff] %vm4543_vm5, %v4497_v20  ;;  %v9037_v18 = vmax.f32 %v8973_v6, 0.0  ;;  %v4498_v23 = vmax.f32 %v4434_v3, 0.0  ;;  %v8974_v57 = vadd.f32 %v21758_v48, %v28626_v43  ;;  %v8703_v35 = vpop.f32.mrb[19].mxu1  ;;  %21866 = vmatmul.mubr.msk.bf16.gmra.mrb[124].mxu0 %vm911_vm4, %v28857_v42  ;;  %v28889_v20 = vld [vmem:[#allocation2 + $0x290] sm:$0xff]  ;;  %v28891_v6 = vld [vmem:[#allocation2 + $0x298] sm:$0xff] }
 0x540   :  { %4560 = vst.msk [vmem:[#allocation8 + $0x80] sm:$0xff] %vm4543_vm5, %v4495_v34  ;;  %v9035_v5 = vmax.f32 %v8971_v31, 0.0  ;;  %v4496_v26 = vmax.f32 %v4432_v62, 0.0  ;;  %v8972_v40 = vadd.f32 %v28626_v43, %v8703_v35  ;;  %21871 = vmatprep.mubr.msk.bf16.mxu0 %vm911_vm4, %v9249_v17  ;;  %v9250_v22 = vpack.c.bf16 %v28891_v6, %v28889_v20  ;;  %v28897_v31 = vld [vmem:[#allocation2 + $0x2a8] sm:$0xff]  ;;  %v28899_v48 = vld [vmem:[#allocation2 + $0x2b0] sm:$0xff] }
 0x541   :  { %9102 = vst.msk [vmem:[#allocation8 + $0x190] sm:$0xff] %vm4543_vm5, %v9037_v18  ;;  %4563 = vst.msk [vmem:[#allocation8 + $0x98] sm:$0xff] %vm4543_vm5, %v4498_v23  ;;  %v9038_v38 = vmax.f32 %v8974_v57, 0.0  ;;  %22460 = vmatmul.mubr.msk.bf16.gmra.mrb[124].mxu1 %vm911_vm4, %v28863_v54  ;;  %v28903_v62 = vpack.c.bf16 %v28899_v48, %v28897_v31 }
 0x542   :  { %9100 = vst.msk [vmem:[#allocation8 + $0x180] sm:$0xff] %vm4543_vm5, %v9035_v5  ;;  %4561 = vst.msk [vmem:[#allocation8 + $0x88] sm:$0xff] %vm4543_vm5, %v4496_v26  ;;  %v9036_v2 = vmax.f32 %v8972_v40, 0.0  ;;  %v21167_v60 = vpop.f32.mrb[20].mxu0  ;;  %22465 = vmatprep.mubr.msk.bf16.mxu1 %vm911_vm4, %v13789_v46  ;;  %v28907_v5 = vld [vmem:[#allocation2 + $0x3d0] sm:$0xff]  ;;  %v28909_v26 = vld [vmem:[#allocation2 + $0x3d8] sm:$0xff] }
 0x543   :  { %9103 = vst.msk [vmem:[#allocation8 + $0x198] sm:$0xff] %vm4543_vm5, %v9038_v38  ;;  %v4437_v39 = vadd.f32 %v21167_v60, %v28626_v43  ;;  %v4170_v17 = vpop.f32.mrb[21].mxu0  ;;  %33107 = vst [vmem:[#allocation67_spill] sm:$0xff] %v28903_v62  ;;  %v13790_v40 = vpack.c.bf16 %v28909_v26, %v28907_v5 }
 0x544   :  { %9101 = vst.msk [vmem:[#allocation8 + $0x188] sm:$0xff] %vm4543_vm5, %v9036_v2  ;;  %v21761_v3 = vpop.f32.mrb[20].mxu1  ;;  %v4435_v27 = vadd.f32 %v28626_v43, %v4170_v17  ;;  %v21168_v34 = vpop.f32.mrb[22].mxu0 }
 0x545   :  { %v4501_v46 = vmax.f32 %v4437_v39, 0.0  ;;  %v8977_v18 = vadd.f32 %v21761_v3, %v28626_v43  ;;  %v8716_v23 = vpop.f32.mrb[21].mxu1  ;;  %v4438_v57 = vadd.f32 %v21168_v34, %v28626_v43  ;;  %v4173_v35 = vpop.f32.mrb[23].mxu0  ;;  %v28915_v39 = vld [vmem:[#allocation2 + $0x3e8] sm:$0xff]  ;;  %v28917_v3 = vld [vmem:[#allocation2 + $0x3f0] sm:$0xff] }
 0x546   :  { %v4499_v38 = vmax.f32 %v4435_v27, 0.0  ;;  %v8975_v2 = vadd.f32 %v28626_v43, %v8716_v23  ;;  %v21762_v60 = vpop.f32.mrb[22].mxu1  ;;  %v4436_v17 = vadd.f32 %v28626_v43, %v4173_v35  ;;  %v28921_v34 = vpack.c.bf16 %v28917_v3, %v28915_v39  ;;  %v25066_v23 = vld [vmem:[#allocation5 + $0x4] ss:$0 sps:$4 sm:$0x33]  }
 0x547   :  { %4566 = vst.msk [vmem:[#allocation8 + $0xb0] sm:$0xff] %vm4543_vm5, %v4501_v46  ;;  %v9041_v54 = vmax.f32 %v8977_v18, 0.0  ;;  %v4502_v42 = vmax.f32 %v4438_v57, 0.0  ;;  %v8978_v59 = vadd.f32 %v21762_v60, %v28626_v43  ;;  %v8719_v27 = vpop.f32.mrb[23].mxu1  ;;  %21872 = vmatmul.mubr.msk.bf16.vlgmr.msra.gmra.mrb[64].mxu0 %vm911_vm4, %v9250_v22  ;;  %v11243_v22 = vshrl.u32 %v25066_v23, 16  ;;  %v28951_v60 = vld [vmem:[#allocation2 + $0x3f8] sm:$0xff] }
 0x548   :  { %33108 = vst [vmem:[#allocation62_spill] sm:$0xff] %v28921_v34  ;;  %4564 = vst.msk [vmem:[#allocation8 + $0xa0] sm:$0xff] %vm4543_vm5, %v4499_v38  ;;  %v9039_v35 = vmax.f32 %v8975_v2, 0.0  ;;  %v4500_v29 = vmax.f32 %v4436_v17, 0.0  ;;  %v8976_v50 = vadd.f32 %v28626_v43, %v8719_v27  ;;  %21936 = vmatpush3.bf16.msra.mxu0 %v28385_v44  ;;  %21875 = vmatprep.mubr.msk.bf16.mxu0 %vm911_vm4, %v28903_v62  ;;  %v11245_v18 = vshll.u32 %v25066_v23, 16  ;;  %v28953_v17 = vld [vmem:[#allocation2 + $0x400] sm:$0xff] }
 0x549   :  { %9106 = vst.msk [vmem:[#allocation8 + $0x1b0] sm:$0xff] %vm4543_vm5, %v9041_v54  ;;  %4567 = vst.msk [vmem:[#allocation8 + $0xb8] sm:$0xff] %vm4543_vm5, %v4502_v42  ;;  %v9042_v46 = vmax.f32 %v8978_v59, 0.0  ;;  %22466 = vmatmul.mubr.msk.bf16.vlgmr.msra.gmra.mrb[64].mxu1 %vm911_vm4, %v13790_v40  ;;  %v28941_v54 = vld [vmem:[#allocation2 + $0x2b8] sm:$0xff]  ;;  %v28943_v40 = vld [vmem:[#allocation2 + $0x2c0] sm:$0xff]  ;;  %v28957_v27 = vpack.c.bf16 %v28953_v17, %v28951_v60 }
 0x54a   :  { %9104 = vst.msk [vmem:[#allocation8 + $0x1a0] sm:$0xff] %vm4543_vm5, %v9039_v35  ;;  %4565 = vst.msk [vmem:[#allocation8 + $0xa8] sm:$0xff] %vm4543_vm5, %v4500_v29  ;;  %v9040_v57 = vmax.f32 %v8976_v50, 0.0  ;;  %22530 = vmatpush3.bf16.msra.mxu1 %v28388_v12  ;;  %v21171_v44 = vpop.f32.mrb[24].mxu0  ;;  %22469 = vmatprep.mubr.msk.bf16.mxu1 %vm911_vm4, %v28921_v34  ;;  %v28947_v38 = vpack.c.bf16 %v28943_v40, %v28941_v54  ;;  %v11247_v29 = vrot.slane %v11245_v18, 1  ;;  %v28959_v23 = vld [vmem:[#allocation2 + $0x2d0] sm:$0xff] }
 0x54b   :  { %9107 = vst.msk [vmem:[#allocation8 + $0x1b8] sm:$0xff] %vm4543_vm5, %v9042_v46  ;;  %v4441_v42 = vadd.f32 %v21171_v44, %v28626_v43  ;;  %v4186_v59 = vpop.f32.mrb[25].mxu0  ;;  %33110 = vst [vmem:[#allocation72_spill] sm:$0xff] %v28957_v27  ;;  %v28961_v35 = vld [vmem:[#allocation2 + $0x2d8] sm:$0xff]  ;;  %v28967_v18 = vld [vmem:[#allocation2 + $0x410] sm:$0xff] }
 0x54c   :  { %33109 = vst [vmem:[#allocation71_spill] sm:$0xff] %v28947_v38  ;;  %9105 = vst.msk [vmem:[#allocation8 + $0x1a8] sm:$0xff] %vm4543_vm5, %v9040_v57  ;;  %v21765_v12 = vpop.f32.mrb[24].mxu1  ;;  %v4439_v50 = vadd.f32 %v28626_v43, %v4186_v59  ;;  %v21172_v2 = vpop.f32.mrb[26].mxu0  ;;  %v28965_v46 = vpack.c.bf16 %v28961_v35, %v28959_v23  ;;  %v28969_v57 = vld [vmem:[#allocation2 + $0x418] sm:$0xff]  ;;  %v11248_v45 = vor.u32 %v11247_v29, %v11243_v22 }
 0x54d   :  { %v28973_v44 = vpack.c.bf16 %v28969_v57, %v28967_v18  ;;  %v25067_v59 = vld [vmem:[#allocation5 + $0x4] ss:$0 sps:$4 sm:$0x33]   ;;  %v4505_v16 = vmax.f32 %v4441_v42, 0.0  ;;  %v8981_v49 = vadd.f32 %v21765_v12, %v28626_v43  ;;  %v8732_v37 = vpop.f32.mrb[25].mxu1  ;;  %v4442_v19 = vadd.f32 %v21172_v2, %v28626_v43  ;;  %v4189_v1 = vpop.f32.mrb[27].mxu0 }
 0x54e   :  { %33111 = vst [vmem:[#allocation129_spill] sm:$0xff] %v28965_v46  ;;  %v4503_v51 = vmax.f32 %v4439_v50, 0.0  ;;  %v8979_v36 = vadd.f32 %v28626_v43, %v8732_v37  ;;  %v21766_v33 = vpop.f32.mrb[26].mxu1  ;;  %v4440_v61 = vadd.f32 %v28626_v43, %v4189_v1  ;;  %v15783_v15 = vshrl.u32 %v25067_v59, 16  ;;  %v29011_v2 = vld [vmem:[#allocation2 + $0x420] sm:$0xff] }
 0x54f   :  { %33112 = vst [vmem:[#allocation73_spill] sm:$0xff] %v28973_v44  ;;  %4570 = vst.msk [vmem:[#allocation8 + $0xd0] sm:$0xff] %vm4543_vm5, %v4505_v16  ;;  %v9045_v53 = vmax.f32 %v8981_v49, 0.0  ;;  %v4506_v47 = vmax.f32 %v4442_v19, 0.0  ;;  %v8982_v42 = vadd.f32 %v21766_v33, %v28626_v43  ;;  %v8735_v11 = vpop.f32.mrb[27].mxu1  ;;  %21876 = vmatmul.mubr.msk.bf16.gmra.mrb[68].mxu0 %vm911_vm4, %v28947_v38  ;;  %v28984_v12 = vand.u32 %v11248_v45, %v32684_v9  ;;  %v29001_v45 = vld [vmem:[#allocation2 + $0x2e0] sm:$0xff] }
 0x550   :  { %4568 = vst.msk [vmem:[#allocation8 + $0xc0] sm:$0xff] %vm4543_vm5, %v4503_v51  ;;  %v9043_v37 = vmax.f32 %v8979_v36, 0.0  ;;  %v4504_v22 = vmax.f32 %v4440_v61, 0.0  ;;  %v8980_v1 = vadd.f32 %v28626_v43, %v8735_v11  ;;  %21879 = vmatprep.mubr.msk.bf16.mxu0 %vm911_vm4, %v28965_v46  ;;  %v15785_v49 = vshll.u32 %v25067_v59, 16  ;;  %v29003_v51 = vld [vmem:[#allocation2 + $0x2e8] sm:$0xff] }
 0x551   :  { %9110 = vst.msk [vmem:[#allocation8 + $0x1d0] sm:$0xff] %vm4543_vm5, %v9045_v53  ;;  %4571 = vst.msk [vmem:[#allocation8 + $0xd8] sm:$0xff] %vm4543_vm5, %v4506_v47  ;;  %v9046_v33 = vmax.f32 %v8982_v42, 0.0  ;;  %22470 = vmatmul.mubr.msk.bf16.gmra.mrb[68].mxu1 %vm911_vm4, %v28957_v27  ;;  %22001 = vmatprep.subr.bf16.mxu0 %v28984_v12  ;;  %v29007_v19 = vpack.c.bf16 %v29003_v51, %v29001_v45  ;;  %v29013_v59 = vld [vmem:[#allocation2 + $0x428] sm:$0xff] }
 0x552   :  { %9108 = vst.msk [vmem:[#allocation8 + $0x1c0] sm:$0xff] %vm4543_vm5, %v9043_v37  ;;  %4569 = vst.msk [vmem:[#allocation8 + $0xc8] sm:$0xff] %vm4543_vm5, %v4504_v22  ;;  %v9044_v61 = vmax.f32 %v8980_v1, 0.0  ;;  %v21175_v11 = vpop.f32.mrb[28].mxu0  ;;  %22473 = vmatprep.mubr.msk.bf16.mxu1 %vm911_vm4, %v28973_v44  ;;  %v15787_v36 = vrot.slane %v15785_v49, 1  ;;  %v29017_v42 = vpack.c.bf16 %v29013_v59, %v29011_v2  ;;  %v29019_v37 = vld [vmem:[#allocation2 + $0x2f8] sm:$0xff] }
 0x553   :  { %9111 = vst.msk [vmem:[#allocation8 + $0x1d8] sm:$0xff] %vm4543_vm5, %v9046_v33  ;;  %v4445_v47 = vadd.f32 %v21175_v11, %v28626_v43  ;;  %v4202_v53 = vpop.f32.mrb[29].mxu0  ;;  %33113 = vst [vmem:[#allocation132_spill] sm:$0xff] %v29007_v19  ;;  %v29021_v22 = vld [vmem:[#allocation2 + $0x300] sm:$0xff]  ;;  %v29147_v27 = vld [vmem:[#allocation2 + $0x488] sm:$0xff] }
 0x554   :  { %9109 = vst.msk [vmem:[#allocation8 + $0x1c8] sm:$0xff] %vm4543_vm5, %v9044_v61  ;;  %v21769_v16 = vpop.f32.mrb[28].mxu1  ;;  %v4443_v29 = vadd.f32 %v28626_v43, %v4202_v53  ;;  %v21176_v50 = vpop.f32.mrb[30].mxu0  ;;  %33114 = vst [vmem:[#allocation20_spill] sm:$0xff] %v29017_v42  ;;  %v29025_v1 = vpack.c.bf16 %v29021_v22, %v29019_v37  ;;  %v15788_v49 = vor.u32 %v15787_v36, %v15783_v15 }
 0x555   :  { %v4509_v33 = vmax.f32 %v4445_v47, 0.0  ;;  %v8985_v61 = vadd.f32 %v21769_v16, %v28626_v43  ;;  %v8748_v11 = vpop.f32.mrb[29].mxu1  ;;  %v4446_v53 = vadd.f32 %v21176_v50, %v28626_v43  ;;  %v4205_v4 = vpop.f32.mrb[31].mxu0  ;;  %33125 = vst [vmem:[#allocation31_spill] sm:$0xff] %v29147_v27 }
 0x556   :  { %33115 = vst [vmem:[#allocation21_spill] sm:$0xff] %v29025_v1  ;;  %v4507_v56 = vmax.f32 %v4443_v29, 0.0  ;;  %v8983_v55 = vadd.f32 %v28626_v43, %v8748_v11  ;;  %v21770_v32 = vpop.f32.mrb[30].mxu1  ;;  %v4444_v15 = vadd.f32 %v28626_v43, %v4205_v4  ;;  %v29040_v36 = vand.u32 %v15788_v49, %v32684_v9  ;;  %v29061_v49 = vld [vmem:[#allocation2 + $0x308] sm:$0xff] }
 0x557   :  { %4574 = vst.msk [vmem:[#allocation8 + $0xf0] sm:$0xff] %vm4543_vm5, %v4509_v33  ;;  %v9049_v47 = vmax.f32 %v8985_v61, 0.0  ;;  %v4510_v16 = vmax.f32 %v4446_v53, 0.0  ;;  %v8986_v50 = vadd.f32 %v21770_v32, %v28626_v43  ;;  %v8751_v14 = vpop.f32.mrb[31].mxu1  ;;  %21880 = vmatmul.mubr.msk.bf16.gmra.mrb[72].mxu0 %vm911_vm4, %v29007_v19  ;;  %v29063_v33 = vld [vmem:[#allocation2 + $0x310] sm:$0xff] }
 0x558   :  { %4572 = vst.msk [vmem:[#allocation8 + $0xe0] sm:$0xff] %vm4543_vm5, %v4507_v56  ;;  %v9047_v29 = vmax.f32 %v8983_v55, 0.0  ;;  %v4508_v11 = vmax.f32 %v4444_v15, 0.0  ;;  %v8984_v63 = vadd.f32 %v28626_v43, %v8751_v14  ;;  %21883 = vmatprep.mubr.msk.bf16.mxu0 %vm911_vm4, %v29025_v1  ;;  %22595 = vmatprep.subr.bf16.mxu1 %v29040_v36  ;;  %v29067_v61 = vpack.c.bf16 %v29063_v33, %v29061_v49 }
 0x559   :  { %9114 = vst.msk [vmem:[#allocation8 + $0x1f0] sm:$0xff] %vm4543_vm5, %v9049_v47  ;;  %4575 = vst.msk [vmem:[#allocation8 + $0xf8] sm:$0xff] %vm4543_vm5, %v4510_v16  ;;  %v9050_v32 = vmax.f32 %v8986_v50, 0.0  ;;  %22474 = vmatmul.mubr.msk.bf16.gmra.mrb[72].mxu1 %vm911_vm4, %v29017_v42  ;;  %v29071_v47 = vld [vmem:[#allocation2 + $0x320] sm:$0xff]  ;;  %v29073_v16 = vld [vmem:[#allocation2 + $0x328] sm:$0xff] }
 0x55a   :  { %9112 = vst.msk [vmem:[#allocation8 + $0x1e0] sm:$0xff] %vm4543_vm5, %v9047_v29  ;;  %4573 = vst.msk [vmem:[#allocation8 + $0xe8] sm:$0xff] %vm4543_vm5, %v4508_v11  ;;  %v9048_v55 = vmax.f32 %v8984_v63, 0.0  ;;  %v21179_v56 = vpop.f32.mrb[32].mxu0  ;;  %22477 = vmatprep.mubr.msk.bf16.mxu1 %vm911_vm4, %v29035_v41  ;;  %v29077_v50 = vpack.c.bf16 %v29073_v16, %v29071_v47 }
 0x55b   :  { %9115 = vst.msk [vmem:[#allocation8 + $0x1f8] sm:$0xff] %vm4543_vm5, %v9050_v32  ;;  %v4449_v14 = vadd.f32 %v21179_v56, %v28626_v43  ;;  %v4218_v4 = vpop.f32.mrb[33].mxu0  ;;  %33117 = vst [vmem:[#allocation23_spill] sm:$0xff] %v29067_v61 }
 0x55c   :  { %9113 = vst.msk [vmem:[#allocation8 + $0x1e8] sm:$0xff] %vm4543_vm5, %v9048_v55  ;;  %v21773_v63 = vpop.f32.mrb[32].mxu1  ;;  %v4447_v53 = vadd.f32 %v28626_v43, %v4218_v4  ;;  %v21180_v15 = vpop.f32.mrb[34].mxu0  ;;  %33118 = vst [vmem:[#allocation24_spill] sm:$0xff] %v29077_v50  ;;  %v29081_v55 = vld [vmem:[#allocation2 + $0x448] sm:$0xff] }
 0x55d   :  { %v4513_v29 = vmax.f32 %v4449_v14, 0.0  ;;  %v8989_v11 = vadd.f32 %v21773_v63, %v28626_v43  ;;  %v8764_v32 = vpop.f32.mrb[33].mxu1  ;;  %v4450_v56 = vadd.f32 %v21180_v15, %v28626_v43  ;;  %v4221_v13 = vpop.f32.mrb[35].mxu0  ;;  %v29087_v4 = vpack.c.bf16 %v29083_v30, %v29081_v55  ;;  %v29093_v63 = vld [vmem:[#allocation2 + $0x468] sm:$0xff] }
 0x55e   :  { %v4511_v28 = vmax.f32 %v4447_v53, 0.0  ;;  %v8987_v10 = vadd.f32 %v28626_v43, %v8764_v32  ;;  %v21774_v21 = vpop.f32.mrb[34].mxu1  ;;  %v4448_v14 = vadd.f32 %v28626_v43, %v4221_v13  ;;  %v29097_v15 = vpack.c.bf16 %v29093_v63, %v29091_v24 }
 0x55f   :  { %33119 = vst [vmem:[#allocation25_spill] sm:$0xff] %v29087_v4  ;;  %4578 = vst.msk [vmem:[#allocation8 + $0x410] sm:$0xff] %vm4543_vm5, %v4513_v29  ;;  %v9053_v7 = vmax.f32 %v8989_v11, 0.0  ;;  %v4514_v25 = vmax.f32 %v4450_v56, 0.0  ;;  %v8990_v41 = vadd.f32 %v21774_v21, %v28626_v43  ;;  %v8767_v53 = vpop.f32.mrb[35].mxu1  ;;  %21884 = vmatmul.mubr.msk.bf16.gmra.mrb[76].mxu0 %vm911_vm4, %v29067_v61  ;;  %v29117_v11 = vld [vmem:[#allocation2 + $0x330] sm:$0xff] }
 0x560   :  { %33120 = vst [vmem:[#allocation26_spill] sm:$0xff] %v29097_v15  ;;  %4576 = vst.msk [vmem:[#allocation8 + $0x400] sm:$0xff] %vm4543_vm5, %v4511_v28  ;;  %v9051_v13 = vmax.f32 %v8987_v10, 0.0  ;;  %v4512_v32 = vmax.f32 %v4448_v14, 0.0  ;;  %v8988_v42 = vadd.f32 %v28626_v43, %v8767_v53  ;;  %21887 = vmatprep.mubr.msk.bf16.mxu0 %vm911_vm4, %v29077_v50  ;;  %v29127_v53 = vld [vmem:[#allocation2 + $0x348] sm:$0xff]  ;;  %v29139_v61 = vld [vmem:[#allocation2 + $0x478] sm:$0xff] }
 0x561   :  { %9118 = vst.msk [vmem:[#allocation8 + $0x510] sm:$0xff] %vm4543_vm5, %v9053_v7  ;;  %4579 = vst.msk [vmem:[#allocation8 + $0x418] sm:$0xff] %vm4543_vm5, %v4514_v25  ;;  %v9054_v29 = vmax.f32 %v8990_v41, 0.0  ;;  %22478 = vmatmul.mubr.msk.bf16.gmra.mrb[76].mxu1 %vm911_vm4, %v29087_v4  ;;  %v29119_v25 = vld [vmem:[#allocation2 + $0x338] sm:$0xff] }
 0x562   :  { %9116 = vst.msk [vmem:[#allocation8 + $0x500] sm:$0xff] %vm4543_vm5, %v9051_v13  ;;  %4577 = vst.msk [vmem:[#allocation8 + $0x408] sm:$0xff] %vm4543_vm5, %v4512_v32  ;;  %v9052_v21 = vmax.f32 %v8988_v42, 0.0  ;;  %v21183_v10 = vpop.f32.mrb[36].mxu0  ;;  %22481 = vmatprep.mubr.msk.bf16.mxu1 %vm911_vm4, %v29097_v15  ;;  %v29123_v41 = vpack.c.bf16 %v29119_v25, %v29117_v11  ;;  %v29129_v13 = vld [vmem:[#allocation2 + $0x350] sm:$0xff] }
 0x563   :  { %9119 = vst.msk [vmem:[#allocation8 + $0x518] sm:$0xff] %vm4543_vm5, %v9054_v29  ;;  %v4453_v28 = vadd.f32 %v21183_v10, %v28626_v43  ;;  %v4234_v7 = vpop.f32.mrb[37].mxu0  ;;  %v29133_v32 = vpack.c.bf16 %v29129_v13, %v29127_v53  ;;  %33123 = vst [vmem:[#allocation29_spill] sm:$0xff] %v29139_v61 }
 0x564   :  { %33121 = vst [vmem:[#allocation27_spill] sm:$0xff] %v29123_v41  ;;  %9117 = vst.msk [vmem:[#allocation8 + $0x508] sm:$0xff] %vm4543_vm5, %v9052_v21  ;;  %v21777_v42 = vpop.f32.mrb[36].mxu1  ;;  %v4451_v56 = vadd.f32 %v28626_v43, %v4234_v7  ;;  %v21184_v14 = vpop.f32.mrb[38].mxu0  ;;  %v29137_v21 = vld [vmem:[#allocation2 + $0x470] sm:$0xff] }
 0x565   :  { %33122 = vst [vmem:[#allocation28_spill] sm:$0xff] %v29133_v32  ;;  %v4517_v29 = vmax.f32 %v4453_v28, 0.0  ;;  %v8993_v10 = vadd.f32 %v21777_v42, %v28626_v43  ;;  %v8780_v15 = vpop.f32.mrb[37].mxu1  ;;  %v4454_v4 = vadd.f32 %v21184_v14, %v28626_v43  ;;  %v4237_v50 = vpop.f32.mrb[39].mxu0  ;;  %v29143_v7 = vpack.c.bf16 %v29139_v61, %v29137_v21  ;;  %v29149_v42 = vld [vmem:[#allocation2 + $0x490] sm:$0xff] }
 0x566   :  { %v4515_v1 = vmax.f32 %v4451_v56, 0.0  ;;  %v8991_v19 = vadd.f32 %v28626_v43, %v8780_v15  ;;  %v21778_v44 = vpop.f32.mrb[38].mxu1  ;;  %v4452_v28 = vadd.f32 %v28626_v43, %v4237_v50  ;;  %33126 = vst [vmem:[#allocation32_spill] sm:$0xff] %v29149_v42  ;;  %v29153_v14 = vpack.c.bf16 %v29149_v42, %v29147_v27  ;;  %v29201_v42 = vld [vmem:[#allocation7] ss:$0 sm:$0xff] }
 0x567   :  { %33124 = vst [vmem:[#allocation30_spill] sm:$0xff] %v29143_v7  ;;  %4582 = vst.msk [vmem:[#allocation8 + $0x430] sm:$0xff] %vm4543_vm5, %v4517_v29  ;;  %v9057_v46 = vmax.f32 %v8993_v10, 0.0  ;;  %v4518_v38 = vmax.f32 %v4454_v4, 0.0  ;;  %v8994_v34 = vadd.f32 %v21778_v44, %v28626_v43  ;;  %v8783_v56 = vpop.f32.mrb[39].mxu1  ;;  %21888 = vmatmul.mubr.msk.bf16.gmra.mrb[80].mxu0 %vm911_vm4, %v29123_v41  ;;  %v29173_v29 = vld [vmem:[#allocation2 + $0x358] sm:$0xff] }
 0x568   :  { %33127 = vst [vmem:[#allocation33_spill] sm:$0xff] %v29153_v14  ;;  %4580 = vst.msk [vmem:[#allocation8 + $0x420] sm:$0xff] %vm4543_vm5, %v4515_v1  ;;  %v9055_v50 = vmax.f32 %v8991_v19, 0.0  ;;  %v4516_v15 = vmax.f32 %v4452_v28, 0.0  ;;  %v8992_v62 = vadd.f32 %v28626_v43, %v8783_v56  ;;  %21891 = vmatprep.mubr.msk.bf16.mxu0 %vm911_vm4, %v29133_v32  ;;  %v29183_v56 = vld [vmem:[#allocation2 + $0x370] sm:$0xff]  ;;  %v29195_v41 = vld [vmem:[#allocation2 + $0x4a0] sm:$0xff] }
 0x569   :  { %9122 = vst.msk [vmem:[#allocation8 + $0x530] sm:$0xff] %vm4543_vm5, %v9057_v46  ;;  %4583 = vst.msk [vmem:[#allocation8 + $0x438] sm:$0xff] %vm4543_vm5, %v4518_v38  ;;  %v9058_v4 = vmax.f32 %v8994_v34, 0.0  ;;  %22482 = vmatmul.mubr.msk.bf16.gmra.mrb[80].mxu1 %vm911_vm4, %v29143_v7  ;;  %v29175_v34 = vld [vmem:[#allocation2 + $0x360] sm:$0xff] }
 0x56a   :  { %9120 = vst.msk [vmem:[#allocation8 + $0x520] sm:$0xff] %vm4543_vm5, %v9055_v50  ;;  %4581 = vst.msk [vmem:[#allocation8 + $0x428] sm:$0xff] %vm4543_vm5, %v4516_v15  ;;  %v9056_v44 = vmax.f32 %v8992_v62, 0.0  ;;  %v21187_v19 = vpop.f32.mrb[40].mxu0  ;;  %22485 = vmatprep.mubr.msk.bf16.mxu1 %vm911_vm4, %v29153_v14  ;;  %v29179_v38 = vpack.c.bf16 %v29175_v34, %v29173_v29  ;;  %v29185_v50 = vld [vmem:[#allocation2 + $0x378] sm:$0xff] }
 0x56b   :  { %9123 = vst.msk [vmem:[#allocation8 + $0x538] sm:$0xff] %vm4543_vm5, %v9058_v4  ;;  %v4457_v1 = vadd.f32 %v21187_v19, %v28626_v43  ;;  %v4250_v46 = vpop.f32.mrb[41].mxu0  ;;  %33128 = vst [vmem:[#allocation34_spill] sm:$0xff] %v29175_v34  ;;  %v29189_v15 = vpack.c.bf16 %v29185_v50, %v29183_v56 }
 0x56c   :  { %33129 = vst [vmem:[#allocation35_spill] sm:$0xff] %v29179_v38  ;;  %9121 = vst.msk [vmem:[#allocation8 + $0x528] sm:$0xff] %vm4543_vm5, %v9056_v44  ;;  %v21781_v62 = vpop.f32.mrb[40].mxu1  ;;  %v4455_v10 = vadd.f32 %v28626_v43, %v4250_v46  ;;  %v21188_v28 = vpop.f32.mrb[42].mxu0  ;;  %v29193_v44 = vld [vmem:[#allocation2 + $0x498] sm:$0xff] }
 0x56d   :  { %33130 = vst [vmem:[#allocation36_spill] sm:$0xff] %v29183_v56  ;;  %33131 = vst [vmem:[#allocation37_spill] sm:$0xff] %v29185_v50  ;;  %v4521_v4 = vmax.f32 %v4457_v1, 0.0  ;;  %v8997_v19 = vadd.f32 %v21781_v62, %v28626_v43  ;;  %v8796_v14 = vpop.f32.mrb[41].mxu1  ;;  %v4458_v7 = vadd.f32 %v21188_v28, %v28626_v43  ;;  %v4253_v32 = vpop.f32.mrb[43].mxu0  ;;  %v29199_v46 = vpack.c.bf16 %v29195_v41, %v29193_v44  ;;  %v29205_v56 = vld [vmem:[#allocation2 + $0x4b0] sm:$0xff] }
 0x56e   :  { %33132 = vst [vmem:[#allocation38_spill] sm:$0xff] %v29189_v15  ;;  %33133 = vst [vmem:[#allocation40_spill] sm:$0xff] %v29193_v44  ;;  %v4519_v34 = vmax.f32 %v4455_v10, 0.0  ;;  %v8995_v50 = vadd.f32 %v29201_v42, %v8796_v14  ;;  %v21782_v1 = vpop.f32.mrb[42].mxu1  ;;  %v4456_v62 = vadd.f32 %v29201_v42, %v4253_v32  ;;  %v29207_v43 = vld [vmem:[#allocation2 + $0x4b8] sm:$0xff] }
 0x56f   :  { %33134 = vst [vmem:[#allocation126_spill] sm:$0xff] %v29195_v41  ;;  %33135 = vst [vmem:[#allocation49_spill] sm:$0xff] %v29199_v46  ;;  %v29211_v28 = vpack.c.bf16 %v29207_v43, %v29205_v56  ;;  %v9061_v41 = vmax.f32 %v8997_v19, 0.0  ;;  %v4522_v44 = vmax.f32 %v4458_v7, 0.0  ;;  %v8998_v10 = vadd.f32 %v29201_v42, %v21782_v1  ;;  %v8799_v27 = vpop.f32.mrb[43].mxu1  ;;  %21892 = vmatmul.mubr.msk.bf16.gmra.mrb[84].mxu0 %vm911_vm4, %v29179_v38  ;;  %v29233_v19 = vld [vmem:[#allocation2 + $0x388] sm:$0xff] }
 0x570   :  { %33136 = vst [vmem:[#allocation82_spill] sm:$0xff] %v29205_v56  ;;  %33137 = vst [vmem:[#allocation84_spill] sm:$0xff] %v29207_v43  ;;  %v9059_v32 = vmax.f32 %v8995_v50, 0.0  ;;  %v4520_v14 = vmax.f32 %v4456_v62, 0.0  ;;  %v8996_v61 = vadd.f32 %v29201_v42, %v8799_v27  ;;  %21895 = vmatprep.mubr.msk.bf16.mxu0 %vm911_vm4, %v29189_v15  ;;  %v29253_v38 = vld [vmem:[#allocation2 + $0x4c8] sm:$0xff] }
 0x571   :  { %33138 = vst [vmem:[#allocation89_spill] sm:$0xff] %v29211_v28  ;;  %4586 = vst.msk [vmem:[#allocation8 + $0x450] sm:$0xff] %vm4543_vm5, %v4521_v4  ;;  %v9062_v7 = vmax.f32 %v8998_v10, 0.0  ;;  %22486 = vmatmul.mubr.msk.bf16.gmra.mrb[84].mxu1 %vm911_vm4, %v29199_v46  ;;  %v29231_v4 = vld [vmem:[#allocation2 + $0x380] sm:$0xff]  ;;  %v29241_v10 = vld [vmem:[#allocation2 + $0x398] sm:$0xff] }
 0x572   :  { %4584 = vst.msk [vmem:[#allocation8 + $0x440] sm:$0xff] %vm4543_vm5, %v4519_v34  ;;  %9126 = vst.msk [vmem:[#allocation8 + $0x550] sm:$0xff] %vm4543_vm5, %v9061_v41  ;;  %v9060_v34 = vmax.f32 %v8996_v61, 0.0  ;;  %v21191_v50 = vpop.f32.mrb[44].mxu0  ;;  %22489 = vmatprep.mubr.msk.bf16.mxu1 %vm911_vm4, %v29211_v28 }
 0x573   :  { %4587 = vst.msk [vmem:[#allocation8 + $0x458] sm:$0xff] %vm4543_vm5, %v4522_v44  ;;  %9124 = vst.msk [vmem:[#allocation8 + $0x540] sm:$0xff] %vm4543_vm5, %v9059_v32  ;;  %v4461_v27 = vadd.f32 %v29201_v42, %v21191_v50  ;;  %v4266_v41 = vpop.f32.mrb[45].mxu0  ;;  %v29237_v44 = vpack.c.bf16 %v29233_v19, %v29231_v4  ;;  %v29243_v32 = vld [vmem:[#allocation2 + $0x3a0] sm:$0xff] }
 0x574   :  { %4585 = vst.msk [vmem:[#allocation8 + $0x448] sm:$0xff] %vm4543_vm5, %v4520_v14  ;;  %9127 = vst.msk [vmem:[#allocation8 + $0x558] sm:$0xff] %vm4543_vm5, %v9062_v7  ;;  %v21785_v61 = vpop.f32.mrb[44].mxu1  ;;  %v4459_v1 = vadd.f32 %v29201_v42, %v4266_v41  ;;  %v21192_v62 = vpop.f32.mrb[46].mxu0  ;;  %v29247_v14 = vpack.c.bf16 %v29243_v32, %v29241_v10 }
 0x575   :  { %33139 = vst [vmem:[#allocation93_spill] sm:$0xff] %v29231_v4  ;;  %33140 = vst [vmem:[#allocation94_spill] sm:$0xff] %v29233_v19  ;;  %v4525_v7 = vmax.f32 %v4461_v27, 0.0  ;;  %v9001_v50 = vadd.f32 %v29201_v42, %v21785_v61  ;;  %v8812_v28 = vpop.f32.mrb[45].mxu1  ;;  %v4462_v46 = vadd.f32 %v29201_v42, %v21192_v62  ;;  %v4269_v15 = vpop.f32.mrb[47].mxu0  ;;  %v29263_v61 = vld [vmem:[#allocation2 + $0x4e0] sm:$0xff] }
 0x576   :  { %33141 = vst [vmem:[#allocation99_spill] sm:$0xff] %v29237_v44  ;;  %9125 = vst.msk [vmem:[#allocation8 + $0x548] sm:$0xff] %vm4543_vm5, %v9060_v34  ;;  %v29251_v34 = vld [vmem:[#allocation2 + $0x4c0] sm:$0xff]  ;;  %v4523_v19 = vmax.f32 %v4459_v1, 0.0  ;;  %v8999_v43 = vadd.f32 %v29201_v42, %v8812_v28  ;;  %v4460_v27 = vadd.f32 %v29201_v42, %v4269_v15 }
 0x577   :  { %33142 = vst [vmem:[#allocation101_spill] sm:$0xff] %v29241_v10  ;;  %33143 = vst [vmem:[#allocation105_spill] sm:$0xff] %v29243_v32  ;;  %v29257_v41 = vpack.c.bf16 %v29253_v38, %v29251_v34  ;;  %v21786_v32 = vpop.f32.mrb[46].mxu1  ;;  %v29261_v10 = vld [vmem:[#allocation2 + $0x4d8] sm:$0xff]  ;;  %v9065_v56 = vmax.f32 %v9001_v50, 0.0  ;;  %v4526_v4 = vmax.f32 %v4462_v46, 0.0  ;;  %21896 = vmatmul.mubr.msk.bf16.gmra.mrb[88].mxu0 %vm911_vm4, %v29237_v44 }
 0x578   :  { %33144 = vst [vmem:[#allocation106_spill] sm:$0xff] %v29247_v14  ;;  %33145 = vst [vmem:[#allocation109_spill] sm:$0xff] %v29251_v34  ;;  %v29267_v62 = vpack.c.bf16 %v29263_v61, %v29261_v10  ;;  %v8815_v1 = vpop.f32.mrb[47].mxu1  ;;  %v9063_v15 = vmax.f32 %v8999_v43, 0.0  ;;  %v4524_v28 = vmax.f32 %v4460_v27, 0.0  ;;  %21899 = vmatprep.mubr.msk.bf16.mxu0 %vm911_vm4, %v29247_v14  ;;  %v29305_v44 = vld [vmem:[#allocation2 + $0x4e8] sm:$0xff] }
 0x579   :  { %33146 = vst [vmem:[#allocation111_spill] sm:$0xff] %v29253_v38  ;;  %33147 = vst [vmem:[#allocation115_spill] sm:$0xff] %v29257_v41  ;;  %v9002_v38 = vadd.f32 %v29201_v42, %v21786_v32  ;;  %v9000_v34 = vadd.f32 %v29201_v42, %v8815_v1  ;;  %22490 = vmatmul.mubr.msk.bf16.gmra.mrb[88].mxu1 %vm911_vm4, %v29257_v41  ;;  %v29297_v1 = vld [vmem:[#allocation2 + $0x7d0] sm:$0xff] }
 0x57a   :  { %33148 = vst [vmem:[#allocation116_spill] sm:$0xff] %v29261_v10  ;;  %33149 = vst [vmem:[#allocation117_spill] sm:$0xff] %v29263_v61  ;;  %v21195_v43 = vpop.f32.mrb[48].mxu0  ;;  %22493 = vmatprep.mubr.msk.bf16.mxu1 %vm911_vm4, %v29267_v62 }
 0x57b   :  { %33150 = vst [vmem:[#allocation118_spill] sm:$0xff] %v29267_v62  ;;  %4590 = vst.msk [vmem:[#allocation8 + $0x470] sm:$0xff] %vm4543_vm5, %v4525_v7  ;;  %v9066_v46 = vmax.f32 %v9002_v38, 0.0  ;;  %v4465_v32 = vadd.f32 %v29201_v42, %v21195_v43  ;;  %v29287_v7 = vld [vmem:[#allocation2 + $0x3a8] sm:$0xff]  ;;  %v29289_v38 = vld [vmem:[#allocation2 + $0x3b0] sm:$0xff] }
 0x57c   :  { %4588 = vst.msk [vmem:[#allocation8 + $0x460] sm:$0xff] %vm4543_vm5, %v4523_v19  ;;  %9130 = vst.msk [vmem:[#allocation8 + $0x570] sm:$0xff] %vm4543_vm5, %v9065_v56  ;;  %v9064_v19 = vmax.f32 %v9000_v34, 0.0  ;;  %v4282_v56 = vpop.f32.mrb[49].mxu0  ;;  %v21789_v50 = vpop.f32.mrb[48].mxu1 }
 0x57d   :  { %4591 = vst.msk [vmem:[#allocation8 + $0x478] sm:$0xff] %vm4543_vm5, %v4526_v4  ;;  %9128 = vst.msk [vmem:[#allocation8 + $0x560] sm:$0xff] %vm4543_vm5, %v9063_v15  ;;  %v29293_v4 = vpack.c.bf16 %v29289_v38, %v29287_v7  ;;  %v4463_v34 = vadd.f32 %v29201_v42, %v4282_v56  ;;  %v21196_v27 = vpop.f32.mrb[50].mxu0  ;;  %v29299_v15 = vld [vmem:[#allocation2 + $0x7d8] sm:$0xff]  ;;  %v9005_v43 = vadd.f32 %v29201_v42, %v21789_v50  ;;  %v8828_v62 = vpop.f32.mrb[49].mxu1 }
 0x57e   :  { %4589 = vst.msk [vmem:[#allocation8 + $0x468] sm:$0xff] %vm4543_vm5, %v4524_v28  ;;  %9131 = vst.msk [vmem:[#allocation8 + $0x578] sm:$0xff] %vm4543_vm5, %v9066_v46  ;;  %v9265_v28 = vpack.c.bf16 %v29299_v15, %v29297_v1  ;;  %v4529_v46 = vmax.f32 %v4465_v32, 0.0  ;;  %v4466_v41 = vadd.f32 %v29201_v42, %v21196_v27  ;;  %v4285_v14 = vpop.f32.mrb[51].mxu0  ;;  %v9003_v61 = vadd.f32 %v29201_v42, %v8828_v62  ;;  %v21790_v10 = vpop.f32.mrb[50].mxu1  ;;  %v29317_v50 = vld [vmem:[#allocation2 + $0x918] sm:$0xff] }
 0x57f   :  { %33151 = vst [vmem:[#allocation119_spill] sm:$0xff] %v29287_v7  ;;  %33152 = vst [vmem:[#allocation169_spill] sm:$0xff] %v29289_v38  ;;  %v4527_v38 = vmax.f32 %v4463_v34, 0.0  ;;  %v4464_v32 = vadd.f32 %v29201_v42, %v4285_v14  ;;  %21900 = vmatmul.mubr.msk.bf16.gmra.mrb[92].mxu0 %vm911_vm4, %v29293_v4 }
 0x580   :  { %33153 = vst [vmem:[#allocation122_spill] sm:$0xff] %v29293_v4  ;;  %9129 = vst.msk [vmem:[#allocation8 + $0x568] sm:$0xff] %vm4543_vm5, %v9064_v19  ;;  %v29307_v19 = vld [vmem:[#allocation2 + $0x4f0] sm:$0xff]  ;;  %v4530_v7 = vmax.f32 %v4466_v41, 0.0  ;;  %v9067_v14 = vmax.f32 %v9003_v61, 0.0  ;;  %21903 = vmatprep.mubr.msk.bf16.mxu0 %vm911_vm4, %v9265_v28  ;;  %v29357_v4 = vld [vmem:[#allocation2 + $0x928] sm:$0xff] }
 0x581   :  { %33154 = vst [vmem:[#allocation68_spill] sm:$0xff] %v29297_v1  ;;  %33155 = vst [vmem:[#allocation76_spill] sm:$0xff] %v29299_v15  ;;  %v29311_v56 = vpack.c.bf16 %v29307_v19, %v29305_v44  ;;  %v29315_v15 = vld [vmem:[#allocation2 + $0x910] sm:$0xff]  ;;  %v9069_v1 = vmax.f32 %v9005_v43, 0.0  ;;  %v4528_v62 = vmax.f32 %v4464_v32, 0.0  ;;  %v29345_v32 = vld [vmem:[#allocation2 + $0x7f8] sm:$0xff] }
 0x582   :  { %33156 = vst [vmem:[#allocation77_spill] sm:$0xff] %v29305_v44  ;;  %33157 = vst [vmem:[#allocation79_spill] sm:$0xff] %v29307_v19  ;;  %v13805_v27 = vpack.c.bf16 %v29317_v50, %v29315_v15  ;;  %v9006_v19 = vadd.f32 %v29201_v42, %v21790_v10  ;;  %v8831_v44 = vpop.f32.mrb[51].mxu1  ;;  %v21199_v41 = vpop.f32.mrb[52].mxu0 }
 0x583   :  { %33158 = vst [vmem:[#allocation74_spill] sm:$0xff] %v29311_v56  ;;  %33159 = vst [vmem:[#allocation83_spill] sm:$0xff] %v29315_v15  ;;  %v9004_v34 = vadd.f32 %v29201_v42, %v8831_v44  ;;  %22494 = vmatmul.mubr.msk.bf16.gmra.mrb[92].mxu1 %vm911_vm4, %v29311_v56  ;;  %v4469_v44 = vadd.f32 %v29201_v42, %v21199_v41  ;;  %v4298_v61 = vpop.f32.mrb[53].mxu0 }
 0x584   :  { %33160 = vst [vmem:[#allocation85_spill] sm:$0xff] %v29317_v50  ;;  %4594 = vst.msk [vmem:[#allocation8 + $0x490] sm:$0xff] %vm4543_vm5, %v4529_v46  ;;  %v9070_v46 = vmax.f32 %v9006_v19, 0.0  ;;  %22497 = vmatprep.mubr.msk.bf16.mxu1 %vm911_vm4, %v13805_v27  ;;  %v21793_v28 = vpop.f32.mrb[52].mxu1  ;;  %v4467_v43 = vadd.f32 %v29201_v42, %v4298_v61  ;;  %v21200_v19 = vpop.f32.mrb[54].mxu0  ;;  %v29347_v27 = vld [vmem:[#allocation2 + $0x800] sm:$0xff] }
 0x585   :  { %4592 = vst.msk [vmem:[#allocation8 + $0x480] sm:$0xff] %vm4543_vm5, %v4527_v38  ;;  %9134 = vst.msk [vmem:[#allocation8 + $0x590] sm:$0xff] %vm4543_vm5, %v9069_v1  ;;  %v9068_v10 = vmax.f32 %v9004_v34, 0.0  ;;  %v29337_v38 = vld [vmem:[#allocation2 + $0x7e0] sm:$0xff]  ;;  %v9009_v34 = vadd.f32 %v29201_v42, %v21793_v28  ;;  %v4470_v41 = vadd.f32 %v29201_v42, %v21200_v19  ;;  %v4301_v56 = vpop.f32.mrb[55].mxu0 }
 0x586   :  { %4595 = vst.msk [vmem:[#allocation8 + $0x498] sm:$0xff] %vm4543_vm5, %v4530_v7  ;;  %9132 = vst.msk [vmem:[#allocation8 + $0x580] sm:$0xff] %vm4543_vm5, %v9067_v14  ;;  %v29339_v7 = vld [vmem:[#allocation2 + $0x7e8] sm:$0xff]  ;;  %v29351_v14 = vpack.c.bf16 %v29347_v27, %v29345_v32  ;;  %v29365_v28 = vld [vmem:[#allocation2 + $0x940] sm:$0xff] }
 0x587   :  { %4593 = vst.msk [vmem:[#allocation8 + $0x488] sm:$0xff] %vm4543_vm5, %v4528_v62  ;;  %9135 = vst.msk [vmem:[#allocation8 + $0x598] sm:$0xff] %vm4543_vm5, %v9070_v46  ;;  %v9266_v1 = vpack.c.bf16 %v29339_v7, %v29337_v38  ;;  %v4533_v62 = vmax.f32 %v4469_v44, 0.0  ;;  %v8844_v46 = vpop.f32.mrb[53].mxu1  ;;  %v29363_v44 = vld [vmem:[#allocation2 + $0x938] sm:$0xff] }
 0x588   :  { %33161 = vst [vmem:[#allocation86_spill] sm:$0xff] %v29337_v38  ;;  %33162 = vst [vmem:[#allocation80_spill] sm:$0xff] %v29339_v7  ;;  %v4531_v7 = vmax.f32 %v4467_v43, 0.0  ;;  %v9007_v50 = vadd.f32 %v29201_v42, %v8844_v46  ;;  %v21794_v15 = vpop.f32.mrb[54].mxu1  ;;  %v29369_v19 = vpack.c.bf16 %v29365_v28, %v29363_v44  ;;  %v4534_v38 = vmax.f32 %v4470_v41, 0.0 }
 0x589   :  { %9133 = vst.msk [vmem:[#allocation8 + $0x588] sm:$0xff] %vm4543_vm5, %v9068_v10  ;;  %33163 = vst [vmem:[#allocation88_spill] sm:$0xff] %v29345_v32  ;;  %v29355_v10 = vld [vmem:[#allocation2 + $0x920] sm:$0xff]  ;;  %v9073_v32 = vmax.f32 %v9009_v34, 0.0  ;;  %v8847_v43 = vpop.f32.mrb[55].mxu1  ;;  %21904 = vmatmul.mubr.msk.bf16.gmra.mrb[96].mxu0 %vm911_vm4, %v9266_v1 }
 0x58a   :  { %33164 = vst [vmem:[#allocation90_spill] sm:$0xff] %v29347_v27  ;;  %33165 = vst [vmem:[#allocation91_spill] sm:$0xff] %v29351_v14  ;;  %v13806_v61 = vpack.c.bf16 %v29357_v4, %v29355_v10  ;;  %v4468_v27 = vadd.f32 %v29201_v42, %v4301_v56  ;;  %v9071_v56 = vmax.f32 %v9007_v50, 0.0  ;;  %21907 = vmatprep.mubr.msk.bf16.mxu0 %vm911_vm4, %v29351_v14  ;;  %v29409_v14 = vld [vmem:[#allocation2 + $0x950] sm:$0xff] }
 0x58b   :  { %33166 = vst [vmem:[#allocation87_spill] sm:$0xff] %v29355_v10  ;;  %33167 = vst [vmem:[#allocation95_spill] sm:$0xff] %v29357_v4  ;;  %v9010_v4 = vadd.f32 %v29201_v42, %v21794_v15  ;;  %v9008_v10 = vadd.f32 %v29201_v42, %v8847_v43 }
 0x58c   :  { %33168 = vst [vmem:[#allocation96_spill] sm:$0xff] %v29363_v44  ;;  %33169 = vst [vmem:[#allocation97_spill] sm:$0xff] %v29365_v28  ;;  %v4532_v46 = vmax.f32 %v4468_v27, 0.0  ;;  %22498 = vmatmul.mubr.msk.bf16.gmra.mrb[96].mxu1 %vm911_vm4, %v13806_v61  ;;  %v21797_v27 = vpop.f32.mrb[56].mxu1  ;;  %v29399_v61 = vld [vmem:[#allocation2 + $0x828] sm:$0xff] }
 0x58d   :  { %33170 = vst [vmem:[#allocation92_spill] sm:$0xff] %v29369_v19  ;;  %4598 = vst.msk [vmem:[#allocation8 + $0x4b0] sm:$0xff] %vm4543_vm5, %v4533_v62  ;;  %v9074_v62 = vmax.f32 %v9010_v4, 0.0  ;;  %v9072_v15 = vmax.f32 %v9008_v10, 0.0  ;;  %22501 = vmatprep.mubr.msk.bf16.mxu1 %vm911_vm4, %v29369_v19  ;;  %v29397_v10 = vld [vmem:[#allocation2 + $0x820] sm:$0xff] }
 0x58e   :  { %4596 = vst.msk [vmem:[#allocation8 + $0x4a0] sm:$0xff] %vm4543_vm5, %v4531_v7  ;;  %9138 = vst.msk [vmem:[#allocation8 + $0x5b0] sm:$0xff] %vm4543_vm5, %v9073_v32  ;;  %v21203_v7 = vpop.f32.mrb[56].mxu0  ;;  %v29387_v32 = vld [vmem:[#allocation2 + $0x808] sm:$0xff]  ;;  %v29403_v43 = vpack.c.bf16 %v29399_v61, %v29397_v10 }
 0x58f   :  { %4599 = vst.msk [vmem:[#allocation8 + $0x4b8] sm:$0xff] %vm4543_vm5, %v4534_v38  ;;  %9136 = vst.msk [vmem:[#allocation8 + $0x5a0] sm:$0xff] %vm4543_vm5, %v9071_v56  ;;  %v4473_v50 = vadd.f32 %v29201_v42, %v21203_v7  ;;  %v4314_v1 = vpop.f32.mrb[57].mxu0  ;;  %v29389_v38 = vld [vmem:[#allocation2 + $0x810] sm:$0xff] }
 0x590   :  { %4597 = vst.msk [vmem:[#allocation8 + $0x4a8] sm:$0xff] %vm4543_vm5, %v4532_v46  ;;  %9139 = vst.msk [vmem:[#allocation8 + $0x5b8] sm:$0xff] %vm4543_vm5, %v9074_v62  ;;  %v29393_v4 = vpack.c.bf16 %v29389_v38, %v29387_v32  ;;  %v4471_v34 = vadd.f32 %v29201_v42, %v4314_v1  ;;  %v21204_v41 = vpop.f32.mrb[58].mxu0  ;;  %v9013_v46 = vadd.f32 %v29201_v42, %v21797_v27  ;;  %v8860_v62 = vpop.f32.mrb[57].mxu1  ;;  %v29419_v27 = vld [vmem:[#allocation2 + $0x968] sm:$0xff] }
 0x591   :  { %33171 = vst [vmem:[#allocation100_spill] sm:$0xff] %v29387_v32  ;;  %33172 = vst [vmem:[#allocation102_spill] sm:$0xff] %v29389_v38  ;;  %v4537_v56 = vmax.f32 %v4473_v50, 0.0  ;;  %v4474_v7 = vadd.f32 %v29201_v42, %v21204_v41  ;;  %v4317_v19 = vpop.f32.mrb[59].mxu0  ;;  %v9011_v28 = vadd.f32 %v29201_v42, %v8860_v62 }
 0x592   :  { %33173 = vst [vmem:[#allocation103_spill] sm:$0xff] %v29393_v4  ;;  %9137 = vst.msk [vmem:[#allocation8 + $0x5a8] sm:$0xff] %vm4543_vm5, %v9072_v15  ;;  %v29407_v15 = vld [vmem:[#allocation2 + $0x948] sm:$0xff]  ;;  %v4535_v38 = vmax.f32 %v4471_v34, 0.0  ;;  %v4472_v50 = vadd.f32 %v29201_v42, %v4317_v19  ;;  %v9077_v44 = vmax.f32 %v9013_v46, 0.0  ;;  %21908 = vmatmul.mubr.msk.bf16.gmra.mrb[100].mxu0 %vm911_vm4, %v29393_v4  ;;  %v29443_v46 = vld [vmem:[#allocation2 + $0x830] sm:$0xff] }
 0x593   :  { %33174 = vst [vmem:[#allocation98_spill] sm:$0xff] %v29397_v10  ;;  %33175 = vst [vmem:[#allocation107_spill] sm:$0xff] %v29399_v61  ;;  %v29413_v1 = vpack.c.bf16 %v29409_v14, %v29407_v15  ;;  %v21798_v61 = vpop.f32.mrb[58].mxu1  ;;  %v29417_v10 = vld [vmem:[#allocation2 + $0x960] sm:$0xff]  ;;  %v4538_v32 = vmax.f32 %v4474_v7, 0.0  ;;  %v9075_v19 = vmax.f32 %v9011_v28, 0.0  ;;  %21911 = vmatprep.mubr.msk.bf16.mxu0 %vm911_vm4, %v29403_v43 }
 0x594   :  { %33176 = vst [vmem:[#allocation15_spill] sm:$0xff] %v29403_v43  ;;  %33177 = vst [vmem:[#allocation104_spill] sm:$0xff] %v29407_v15  ;;  %v29423_v41 = vpack.c.bf16 %v29419_v27, %v29417_v10  ;;  %v8863_v34 = vpop.f32.mrb[59].mxu1  ;;  %v4536_v62 = vmax.f32 %v4472_v50, 0.0  ;;  %v21207_v28 = vpop.f32.mrb[60].mxu0  ;;  %v29465_v4 = vld [vmem:[#allocation2 + $0x978] sm:$0xff] }
 0x595   :  { %33178 = vst [vmem:[#allocation16_spill] sm:$0xff] %v29409_v14  ;;  %33179 = vst [vmem:[#allocation17_spill] sm:$0xff] %v29413_v1  ;;  %v9014_v14 = vadd.f32 %v29201_v42, %v21798_v61  ;;  %v9012_v15 = vadd.f32 %v29201_v42, %v8863_v34  ;;  %22502 = vmatmul.mubr.msk.bf16.gmra.mrb[100].mxu1 %vm911_vm4, %v29413_v1  ;;  %v4477_v61 = vadd.f32 %v29201_v42, %v21207_v28  ;;  %v21801_v7 = vpop.f32.mrb[60].mxu1  ;;  %v29453_v34 = vld [vmem:[#allocation2 + $0x848] sm:$0xff] }
 0x596   :  { %33180 = vst [vmem:[#allocation19_spill] sm:$0xff] %v29417_v10  ;;  %33181 = vst [vmem:[#allocation112_spill] sm:$0xff] %v29419_v27  ;;  %22505 = vmatprep.mubr.msk.bf16.mxu1 %vm911_vm4, %v29423_v41  ;;  %v9017_v28 = vadd.f32 %v29201_v42, %v21801_v7  ;;  %v29475_v7 = vld [vmem:[#allocation2 + $0x990] sm:$0xff] }
 0x597   :  { %33182 = vst [vmem:[#allocation108_spill] sm:$0xff] %v29423_v41  ;;  %4602 = vst.msk [vmem:[#allocation8 + $0x4d0] sm:$0xff] %vm4543_vm5, %v4537_v56  ;;  %v9078_v56 = vmax.f32 %v9014_v14, 0.0  ;;  %v29445_v14 = vld [vmem:[#allocation2 + $0x838] sm:$0xff]  ;;  %v8876_v41 = vpop.f32.mrb[61].mxu1 }
 0x598   :  { %4600 = vst.msk [vmem:[#allocation8 + $0x4c0] sm:$0xff] %vm4543_vm5, %v4535_v38  ;;  %9142 = vst.msk [vmem:[#allocation8 + $0x5d0] sm:$0xff] %vm4543_vm5, %v9077_v44  ;;  %v9076_v38 = vmax.f32 %v9012_v15, 0.0  ;;  %v4330_v44 = vpop.f32.mrb[61].mxu0  ;;  %v9015_v27 = vadd.f32 %v29201_v42, %v8876_v41  ;;  %v9081_v10 = vmax.f32 %v9017_v28, 0.0  ;;  %v29517_v28 = vld [vmem:[#allocation2 + $0x9a0] sm:$0xff] }
 0x599   :  { %4603 = vst.msk [vmem:[#allocation8 + $0x4d8] sm:$0xff] %vm4543_vm5, %v4538_v32  ;;  %9140 = vst.msk [vmem:[#allocation8 + $0x5c0] sm:$0xff] %vm4543_vm5, %v9075_v19  ;;  %v29449_v32 = vpack.c.bf16 %v29445_v14, %v29443_v46  ;;  %v4475_v15 = vadd.f32 %v29201_v42, %v4330_v44  ;;  %v21208_v50 = vpop.f32.mrb[62].mxu0  ;;  %v29455_v19 = vld [vmem:[#allocation2 + $0x850] sm:$0xff] }
 0x59a   :  { %4601 = vst.msk [vmem:[#allocation8 + $0x4c8] sm:$0xff] %vm4543_vm5, %v4536_v62  ;;  %9143 = vst.msk [vmem:[#allocation8 + $0x5d8] sm:$0xff] %vm4543_vm5, %v9078_v56  ;;  %v29459_v62 = vpack.c.bf16 %v29455_v19, %v29453_v34  ;;  %v4541_v56 = vmax.f32 %v4477_v61, 0.0  ;;  %v4478_v1 = vadd.f32 %v29201_v42, %v21208_v50  ;;  %v4333_v43 = vpop.f32.mrb[63].mxu0 }
 0x59b   :  { %33183 = vst [vmem:[#allocation114_spill] sm:$0xff] %v29443_v46  ;;  %33184 = vst [vmem:[#allocation13_spill] sm:$0xff] %v29445_v14  ;;  %v4539_v14 = vmax.f32 %v4475_v15, 0.0  ;;  %v4476_v61 = vadd.f32 %v29201_v42, %v4333_v43  ;;  %21912 = vmatmul.mubr.msk.bf16.gmra.mrb[104].mxu0 %vm911_vm4, %v29449_v32  ;;  %v9079_v43 = vmax.f32 %v9015_v27, 0.0  ;;  %v29500_v27 = vld [vmem:[#allocation2 + $0x860] sm:$0xff] }
 0x59c   :  { %33185 = vst [vmem:[#allocation125_spill] sm:$0xff] %v29449_v32  ;;  %9141 = vst.msk [vmem:[#allocation8 + $0x5c8] sm:$0xff] %vm4543_vm5, %v9076_v38  ;;  %v29463_v38 = vld [vmem:[#allocation2 + $0x970] sm:$0xff]  ;;  %v4542_v46 = vmax.f32 %v4478_v1, 0.0  ;;  %21915 = vmatprep.mubr.msk.bf16.mxu0 %vm911_vm4, %v29459_v62  ;;  %v29565_v32 = vld [vmem:[#allocation2 + $0x9e0] sm:$0xff] }
 0x59d   :  { %33186 = vst [vmem:[#allocation14_spill] sm:$0xff] %v29453_v34  ;;  %33187 = vst [vmem:[#allocation130_spill] sm:$0xff] %v29455_v19  ;;  %v29469_v44 = vpack.c.bf16 %v29465_v4, %v29463_v38  ;;  %v21802_v19 = vpop.f32.mrb[62].mxu1  ;;  %v29473_v34 = vld [vmem:[#allocation2 + $0x988] sm:$0xff]  ;;  %v4540_v41 = vmax.f32 %v4476_v61, 0.0  ;;  %v29523_v61 = vld [vmem:[#allocation2 + $0x9b0] sm:$0xff] }
 0x59e   :  { %33188 = vst [vmem:[#allocation12_spill] sm:$0xff] %v29459_v62  ;;  %33189 = vst [vmem:[#allocation131_spill] sm:$0xff] %v29463_v38  ;;  %v29479_v50 = vpack.c.bf16 %v29475_v7, %v29473_v34  ;;  %v8879_v15 = vpop.f32.mrb[63].mxu1  ;;  %v29563_v62 = vld [vmem:[#allocation2 + $0x9d8] sm:$0xff] }
 0x59f   :  { %33190 = vst [vmem:[#allocation133_spill] sm:$0xff] %v29465_v4  ;;  %33191 = vst [vmem:[#allocation134_spill] sm:$0xff] %v29469_v44  ;;  %v9018_v4 = vadd.f32 %v29201_v42, %v21802_v19  ;;  %v9016_v38 = vadd.f32 %v29201_v42, %v8879_v15  ;;  %22506 = vmatmul.mubr.msk.bf16.gmra.mrb[104].mxu1 %vm911_vm4, %v29469_v44  ;;  %v29498_v42 = vld [vmem:[#allocation2 + $0x858] sm:$0xff]  ;;  %v29557_v44 = vld [vmem:[#allocation2 + $0x9c8] sm:$0xff] }
 0x5a0   :  { %33192 = vst [vmem:[#allocation141_spill] sm:$0xff] %v29479_v50  ;;  %4606 = vst.msk [vmem:[#allocation8 + $0x4f0] sm:$0xff] %vm4543_vm5, %v4541_v56  ;;  %22509 = vmatprep.mubr.msk.bf16.mxu1 %vm911_vm4, %v29479_v50  ;;  %v29515_v56 = vld [vmem:[#allocation2 + $0x998] sm:$0xff] }
 0x5a1   :  { %4604 = vst.msk [vmem:[#allocation8 + $0x4e0] sm:$0xff] %vm4543_vm5, %v4539_v14  ;;  %9146 = vst.msk [vmem:[#allocation8 + $0x5f0] sm:$0xff] %vm4543_vm5, %v9081_v10  ;;  %v9082_v1 = vmax.f32 %v9018_v4, 0.0  ;;  %v9080_v14 = vmax.f32 %v9016_v38, 0.0  ;;  %v29504_v4 = vpack.c.bf16 %v29500_v27, %v29498_v42  ;;  %v29507_v10 = vld [vmem:[#allocation2 + $0x870] sm:$0xff]  ;;  %v29521_v38 = vpack.c.bf16 %v29517_v28, %v29515_v56  ;;  %v29525_v15 = vld [vmem:[#allocation2 + $0x9b8] sm:$0xff] }
 0x5a2   :  { %4607 = vst.msk [vmem:[#allocation8 + $0x4f8] sm:$0xff] %vm4543_vm5, %v4542_v46  ;;  %9144 = vst.msk [vmem:[#allocation8 + $0x5e0] sm:$0xff] %vm4543_vm5, %v9079_v43  ;;  %v29509_v46 = vld [vmem:[#allocation2 + $0x878] sm:$0xff]  ;;  %v29529_v43 = vpack.c.bf16 %v29525_v15, %v29523_v61 }
 0x5a3   :  { %4605 = vst.msk [vmem:[#allocation8 + $0x4e8] sm:$0xff] %vm4543_vm5, %v4540_v41  ;;  %9147 = vst.msk [vmem:[#allocation8 + $0x5f8] sm:$0xff] %vm4543_vm5, %v9082_v1  ;;  %v29513_v19 = vpack.c.bf16 %v29509_v46, %v29507_v10  ;;  %21916 = vmatmul.mubr.msk.bf16.gmra.mrb[108].mxu0 %vm911_vm4, %v29504_v4  ;;  %v29539_v41 = vld [vmem:[#allocation2 + $0x880] sm:$0xff]  ;;  %v29541_v1 = vld [vmem:[#allocation2 + $0x888] sm:$0xff] }
 0x5a4   :  { %33193 = vst [vmem:[#allocation136_spill] sm:$0xff] %v29500_v27  ;;  %33194 = vst [vmem:[#allocation138_spill] sm:$0xff] %v29504_v4  ;;  %v29547_v50 = vld [vmem:[#allocation2 + $0x898] sm:$0xff]  ;;  %v29549_v4 = vld [vmem:[#allocation2 + $0x8a0] sm:$0xff]  ;;  %v9611_v27 = vrot.slane %v28899_v48, 2 }
 0x5a5   :  { %9145 = vst.msk [vmem:[#allocation8 + $0x5e8] sm:$0xff] %vm4543_vm5, %v9080_v14  ;;  %33195 = vst [vmem:[#allocation139_spill] sm:$0xff] %v29507_v10  ;;  %21919 = vmatprep.mubr.msk.bf16.mxu0 %vm911_vm4, %v29513_v19  ;;  %v29545_v14 = vpack.c.bf16 %v29541_v1, %v29539_v41  ;;  %v9610_v10 = vrot.slane %v28897_v31, 2 }
 0x5a6   :  { %33196 = vst [vmem:[#allocation142_spill] sm:$0xff] %v29509_v46  ;;  %33197 = vst [vmem:[#allocation144_spill] sm:$0xff] %v29513_v19  ;;  %v29553_v19 = vpack.c.bf16 %v29549_v4, %v29547_v50 }
 0x5a7   :  { %33198 = vst [vmem:[#allocation145_spill] sm:$0xff] %v29517_v28  ;;  %33199 = vst [vmem:[#allocation147_spill] sm:$0xff] %v29521_v38  ;;  %22510 = vmatmul.mubr.msk.bf16.gmra.mrb[108].mxu1 %vm911_vm4, %v29521_v38  ;;  %v29555_v38 = vld [vmem:[#allocation2 + $0x9c0] sm:$0xff]  ;;  %v29644_v28 = vld [vmem:[#allocation2 + $0xa28] sm:$0xff] }
 0x5a8   :  { %33200 = vst [vmem:[#allocation149_spill] sm:$0xff] %v29523_v61  ;;  %33201 = vst [vmem:[#allocation150_spill] sm:$0xff] %v29525_v15  ;;  %22513 = vmatprep.mubr.msk.bf16.mxu1 %vm911_vm4, %v29529_v43  ;;  %v9604_v61 = vrot.slane %v28889_v20, 2 }
 0x5a9   :  { %33202 = vst [vmem:[#allocation152_spill] sm:$0xff] %v29529_v43  ;;  %33203 = vst [vmem:[#allocation154_spill] sm:$0xff] %v29539_v41  ;;  %v29561_v43 = vpack.c.bf16 %v29557_v44, %v29555_v38  ;;  %v29646_v41 = vld [vmem:[#allocation2 + $0xa30] sm:$0xff] }
 0x5aa   :  { %33204 = vst [vmem:[#allocation18_spill] sm:$0xff] %v29541_v1  ;;  %33205 = vst [vmem:[#allocation156_spill] sm:$0xff] %v29545_v14  ;;  %v29569_v1 = vpack.c.bf16 %v29565_v32, %v29563_v62 }
 0x5ab   :  { %33206 = vst [vmem:[#allocation41_spill] sm:$0xff] %v29547_v50  ;;  %33207 = vst [vmem:[#allocation47_spill] sm:$0xff] %v29549_v4  ;;  %21920 = vmatmul.mubr.msk.bf16.gmra.mrb[112].mxu0 %vm911_vm4, %v29545_v14  ;;  %v29581_v4 = vld [vmem:[#allocation2 + $0x8b0] sm:$0xff]  ;;  %v29589_v14 = vld [vmem:[#allocation2 + $0x8c8] sm:$0xff] }
 0x5ac   :  { %33208 = vst [vmem:[#allocation57_spill] sm:$0xff] %v29553_v19  ;;  %33209 = vst [vmem:[#allocation170_spill] sm:$0xff] %v29555_v38  ;;  %21923 = vmatprep.mubr.msk.bf16.mxu0 %vm911_vm4, %v29553_v19  ;;  %v29597_v50 = vld [vmem:[#allocation2 + $0x9f0] sm:$0xff]  ;;  %v29603_v38 = vld [vmem:[#allocation2 + $0xa00] sm:$0xff] }
 0x5ad   :  { %33210 = vst [vmem:[#allocation171_spill] sm:$0xff] %v29557_v44  ;;  %33211 = vst [vmem:[#allocation172_spill] sm:$0xff] %v29561_v43  ;;  %v29579_v44 = vld [vmem:[#allocation2 + $0x8a8] sm:$0xff] }
 0x5ae   :  { %33212 = vst [vmem:[#allocation173_spill] sm:$0xff] %v29563_v62  ;;  %33213 = vst [vmem:[#allocation174_spill] sm:$0xff] %v29565_v32  ;;  %v29585_v32 = vpack.c.bf16 %v29581_v4, %v29579_v44  ;;  %v29587_v62 = vld [vmem:[#allocation2 + $0x8c0] sm:$0xff] }
 0x5af   :  { %33214 = vst [vmem:[#allocation175_spill] sm:$0xff] %v29569_v1  ;;  %22514 = vmatmul.mubr.msk.bf16.gmra.mrb[112].mxu1 %vm911_vm4, %v29561_v43  ;;  %33215 = vst [vmem:[#allocation176_spill] sm:$0xff] %v29579_v44  ;;  %v29593_v19 = vpack.c.bf16 %v29589_v14, %v29587_v62  ;;  %v29595_v43 = vld [vmem:[#allocation2 + $0x9e8] sm:$0xff] }
 0x5b0   :  { %22517 = vmatprep.mubr.msk.bf16.mxu1 %vm911_vm4, %v29569_v1  ;;  %33216 = vst [vmem:[#allocation177_spill] sm:$0xff] %v29581_v4  ;;  %33217 = vst [vmem:[#allocation178_spill] sm:$0xff] %v29585_v32  ;;  %v29601_v1 = vpack.c.bf16 %v29597_v50, %v29595_v43  ;;  %v29605_v4 = vld [vmem:[#allocation2 + $0xa08] sm:$0xff] }
 0x5b1   :  { %33218 = vst [vmem:[#allocation179_spill] sm:$0xff] %v29587_v62  ;;  %33219 = vst [vmem:[#allocation180_spill] sm:$0xff] %v29589_v14  ;;  %v29609_v44 = vpack.c.bf16 %v29605_v4, %v29603_v38  ;;  %v29621_v14 = vld [vmem:[#allocation2 + $0x8d8] sm:$0xff] }
 0x5b2   :  { %33220 = vst [vmem:[#allocation181_spill] sm:$0xff] %v29593_v19  ;;  %33221 = vst [vmem:[#allocation182_spill] sm:$0xff] %v29595_v43  ;;  %v29637_v62 = vld [vmem:[#allocation2 + $0xa18] sm:$0xff]  ;;  %v25355_v43 = vld [vmem:[#allocation2 + $0x280] sm:$0xff] }
 0x5b3   :  { %33222 = vst [vmem:[#allocation183_spill] sm:$0xff] %v29597_v50  ;;  %33223 = vst [vmem:[#allocation184_spill] sm:$0xff] %v29601_v1  ;;  %21924 = vmatmul.mubr.msk.bf16.gmra.mrb[116].mxu0 %vm911_vm4, %v29585_v32  ;;  %v29619_v50 = vld [vmem:[#allocation2 + $0x8d0] sm:$0xff]  ;;  %v9601_v15 = vrot.slane %v25355_v43, 2  ;;  %v14144_v43 = vrot.slane %v28907_v5, 2  ;;  %v29673_v5 = vld [vmem:[#allocation2 + $0xa38] sm:$0xff] }
 0x5b4   :  { %33224 = vst [vmem:[#allocation185_spill] sm:$0xff] %v29603_v38  ;;  %33225 = vst [vmem:[#allocation186_spill] sm:$0xff] %v29605_v4  ;;  %21927 = vmatprep.mubr.msk.bf16.mxu0 %vm911_vm4, %v29593_v19  ;;  %v29625_v4 = vpack.c.bf16 %v29621_v14, %v29619_v50  ;;  %v29627_v38 = vld [vmem:[#allocation2 + $0x8e8] sm:$0xff]  ;;  %v29629_v32 = vld [vmem:[#allocation2 + $0x8f0] sm:$0xff] }
 0x5b5   :  { %33226 = vst [vmem:[#allocation187_spill] sm:$0xff] %v29609_v44  ;;  %33227 = vst [vmem:[#allocation188_spill] sm:$0xff] %v29619_v50  ;;  %v29633_v19 = vpack.c.bf16 %v29629_v32, %v29627_v38 }
 0x5b6   :  { %33228 = vst [vmem:[#allocation189_spill] sm:$0xff] %v29621_v14  ;;  %33229 = vst [vmem:[#allocation190_spill] sm:$0xff] %v29625_v4  ;;  %v25356_v14 = vld [vmem:[#allocation2 + $0x288] sm:$0xff] }
 0x5b7   :  { %22518 = vmatmul.mubr.msk.bf16.gmra.mrb[116].mxu1 %vm911_vm4, %v29601_v1  ;;  %33230 = vst [vmem:[#allocation191_spill] sm:$0xff] %v29627_v38  ;;  %33231 = vst [vmem:[#allocation192_spill] sm:$0xff] %v29629_v32  ;;  %v29635_v1 = vld [vmem:[#allocation2 + $0xa10] sm:$0xff]  ;;  %v9602_v50 = vrot.slane %v25356_v14, 2  ;;  %v29650_v32 = vpack.c.bf16 %v29646_v41, %v29644_v28  ;;  %v14142_v38 = vrot.slane %v28869_v0, 2 }
 0x5b8   :  { %22521 = vmatprep.mubr.msk.bf16.mxu1 %vm911_vm4, %v29609_v44  ;;  %33232 = vst [vmem:[#allocation193_spill] sm:$0xff] %v29633_v19  ;;  %33233 = vst [vmem:[#allocation194_spill] sm:$0xff] %v29635_v1  ;;  %v29641_v44 = vpack.c.bf16 %v29637_v62, %v29635_v1  ;;  %v25363_v1 = vld [vmem:[#allocation2 + $0x2a0] sm:$0x3] }
 0x5b9   :  { %33234 = vst [vmem:[#allocation195_spill] sm:$0xff] %v29637_v62  ;;  %33236 = vst [vmem:[#allocation197_spill] sm:$0xff] %v29644_v28  ;;  %v14141_v62 = vrot.slane %v28867_v58, 2  ;;  %v9603_v20 = vsel %vm509_vm3, %v9601_v15, %v9602_v50  ;;  %v9605_v14 = vsel %vm509_vm3, %v9602_v50, %v9604_v61  ;;  %v29667_v58 = vld [vmem:[#allocation2 + $0x900] sm:$0xff]  ;;  %v14146_v28 = vrot.slane %v28909_v26, 2 }
 0x5ba   :  { %33235 = vst [vmem:[#allocation196_spill] sm:$0xff] %v29641_v44  ;;  %33237 = vst [vmem:[#allocation198_spill] sm:$0xff] %v29646_v41  ;;  %v9809_v41 = vpack.c.bf16 %v9605_v14, %v9603_v20  ;;  %v14153_v26 = vrot.slane %v28951_v60, 2 }
 0x5bb   :  { %33238 = vst [vmem:[#allocation199_spill] sm:$0xff] %v29650_v32  ;;  %21928 = vmatmul.mubr.msk.bf16.gmra.mrb[120].mxu0 %vm911_vm4, %v29625_v4  ;;  %v29665_v4 = vld [vmem:[#allocation2 + $0x8f8] sm:$0xff]  ;;  %33240 = vst [vmem:[#allocation201_spill] sm:$0xff] %v29667_v58  ;;  %v14143_v50 = vsel %vm509_vm3, %v14141_v62, %v14142_v38  ;;  %v14150_v62 = vrot.slane %v28915_v39, 2  ;;  %v14147_v48 = vsel %vm509_vm3, %v14144_v43, %v14146_v28 }
 0x5bc   :  { %21931 = vmatprep.mubr.msk.bf16.mxu0 %vm911_vm4, %v29633_v19  ;;  %33239 = vst [vmem:[#allocation200_spill] sm:$0xff] %v29665_v4  ;;  %v29671_v0 = vpack.c.bf16 %v29667_v58, %v29665_v4  ;;  %33242 = vst [vmem:[#allocation203_spill] sm:$0xff] %v29673_v5  ;;  %v29675_v19 = vld [vmem:[#allocation2 + $0xa40] sm:$0xff]  ;;  %v9608_v58 = vrot.slane %v25363_v1, 2 }
 0x5bd   :  { %33243 = vst [vmem:[#allocation204_spill] sm:$0xff] %v29675_v19  ;;  %v29679_v15 = vpack.c.bf16 %v29675_v19, %v29673_v5  ;;  %v25364_v4 = vld [vmem:[#allocation2 + $0x3e0] sm:$0x3]  ;;  %v9613_v19 = vrot.slane %v28941_v54, 2 }
 0x5be   :  { %33241 = vst [vmem:[#allocation202_spill] sm:$0xff] %v29671_v0  ;;  %v14148_v46 = vrot.slane %v25364_v4, 2 }
 0x5bf   :  { %22522 = vmatmul.mubr.msk.bf16.gmra.mrb[120].mxu1 %vm911_vm4, %v29641_v44  ;;  %33244 = vst [vmem:[#allocation205_spill] sm:$0xff] %v29679_v15  ;;  %v9606_v44 = vrot.slane %v28891_v6, 2  ;;  %v14151_v6 = vrot.slane %v28917_v3, 2  ;;  %v9614_v39 = vsel %vm509_vm3, %v9611_v27, %v9613_v19  ;;  %v9615_v3 = vrot.slane %v28943_v40, 2 }
 0x5c0   :  { %22525 = vmatprep.mubr.msk.bf16.mxu1 %vm911_vm4, %v29650_v32  ;;  %v14145_v32 = vsel %vm509_vm3, %v14142_v38, %v14144_v43  ;;  %v14149_v54 = vsel %vm509_vm3, %v14146_v28, %v14148_v46  ;;  %v14155_v46 = vrot.slane %v28953_v17, 2  ;;  %v25366_v28 = vld [vmem:[#allocation2 + $0x408] sm:$0x3]  ;;  %v9620_v43 = vrot.slane %v28961_v35, 2 }
 0x5c1   :  { %v14349_v5 = vpack.c.bf16 %v14145_v32, %v14143_v50  ;;  %v9607_v38 = vsel %vm509_vm3, %v9604_v61, %v9606_v44  ;;  %v9609_v31 = vsel %vm509_vm3, %v9606_v44, %v9608_v58  ;;  %v9612_v32 = vsel %vm509_vm3, %v9610_v10, %v9611_v27  ;;  %v25365_v61 = vld [vmem:[#allocation2 + $0x2c8] sm:$0x3] }
 0x5c2   :  { %v9810_v60 = vpack.c.bf16 %v9609_v31, %v9607_v38  ;;  %v14152_v4 = vsel %vm509_vm3, %v14150_v62, %v14151_v6  ;;  %v14154_v44 = vsel %vm509_vm3, %v14151_v6, %v14153_v26  ;;  %v14350_v1 = vpack.c.bf16 %v14149_v54, %v14147_v48  ;;  %v25068_v6 = vld [vmem:[#allocation5 + $0x4] ss:$0 sps:$4 sm:$0xcc]  }
 0x5c3   :  { %21932 = vmatmul.mubr.msk.bf16.gmra.mrb[124].mxu0 %vm911_vm4, %v29671_v0  ;;  %v29706_v20 = vpack.c.bf16 %v9614_v39, %v9612_v32  ;;  %v14157_v10 = vrot.slane %v25366_v28, 2  ;;  %v9619_v27 = vrot.slane %v28959_v23, 2  ;;  %v9622_v40 = vrot.slane %v29001_v45, 2 }
 0x5c4   :  { %21937 = vmatprep.mubr.msk.bf16.mxu0 %vm911_vm4, %v9809_v41  ;;  %v9617_v41 = vrot.slane %v25365_v61, 2  ;;  %v29712_v14 = vpack.c.bf16 %v14154_v44, %v14152_v4  ;;  %v9616_v58 = vsel %vm509_vm3, %v9613_v19, %v9615_v3  ;;  %v14159_v50 = vrot.slane %v28967_v18, 2 }
 0x5c5   :  { %v14160_v17 = vrot.slane %v28969_v57, 2  ;;  %v14162_v62 = vrot.slane %v29011_v2, 2  ;;  %v14156_v23 = vsel %vm509_vm3, %v14153_v26, %v14155_v46  ;;  %v14158_v35 = vsel %vm509_vm3, %v14155_v46, %v14157_v10  ;;  %v25069_v57 = vld [vmem:[#allocation5 + $0x4] ss:$0 sps:$4 sm:$0xcc]  }
 0x5c6   :  { %v9621_v45 = vsel %vm509_vm3, %v9619_v27, %v9620_v43  ;;  %v9623_v18 = vsel %vm509_vm3, %v9620_v43, %v9622_v40  ;;  %v11621_v19 = vrot.slane %v25068_v6, 2  ;;  %v16161_v31 = vrot.slane %v25069_v57, 2 }
 0x5c7   :  { %22526 = vmatmul.mubr.msk.bf16.gmra.mrb[124].mxu1 %vm911_vm4, %v29679_v15  ;;  %v14161_v2 = vsel %vm509_vm3, %v14159_v50, %v14160_v17  ;;  %v14163_v26 = vsel %vm509_vm3, %v14160_v17, %v14162_v62  ;;  %v29738_v48 = vpack.c.bf16 %v14158_v35, %v14156_v23  ;;  %v29740_v54 = vpack.c.bf16 %v9623_v18, %v9621_v45  ;;  %v25370_v18 = vld [vmem:[#allocation2 + $0x458] sm:$0x3] }
 0x5c8   :  { %22531 = vmatprep.mubr.msk.bf16.mxu1 %vm911_vm4, %v14349_v5  ;;  %v9618_v5 = vsel %vm509_vm3, %v9615_v3, %v9617_v41  ;;  %v29736_v38 = vand.u32 %v11621_v19, %v32684_v9  ;;  %v9624_v32 = vrot.slane %v29003_v51, 2  ;;  %v9628_v3 = vrot.slane %v29019_v37, 2 }
 0x5c9   :  { %v9631_v4 = vrot.slane %v29061_v49, 2  ;;  %v29748_v44 = vand.u32 %v16161_v31, %v32684_v9  ;;  %v29750_v61 = vpack.c.bf16 %v14163_v26, %v14161_v2  ;;  %v14164_v41 = vrot.slane %v29013_v59, 2 }
 0x5ca   :  { %v14168_v51 = vrot.slane %v29029_v52, 2  ;;  %v14169_v37 = vrot.slane %v29031_v8, 2  ;;  %v9625_v49 = vsel %vm509_vm3, %v9622_v40, %v9624_v32  ;;  %v9637_v6 = vrot.slane %v29071_v47, 2 }
 0x5cb   :  { %21938 = vmatmul.mubr.msk.bf16.vlgmr.msra.gmra.mrb[64].mxu0 %vm911_vm4, %v9810_v60  ;;  %v9629_v60 = vrot.slane %v29021_v22, 2  ;;  %33245 = vst [vmem:[#allocation206_spill] sm:$0xff] %v29750_v61  ;;  %v14171_v22 = vrot.slane %v29081_v55, 2  ;;  %v14165_v8 = vsel %vm509_vm3, %v14162_v62, %v14164_v41  ;;  %v9638_v62 = vrot.slane %v29073_v16, 2 }
 0x5cc   :  { %22002 = vmatpush3.bf16.msra.mxu0 %v28984_v12  ;;  %21941 = vmatprep.mubr.msk.bf16.mxu0 %vm911_vm4, %v29706_v20  ;;  %v29731_v12 = vpack.c.bf16 %v9618_v5, %v9616_v58  ;;  %v14170_v27 = vsel %vm509_vm3, %v14168_v51, %v14169_v37  ;;  %v9633_v58 = vrot.slane %v29063_v33, 2  ;;  %v25369_v5 = vld [vmem:[#allocation2 + $0x318] sm:$0x3]  ;;  %v9640_v23 = vrot.slane %v29117_v11, 2  ;;  %v33254_v51 = vld [vmem:[#allocation29_spill] sm:$0xff] }
 0x5cd   :  { %22067 = vmatprep.subr.bf16.mxu0 %v29736_v38  ;;  %v9630_v28 = vsel %vm509_vm3, %v9628_v3, %v9629_v60  ;;  %v9632_v52 = vsel %vm509_vm3, %v9629_v60, %v9631_v4  ;;  %v14172_v43 = vsel %vm509_vm3, %v14169_v37, %v14171_v22  ;;  %v9635_v50 = vrot.slane %v25369_v5, 2 }
 0x5ce   :  { %v29775_v40 = vpack.c.bf16 %v9632_v52, %v9630_v28  ;;  %v29783_v35 = vpack.c.bf16 %v14172_v43, %v14170_v27  ;;  %v14173_v45 = vrot.slane %v29083_v30, 2  ;;  %v14175_v19 = vrot.slane %v25370_v18, 2  ;;  %v33256_v28 = vld [vmem:[#allocation32_spill] sm:$0xff]  ;;  %v25373_v18 = vld [vmem:[#allocation2 + $0x368] sm:$0x3] }
 0x5cf   :  { %22532 = vmatmul.mubr.msk.bf16.vlgmr.msra.gmra.mrb[64].mxu1 %vm911_vm4, %v14350_v1  ;;  %v25368_v1 = vld [vmem:[#allocation2 + $0x430] sm:$0x3]  ;;  %v14177_v33 = vrot.slane %v29091_v24, 2  ;;  %v14178_v57 = vrot.slane %v29093_v63, 2  ;;  %v14180_v2 = vrot.slane %v29137_v21, 2  ;;  %v9634_v47 = vsel %vm509_vm3, %v9631_v4, %v9633_v58 }
 0x5d0   :  { %22596 = vmatpush3.bf16.msra.mxu1 %v29040_v36  ;;  %22535 = vmatprep.mubr.msk.bf16.mxu1 %vm911_vm4, %v29712_v14  ;;  %v25367_v36 = vld [vmem:[#allocation2 + $0x2f0] sm:$0x3]  ;;  %v14166_v46 = vrot.slane %v25368_v1, 2  ;;  %33247 = vst [vmem:[#allocation208_spill] sm:$0xff] %v29775_v40  ;;  %33249 = vst [vmem:[#allocation210_spill] sm:$0xff] %v29783_v35  ;;  %v9636_v16 = vsel %vm509_vm3, %v9633_v58, %v9635_v50  ;;  %v9639_v30 = vsel %vm509_vm3, %v9637_v6, %v9638_v62 }
 0x5d1   :  { %v9626_v39 = vrot.slane %v25367_v36, 2  ;;  %22661 = vmatprep.subr.bf16.mxu1 %v29748_v44  ;;  %v9641_v11 = vsel %vm509_vm3, %v9638_v62, %v9640_v23  ;;  %v14174_v24 = vsel %vm509_vm3, %v14171_v22, %v14173_v45  ;;  %v14176_v63 = vsel %vm509_vm3, %v14173_v45, %v14175_v19  ;;  %v25372_v22 = vld [vmem:[#allocation2 + $0x480] sm:$0x3] }
 0x5d2   :  { %v14167_v55 = vsel %vm509_vm3, %v14164_v41, %v14166_v46  ;;  %v29803_v21 = vpack.c.bf16 %v9636_v16, %v9634_v47  ;;  %v14179_v26 = vsel %vm509_vm3, %v14177_v33, %v14178_v57  ;;  %v14181_v31 = vsel %vm509_vm3, %v14178_v57, %v14180_v2  ;;  %v33262_v57 = vld [vmem:[#allocation36_spill] sm:$0xff]  ;;  %v33263_v16 = vld [vmem:[#allocation37_spill] sm:$0xff] }
 0x5d3   :  { %21942 = vmatmul.mubr.msk.bf16.gmra.mrb[68].mxu0 %vm911_vm4, %v29731_v12  ;;  %v9627_v59 = vsel %vm509_vm3, %v9624_v32, %v9626_v39  ;;  %v29778_v17 = vpack.c.bf16 %v14167_v55, %v14165_v8  ;;  %v29807_v32 = vpack.c.bf16 %v9641_v11, %v9639_v30  ;;  %v9642_v36 = vrot.slane %v29119_v25, 2  ;;  %v25371_v39 = vld [vmem:[#allocation2 + $0x340] sm:$0x3]  ;;  %v33255_v25 = vld [vmem:[#allocation31_spill] sm:$0xff]  ;;  %v33257_v8 = vld [vmem:[#allocation40_spill] sm:$0xff] }
 0x5d4   :  { %21945 = vmatprep.mubr.msk.bf16.mxu0 %vm911_vm4, %v29740_v54  ;;  %v29771_v10 = vpack.c.bf16 %v9627_v59, %v9625_v49  ;;  %33250 = vst [vmem:[#allocation211_spill] sm:$0xff] %v29803_v21  ;;  %v9644_v3 = vrot.slane %v25371_v39, 2  ;;  %v29810_v60 = vpack.c.bf16 %v14176_v63, %v14174_v24  ;;  %v9646_v4 = vrot.slane %v29127_v53, 2  ;;  %v33264_v30 = vld [vmem:[#allocation93_spill] sm:$0xff]  ;;  %v33266_v63 = vld [vmem:[#allocation126_spill] sm:$0xff] }
 0x5d5   :  { %33248 = vst [vmem:[#allocation209_spill] sm:$0xff] %v29778_v17  ;;  %33251 = vst [vmem:[#allocation212_spill] sm:$0xff] %v29807_v32  ;;  %v9647_v41 = vrot.slane %v29129_v13, 2  ;;  %v9649_v1 = vrot.slane %v29173_v29, 2  ;;  %v29815_v46 = vpack.c.bf16 %v14181_v31, %v14179_v26  ;;  %v14182_v37 = vrot.slane %v33254_v51, 2  ;;  %v33267_v39 = vld [vmem:[#allocation82_spill] sm:$0xff] }
 0x5d6   :  { %33246 = vst [vmem:[#allocation207_spill] sm:$0xff] %v29771_v10  ;;  %33252 = vst [vmem:[#allocation213_spill] sm:$0xff] %v29810_v60  ;;  %v14184_v49 = vrot.slane %v25372_v22, 2  ;;  %v14186_v59 = vrot.slane %v33255_v25, 2  ;;  %v14187_v52 = vrot.slane %v33256_v28, 2  ;;  %v14189_v55 = vrot.slane %v33257_v8, 2 }
 0x5d7   :  { %22536 = vmatmul.mubr.msk.bf16.gmra.mrb[68].mxu1 %vm911_vm4, %v29738_v48  ;;  %33253 = vst [vmem:[#allocation214_spill] sm:$0xff] %v29815_v46  ;;  %v9643_v53 = vsel %vm509_vm3, %v9640_v23, %v9642_v36  ;;  %v9645_v13 = vsel %vm509_vm3, %v9642_v36, %v9644_v3  ;;  %v9648_v29 = vsel %vm509_vm3, %v9646_v4, %v9647_v41  ;;  %v33260_v23 = vld [vmem:[#allocation34_spill] sm:$0xff]  ;;  %v9653_v19 = vrot.slane %v25373_v18, 2  ;;  %v33268_v4 = vld [vmem:[#allocation84_spill] sm:$0xff]  ;;  %v33269_v51 = vld [vmem:[#allocation109_spill] sm:$0xff] }
 0x5d8   :  { %22539 = vmatprep.mubr.msk.bf16.mxu1 %vm911_vm4, %v29750_v61  ;;  %v9650_v27 = vsel %vm509_vm3, %v9647_v41, %v9649_v1  ;;  %v14183_v43 = vsel %vm509_vm3, %v14180_v2, %v14182_v37  ;;  %v14185_v58 = vsel %vm509_vm3, %v14182_v37, %v14184_v49  ;;  %v29835_v5 = vpack.c.bf16 %v9645_v13, %v9643_v53  ;;  %v25374_v31 = vld [vmem:[#allocation2 + $0x4a8] sm:$0x3]  ;;  %v33276_v18 = vld [vmem:[#allocation119_spill] sm:$0xff] }
 0x5d9   :  { %v14188_v50 = vsel %vm509_vm3, %v14186_v59, %v14187_v52  ;;  %v14190_v6 = vsel %vm509_vm3, %v14187_v52, %v14189_v55  ;;  %v29839_v62 = vpack.c.bf16 %v9650_v27, %v9648_v29  ;;  %v9651_v45 = vrot.slane %v33260_v23, 2  ;;  %v33272_v29 = vld [vmem:[#allocation94_spill] sm:$0xff] }
 0x5da   :  { %33258 = vst [vmem:[#allocation29_spill] sm:$0xff] %v29835_v5  ;;  %v29842_v33 = vpack.c.bf16 %v14185_v58, %v14183_v43  ;;  %v9655_v47 = vrot.slane %v33262_v57, 2  ;;  %v9656_v2 = vrot.slane %v33263_v16, 2  ;;  %v9658_v11 = vrot.slane %v33264_v30, 2  ;;  %v25375_v43 = vld [vmem:[#allocation2 + $0x390] sm:$0x3] }
 0x5db   :  { %21946 = vmatmul.mubr.msk.bf16.gmra.mrb[72].mxu0 %vm911_vm4, %v29771_v10  ;;  %33259 = vst [vmem:[#allocation31_spill] sm:$0xff] %v29839_v62  ;;  %v29847_v24 = vpack.c.bf16 %v14190_v6, %v14188_v50  ;;  %v14191_v26 = vrot.slane %v33266_v63, 2  ;;  %v14193_v36 = vrot.slane %v25374_v31, 2  ;;  %v14195_v3 = vrot.slane %v33267_v39, 2  ;;  %v33274_v6 = vld [vmem:[#allocation101_spill] sm:$0xff]  ;;  %v33279_v63 = vld [vmem:[#allocation116_spill] sm:$0xff] }
 0x5dc   :  { %21949 = vmatprep.mubr.msk.bf16.mxu0 %vm911_vm4, %v29775_v40  ;;  %33261 = vst [vmem:[#allocation32_spill] sm:$0xff] %v29842_v33  ;;  %v14196_v41 = vrot.slane %v33268_v4, 2  ;;  %v14198_v37 = vrot.slane %v33269_v51, 2  ;;  %v9652_v22 = vsel %vm509_vm3, %v9649_v1, %v9651_v45  ;;  %v9654_v49 = vsel %vm509_vm3, %v9651_v45, %v9653_v19  ;;  %v33275_v45 = vld [vmem:[#allocation105_spill] sm:$0xff] }
 0x5dd   :  { %33265 = vst [vmem:[#allocation40_spill] sm:$0xff] %v29847_v24  ;;  %v9657_v25 = vsel %vm509_vm3, %v9655_v47, %v9656_v2  ;;  %v9659_v59 = vsel %vm509_vm3, %v9656_v2, %v9658_v11  ;;  %v14192_v28 = vsel %vm509_vm3, %v14189_v55, %v14191_v26  ;;  %v14194_v52 = vsel %vm509_vm3, %v14191_v26, %v14193_v36  ;;  %v33278_v47 = vld [vmem:[#allocation111_spill] sm:$0xff]  ;;  %v33280_v31 = vld [vmem:[#allocation117_spill] sm:$0xff] }
 0x5de   :  { %v29867_v8 = vpack.c.bf16 %v9654_v49, %v9652_v22  ;;  %v14197_v1 = vsel %vm509_vm3, %v14195_v3, %v14196_v41  ;;  %v14199_v53 = vsel %vm509_vm3, %v14196_v41, %v14198_v37  ;;  %v29871_v13 = vpack.c.bf16 %v9659_v59, %v9657_v25  ;;  %v25376_v2 = vld [vmem:[#allocation2 + $0x4d0] sm:$0x3]  ;;  %v33281_v39 = vld [vmem:[#allocation77_spill] sm:$0xff] }
 0x5df   :  { %22540 = vmatmul.mubr.msk.bf16.gmra.mrb[72].mxu1 %vm911_vm4, %v29778_v17  ;;  %v9660_v27 = vrot.slane %v33272_v29, 2  ;;  %v9662_v58 = vrot.slane %v25375_v43, 2  ;;  %v29874_v50 = vpack.c.bf16 %v14194_v52, %v14192_v28  ;;  %v9664_v23 = vrot.slane %v33274_v6, 2  ;;  %v25377_v29 = vld [vmem:[#allocation2 + $0x3b8] sm:$0x3] }
 0x5e0   :  { %22543 = vmatprep.mubr.msk.bf16.mxu1 %vm911_vm4, %v29783_v35  ;;  %33270 = vst [vmem:[#allocation34_spill] sm:$0xff] %v29867_v8  ;;  %33271 = vst [vmem:[#allocation36_spill] sm:$0xff] %v29871_v13  ;;  %v9665_v55 = vrot.slane %v33275_v45, 2  ;;  %v9667_v19 = vrot.slane %v33276_v18, 2  ;;  %v29879_v57 = vpack.c.bf16 %v14199_v53, %v14197_v1  ;;  %v14200_v16 = vrot.slane %v33278_v47, 2  ;;  %v33284_v1 = vld [vmem:[#allocation169_spill] sm:$0xff] }
 0x5e1   :  { %33273 = vst [vmem:[#allocation37_spill] sm:$0xff] %v29874_v50  ;;  %v14202_v30 = vrot.slane %v25376_v2, 2  ;;  %v14204_v26 = vrot.slane %v33279_v63, 2  ;;  %v14205_v36 = vrot.slane %v33280_v31, 2  ;;  %v14207_v3 = vrot.slane %v33281_v39, 2  ;;  %v33288_v45 = vld [vmem:[#allocation86_spill] sm:$0xff] }
 0x5e2   :  { %33277 = vst [vmem:[#allocation93_spill] sm:$0xff] %v29879_v57  ;;  %v9661_v4 = vsel %vm509_vm3, %v9658_v11, %v9660_v27  ;;  %v9663_v41 = vsel %vm509_vm3, %v9660_v27, %v9662_v58  ;;  %v9666_v51 = vsel %vm509_vm3, %v9664_v23, %v9665_v55  ;;  %v9668_v22 = vsel %vm509_vm3, %v9665_v55, %v9667_v19  ;;  %v33286_v58 = vld [vmem:[#allocation68_spill] sm:$0xff]  ;;  %v33290_v47 = vld [vmem:[#allocation79_spill] sm:$0xff]  ;;  %v33292_v31 = vld [vmem:[#allocation85_spill] sm:$0xff] }
 0x5e3   :  { %21950 = vmatmul.mubr.msk.bf16.gmra.mrb[76].mxu0 %vm911_vm4, %v29803_v21  ;;  %v14201_v49 = vsel %vm509_vm3, %v14198_v37, %v14200_v16  ;;  %v14203_v25 = vsel %vm509_vm3, %v14200_v16, %v14202_v30  ;;  %v29899_v59 = vpack.c.bf16 %v9663_v41, %v9661_v4  ;;  %v14206_v11 = vsel %vm509_vm3, %v14204_v26, %v14205_v36  ;;  %v33287_v23 = vld [vmem:[#allocation76_spill] sm:$0xff]  ;;  %v33291_v63 = vld [vmem:[#allocation83_spill] sm:$0xff] }
 0x5e4   :  { %21953 = vmatprep.mubr.msk.bf16.mxu0 %vm911_vm4, %v29807_v32  ;;  %v14208_v28 = vsel %vm509_vm3, %v14205_v36, %v14207_v3  ;;  %v29903_v52 = vpack.c.bf16 %v9668_v22, %v9666_v51  ;;  %v9669_v53 = vrot.slane %v33284_v1, 2  ;;  %v9671_v27 = vrot.slane %v25377_v29, 2  ;;  %v25378_v2 = vld [vmem:[#allocation2 + $0x4f8] sm:$0x3]  ;;  %v33293_v39 = vld [vmem:[#allocation87_spill] sm:$0xff] }
 0x5e5   :  { %33282 = vst [vmem:[#allocation126_spill] sm:$0xff] %v29899_v59  ;;  %v29906_v43 = vpack.c.bf16 %v14203_v25, %v14201_v49  ;;  %v9673_v6 = vrot.slane %v33286_v58, 2  ;;  %v9674_v37 = vrot.slane %v33287_v23, 2  ;;  %v9676_v55 = vrot.slane %v33288_v45, 2  ;;  %v33295_v29 = vld [vmem:[#allocation80_spill] sm:$0xff] }
 0x5e6   :  { %33283 = vst [vmem:[#allocation82_spill] sm:$0xff] %v29903_v52  ;;  %v29911_v18 = vpack.c.bf16 %v14208_v28, %v14206_v11  ;;  %v14209_v16 = vrot.slane %v33290_v47, 2  ;;  %v14211_v30 = vrot.slane %v25378_v2, 2  ;;  %v14213_v26 = vrot.slane %v33291_v63, 2  ;;  %v25379_v58 = vld [vmem:[#allocation2 + $0x7f0] sm:$0x3] }
 0x5e7   :  { %22544 = vmatmul.mubr.msk.bf16.gmra.mrb[76].mxu1 %vm911_vm4, %v29810_v60  ;;  %33285 = vst [vmem:[#allocation84_spill] sm:$0xff] %v29906_v43  ;;  %v14214_v36 = vrot.slane %v33292_v31, 2  ;;  %v14216_v4 = vrot.slane %v33293_v39, 2  ;;  %v9670_v41 = vsel %vm509_vm3, %v9667_v19, %v9669_v53  ;;  %v9672_v51 = vsel %vm509_vm3, %v9669_v53, %v9671_v27  ;;  %v33298_v47 = vld [vmem:[#allocation90_spill] sm:$0xff]  ;;  %v25380_v39 = vld [vmem:[#allocation2 + $0x930] sm:$0x3] }
 0x5e8   :  { %22547 = vmatprep.mubr.msk.bf16.mxu1 %vm911_vm4, %v29815_v46  ;;  %33289 = vst [vmem:[#allocation109_spill] sm:$0xff] %v29911_v18  ;;  %v9675_v22 = vsel %vm509_vm3, %v9673_v6, %v9674_v37  ;;  %v9677_v49 = vsel %vm509_vm3, %v9674_v37, %v9676_v55  ;;  %v14210_v25 = vsel %vm509_vm3, %v14207_v3, %v14209_v16  ;;  %v9678_v27 = vrot.slane %v33295_v29, 2  ;;  %v33297_v37 = vld [vmem:[#allocation88_spill] sm:$0xff] }
 0x5e9   :  { %v14212_v11 = vsel %vm509_vm3, %v14209_v16, %v14211_v30  ;;  %v29931_v28 = vpack.c.bf16 %v9672_v51, %v9670_v41  ;;  %v14215_v19 = vsel %vm509_vm3, %v14213_v26, %v14214_v36  ;;  %v14217_v1 = vsel %vm509_vm3, %v14214_v36, %v14216_v4  ;;  %v33299_v3 = vld [vmem:[#allocation100_spill] sm:$0xff]  ;;  %v33300_v30 = vld [vmem:[#allocation95_spill] sm:$0xff]  ;;  %v33302_v51 = vld [vmem:[#allocation97_spill] sm:$0xff] }
 0x5ea   :  { %v9825_v53 = vpack.c.bf16 %v9677_v49, %v9675_v22  ;;  %v9680_v6 = vrot.slane %v25379_v58, 2  ;;  %v29936_v23 = vpack.c.bf16 %v14212_v11, %v14210_v25  ;;  %v9682_v45 = vrot.slane %v33297_v37, 2  ;;  %v33301_v36 = vld [vmem:[#allocation96_spill] sm:$0xff] }
 0x5eb   :  { %21954 = vmatmul.mubr.msk.bf16.gmra.mrb[80].mxu0 %vm911_vm4, %v29835_v5  ;;  %33294 = vst [vmem:[#allocation94_spill] sm:$0xff] %v29931_v28  ;;  %v9683_v2 = vrot.slane %v33298_v47, 2  ;;  %v9685_v63 = vrot.slane %v33299_v3, 2  ;;  %v14365_v16 = vpack.c.bf16 %v14217_v1, %v14215_v19  ;;  %v14218_v31 = vrot.slane %v33300_v30, 2  ;;  %v33303_v49 = vld [vmem:[#allocation104_spill] sm:$0xff] }
 0x5ec   :  { %21957 = vmatprep.mubr.msk.bf16.mxu0 %vm911_vm4, %v29839_v62  ;;  %33296 = vst [vmem:[#allocation101_spill] sm:$0xff] %v29936_v23  ;;  %v14220_v26 = vrot.slane %v25380_v39, 2  ;;  %v14222_v41 = vrot.slane %v33301_v36, 2  ;;  %v14223_v22 = vrot.slane %v33302_v51, 2  ;;  %v14225_v25 = vrot.slane %v33303_v49, 2  ;;  %v33306_v36 = vld [vmem:[#allocation98_spill] sm:$0xff] }
 0x5ed   :  { %v9679_v11 = vsel %vm509_vm3, %v9676_v55, %v9678_v27  ;;  %v9681_v29 = vsel %vm509_vm3, %v9678_v27, %v9680_v6  ;;  %v9684_v19 = vsel %vm509_vm3, %v9682_v45, %v9683_v2  ;;  %v9686_v1 = vsel %vm509_vm3, %v9683_v2, %v9685_v63  ;;  %v33305_v27 = vld [vmem:[#allocation102_spill] sm:$0xff]  ;;  %v25381_v30 = vld [vmem:[#allocation2 + $0x818] sm:$0x3]  ;;  %v33307_v51 = vld [vmem:[#allocation107_spill] sm:$0xff] }
 0x5ee   :  { %v14219_v58 = vsel %vm509_vm3, %v14216_v4, %v14218_v31  ;;  %v14221_v37 = vsel %vm509_vm3, %v14218_v31, %v14220_v26  ;;  %v9826_v47 = vpack.c.bf16 %v9681_v29, %v9679_v11  ;;  %v14226_v55 = vsel %vm509_vm3, %v14223_v22, %v14225_v25  ;;  %v33308_v49 = vld [vmem:[#allocation114_spill] sm:$0xff]  ;;  %v33310_v31 = vld [vmem:[#allocation16_spill] sm:$0xff] }
 0x5ef   :  { %22548 = vmatmul.mubr.msk.bf16.gmra.mrb[80].mxu1 %vm911_vm4, %v29842_v33  ;;  %v29959_v3 = vpack.c.bf16 %v9686_v1, %v9684_v19  ;;  %v9687_v6 = vrot.slane %v33305_v27, 2  ;;  %v9689_v39 = vrot.slane %v25381_v30, 2  ;;  %v14366_v45 = vpack.c.bf16 %v14221_v37, %v14219_v58  ;;  %v33312_v19 = vld [vmem:[#allocation112_spill] sm:$0xff]  ;;  %v33313_v27 = vld [vmem:[#allocation131_spill] sm:$0xff] }
 0x5f0   :  { %22551 = vmatprep.mubr.msk.bf16.mxu1 %vm911_vm4, %v29847_v24  ;;  %v9691_v2 = vrot.slane %v33306_v36, 2  ;;  %v9694_v4 = vrot.slane %v33308_v49, 2  ;;  %v14227_v26 = vrot.slane %v33310_v31, 2  ;;  %v14232_v1 = vrot.slane %v33312_v19, 2  ;;  %v33319_v19 = vld [vmem:[#allocation130_spill] sm:$0xff] }
 0x5f1   :  { %33304 = vst [vmem:[#allocation105_spill] sm:$0xff] %v29959_v3  ;;  %v14234_v58 = vrot.slane %v33313_v27, 2  ;;  %v9688_v37 = vsel %vm509_vm3, %v9685_v63, %v9687_v6  ;;  %v33321_v27 = vld [vmem:[#allocation133_spill] sm:$0xff] }
 0x5f3   :  { %21958 = vmatmul.mubr.msk.bf16.gmra.mrb[84].mxu0 %vm911_vm4, %v29867_v8  ;;  %v14235_v63 = vsel %vm509_vm3, %v14232_v1, %v14234_v58 }
 0x5f4   :  { %21961 = vmatprep.mubr.msk.bf16.mxu0 %vm911_vm4, %v29871_v13 }
 0x5f7   :  { %22552 = vmatmul.mubr.msk.bf16.gmra.mrb[84].mxu1 %vm911_vm4, %v29874_v50  ;;  %v33441_v50 = vld [vmem:[#allocation63_spill] sm:$0xff] }
 0x5f8   :  { %22555 = vmatprep.mubr.msk.bf16.mxu1 %vm911_vm4, %v29879_v57  ;;  %v33440_v57 = vld [vmem:[#allocation58_spill] sm:$0xff] }
 0x5fb   :  { %21962 = vmatmul.mubr.msk.bf16.gmra.mrb[88].mxu0 %vm911_vm4, %v29899_v59 }
 0x5fc   :  { %21965 = vmatprep.mubr.msk.bf16.mxu0 %vm911_vm4, %v29903_v52 }
 0x5ff   :  { %22556 = vmatmul.mubr.msk.bf16.gmra.mrb[88].mxu1 %vm911_vm4, %v29906_v43 }
 0x600   :  { %22559 = vmatprep.mubr.msk.bf16.mxu1 %vm911_vm4, %v29911_v18 }
 0x603   :  { %21966 = vmatmul.mubr.msk.bf16.gmra.mrb[92].mxu0 %vm911_vm4, %v29931_v28 }
 0x604   :  { %21969 = vmatprep.mubr.msk.bf16.mxu0 %vm911_vm4, %v9825_v53  ;;  %v14224_v53 = vsel %vm509_vm3, %v14222_v41, %v14223_v22  ;;  %v25382_v41 = vld [vmem:[#allocation2 + $0x958] sm:$0x3]  ;;  %v33311_v22 = vld [vmem:[#allocation19_spill] sm:$0xff] }
 0x605   :  { %v14229_v11 = vrot.slane %v25382_v41, 2  ;;  %v14231_v29 = vrot.slane %v33311_v22, 2  ;;  %v33318_v41 = vld [vmem:[#allocation14_spill] sm:$0xff] }
 0x606   :  { %v9700_v22 = vrot.slane %v33318_v41, 2 }
 0x607   :  { %22560 = vmatmul.mubr.msk.bf16.gmra.mrb[92].mxu1 %vm911_vm4, %v29936_v23  ;;  %v29965_v23 = vpack.c.bf16 %v14226_v55, %v14224_v53  ;;  %v9690_v53 = vsel %vm509_vm3, %v9687_v6, %v9689_v39  ;;  %v14230_v36 = vsel %vm509_vm3, %v14227_v26, %v14229_v11  ;;  %v14233_v49 = vsel %vm509_vm3, %v14231_v29, %v14232_v1  ;;  %v33316_v39 = vld [vmem:[#allocation13_spill] sm:$0xff] }
 0x608   :  { %22563 = vmatprep.mubr.msk.bf16.mxu1 %vm911_vm4, %v14365_v16  ;;  %v9692_v16 = vrot.slane %v33307_v51, 2  ;;  %v29983_v51 = vpack.c.bf16 %v9690_v53, %v9688_v37  ;;  %v29995_v11 = vpack.c.bf16 %v14235_v63, %v14233_v49  ;;  %v14236_v29 = vrot.slane %v33321_v27, 2  ;;  %v25384_v37 = vld [vmem:[#allocation2 + $0x980] sm:$0x3]  ;;  %v33327_v27 = vld [vmem:[#allocation142_spill] sm:$0xff] }
 0x609   :  { %33309 = vst [vmem:[#allocation119_spill] sm:$0xff] %v29965_v23  ;;  %v14238_v1 = vrot.slane %v25384_v37, 2  ;;  %v14240_v53 = vrot.slane %v29473_v34, 2  ;;  %v33328_v37 = vld [vmem:[#allocation154_spill] sm:$0xff] }
 0x60a   :  { %v9693_v55 = vsel %vm509_vm3, %v9691_v2, %v9692_v16  ;;  %v9695_v30 = vsel %vm509_vm3, %v9692_v16, %v9694_v4  ;;  %33314 = vst [vmem:[#allocation111_spill] sm:$0xff] %v29983_v51  ;;  %v25383_v2 = vld [vmem:[#allocation2 + $0x840] sm:$0x3]  ;;  %33320 = vst [vmem:[#allocation77_spill] sm:$0xff] %v29995_v11  ;;  %v14237_v34 = vsel %vm509_vm3, %v14234_v58, %v14236_v29  ;;  %v9710_v58 = vrot.slane %v33327_v27, 2 }
 0x60b   :  { %21970 = vmatmul.mubr.msk.bf16.gmra.mrb[96].mxu0 %vm911_vm4, %v9826_v47  ;;  %v14228_v47 = vsel %vm509_vm3, %v14225_v25, %v14227_v26  ;;  %v29987_v6 = vpack.c.bf16 %v9695_v30, %v9693_v55  ;;  %v9698_v31 = vrot.slane %v25383_v2, 2  ;;  %v9701_v25 = vrot.slane %v33319_v19, 2  ;;  %v33326_v19 = vld [vmem:[#allocation139_spill] sm:$0xff] }
 0x60c   :  { %21973 = vmatprep.mubr.msk.bf16.mxu0 %vm911_vm4, %v29959_v3  ;;  %v29990_v16 = vpack.c.bf16 %v14230_v36, %v14228_v47  ;;  %v9703_v26 = vrot.slane %v29498_v42, 2  ;;  %v14241_v55 = vrot.slane %v29475_v7, 2  ;;  %v14243_v30 = vrot.slane %v29515_v56, 2 }
 0x60d   :  { %33315 = vst [vmem:[#allocation116_spill] sm:$0xff] %v29987_v6  ;;  %v9702_v36 = vsel %vm509_vm3, %v9700_v22, %v9701_v25  ;;  %v14239_v7 = vsel %vm509_vm3, %v14236_v29, %v14238_v1  ;;  %v9712_v29 = vrot.slane %v33328_v37, 2 }
 0x60e   :  { %33317 = vst [vmem:[#allocation117_spill] sm:$0xff] %v29990_v16  ;;  %v9704_v49 = vsel %vm509_vm3, %v9701_v25, %v9703_v26  ;;  %v14244_v63 = vsel %vm509_vm3, %v14241_v55, %v14243_v30  ;;  %v30022_v22 = vpack.c.bf16 %v14239_v7, %v14237_v34  ;;  %v9709_v25 = vrot.slane %v33326_v19, 2  ;;  %v33333_v7 = vld [vmem:[#allocation170_spill] sm:$0xff] }
 0x60f   :  { %22564 = vmatmul.mubr.msk.bf16.gmra.mrb[96].mxu1 %vm911_vm4, %v14366_v45  ;;  %v9696_v45 = vrot.slane %v33316_v39, 2  ;;  %v30019_v39 = vpack.c.bf16 %v9704_v49, %v9702_v36  ;;  %v33331_v36 = vld [vmem:[#allocation149_spill] sm:$0xff]  ;;  %v9713_v27 = vsel %vm509_vm3, %v9710_v58, %v9712_v29 }
 0x610   :  { %22567 = vmatprep.mubr.msk.bf16.mxu1 %vm911_vm4, %v29965_v23  ;;  %33325 = vst [vmem:[#allocation76_spill] sm:$0xff] %v30022_v22  ;;  %v14249_v49 = vrot.slane %v33331_v36, 2  ;;  %v33336_v36 = vld [vmem:[#allocation18_spill] sm:$0xff] }
 0x611   :  { %v9697_v42 = vsel %vm509_vm3, %v9694_v4, %v9696_v45  ;;  %v9699_v47 = vsel %vm509_vm3, %v9696_v45, %v9698_v31  ;;  %v14242_v4 = vsel %vm509_vm3, %v14240_v53, %v14241_v55  ;;  %33323 = vst [vmem:[#allocation68_spill] sm:$0xff] %v30019_v39  ;;  %v33324_v45 = vld [vmem:[#allocation136_spill] sm:$0xff]  ;;  %v25385_v31 = vld [vmem:[#allocation2 + $0x868] sm:$0x3] }
 0x612   :  { %v30015_v56 = vpack.c.bf16 %v9699_v47, %v9697_v42  ;;  %v9705_v2 = vrot.slane %v33324_v45, 2  ;;  %v9707_v41 = vrot.slane %v25385_v31, 2  ;;  %v30027_v1 = vpack.c.bf16 %v14244_v63, %v14242_v4  ;;  %v33330_v42 = vld [vmem:[#allocation145_spill] sm:$0xff]  ;;  %v25386_v47 = vld [vmem:[#allocation2 + $0x9a8] sm:$0x3] }
 0x613   :  { %21974 = vmatmul.mubr.msk.bf16.gmra.mrb[100].mxu0 %vm911_vm4, %v29983_v51  ;;  %v14245_v53 = vrot.slane %v33330_v42, 2  ;;  %v14247_v55 = vrot.slane %v25386_v47, 2  ;;  %v33332_v45 = vld [vmem:[#allocation150_spill] sm:$0xff]  ;;  %v14252_v31 = vrot.slane %v33333_v7, 2  ;;  %v9711_v63 = vsel %vm509_vm3, %v9709_v25, %v9710_v58  ;;  %v25387_v25 = vld [vmem:[#allocation2 + $0x890] sm:$0x3] }
 0x614   :  { %21977 = vmatprep.mubr.msk.bf16.mxu0 %vm911_vm4, %v29987_v6  ;;  %33322 = vst [vmem:[#allocation169_spill] sm:$0xff] %v30015_v56  ;;  %33329 = vst [vmem:[#allocation86_spill] sm:$0xff] %v30027_v1  ;;  %v14250_v34 = vrot.slane %v33332_v45, 2  ;;  %v9706_v19 = vsel %vm509_vm3, %v9703_v26, %v9705_v2  ;;  %v9708_v4 = vsel %vm509_vm3, %v9705_v2, %v9707_v41  ;;  %v9714_v45 = vrot.slane %v33336_v36, 2  ;;  %v33344_v36 = vld [vmem:[#allocation174_spill] sm:$0xff] }
 0x615   :  { %v14246_v37 = vsel %vm509_vm3, %v14243_v30, %v14245_v53  ;;  %v14248_v42 = vsel %vm509_vm3, %v14245_v53, %v14247_v55  ;;  %v30047_v47 = vpack.c.bf16 %v9708_v4, %v9706_v19  ;;  %v30051_v41 = vpack.c.bf16 %v9713_v27, %v9711_v63  ;;  %v33342_v19 = vld [vmem:[#allocation171_spill] sm:$0xff]  ;;  %v33343_v63 = vld [vmem:[#allocation173_spill] sm:$0xff] }
 0x616   :  { %v14251_v26 = vsel %vm509_vm3, %v14249_v49, %v14250_v34  ;;  %v14253_v2 = vsel %vm509_vm3, %v14250_v34, %v14252_v31  ;;  %v9716_v7 = vrot.slane %v25387_v25, 2  ;;  %v30054_v58 = vpack.c.bf16 %v14248_v42, %v14246_v37  ;;  %v25388_v4 = vld [vmem:[#allocation2 + $0x9d0] sm:$0x3]  ;;  %v33345_v42 = vld [vmem:[#allocation182_spill] sm:$0xff] }
 0x617   :  { %22568 = vmatmul.mubr.msk.bf16.gmra.mrb[100].mxu1 %vm911_vm4, %v29990_v16  ;;  %33334 = vst [vmem:[#allocation79_spill] sm:$0xff] %v30047_v47  ;;  %33335 = vst [vmem:[#allocation83_spill] sm:$0xff] %v30051_v41  ;;  %v30059_v55 = vpack.c.bf16 %v14253_v2, %v14251_v26  ;;  %v14254_v49 = vrot.slane %v33342_v19, 2  ;;  %v14256_v34 = vrot.slane %v25388_v4, 2  ;;  %v14258_v27 = vrot.slane %v33343_v63, 2  ;;  %v33348_v63 = vld [vmem:[#allocation177_spill] sm:$0xff] }
 0x618   :  { %22571 = vmatprep.mubr.msk.bf16.mxu1 %vm911_vm4, %v29995_v11  ;;  %33337 = vst [vmem:[#allocation85_spill] sm:$0xff] %v30054_v58  ;;  %v14259_v37 = vrot.slane %v33344_v36, 2  ;;  %v14261_v25 = vrot.slane %v33345_v42, 2  ;;  %v9723_v36 = vrot.slane %v33348_v63, 2  ;;  %v33356_v63 = vld [vmem:[#allocation186_spill] sm:$0xff]  ;;  %v33412_v11 = vld [vmem:[#allocation92_spill] sm:$0xff] }
 0x619   :  { %33341 = vst [vmem:[#allocation87_spill] sm:$0xff] %v30059_v55  ;;  %v14255_v2 = vsel %vm509_vm3, %v14252_v31, %v14254_v49  ;;  %v14257_v19 = vsel %vm509_vm3, %v14254_v49, %v14256_v34  ;;  %v30398_v23 = vld [vmem:[#allocation2 + $0xa68] sm:$0xff] }
 0x61b   :  { %21978 = vmatmul.mubr.msk.bf16.gmra.mrb[104].mxu0 %vm911_vm4, %v30015_v56  ;;  %v33340_v56 = vld [vmem:[#allocation176_spill] sm:$0xff] }
 0x61c   :  { %21981 = vmatprep.mubr.msk.bf16.mxu0 %vm911_vm4, %v30019_v39  ;;  %v33339_v39 = vld [vmem:[#allocation47_spill] sm:$0xff]  ;;  %v9721_v53 = vrot.slane %v33340_v56, 2  ;;  %v9715_v56 = vsel %vm509_vm3, %v9712_v29, %v9714_v45  ;;  %v14260_v29 = vsel %vm509_vm3, %v14258_v27, %v14259_v37 }
 0x61d   :  { %v9719_v30 = vrot.slane %v33339_v39, 2  ;;  %v9717_v39 = vsel %vm509_vm3, %v9714_v45, %v9716_v7  ;;  %v14262_v45 = vsel %vm509_vm3, %v14259_v37, %v14261_v25 }
 0x61e   :  { %v30079_v4 = vpack.c.bf16 %v9717_v39, %v9715_v56  ;;  %v30091_v34 = vpack.c.bf16 %v14262_v45, %v14260_v29  ;;  %v33354_v56 = vld [vmem:[#allocation183_spill] sm:$0xff]  ;;  %v25390_v39 = vld [vmem:[#allocation2 + $0x9f8] sm:$0x3] }
 0x61f   :  { %22572 = vmatmul.mubr.msk.bf16.gmra.mrb[104].mxu1 %vm911_vm4, %v30022_v22  ;;  %v33338_v22 = vld [vmem:[#allocation41_spill] sm:$0xff]  ;;  %v9722_v26 = vsel %vm509_vm3, %v9719_v30, %v9721_v53  ;;  %v14263_v27 = vrot.slane %v33354_v56, 2  ;;  %v14265_v37 = vrot.slane %v25390_v39, 2 }
 0x620   :  { %22575 = vmatprep.mubr.msk.bf16.mxu1 %vm911_vm4, %v30027_v1  ;;  %v9718_v1 = vrot.slane %v33338_v22, 2  ;;  %33346 = vst [vmem:[#allocation80_spill] sm:$0xff] %v30079_v4  ;;  %33353 = vst [vmem:[#allocation100_spill] sm:$0xff] %v30091_v34 }
 0x621   :  { %v14264_v45 = vsel %vm509_vm3, %v14261_v25, %v14263_v27  ;;  %v14266_v56 = vsel %vm509_vm3, %v14263_v27, %v14265_v37 }
 0x622   :  { %v9720_v22 = vsel %vm509_vm3, %v9718_v1, %v9719_v30  ;;  %v25389_v1 = vld [vmem:[#allocation2 + $0x8b8] sm:$0x3]  ;;  %v30086_v30 = vpack.c.bf16 %v14257_v19, %v14255_v2  ;;  %v14268_v2 = vrot.slane %v33356_v63, 2  ;;  %v33357_v19 = vld [vmem:[#allocation194_spill] sm:$0xff] }
 0x623   :  { %21982 = vmatmul.mubr.msk.bf16.gmra.mrb[108].mxu0 %vm911_vm4, %v30047_v47  ;;  %v30083_v7 = vpack.c.bf16 %v9722_v26, %v9720_v22  ;;  %v9725_v42 = vrot.slane %v25389_v1, 2  ;;  %v33352_v47 = vld [vmem:[#allocation188_spill] sm:$0xff]  ;;  %v33355_v22 = vld [vmem:[#allocation185_spill] sm:$0xff]  ;;  %v14270_v1 = vrot.slane %v33357_v19, 2 }
 0x624   :  { %21985 = vmatprep.mubr.msk.bf16.mxu0 %vm911_vm4, %v30051_v41  ;;  %33349 = vst [vmem:[#allocation90_spill] sm:$0xff] %v30086_v30  ;;  %v33351_v41 = vld [vmem:[#allocation180_spill] sm:$0xff]  ;;  %v9730_v49 = vrot.slane %v33352_v47, 2  ;;  %v14267_v26 = vrot.slane %v33355_v22, 2  ;;  %v9724_v47 = vsel %vm509_vm3, %v9721_v53, %v9723_v36  ;;  %v33360_v22 = vld [vmem:[#allocation189_spill] sm:$0xff] }
 0x625   :  { %33347 = vst [vmem:[#allocation88_spill] sm:$0xff] %v30083_v7  ;;  %v9728_v31 = vrot.slane %v33351_v41, 2  ;;  %v9726_v41 = vsel %vm509_vm3, %v9723_v36, %v9725_v42  ;;  %v14271_v36 = vsel %vm509_vm3, %v14268_v2, %v14270_v1  ;;  %v9732_v63 = vrot.slane %v33360_v22, 2  ;;  %v33368_v22 = vld [vmem:[#allocation198_spill] sm:$0xff] }
 0x626   :  { %v30111_v39 = vpack.c.bf16 %v9726_v41, %v9724_v47  ;;  %v14269_v53 = vsel %vm509_vm3, %v14267_v26, %v14268_v2  ;;  %v33366_v47 = vld [vmem:[#allocation195_spill] sm:$0xff]  ;;  %v25392_v41 = vld [vmem:[#allocation2 + $0xa20] sm:$0x3] }
 0x627   :  { %22576 = vmatmul.mubr.msk.bf16.gmra.mrb[108].mxu1 %vm911_vm4, %v30054_v58  ;;  %v33350_v58 = vld [vmem:[#allocation179_spill] sm:$0xff]  ;;  %v9731_v29 = vsel %vm509_vm3, %v9728_v31, %v9730_v49  ;;  %v30123_v37 = vpack.c.bf16 %v14271_v36, %v14269_v53  ;;  %v14272_v26 = vrot.slane %v33366_v47, 2  ;;  %v14274_v2 = vrot.slane %v25392_v41, 2 }
 0x628   :  { %22579 = vmatprep.mubr.msk.bf16.mxu1 %vm911_vm4, %v30059_v55  ;;  %v9727_v55 = vrot.slane %v33350_v58, 2  ;;  %33358 = vst [vmem:[#allocation95_spill] sm:$0xff] %v30111_v39 }
 0x629   :  { %33365 = vst [vmem:[#allocation104_spill] sm:$0xff] %v30123_v37  ;;  %v14273_v36 = vsel %vm509_vm3, %v14270_v1, %v14272_v26  ;;  %v14275_v47 = vsel %vm509_vm3, %v14272_v26, %v14274_v2 }
 0x62a   :  { %v9729_v58 = vsel %vm509_vm3, %v9727_v55, %v9728_v31  ;;  %v25391_v55 = vld [vmem:[#allocation2 + $0x8e0] sm:$0x3]  ;;  %v30118_v31 = vpack.c.bf16 %v14266_v56, %v14264_v45  ;;  %v14277_v45 = vrot.slane %v33368_v22, 2  ;;  %v33369_v56 = vld [vmem:[#allocation203_spill] sm:$0xff] }
 0x62b   :  { %21986 = vmatmul.mubr.msk.bf16.gmra.mrb[112].mxu0 %vm911_vm4, %v30079_v4  ;;  %v30115_v42 = vpack.c.bf16 %v9731_v29, %v9729_v58  ;;  %v9734_v19 = vrot.slane %v25391_v55, 2  ;;  %v33364_v4 = vld [vmem:[#allocation200_spill] sm:$0xff]  ;;  %v33367_v58 = vld [vmem:[#allocation197_spill] sm:$0xff]  ;;  %v14279_v55 = vrot.slane %v33369_v56, 2 }
 0x62c   :  { %21989 = vmatprep.mubr.msk.bf16.mxu0 %vm911_vm4, %v30083_v7  ;;  %33361 = vst [vmem:[#allocation97_spill] sm:$0xff] %v30118_v31  ;;  %v33363_v7 = vld [vmem:[#allocation192_spill] sm:$0xff]  ;;  %v9739_v27 = vrot.slane %v33364_v4, 2  ;;  %v14276_v29 = vrot.slane %v33367_v58, 2  ;;  %v9733_v4 = vsel %vm509_vm3, %v9730_v49, %v9732_v63  ;;  %v33372_v58 = vld [vmem:[#allocation201_spill] sm:$0xff] }
 0x62d   :  { %33359 = vst [vmem:[#allocation96_spill] sm:$0xff] %v30115_v42  ;;  %v9737_v25 = vrot.slane %v33363_v7, 2  ;;  %v9735_v7 = vsel %vm509_vm3, %v9732_v63, %v9734_v19  ;;  %v14280_v63 = vsel %vm509_vm3, %v14277_v45, %v14279_v55  ;;  %v9741_v22 = vrot.slane %v33372_v58, 2  ;;  %v33383_v58 = vld [vmem:[#allocation73_spill] sm:$0xff] }
 0x62e   :  { %v30143_v41 = vpack.c.bf16 %v9735_v7, %v9733_v4  ;;  %v14278_v49 = vsel %vm509_vm3, %v14276_v29, %v14277_v45  ;;  %v33379_v7 = vld [vmem:[#allocation62_spill] sm:$0xff] }
 0x62f   :  { %22580 = vmatmul.mubr.msk.bf16.gmra.mrb[112].mxu1 %vm911_vm4, %v30086_v30  ;;  %v33362_v30 = vld [vmem:[#allocation191_spill] sm:$0xff]  ;;  %v9740_v53 = vsel %vm509_vm3, %v9737_v25, %v9739_v27  ;;  %v9742_v2 = vsel %vm509_vm3, %v9739_v27, %v9741_v22 }
 0x630   :  { %22583 = vmatprep.mubr.msk.bf16.mxu1 %vm911_vm4, %v30091_v34  ;;  %v9736_v34 = vrot.slane %v33362_v30, 2  ;;  %33370 = vst [vmem:[#allocation102_spill] sm:$0xff] %v30143_v41  ;;  %v33378_v27 = vld [vmem:[#allocation67_spill] sm:$0xff] }
 0x632   :  { %v9738_v30 = vsel %vm509_vm3, %v9736_v34, %v9737_v25  ;;  %v25393_v34 = vld [vmem:[#allocation2 + $0x908] sm:$0x3]  ;;  %v30150_v25 = vpack.c.bf16 %v14275_v47, %v14273_v36  ;;  %v33382_v36 = vld [vmem:[#allocation72_spill] sm:$0xff] }
 0x633   :  { %21990 = vmatmul.mubr.msk.bf16.gmra.mrb[116].mxu0 %vm911_vm4, %v30111_v39  ;;  %v30147_v19 = vpack.c.bf16 %v9740_v53, %v9738_v30  ;;  %v9743_v56 = vrot.slane %v25393_v34, 2  ;;  %v33380_v30 = vld [vmem:[#allocation71_spill] sm:$0xff]  ;;  %v33381_v53 = vld [vmem:[#allocation129_spill] sm:$0xff] }
 0x634   :  { %21993 = vmatprep.mubr.msk.bf16.mxu0 %vm911_vm4, %v30115_v42  ;;  %33373 = vst [vmem:[#allocation107_spill] sm:$0xff] %v30150_v25  ;;  %v25394_v42 = vld [vmem:[#allocation2 + $0xa48] sm:$0x3]  ;;  %v33411_v39 = vld [vmem:[#allocation91_spill] sm:$0xff] }
 0x635   :  { %33371 = vst [vmem:[#allocation98_spill] sm:$0xff] %v30147_v19  ;;  %v14283_v26 = vrot.slane %v25394_v42, 2  ;;  %v9744_v29 = vsel %vm509_vm3, %v9741_v22, %v9743_v56 }
 0x636   :  { %v30167_v45 = vpack.c.bf16 %v9744_v29, %v9742_v2  ;;  %v33384_v29 = vld [vmem:[#allocation132_spill] sm:$0xff] }
 0x637   :  { %22584 = vmatmul.mubr.msk.bf16.gmra.mrb[116].mxu1 %vm911_vm4, %v30118_v31  ;;  %v30152_v31 = vpack.c.bf16 %v14280_v63, %v14278_v49  ;;  %v25071_v63 = vld [vmem:[#allocation5 + $0x4] sm:$0x18]  }
 0x638   :  { %22587 = vmatprep.mubr.msk.bf16.mxu1 %vm911_vm4, %v30123_v37  ;;  %v33375_v37 = vld [vmem:[#allocation204_spill] sm:$0xff]  ;;  %33376 = vst [vmem:[#allocation16_spill] sm:$0xff] %v30167_v45  ;;  %v16538_v56 = vshrl.u32 %v25071_v63, 16 }
 0x639   :  { %33374 = vst [vmem:[#allocation114_spill] sm:$0xff] %v30152_v31  ;;  %v14281_v1 = vrot.slane %v33375_v37, 2 }
 0x63b   :  { %21994 = vmatmul.mubr.msk.bf16.gmra.mrb[120].mxu0 %vm911_vm4, %v30143_v41  ;;  %v14282_v37 = vsel %vm509_vm3, %v14279_v55, %v14281_v1  ;;  %v14284_v42 = vsel %vm509_vm3, %v14281_v1, %v14283_v26  ;;  %v25070_v55 = vld [vmem:[#allocation5 + $0x4] sm:$0x18]   ;;  %v16541_v1 = vshll.u32 %v25071_v63, 16  ;;  %v33392_v63 = vld [vmem:[#allocation27_spill] sm:$0xff] }
 0x63c   :  { %21997 = vmatprep.mubr.msk.bf16.mxu0 %vm911_vm4, %v30147_v19  ;;  %v30169_v4 = vpack.c.bf16 %v14284_v42, %v14282_v37  ;;  %v11998_v47 = vshrl.u32 %v25070_v55, 16  ;;  %v12001_v49 = vshll.u32 %v25070_v55, 16  ;;  %v33388_v55 = vld [vmem:[#allocation23_spill] sm:$0xff] }
 0x63d   :  { %v16543_v2 = vrot.slane %v16541_v1, 4  ;;  %v33396_v1 = vld [vmem:[#allocation35_spill] sm:$0xff] }
 0x63e   :  { %33377 = vst [vmem:[#allocation19_spill] sm:$0xff] %v30169_v4  ;;  %v12000_v22 = vrot.slane %v11998_v47, 3  ;;  %v12003_v34 = vrot.slane %v12001_v49, 4  ;;  %v33390_v47 = vld [vmem:[#allocation25_spill] sm:$0xff]  ;;  %v33391_v49 = vld [vmem:[#allocation26_spill] sm:$0xff] }
 0x63f   :  { %22588 = vmatmul.mubr.msk.bf16.gmra.mrb[120].mxu1 %vm911_vm4, %v30150_v25 }
 0x640   :  { %22591 = vmatprep.mubr.msk.bf16.mxu1 %vm911_vm4, %v30152_v31  ;;  %v12004_v26 = vor.u32 %v12003_v34, %v12000_v22  ;;  %v33393_v22 = vld [vmem:[#allocation28_spill] sm:$0xff]  ;;  %v33394_v34 = vld [vmem:[#allocation30_spill] sm:$0xff] }
 0x642   :  { %v30192_v37 = vand.u32 %v12004_v26, %v32684_v9  ;;  %v33397_v26 = vld [vmem:[#allocation38_spill] sm:$0xff] }
 0x643   :  { %21998 = vmatmul.mubr.msk.bf16.gmra.mrb[124].mxu0 %vm911_vm4, %v30167_v45 }
 0x644   :  { %22003 = vmatprep.mubr.msk.bf16.mxu0 %vm911_vm4, %v33378_v27  ;;  %v33385_v27 = vld [vmem:[#allocation21_spill] sm:$0xff] }
 0x647   :  { %22592 = vmatmul.mubr.msk.bf16.gmra.mrb[124].mxu1 %vm911_vm4, %v30169_v4 }
 0x648   :  { %22597 = vmatprep.mubr.msk.bf16.mxu1 %vm911_vm4, %v33379_v7 }
 0x64b   :  { %22004 = vmatmul.mubr.msk.bf16.vlgmr.msra.gmra.mrb[64].mxu0 %vm911_vm4, %v33380_v30  ;;  %v33387_v30 = vld [vmem:[#allocation22_spill] sm:$0xff] }
 0x64c   :  { %22068 = vmatpush3.bf16.msra.mxu0 %v29736_v38  ;;  %22007 = vmatprep.mubr.msk.bf16.mxu0 %vm911_vm4, %v33381_v53  ;;  %v16540_v38 = vrot.slane %v16538_v56, 3  ;;  %v33395_v56 = vld [vmem:[#allocation33_spill] sm:$0xff] }
 0x64d   :  { %22133 = vmatprep.subr.bf16.mxu0 %v30192_v37  ;;  %v30272_v53 = vld [vmem:[#allocation2 + $0x518] sm:$0xff] }
 0x64e   :  { %v16544_v42 = vor.u32 %v16543_v2, %v16540_v38  ;;  %v33398_v38 = vld [vmem:[#allocation49_spill] sm:$0xff] }
 0x64f   :  { %22598 = vmatmul.mubr.msk.bf16.vlgmr.msra.gmra.mrb[64].mxu1 %vm911_vm4, %v33382_v36  ;;  %v33389_v36 = vld [vmem:[#allocation24_spill] sm:$0xff]  ;;  %v33399_v2 = vld [vmem:[#allocation89_spill] sm:$0xff] }
 0x650   :  { %22662 = vmatpush3.bf16.msra.mxu1 %v29748_v44  ;;  %22601 = vmatprep.mubr.msk.bf16.mxu1 %vm911_vm4, %v33383_v58  ;;  %v33386_v44 = vld [vmem:[#allocation20_spill] sm:$0xff]  ;;  %v30200_v7 = vand.u32 %v16544_v42, %v32684_v9  ;;  %v33400_v42 = vld [vmem:[#allocation99_spill] sm:$0xff]  ;;  %v33407_v58 = vld [vmem:[#allocation74_spill] sm:$0xff] }
 0x652   :  { %22727 = vmatprep.subr.bf16.mxu1 %v30200_v7 }
 0x653   :  { %22008 = vmatmul.mubr.msk.bf16.gmra.mrb[68].mxu0 %vm911_vm4, %v33384_v29  ;;  %v33406_v29 = vld [vmem:[#allocation122_spill] sm:$0xff] }
 0x654   :  { %22011 = vmatprep.mubr.msk.bf16.mxu0 %vm911_vm4, %v33385_v27 }
 0x657   :  { %22602 = vmatmul.mubr.msk.bf16.gmra.mrb[68].mxu1 %vm911_vm4, %v33386_v44 }
 0x658   :  { %22605 = vmatprep.mubr.msk.bf16.mxu1 %vm911_vm4, %v33387_v30 }
 0x65b   :  { %22012 = vmatmul.mubr.msk.bf16.gmra.mrb[72].mxu0 %vm911_vm4, %v33388_v55 }
 0x65c   :  { %22015 = vmatprep.mubr.msk.bf16.mxu0 %vm911_vm4, %v33389_v36  ;;  %v30257_v36 = vld [vmem:[#allocation2 + $0x3d8] sm:$0xff] }
 0x65d   :  { %v9860_v27 = vrot.slane %v30257_v36, 1 }
 0x65f   :  { %22606 = vmatmul.mubr.msk.bf16.gmra.mrb[72].mxu1 %vm911_vm4, %v33390_v47 }
 0x660   :  { %22609 = vmatprep.mubr.msk.bf16.mxu1 %vm911_vm4, %v33391_v49  ;;  %v30253_v49 = vld [vmem:[#allocation2 + $0x510] sm:$0xff] }
 0x661   :  { %v14398_v30 = vrot.slane %v30253_v49, 1 }
 0x663   :  { %22016 = vmatmul.mubr.msk.bf16.gmra.mrb[76].mxu0 %vm911_vm4, %v33392_v63  ;;  %v30243_v63 = vld [vmem:[#allocation2 + $0x508] sm:$0xff] }
 0x664   :  { %22019 = vmatprep.mubr.msk.bf16.mxu0 %vm911_vm4, %v33393_v22  ;;  %v33401_v22 = vld [vmem:[#allocation106_spill] sm:$0xff] }
 0x667   :  { %22610 = vmatmul.mubr.msk.bf16.gmra.mrb[76].mxu1 %vm911_vm4, %v33394_v34  ;;  %v33402_v34 = vld [vmem:[#allocation115_spill] sm:$0xff] }
 0x668   :  { %22613 = vmatprep.mubr.msk.bf16.mxu1 %vm911_vm4, %v33395_v56  ;;  %v30235_v56 = vld [vmem:[#allocation2 + $0x3c0] sm:$0xff] }
 0x66b   :  { %22020 = vmatmul.mubr.msk.bf16.gmra.mrb[80].mxu0 %vm911_vm4, %v33396_v1  ;;  %v30237_v1 = vld [vmem:[#allocation2 + $0x3c8] sm:$0xff] }
 0x66c   :  { %22023 = vmatprep.mubr.msk.bf16.mxu0 %vm911_vm4, %v33397_v26  ;;  %v33403_v26 = vld [vmem:[#allocation118_spill] sm:$0xff] }
 0x66f   :  { %22614 = vmatmul.mubr.msk.bf16.gmra.mrb[80].mxu1 %vm911_vm4, %v33398_v38  ;;  %v30241_v38 = vld [vmem:[#allocation2 + $0x500] sm:$0xff] }
 0x670   :  { %22617 = vmatprep.mubr.msk.bf16.mxu1 %vm911_vm4, %v33399_v2  ;;  %v9856_v2 = vrot.slane %v30237_v1, 1  ;;  %v14395_v47 = vrot.slane %v30241_v38, 1  ;;  %v30263_v44 = vpack.c.bf16 %v30243_v63, %v30241_v38 }
 0x672   :  { %33405 = vst [vmem:[#allocation131_spill] sm:$0xff] %v30263_v44 }
 0x673   :  { %22024 = vmatmul.mubr.msk.bf16.gmra.mrb[84].mxu0 %vm911_vm4, %v33400_v42  ;;  %v30247_v42 = vpack.c.bf16 %v30237_v1, %v30235_v56 }
 0x674   :  { %22027 = vmatprep.mubr.msk.bf16.mxu0 %vm911_vm4, %v33401_v22  ;;  %v9855_v22 = vrot.slane %v30235_v56, 1 }
 0x675   :  { %33404 = vst [vmem:[#allocation112_spill] sm:$0xff] %v30247_v42 }
 0x676   :  { %v9857_v4 = vsel %vm268_vm2, %v9855_v22, %v9856_v2 }
 0x677   :  { %22618 = vmatmul.mubr.msk.bf16.gmra.mrb[84].mxu1 %vm911_vm4, %v33402_v34  ;;  %v30251_v34 = vld [vmem:[#allocation2 + $0x3d0] sm:$0xff] }
 0x678   :  { %22621 = vmatprep.mubr.msk.bf16.mxu1 %vm911_vm4, %v33403_v26  ;;  %v14396_v26 = vrot.slane %v30243_v63, 1  ;;  %v9858_v55 = vrot.slane %v30251_v34, 1  ;;  %v30290_v22 = vpack.c.bf16 %v30257_v36, %v30251_v34 }
 0x67a   :  { %v9859_v45 = vsel %vm268_vm2, %v9856_v2, %v9858_v55  ;;  %v14397_v31 = vsel %vm268_vm2, %v14395_v47, %v14396_v26  ;;  %v14399_v25 = vsel %vm268_vm2, %v14396_v26, %v14398_v30  ;;  %v9861_v41 = vsel %vm268_vm2, %v9858_v55, %v9860_v27  ;;  %33409 = vst [vmem:[#allocation14_spill] sm:$0xff] %v30290_v22  ;;  %v30293_v26 = vld [vmem:[#allocation2 + $0x520] sm:$0x3] }
 0x67b   :  { %22028 = vmatmul.mubr.msk.bf16.gmra.mrb[88].mxu0 %vm911_vm4, %v33406_v29  ;;  %v14400_v29 = vrot.slane %v30272_v53, 1  ;;  %v30281_v19 = vpack.c.bf16 %v9859_v45, %v9857_v4  ;;  %v14402_v2 = vrot.slane %v30293_v26, 1  ;;  %v30298_v45 = vpack.c.bf16 %v30272_v53, %v30253_v49 }
 0x67c   :  { %22031 = vmatprep.mubr.msk.bf16.mxu0 %vm911_vm4, %v30247_v42  ;;  %v30283_v42 = vpack.c.bf16 %v14399_v25, %v14397_v31 }
 0x67d   :  { %33408 = vst [vmem:[#allocation13_spill] sm:$0xff] %v30281_v19  ;;  %33410 = vst [vmem:[#allocation130_spill] sm:$0xff] %v30298_v45  ;;  %v14401_v4 = vsel %vm268_vm2, %v14398_v30, %v14400_v29  ;;  %v14403_v55 = vsel %vm268_vm2, %v14400_v29, %v14402_v2  ;;  %v33415_v29 = vld [vmem:[#allocation17_spill] sm:$0xff]  ;;  %v33416_v30 = vld [vmem:[#allocation108_spill] sm:$0xff] }
 0x67e   :  { %v33419_v2 = vld [vmem:[#allocation134_spill] sm:$0xff] }
 0x67f   :  { %22622 = vmatmul.mubr.msk.bf16.gmra.mrb[88].mxu1 %vm911_vm4, %v33407_v58  ;;  %v30285_v58 = vld [vmem:[#allocation2 + $0x3e0] sm:$0x3] }
 0x680   :  { %22625 = vmatprep.mubr.msk.bf16.mxu1 %vm911_vm4, %v30263_v44  ;;  %v9862_v47 = vrot.slane %v30285_v58, 1  ;;  %v30307_v44 = vpack.c.bf16 %v14403_v55, %v14401_v4  ;;  %v33422_v4 = vld [vmem:[#allocation144_spill] sm:$0xff]  ;;  %v33423_v55 = vld [vmem:[#allocation147_spill] sm:$0xff] }
 0x682   :  { %v9863_v31 = vsel %vm268_vm2, %v9860_v27, %v9862_v47  ;;  %v33414_v27 = vld [vmem:[#allocation15_spill] sm:$0xff]  ;;  %v33417_v47 = vld [vmem:[#allocation125_spill] sm:$0xff] }
 0x683   :  { %v30301_v25 = vpack.c.bf16 %v9863_v31, %v9861_v41  ;;  %22032 = vmatmul.mubr.msk.bf16.gmra.mrb[92].mxu0 %vm911_vm4, %v30290_v22  ;;  %v33413_v41 = vld [vmem:[#allocation103_spill] sm:$0xff]  ;;  %v33421_v31 = vld [vmem:[#allocation138_spill] sm:$0xff] }
 0x684   :  { %22035 = vmatprep.mubr.msk.bf16.mxu0 %vm911_vm4, %v33411_v39  ;;  %v33418_v39 = vld [vmem:[#allocation12_spill] sm:$0xff] }
 0x687   :  { %22626 = vmatmul.mubr.msk.bf16.gmra.mrb[92].mxu1 %vm911_vm4, %v30298_v45  ;;  %v30383_v45 = vld [vmem:[#allocation2 + $0x928] sm:$0xff] }
 0x688   :  { %22629 = vmatprep.mubr.msk.bf16.mxu1 %vm911_vm4, %v33412_v11  ;;  %v33420_v11 = vld [vmem:[#allocation141_spill] sm:$0xff]  ;;  %v9869_v51 = vrot.slane %v30383_v45, 1 }
 0x68b   :  { %22036 = vmatmul.mubr.msk.bf16.gmra.mrb[96].mxu0 %vm911_vm4, %v33413_v41  ;;  %v33424_v41 = vld [vmem:[#allocation152_spill] sm:$0xff] }
 0x68c   :  { %22039 = vmatprep.mubr.msk.bf16.mxu0 %vm911_vm4, %v33414_v27 }
 0x68f   :  { %22630 = vmatmul.mubr.msk.bf16.gmra.mrb[96].mxu1 %vm911_vm4, %v33415_v29  ;;  %v33425_v29 = vld [vmem:[#allocation156_spill] sm:$0xff] }
 0x690   :  { %22633 = vmatprep.mubr.msk.bf16.mxu1 %vm911_vm4, %v33416_v30  ;;  %v30379_v30 = vld [vmem:[#allocation2 + $0xa60] sm:$0xff] }
 0x691   :  { %v14407_v16 = vrot.slane %v30379_v30, 1 }
 0x693   :  { %22040 = vmatmul.mubr.msk.bf16.gmra.mrb[100].mxu0 %vm911_vm4, %v33417_v47  ;;  %v30369_v47 = vld [vmem:[#allocation2 + $0xa58] sm:$0xff] }
 0x694   :  { %22043 = vmatprep.mubr.msk.bf16.mxu0 %vm911_vm4, %v33418_v39  ;;  %v33426_v39 = vld [vmem:[#allocation57_spill] sm:$0xff] }
 0x697   :  { %22634 = vmatmul.mubr.msk.bf16.gmra.mrb[100].mxu1 %vm911_vm4, %v33419_v2  ;;  %v33427_v2 = vld [vmem:[#allocation172_spill] sm:$0xff] }
 0x698   :  { %22637 = vmatprep.mubr.msk.bf16.mxu1 %vm911_vm4, %v33420_v11  ;;  %v33428_v11 = vld [vmem:[#allocation175_spill] sm:$0xff] }
 0x69b   :  { %22044 = vmatmul.mubr.msk.bf16.gmra.mrb[104].mxu0 %vm911_vm4, %v33421_v31  ;;  %v33429_v31 = vld [vmem:[#allocation178_spill] sm:$0xff] }
 0x69c   :  { %22047 = vmatprep.mubr.msk.bf16.mxu0 %vm911_vm4, %v33422_v4  ;;  %v33430_v4 = vld [vmem:[#allocation181_spill] sm:$0xff] }
 0x69f   :  { %22638 = vmatmul.mubr.msk.bf16.gmra.mrb[104].mxu1 %vm911_vm4, %v33423_v55  ;;  %v33431_v55 = vld [vmem:[#allocation184_spill] sm:$0xff] }
 0x6a0   :  { %22641 = vmatprep.mubr.msk.bf16.mxu1 %vm911_vm4, %v33424_v41  ;;  %v33432_v41 = vld [vmem:[#allocation187_spill] sm:$0xff] }
 0x6a3   :  { %22048 = vmatmul.mubr.msk.bf16.gmra.mrb[108].mxu0 %vm911_vm4, %v33425_v29  ;;  %v33433_v29 = vld [vmem:[#allocation190_spill] sm:$0xff] }
 0x6a4   :  { %22051 = vmatprep.mubr.msk.bf16.mxu0 %vm911_vm4, %v33426_v39  ;;  %v33434_v39 = vld [vmem:[#allocation193_spill] sm:$0xff] }
 0x6a7   :  { %22642 = vmatmul.mubr.msk.bf16.gmra.mrb[108].mxu1 %vm911_vm4, %v33427_v2  ;;  %v33435_v2 = vld [vmem:[#allocation196_spill] sm:$0xff] }
 0x6a8   :  { %22645 = vmatprep.mubr.msk.bf16.mxu1 %vm911_vm4, %v33428_v11  ;;  %v30361_v11 = vld [vmem:[#allocation2 + $0x910] sm:$0xff] }
 0x6ab   :  { %22052 = vmatmul.mubr.msk.bf16.gmra.mrb[112].mxu0 %vm911_vm4, %v33429_v31  ;;  %v30363_v31 = vld [vmem:[#allocation2 + $0x918] sm:$0xff] }
 0x6ac   :  { %22055 = vmatprep.mubr.msk.bf16.mxu0 %vm911_vm4, %v33430_v4  ;;  %v33436_v4 = vld [vmem:[#allocation199_spill] sm:$0xff] }
 0x6af   :  { %22646 = vmatmul.mubr.msk.bf16.gmra.mrb[112].mxu1 %vm911_vm4, %v33431_v55  ;;  %v30367_v55 = vld [vmem:[#allocation2 + $0xa50] sm:$0xff] }
 0x6b0   :  { %22649 = vmatprep.mubr.msk.bf16.mxu1 %vm911_vm4, %v33432_v41  ;;  %v9865_v41 = vrot.slane %v30363_v31, 1  ;;  %v14404_v27 = vrot.slane %v30367_v55, 1  ;;  %v30389_v6 = vpack.c.bf16 %v30369_v47, %v30367_v55 }
 0x6b2   :  { %33438 = vst [vmem:[#allocation136_spill] sm:$0xff] %v30389_v6 }
 0x6b3   :  { %22056 = vmatmul.mubr.msk.bf16.gmra.mrb[116].mxu0 %vm911_vm4, %v33433_v29  ;;  %v30373_v29 = vpack.c.bf16 %v30363_v31, %v30361_v11 }
 0x6b4   :  { %22059 = vmatprep.mubr.msk.bf16.mxu0 %vm911_vm4, %v33434_v39  ;;  %v9864_v39 = vrot.slane %v30361_v11, 1 }
 0x6b5   :  { %33437 = vst [vmem:[#allocation133_spill] sm:$0xff] %v30373_v29 }
 0x6b6   :  { %v9866_v3 = vsel %vm268_vm2, %v9864_v39, %v9865_v41 }
 0x6b7   :  { %22650 = vmatmul.mubr.msk.bf16.gmra.mrb[116].mxu1 %vm911_vm4, %v33435_v2  ;;  %v30377_v2 = vld [vmem:[#allocation2 + $0x920] sm:$0xff] }
 0x6b8   :  { %22653 = vmatprep.mubr.msk.bf16.mxu1 %vm911_vm4, %v33436_v4  ;;  %v14405_v4 = vrot.slane %v30369_v47, 1  ;;  %v9867_v22 = vrot.slane %v30377_v2, 1  ;;  %v30416_v39 = vpack.c.bf16 %v30383_v45, %v30377_v2 }
 0x6ba   :  { %v9868_v28 = vsel %vm268_vm2, %v9865_v41, %v9867_v22  ;;  %v14406_v18 = vsel %vm268_vm2, %v14404_v27, %v14405_v4  ;;  %v14408_v43 = vsel %vm268_vm2, %v14405_v4, %v14407_v16  ;;  %v9870_v59 = vsel %vm268_vm2, %v9867_v22, %v9869_v51  ;;  %v30419_v4 = vld [vmem:[#allocation2 + $0xa70] sm:$0x3] }
 0x6bb   :  { %22060 = vmatmul.mubr.msk.bf16.gmra.mrb[120].mxu0 %vm911_vm4, %v29671_v0  ;;  %v14409_v0 = vrot.slane %v30398_v23, 1  ;;  %v30407_v52 = vpack.c.bf16 %v9868_v28, %v9866_v3  ;;  %v14411_v41 = vrot.slane %v30419_v4, 1  ;;  %v30424_v28 = vpack.c.bf16 %v30398_v23, %v30379_v30 }
 0x6bc   :  { %22063 = vmatprep.mubr.msk.bf16.mxu0 %vm911_vm4, %v30373_v29  ;;  %v30409_v29 = vpack.c.bf16 %v14408_v43, %v14406_v18 }
 0x6bd   :  { %33439 = vst [vmem:[#allocation139_spill] sm:$0xff] %v30407_v52  ;;  %v14410_v3 = vsel %vm268_vm2, %v14407_v16, %v14409_v0  ;;  %v14412_v22 = vsel %vm268_vm2, %v14409_v0, %v14411_v41  ;;  %v33443_v0 = vld [vmem:[#allocation70_spill] sm:$0xff]  ;;  %v33444_v16 = vld [vmem:[#allocation69_spill] sm:$0xff]  ;;  %v33445_v41 = vld [vmem:[#allocation75_spill] sm:$0xff] }
 0x6bf   :  { %22654 = vmatmul.mubr.msk.bf16.gmra.mrb[120].mxu1 %vm911_vm4, %v29679_v15  ;;  %v30411_v15 = vld [vmem:[#allocation2 + $0x930] sm:$0x3] }
 0x6c0   :  { %22657 = vmatprep.mubr.msk.bf16.mxu1 %vm911_vm4, %v30389_v6  ;;  %v9871_v27 = vrot.slane %v30411_v15, 1  ;;  %v30433_v6 = vpack.c.bf16 %v14412_v22, %v14410_v3  ;;  %v33446_v3 = vld [vmem:[#allocation78_spill] sm:$0xff]  ;;  %v33447_v22 = vld [vmem:[#allocation81_spill] sm:$0xff] }
 0x6c2   :  { %v9872_v43 = vsel %vm268_vm2, %v9869_v51, %v9871_v27  ;;  %v25072_v51 = vld [vmem:[#allocation5 + $0x8] ss:$0 sps:$4 sm:$0x66]  }
 0x6c3   :  { %v30427_v18 = vpack.c.bf16 %v9872_v43, %v9870_v59  ;;  %22064 = vmatmul.mubr.msk.bf16.gmra.mrb[124].mxu0 %vm911_vm4, %v30416_v39  ;;  %v33442_v59 = vld [vmem:[#allocation65_spill] sm:$0xff]  ;;  %v12377_v27 = vrot.slane %v25072_v51, 1  ;;  %v33450_v51 = vld [vmem:[#allocation110_spill] sm:$0xff] }
 0x6c4   :  { %22069 = vmatprep.mubr.msk.bf16.mxu0 %vm911_vm4, %v33440_v57  ;;  %v25073_v57 = vld [vmem:[#allocation5 + $0x8] ss:$0 sps:$4 sm:$0x66]  }
 0x6c5   :  { %v16917_v43 = vrot.slane %v25073_v57, 1  ;;  %v33453_v57 = vld [vmem:[#allocation137_spill] sm:$0xff] }
 0x6c7   :  { %22658 = vmatmul.mubr.msk.bf16.gmra.mrb[124].mxu1 %vm911_vm4, %v30424_v28 }
 0x6c8   :  { %22663 = vmatprep.mubr.msk.bf16.mxu1 %vm911_vm4, %v33441_v50  ;;  %v30452_v50 = vand.u32 %v12377_v27, %v32684_v9  ;;  %v33452_v27 = vld [vmem:[#allocation135_spill] sm:$0xff] }
 0x6cb   :  { %22070 = vmatmul.mubr.msk.bf16.vlgmr.msra.gmra.mrb[64].mxu0 %vm911_vm4, %v33442_v59  ;;  %v33449_v59 = vld [vmem:[#allocation121_spill] sm:$0xff] }
 0x6cc   :  { %22134 = vmatpush3.bf16.msra.mxu0 %v30192_v37  ;;  %22073 = vmatprep.mubr.msk.bf16.mxu0 %vm911_vm4, %v33443_v0  ;;  %v30456_v37 = vand.u32 %v16917_v43, %v32684_v9  ;;  %v33454_v43 = vld [vmem:[#allocation140_spill] sm:$0xff] }
 0x6cd   :  { %22199 = vmatprep.subr.bf16.mxu0 %v30452_v50 }
 0x6cf   :  { %22664 = vmatmul.mubr.msk.bf16.vlgmr.msra.gmra.mrb[64].mxu1 %vm911_vm4, %v33444_v16  ;;  %v33451_v16 = vld [vmem:[#allocation113_spill] sm:$0xff] }
 0x6d0   :  { %22728 = vmatpush3.bf16.msra.mxu1 %v30200_v7  ;;  %22667 = vmatprep.mubr.msk.bf16.mxu1 %vm911_vm4, %v33445_v41  ;;  %v33448_v7 = vld [vmem:[#allocation120_spill] sm:$0xff]  ;;  %v33466_v41 = vld [vmem:[#allocation162_spill] sm:$0xff] }
 0x6d1   :  { %22793 = vmatprep.subr.bf16.mxu1 %v30456_v37 }
 0x6d3   :  { %22074 = vmatmul.mubr.msk.bf16.gmra.mrb[68].mxu0 %vm911_vm4, %v33446_v3  ;;  %v9888_v3 = vrot.slane %v30251_v34, 2 }
 0x6d4   :  { %22077 = vmatprep.mubr.msk.bf16.mxu0 %vm911_vm4, %v33447_v22  ;;  %v33455_v22 = vld [vmem:[#allocation143_spill] sm:$0xff] }
 0x6d7   :  { %22668 = vmatmul.mubr.msk.bf16.gmra.mrb[68].mxu1 %vm911_vm4, %v33448_v7  ;;  %v33456_v7 = vld [vmem:[#allocation146_spill] sm:$0xff] }
 0x6d8   :  { %22671 = vmatprep.mubr.msk.bf16.mxu1 %vm911_vm4, %v33449_v59  ;;  %v33457_v59 = vld [vmem:[#allocation148_spill] sm:$0xff] }
 0x6db   :  { %22078 = vmatmul.mubr.msk.bf16.gmra.mrb[72].mxu0 %vm911_vm4, %v33450_v51  ;;  %v33458_v51 = vld [vmem:[#allocation151_spill] sm:$0xff] }
 0x6dc   :  { %22081 = vmatprep.mubr.msk.bf16.mxu0 %vm911_vm4, %v33451_v16  ;;  %v33459_v16 = vld [vmem:[#allocation153_spill] sm:$0xff] }
 0x6df   :  { %22672 = vmatmul.mubr.msk.bf16.gmra.mrb[72].mxu1 %vm911_vm4, %v33452_v27  ;;  %v33460_v27 = vld [vmem:[#allocation155_spill] sm:$0xff] }
 0x6e0   :  { %22675 = vmatprep.mubr.msk.bf16.mxu1 %vm911_vm4, %v33453_v57  ;;  %v33461_v57 = vld [vmem:[#allocation157_spill] sm:$0xff] }
 0x6e3   :  { %22082 = vmatmul.mubr.msk.bf16.gmra.mrb[76].mxu0 %vm911_vm4, %v33454_v43  ;;  %v33462_v43 = vld [vmem:[#allocation158_spill] sm:$0xff] }
 0x6e4   :  { %22085 = vmatprep.mubr.msk.bf16.mxu0 %vm911_vm4, %v33455_v22  ;;  %v33463_v22 = vld [vmem:[#allocation159_spill] sm:$0xff] }
 0x6e7   :  { %22676 = vmatmul.mubr.msk.bf16.gmra.mrb[76].mxu1 %vm911_vm4, %v33456_v7  ;;  %v33464_v7 = vld [vmem:[#allocation160_spill] sm:$0xff] }
 0x6e8   :  { %22679 = vmatprep.mubr.msk.bf16.mxu1 %vm911_vm4, %v33457_v59  ;;  %v33465_v59 = vld [vmem:[#allocation161_spill] sm:$0xff] }
 0x6eb   :  { %22086 = vmatmul.mubr.msk.bf16.gmra.mrb[80].mxu0 %vm911_vm4, %v33458_v51  ;;  %v9886_v51 = vrot.slane %v30237_v1, 2 }
 0x6ec   :  { %22089 = vmatprep.mubr.msk.bf16.mxu0 %vm911_vm4, %v33459_v16  ;;  %v9885_v16 = vrot.slane %v30235_v56, 2  ;;  %v33467_v56 = vld [vmem:[#allocation163_spill] sm:$0xff] }
 0x6ee   :  { %v9887_v1 = vsel %vm509_vm3, %v9885_v16, %v9886_v51  ;;  %v14432_v16 = vrot.slane %v30293_v26, 2  ;;  %v33475_v26 = vld [vmem:[#allocation167_spill] sm:$0xff] }
 0x6ef   :  { %22680 = vmatmul.mubr.msk.bf16.gmra.mrb[80].mxu1 %vm911_vm4, %v33460_v27  ;;  %v14425_v27 = vrot.slane %v30241_v38, 2 }
 0x6f0   :  { %22683 = vmatprep.mubr.msk.bf16.mxu1 %vm911_vm4, %v33461_v57  ;;  %v14426_v57 = vrot.slane %v30243_v63, 2  ;;  %v9889_v63 = vsel %vm509_vm3, %v9886_v51, %v9888_v3 }
 0x6f2   :  { %v14427_v34 = vsel %vm509_vm3, %v14425_v27, %v14426_v57 }
 0x6f3   :  { %22090 = vmatmul.mubr.msk.bf16.gmra.mrb[84].mxu0 %vm911_vm4, %v33462_v43  ;;  %v14428_v43 = vrot.slane %v30253_v49, 2 }
 0x6f4   :  { %22093 = vmatprep.mubr.msk.bf16.mxu0 %vm911_vm4, %v33463_v22  ;;  %v9890_v22 = vrot.slane %v30257_v36, 2  ;;  %v30519_v36 = vpack.c.bf16 %v9889_v63, %v9887_v1  ;;  %v33472_v63 = vld [vmem:[#allocation164_spill] sm:$0xff] }
 0x6f5   :  { %v14429_v49 = vsel %vm509_vm3, %v14426_v57, %v14428_v43 }
 0x6f6   :  { %33468 = vst [vmem:[#allocation142_spill] sm:$0xff] %v30519_v36  ;;  %v9891_v38 = vsel %vm509_vm3, %v9888_v3, %v9890_v22  ;;  %v33476_v3 = vld [vmem:[#allocation123_spill] sm:$0xff] }
 0x6f7   :  { %22684 = vmatmul.mubr.msk.bf16.gmra.mrb[84].mxu1 %vm911_vm4, %v33464_v7  ;;  %v14430_v7 = vrot.slane %v30272_v53, 2  ;;  %v30521_v53 = vpack.c.bf16 %v14429_v49, %v14427_v34  ;;  %v33481_v34 = vld [vmem:[#allocation42_spill] sm:$0xff]  ;;  %v33482_v49 = vld [vmem:[#allocation39_spill] sm:$0xff] }
 0x6f8   :  { %22687 = vmatprep.mubr.msk.bf16.mxu1 %vm911_vm4, %v33465_v59 }
 0x6f9   :  { %33469 = vst [vmem:[#allocation154_spill] sm:$0xff] %v30521_v53  ;;  %v14431_v27 = vsel %vm509_vm3, %v14428_v43, %v14430_v7  ;;  %v14433_v57 = vsel %vm509_vm3, %v14430_v7, %v14432_v16  ;;  %v33478_v7 = vld [vmem:[#allocation124_spill] sm:$0xff] }
 0x6fa   :  { %v30533_v1 = vpack.c.bf16 %v14433_v57, %v14431_v27  ;;  %v33479_v43 = vld [vmem:[#allocation128_spill] sm:$0xff]  ;;  %v33485_v27 = vld [vmem:[#allocation46_spill] sm:$0xff]  ;;  %v33486_v57 = vld [vmem:[#allocation43_spill] sm:$0xff] }
 0x6fb   :  { %22094 = vmatmul.mubr.msk.bf16.gmra.mrb[88].mxu0 %vm911_vm4, %v33466_v41  ;;  %v33484_v16 = vld [vmem:[#allocation44_spill] sm:$0xff] }
 0x6fc   :  { %22097 = vmatprep.mubr.msk.bf16.mxu0 %vm911_vm4, %v30281_v19  ;;  %v9892_v19 = vrot.slane %v30285_v58, 2  ;;  %33471 = vst [vmem:[#allocation149_spill] sm:$0xff] %v30533_v1  ;;  %v33474_v58 = vld [vmem:[#allocation166_spill] sm:$0xff] }
 0x6ff   :  { %22688 = vmatmul.mubr.msk.bf16.gmra.mrb[88].mxu1 %vm911_vm4, %v33467_v56  ;;  %v9893_v56 = vsel %vm509_vm3, %v9890_v22, %v9892_v19  ;;  %v33473_v19 = vld [vmem:[#allocation165_spill] sm:$0xff]  ;;  %v33477_v22 = vld [vmem:[#allocation168_spill] sm:$0xff] }
 0x700   :  { %22691 = vmatprep.mubr.msk.bf16.mxu1 %vm911_vm4, %v30283_v42  ;;  %v30527_v51 = vpack.c.bf16 %v9893_v56, %v9891_v38  ;;  %v33480_v56 = vld [vmem:[#allocation127_spill] sm:$0xff]  ;;  %v33483_v38 = vld [vmem:[#allocation45_spill] sm:$0xff] }
 0x702   :  { %33470 = vst [vmem:[#allocation145_spill] sm:$0xff] %v30527_v51 }
 0x703   :  { %22098 = vmatmul.mubr.msk.bf16.gmra.mrb[92].mxu0 %vm911_vm4, %v30301_v25 }
 0x704   :  { %22101 = vmatprep.mubr.msk.bf16.mxu0 %vm911_vm4, %v33472_v63  ;;  %v33487_v63 = vld [vmem:[#allocation51_spill] sm:$0xff] }
 0x707   :  { %22692 = vmatmul.mubr.msk.bf16.gmra.mrb[92].mxu1 %vm911_vm4, %v30307_v44 }
 0x708   :  { %22695 = vmatprep.mubr.msk.bf16.mxu1 %vm911_vm4, %v33473_v19  ;;  %v33488_v19 = vld [vmem:[#allocation50_spill] sm:$0xff] }
 0x70b   :  { %22102 = vmatmul.mubr.msk.bf16.gmra.mrb[96].mxu0 %vm911_vm4, %v33474_v58  ;;  %v33489_v58 = vld [vmem:[#allocation48_spill] sm:$0xff] }
 0x70c   :  { %22105 = vmatprep.mubr.msk.bf16.mxu0 %vm911_vm4, %v33475_v26 }
 0x70f   :  { %22696 = vmatmul.mubr.msk.bf16.gmra.mrb[96].mxu1 %vm911_vm4, %v33476_v3  ;;  %v33490_v3 = vld [vmem:[#allocation52_spill] sm:$0xff] }
 0x710   :  { %22699 = vmatprep.mubr.msk.bf16.mxu1 %vm911_vm4, %v33477_v22 }
 0x713   :  { %22106 = vmatmul.mubr.msk.bf16.gmra.mrb[100].mxu0 %vm911_vm4, %v33478_v7 }
 0x714   :  { %22109 = vmatprep.mubr.msk.bf16.mxu0 %vm911_vm4, %v33479_v43 }
 0x717   :  { %22700 = vmatmul.mubr.msk.bf16.gmra.mrb[100].mxu1 %vm911_vm4, %v33480_v56 }
 0x718   :  { %22703 = vmatprep.mubr.msk.bf16.mxu1 %vm911_vm4, %v33481_v34  ;;  %v33498_v34 = vld [vmem:[#allocation64_spill] sm:$0xff] }
 0x71b   :  { %22110 = vmatmul.mubr.msk.bf16.gmra.mrb[104].mxu0 %vm911_vm4, %v33482_v49  ;;  %v9897_v49 = vrot.slane %v30377_v2, 2 }
 0x71c   :  { %22113 = vmatprep.mubr.msk.bf16.mxu0 %vm911_vm4, %v33483_v38  ;;  %v33491_v38 = vld [vmem:[#allocation55_spill] sm:$0xff] }
 0x71f   :  { %22704 = vmatmul.mubr.msk.bf16.gmra.mrb[104].mxu1 %vm911_vm4, %v33484_v16  ;;  %v33492_v16 = vld [vmem:[#allocation54_spill] sm:$0xff] }
 0x720   :  { %22707 = vmatprep.mubr.msk.bf16.mxu1 %vm911_vm4, %v33485_v27  ;;  %v33493_v27 = vld [vmem:[#allocation53_spill] sm:$0xff] }
 0x723   :  { %22114 = vmatmul.mubr.msk.bf16.gmra.mrb[108].mxu0 %vm911_vm4, %v33486_v57  ;;  %v33494_v57 = vld [vmem:[#allocation59_spill] sm:$0xff] }
 0x724   :  { %22117 = vmatprep.mubr.msk.bf16.mxu0 %vm911_vm4, %v33487_v63  ;;  %v33495_v63 = vld [vmem:[#allocation61_spill] sm:$0xff] }
 0x727   :  { %22708 = vmatmul.mubr.msk.bf16.gmra.mrb[108].mxu1 %vm911_vm4, %v33488_v19  ;;  %v33496_v19 = vld [vmem:[#allocation60_spill] sm:$0xff] }
 0x728   :  { %22711 = vmatprep.mubr.msk.bf16.mxu1 %vm911_vm4, %v33489_v58  ;;  %v33497_v58 = vld [vmem:[#allocation56_spill] sm:$0xff] }
 0x72b   :  { %22118 = vmatmul.mubr.msk.bf16.gmra.mrb[112].mxu0 %vm911_vm4, %v33490_v3  ;;  %v9895_v3 = vrot.slane %v30363_v31, 2 }
 0x72c   :  { %22121 = vmatprep.mubr.msk.bf16.mxu0 %vm911_vm4, %v33491_v38  ;;  %v9894_v38 = vrot.slane %v30361_v11, 2  ;;  %v33499_v11 = vld [vmem:[#allocation66_spill] sm:$0xff] }
 0x72e   :  { %v9896_v31 = vsel %vm509_vm3, %v9894_v38, %v9895_v3  ;;  %v14441_v38 = vrot.slane %v30419_v4, 2  ;;  %v25075_v4 = vld [vmem:[#allocation5 + $0x8] ss:$0 sps:$4 sm:$0xcc]  }
 0x72f   :  { %22712 = vmatmul.mubr.msk.bf16.gmra.mrb[112].mxu1 %vm911_vm4, %v33492_v16  ;;  %v14434_v16 = vrot.slane %v30367_v55, 2 }
 0x730   :  { %22715 = vmatprep.mubr.msk.bf16.mxu1 %vm911_vm4, %v33493_v27  ;;  %v14435_v27 = vrot.slane %v30369_v47, 2  ;;  %v9898_v47 = vsel %vm509_vm3, %v9895_v3, %v9897_v49 }
 0x732   :  { %v14436_v2 = vsel %vm509_vm3, %v14434_v16, %v14435_v27 }
 0x733   :  { %22122 = vmatmul.mubr.msk.bf16.gmra.mrb[116].mxu0 %vm911_vm4, %v33494_v57  ;;  %v14437_v57 = vrot.slane %v30379_v30, 2 }
 0x734   :  { %22125 = vmatprep.mubr.msk.bf16.mxu0 %vm911_vm4, %v33495_v63  ;;  %v9899_v63 = vrot.slane %v30383_v45, 2  ;;  %v30609_v45 = vpack.c.bf16 %v9898_v47, %v9896_v31  ;;  %v33504_v47 = vld [vmem:[#allocation37_spill] sm:$0xff] }
 0x735   :  { %v14438_v30 = vsel %vm509_vm3, %v14435_v27, %v14437_v57 }
 0x736   :  { %33500 = vst [vmem:[#allocation150_spill] sm:$0xff] %v30609_v45  ;;  %v9900_v55 = vsel %vm509_vm3, %v9897_v49, %v9899_v63 }
 0x737   :  { %22716 = vmatmul.mubr.msk.bf16.gmra.mrb[116].mxu1 %vm911_vm4, %v33496_v19  ;;  %v14439_v19 = vrot.slane %v30398_v23, 2  ;;  %v30611_v23 = vpack.c.bf16 %v14438_v30, %v14436_v2  ;;  %v33505_v2 = vld [vmem:[#allocation93_spill] sm:$0xff]  ;;  %v33506_v30 = vld [vmem:[#allocation126_spill] sm:$0xff] }
 0x738   :  { %22719 = vmatprep.mubr.msk.bf16.mxu1 %vm911_vm4, %v33497_v58 }
 0x739   :  { %33501 = vst [vmem:[#allocation170_spill] sm:$0xff] %v30611_v23  ;;  %v14440_v16 = vsel %vm509_vm3, %v14437_v57, %v14439_v19  ;;  %v14442_v27 = vsel %vm509_vm3, %v14439_v19, %v14441_v38  ;;  %v17294_v57 = vshll.u32 %v25075_v4, 16  ;;  %v33508_v38 = vld [vmem:[#allocation84_spill] sm:$0xff] }
 0x73a   :  { %v30623_v31 = vpack.c.bf16 %v14442_v27, %v14440_v16  ;;  %v33509_v16 = vld [vmem:[#allocation109_spill] sm:$0xff]  ;;  %v33510_v27 = vld [vmem:[#allocation94_spill] sm:$0xff] }
 0x73b   :  { %22126 = vmatmul.mubr.msk.bf16.gmra.mrb[120].mxu0 %vm911_vm4, %v33498_v34  ;;  %v17296_v19 = vrot.slane %v17294_v57, 3  ;;  %v33518_v57 = vld [vmem:[#allocation169_spill] sm:$0xff] }
 0x73c   :  { %22129 = vmatprep.mubr.msk.bf16.mxu0 %vm911_vm4, %v30407_v52  ;;  %v9901_v52 = vrot.slane %v30411_v15, 2  ;;  %33503 = vst [vmem:[#allocation41_spill] sm:$0xff] %v30623_v31  ;;  %v25074_v15 = vld [vmem:[#allocation5 + $0x8] ss:$0 sps:$4 sm:$0xcc]  }
 0x73f   :  { %22720 = vmatmul.mubr.msk.bf16.gmra.mrb[120].mxu1 %vm911_vm4, %v33499_v11  ;;  %v9902_v11 = vsel %vm509_vm3, %v9899_v63, %v9901_v52  ;;  %v12751_v52 = vshrl.u32 %v25074_v15, 16 }
 0x740   :  { %22723 = vmatprep.mubr.msk.bf16.mxu1 %vm911_vm4, %v30409_v29  ;;  %v30617_v3 = vpack.c.bf16 %v9902_v11, %v9900_v55  ;;  %v33507_v55 = vld [vmem:[#allocation82_spill] sm:$0xff] }
 0x742   :  { %33502 = vst [vmem:[#allocation18_spill] sm:$0xff] %v30617_v3 }
 0x743   :  { %22130 = vmatmul.mubr.msk.bf16.gmra.mrb[124].mxu0 %vm911_vm4, %v30427_v18 }
 0x744   :  { %22135 = vmatprep.mubr.msk.bf16.mxu0 %vm911_vm4, %v29706_v20  ;;  %v12754_v20 = vshll.u32 %v25074_v15, 16  ;;  %v33511_v15 = vld [vmem:[#allocation101_spill] sm:$0xff] }
 0x746   :  { %v12756_v49 = vrot.slane %v12754_v20, 3  ;;  %v33513_v20 = vld [vmem:[#allocation119_spill] sm:$0xff] }
 0x747   :  { %22724 = vmatmul.mubr.msk.bf16.gmra.mrb[124].mxu1 %vm911_vm4, %v30433_v6 }
 0x748   :  { %22729 = vmatprep.mubr.msk.bf16.mxu1 %vm911_vm4, %v29712_v14  ;;  %v12753_v14 = vrot.slane %v12751_v52, 2  ;;  %v33512_v52 = vld [vmem:[#allocation105_spill] sm:$0xff] }
 0x74a   :  { %v12757_v63 = vor.u32 %v12756_v49, %v12753_v14  ;;  %v33515_v14 = vld [vmem:[#allocation116_spill] sm:$0xff]  ;;  %v33516_v49 = vld [vmem:[#allocation117_spill] sm:$0xff] }
 0x74b   :  { %22136 = vmatmul.mubr.msk.bf16.vlgmr.msra.gmra.mrb[64].mxu0 %vm911_vm4, %v29731_v12  ;;  %v17291_v12 = vshrl.u32 %v25075_v4, 16  ;;  %v33514_v4 = vld [vmem:[#allocation111_spill] sm:$0xff] }
 0x74c   :  { %22200 = vmatpush3.bf16.msra.mxu0 %v30452_v50  ;;  %22139 = vmatprep.mubr.msk.bf16.mxu0 %vm911_vm4, %v29740_v54 }
 0x74d   :  { %v17293_v50 = vrot.slane %v17291_v12, 2  ;;  %v33517_v12 = vld [vmem:[#allocation77_spill] sm:$0xff] }
 0x74f   :  { %22730 = vmatmul.mubr.msk.bf16.vlgmr.msra.gmra.mrb[64].mxu1 %vm911_vm4, %v29738_v48  ;;  %v30644_v48 = vand.u32 %v12757_v63, %v32684_v9  ;;  %v17297_v11 = vor.u32 %v17296_v19, %v17293_v50  ;;  %v33519_v63 = vld [vmem:[#allocation68_spill] sm:$0xff]  ;;  %v33521_v19 = vld [vmem:[#allocation86_spill] sm:$0xff] }
 0x750   :  { %22794 = vmatpush3.bf16.msra.mxu1 %v30456_v37  ;;  %22733 = vmatprep.mubr.msk.bf16.mxu1 %vm911_vm4, %v29750_v61  ;;  %v33520_v50 = vld [vmem:[#allocation76_spill] sm:$0xff] }
 0x751   :  { %22265 = vmatprep.subr.bf16.mxu0 %v30644_v48  ;;  %v30652_v37 = vand.u32 %v17297_v11, %v32684_v9  ;;  %v33522_v11 = vld [vmem:[#allocation79_spill] sm:$0xff] }
 0x753   :  { %22140 = vmatmul.mubr.msk.bf16.gmra.mrb[68].mxu0 %vm911_vm4, %v29771_v10  ;;  %22859 = vmatprep.subr.bf16.mxu1 %v30652_v37 }
 0x754   :  { %22143 = vmatprep.mubr.msk.bf16.mxu0 %vm911_vm4, %v29775_v40 }
 0x757   :  { %22734 = vmatmul.mubr.msk.bf16.gmra.mrb[68].mxu1 %vm911_vm4, %v29778_v17  ;;  %v31015_v17 = vld [vmem:[#allocation2 + $0xa98] sm:$0x3] }
 0x758   :  { %22737 = vmatprep.mubr.msk.bf16.mxu1 %vm911_vm4, %v29783_v35 }
 0x75b   :  { %22144 = vmatmul.mubr.msk.bf16.gmra.mrb[72].mxu0 %vm911_vm4, %v29803_v21 }
 0x75c   :  { %22147 = vmatprep.mubr.msk.bf16.mxu0 %vm911_vm4, %v29807_v32 }
 0x75f   :  { %22738 = vmatmul.mubr.msk.bf16.gmra.mrb[72].mxu1 %vm911_vm4, %v29810_v60 }
 0x760   :  { %22741 = vmatprep.mubr.msk.bf16.mxu1 %vm911_vm4, %v29815_v46  ;;  %v30987_v46 = vld [vmem:[#allocation2 + $0xa90] sm:$0xff] }
 0x763   :  { %22148 = vmatmul.mubr.msk.bf16.gmra.mrb[76].mxu0 %vm911_vm4, %v29835_v5 }
 0x764   :  { %22151 = vmatprep.mubr.msk.bf16.mxu0 %vm911_vm4, %v29839_v62 }
 0x767   :  { %22742 = vmatmul.mubr.msk.bf16.gmra.mrb[76].mxu1 %vm911_vm4, %v29842_v33 }
 0x768   :  { %22745 = vmatprep.mubr.msk.bf16.mxu1 %vm911_vm4, %v29847_v24 }
 0x76b   :  { %22152 = vmatmul.mubr.msk.bf16.gmra.mrb[80].mxu0 %vm911_vm4, %v29867_v8 }
 0x76c   :  { %22155 = vmatprep.mubr.msk.bf16.mxu0 %vm911_vm4, %v29871_v13 }
 0x76f   :  { %22746 = vmatmul.mubr.msk.bf16.gmra.mrb[80].mxu1 %vm911_vm4, %v33504_v47  ;;  %v33568_v47 = vld [vmem:[#allocation15_spill] sm:$0xff] }
 0x770   :  { %22749 = vmatprep.mubr.msk.bf16.mxu1 %vm911_vm4, %v33505_v2  ;;  %v30963_v2 = vld [vmem:[#allocation2 + $0xa80] sm:$0xff] }
 0x771   :  { %v14479_v8 = vrot.slane %v30963_v2, 1 }
 0x773   :  { %22156 = vmatmul.mubr.msk.bf16.gmra.mrb[84].mxu0 %vm911_vm4, %v33506_v30 }
 0x774   :  { %22159 = vmatprep.mubr.msk.bf16.mxu0 %vm911_vm4, %v33507_v55 }
 0x777   :  { %22750 = vmatmul.mubr.msk.bf16.gmra.mrb[84].mxu1 %vm911_vm4, %v33508_v38  ;;  %v30885_v38 = vld [vmem:[#allocation2 + $0x548] sm:$0x3] }
 0x778   :  { %22753 = vmatprep.mubr.msk.bf16.mxu1 %vm911_vm4, %v33509_v16 }
 0x77b   :  { %22160 = vmatmul.mubr.msk.bf16.gmra.mrb[88].mxu0 %vm911_vm4, %v33510_v27 }
 0x77c   :  { %22163 = vmatprep.mubr.msk.bf16.mxu0 %vm911_vm4, %v30519_v36 }
 0x77f   :  { %22754 = vmatmul.mubr.msk.bf16.gmra.mrb[88].mxu1 %vm911_vm4, %v33511_v15 }
 0x780   :  { %22757 = vmatprep.mubr.msk.bf16.mxu1 %vm911_vm4, %v30521_v53  ;;  %v30857_v53 = vld [vmem:[#allocation2 + $0x540] sm:$0xff] }
 0x783   :  { %22164 = vmatmul.mubr.msk.bf16.gmra.mrb[92].mxu0 %vm911_vm4, %v30527_v51  ;;  %v33567_v51 = vld [vmem:[#allocation130_spill] sm:$0xff] }
 0x784   :  { %22167 = vmatprep.mubr.msk.bf16.mxu0 %vm911_vm4, %v33512_v52  ;;  %v33523_v52 = vld [vmem:[#allocation83_spill] sm:$0xff] }
 0x787   :  { %22758 = vmatmul.mubr.msk.bf16.gmra.mrb[92].mxu1 %vm911_vm4, %v30533_v1  ;;  %v33566_v1 = vld [vmem:[#allocation14_spill] sm:$0xff] }
 0x788   :  { %22761 = vmatprep.mubr.msk.bf16.mxu1 %vm911_vm4, %v33513_v20  ;;  %v33524_v20 = vld [vmem:[#allocation85_spill] sm:$0xff] }
 0x78b   :  { %22168 = vmatmul.mubr.msk.bf16.gmra.mrb[96].mxu0 %vm911_vm4, %v33514_v4  ;;  %v33525_v4 = vld [vmem:[#allocation87_spill] sm:$0xff] }
 0x78c   :  { %22171 = vmatprep.mubr.msk.bf16.mxu0 %vm911_vm4, %v33515_v14 }
 0x78f   :  { %22762 = vmatmul.mubr.msk.bf16.gmra.mrb[96].mxu1 %vm911_vm4, %v33516_v49  ;;  %v33526_v49 = vld [vmem:[#allocation80_spill] sm:$0xff] }
 0x790   :  { %22765 = vmatprep.mubr.msk.bf16.mxu1 %vm911_vm4, %v33517_v12 }
 0x793   :  { %22172 = vmatmul.mubr.msk.bf16.gmra.mrb[100].mxu0 %vm911_vm4, %v33518_v57 }
 0x794   :  { %22175 = vmatprep.mubr.msk.bf16.mxu0 %vm911_vm4, %v33519_v63  ;;  %v33527_v63 = vld [vmem:[#allocation88_spill] sm:$0xff] }
 0x797   :  { %22766 = vmatmul.mubr.msk.bf16.gmra.mrb[100].mxu1 %vm911_vm4, %v33520_v50  ;;  %v33528_v50 = vld [vmem:[#allocation90_spill] sm:$0xff] }
 0x798   :  { %22769 = vmatprep.mubr.msk.bf16.mxu1 %vm911_vm4, %v33521_v19  ;;  %v33529_v19 = vld [vmem:[#allocation100_spill] sm:$0xff] }
 0x79b   :  { %22176 = vmatmul.mubr.msk.bf16.gmra.mrb[104].mxu0 %vm911_vm4, %v33522_v11  ;;  %v33530_v11 = vld [vmem:[#allocation95_spill] sm:$0xff] }
 0x79c   :  { %22179 = vmatprep.mubr.msk.bf16.mxu0 %vm911_vm4, %v33523_v52  ;;  %v33531_v52 = vld [vmem:[#allocation96_spill] sm:$0xff] }
 0x79f   :  { %22770 = vmatmul.mubr.msk.bf16.gmra.mrb[104].mxu1 %vm911_vm4, %v33524_v20  ;;  %v33532_v20 = vld [vmem:[#allocation97_spill] sm:$0xff] }
 0x7a0   :  { %22773 = vmatprep.mubr.msk.bf16.mxu1 %vm911_vm4, %v33525_v4  ;;  %v33533_v4 = vld [vmem:[#allocation104_spill] sm:$0xff] }
 0x7a3   :  { %22180 = vmatmul.mubr.msk.bf16.gmra.mrb[108].mxu0 %vm911_vm4, %v33526_v49  ;;  %v33534_v49 = vld [vmem:[#allocation102_spill] sm:$0xff] }
 0x7a4   :  { %22183 = vmatprep.mubr.msk.bf16.mxu0 %vm911_vm4, %v33527_v63  ;;  %v33535_v63 = vld [vmem:[#allocation98_spill] sm:$0xff] }
 0x7a7   :  { %22774 = vmatmul.mubr.msk.bf16.gmra.mrb[108].mxu1 %vm911_vm4, %v33528_v50  ;;  %v33536_v50 = vld [vmem:[#allocation107_spill] sm:$0xff] }
 0x7a8   :  { %22777 = vmatprep.mubr.msk.bf16.mxu1 %vm911_vm4, %v33529_v19  ;;  %v33537_v19 = vld [vmem:[#allocation114_spill] sm:$0xff] }
 0x7ab   :  { %22184 = vmatmul.mubr.msk.bf16.gmra.mrb[112].mxu0 %vm911_vm4, %v33530_v11  ;;  %v33538_v11 = vld [vmem:[#allocation16_spill] sm:$0xff] }
 0x7ac   :  { %22187 = vmatprep.mubr.msk.bf16.mxu0 %vm911_vm4, %v33531_v52 }
 0x7af   :  { %22778 = vmatmul.mubr.msk.bf16.gmra.mrb[112].mxu1 %vm911_vm4, %v33532_v20  ;;  %v33539_v20 = vld [vmem:[#allocation19_spill] sm:$0xff] }
 0x7b0   :  { %22781 = vmatprep.mubr.msk.bf16.mxu1 %vm911_vm4, %v33533_v4 }
 0x7b3   :  { %22188 = vmatmul.mubr.msk.bf16.gmra.mrb[116].mxu0 %vm911_vm4, %v33534_v49 }
 0x7b4   :  { %22191 = vmatprep.mubr.msk.bf16.mxu0 %vm911_vm4, %v33535_v63  ;;  %v33540_v63 = vld [vmem:[#allocation129_spill] sm:$0xff] }
 0x7b7   :  { %22782 = vmatmul.mubr.msk.bf16.gmra.mrb[116].mxu1 %vm911_vm4, %v33536_v50  ;;  %v30839_v50 = vld [vmem:[#allocation2 + $0x3f8] sm:$0xff] }
 0x7b8   :  { %22785 = vmatprep.mubr.msk.bf16.mxu1 %vm911_vm4, %v33537_v19  ;;  %v33541_v19 = vld [vmem:[#allocation73_spill] sm:$0xff]  ;;  %v9932_v52 = vrot.slane %v30839_v50, 1 }
 0x7bb   :  { %22192 = vmatmul.mubr.msk.bf16.gmra.mrb[120].mxu0 %vm911_vm4, %v33538_v11  ;;  %v33542_v11 = vld [vmem:[#allocation132_spill] sm:$0xff] }
 0x7bc   :  { %22195 = vmatprep.mubr.msk.bf16.mxu0 %vm911_vm4, %v30609_v45  ;;  %v13126_v45 = vld [vmem:[#allocation5 + $0xc] sm:$0x3] }
 0x7bf   :  { %22786 = vmatmul.mubr.msk.bf16.gmra.mrb[120].mxu1 %vm911_vm4, %v33539_v20  ;;  %v33543_v20 = vld [vmem:[#allocation21_spill] sm:$0xff] }
 0x7c0   :  { %22789 = vmatprep.mubr.msk.bf16.mxu1 %vm911_vm4, %v30611_v23  ;;  %v33544_v23 = vld [vmem:[#allocation20_spill] sm:$0xff] }
 0x7c3   :  { %22196 = vmatmul.mubr.msk.bf16.gmra.mrb[124].mxu0 %vm911_vm4, %v30617_v3  ;;  %v30775_v3 = vand.u32 %v13126_v45, %v32684_v9  ;;  %v33547_v45 = vld [vmem:[#allocation24_spill] sm:$0xff] }
 0x7c4   :  { %22201 = vmatprep.mubr.msk.bf16.mxu0 %vm911_vm4, %v33540_v63  ;;  %v17666_v63 = vld [vmem:[#allocation5 + $0xc] sm:$0x3] }
 0x7c7   :  { %22790 = vmatmul.mubr.msk.bf16.gmra.mrb[124].mxu1 %vm911_vm4, %v30623_v31  ;;  %v33545_v31 = vld [vmem:[#allocation22_spill] sm:$0xff] }
 0x7c8   :  { %22795 = vmatprep.mubr.msk.bf16.mxu1 %vm911_vm4, %v33541_v19  ;;  %v30783_v19 = vand.u32 %v17666_v63, %v32684_v9  ;;  %v33551_v9 = vld [vmem:[#allocation28_spill] sm:$0xff]  ;;  %v33554_v63 = vld [vmem:[#allocation35_spill] sm:$0xff] }
 0x7cb   :  { %22202 = vmatmul.mubr.msk.bf16.vlgmr.msra.gmra.mrb[64].mxu0 %vm911_vm4, %v33542_v11  ;;  %v33552_v11 = vld [vmem:[#allocation30_spill] sm:$0xff] }
 0x7cc   :  { %22266 = vmatpush3.bf16.msra.mxu0 %v30644_v48  ;;  %22205 = vmatprep.mubr.msk.bf16.mxu0 %vm911_vm4, %v33543_v20  ;;  %v33546_v48 = vld [vmem:[#allocation23_spill] sm:$0xff]  ;;  %v33553_v20 = vld [vmem:[#allocation33_spill] sm:$0xff] }
 0x7cd   :  { %22331 = vmatprep.subr.bf16.mxu0 %v30775_v3 }
 0x7cf   :  { %22796 = vmatmul.mubr.msk.bf16.vlgmr.msra.gmra.mrb[64].mxu1 %vm911_vm4, %v33544_v23  ;;  %v33548_v23 = vld [vmem:[#allocation25_spill] sm:$0xff] }
 0x7d0   :  { %22860 = vmatpush3.bf16.msra.mxu1 %v30652_v37  ;;  %22799 = vmatprep.mubr.msk.bf16.mxu1 %vm911_vm4, %v33545_v31  ;;  %v33549_v37 = vld [vmem:[#allocation26_spill] sm:$0xff]  ;;  %v33550_v31 = vld [vmem:[#allocation27_spill] sm:$0xff] }
 0x7d1   :  { %22925 = vmatprep.subr.bf16.mxu1 %v30783_v19 }
 0x7d3   :  { %22206 = vmatmul.mubr.msk.bf16.gmra.mrb[68].mxu0 %vm911_vm4, %v33546_v48  ;;  %v33555_v48 = vld [vmem:[#allocation38_spill] sm:$0xff] }
 0x7d4   :  { %22209 = vmatprep.mubr.msk.bf16.mxu0 %vm911_vm4, %v33547_v45  ;;  %v33556_v45 = vld [vmem:[#allocation49_spill] sm:$0xff] }
 0x7d7   :  { %22800 = vmatmul.mubr.msk.bf16.gmra.mrb[68].mxu1 %vm911_vm4, %v33548_v23  ;;  %v33557_v23 = vld [vmem:[#allocation89_spill] sm:$0xff] }
 0x7d8   :  { %22803 = vmatprep.mubr.msk.bf16.mxu1 %vm911_vm4, %v33549_v37  ;;  %v33558_v37 = vld [vmem:[#allocation99_spill] sm:$0xff] }
 0x7db   :  { %22210 = vmatmul.mubr.msk.bf16.gmra.mrb[72].mxu0 %vm911_vm4, %v33550_v31  ;;  %v33559_v31 = vld [vmem:[#allocation106_spill] sm:$0xff] }
 0x7dc   :  { %22213 = vmatprep.mubr.msk.bf16.mxu0 %vm911_vm4, %v33551_v9  ;;  %v33560_v9 = vld [vmem:[#allocation115_spill] sm:$0xff] }
 0x7df   :  { %22804 = vmatmul.mubr.msk.bf16.gmra.mrb[72].mxu1 %vm911_vm4, %v33552_v11  ;;  %v33561_v11 = vld [vmem:[#allocation118_spill] sm:$0xff] }
 0x7e0   :  { %22807 = vmatprep.mubr.msk.bf16.mxu1 %vm911_vm4, %v33553_v20  ;;  %v33562_v20 = vld [vmem:[#allocation122_spill] sm:$0xff] }
 0x7e3   :  { %22214 = vmatmul.mubr.msk.bf16.gmra.mrb[76].mxu0 %vm911_vm4, %v33554_v63  ;;  %v33563_v63 = vld [vmem:[#allocation112_spill] sm:$0xff] }
 0x7e4   :  { %22217 = vmatprep.mubr.msk.bf16.mxu0 %vm911_vm4, %v33555_v48  ;;  %v33564_v48 = vld [vmem:[#allocation74_spill] sm:$0xff] }
 0x7e7   :  { %22808 = vmatmul.mubr.msk.bf16.gmra.mrb[76].mxu1 %vm911_vm4, %v33556_v45  ;;  %v30825_v45 = vld [vmem:[#allocation2 + $0x3e8] sm:$0xff] }
 0x7e8   :  { %22811 = vmatprep.mubr.msk.bf16.mxu1 %vm911_vm4, %v33557_v23  ;;  %v30827_v23 = vld [vmem:[#allocation2 + $0x3f0] sm:$0xff] }
 0x7eb   :  { %22218 = vmatmul.mubr.msk.bf16.gmra.mrb[80].mxu0 %vm911_vm4, %v33558_v37  ;;  %v33565_v37 = vld [vmem:[#allocation131_spill] sm:$0xff] }
 0x7ec   :  { %22221 = vmatprep.mubr.msk.bf16.mxu0 %vm911_vm4, %v33559_v31  ;;  %v30831_v31 = vld [vmem:[#allocation2 + $0x528] sm:$0xff] }
 0x7ed   :  { %v14469_v49 = vrot.slane %v30831_v31, 1 }
 0x7ef   :  { %22812 = vmatmul.mubr.msk.bf16.gmra.mrb[80].mxu1 %vm911_vm4, %v33560_v9  ;;  %v30833_v9 = vld [vmem:[#allocation2 + $0x530] sm:$0xff] }
 0x7f0   :  { %22815 = vmatprep.mubr.msk.bf16.mxu1 %vm911_vm4, %v33561_v11  ;;  %v9915_v11 = vpack.c.bf16 %v30827_v23, %v30825_v45  ;;  %v14470_v4 = vrot.slane %v30833_v9, 1  ;;  %v14455_v12 = vpack.c.bf16 %v30833_v9, %v30831_v31 }
 0x7f2   :  { %v30866_v27 = vsel %vm268_vm2, %v14469_v49, %v14470_v4 }
 0x7f3   :  { %22222 = vmatmul.mubr.msk.bf16.gmra.mrb[84].mxu0 %vm911_vm4, %v33562_v20  ;;  %v9929_v20 = vrot.slane %v30825_v45, 1 }
 0x7f4   :  { %22225 = vmatprep.mubr.msk.bf16.mxu0 %vm911_vm4, %v33563_v63  ;;  %v9930_v63 = vrot.slane %v30827_v23, 1 }
 0x7f6   :  { %v30860_v15 = vsel %vm268_vm2, %v9929_v20, %v9930_v63  ;;  %v30863_v36 = vsel %vm268_vm2, %v9930_v63, %v9932_v52  ;;  %v30877_v20 = vld [vmem:[#allocation2 + $0x408] sm:$0x3] }
 0x7f7   :  { %22816 = vmatmul.mubr.msk.bf16.gmra.mrb[84].mxu1 %vm911_vm4, %v33564_v48  ;;  %v30841_v48 = vld [vmem:[#allocation2 + $0x538] sm:$0xff] }
 0x7f8   :  { %22819 = vmatprep.mubr.msk.bf16.mxu1 %vm911_vm4, %v33565_v37  ;;  %v30845_v37 = vld [vmem:[#allocation2 + $0x400] sm:$0xff]  ;;  %v14472_v57 = vrot.slane %v30841_v48, 1 }
 0x7f9   :  { %v9934_v14 = vrot.slane %v30845_v37, 1  ;;  %v9916_v49 = vpack.c.bf16 %v30845_v37, %v30839_v50 }
 0x7fa   :  { %v30869_v16 = vsel %vm268_vm2, %v14470_v4, %v14472_v57  ;;  %v9936_v4 = vrot.slane %v30877_v20, 1 }
 0x7fb   :  { %22226 = vmatmul.mubr.msk.bf16.gmra.mrb[88].mxu0 %vm911_vm4, %v33566_v1  ;;  %v14474_v1 = vrot.slane %v30857_v53, 1  ;;  %v30880_v63 = vsel %vm268_vm2, %v9932_v52, %v9934_v14 }
 0x7fc   :  { %22229 = vmatprep.mubr.msk.bf16.mxu0 %vm911_vm4, %v9915_v11  ;;  %v30891_v55 = vsel %vm268_vm2, %v9934_v14, %v9936_v4  ;;  %v33569_v14 = vld [vmem:[#allocation108_spill] sm:$0xff]  ;;  %v33570_v4 = vld [vmem:[#allocation125_spill] sm:$0xff]  ;;  %v30969_v11 = vld [vmem:[#allocation2 + $0x948] sm:$0xff] }
 0x7fd   :  { %v30896_v52 = vsel %vm268_vm2, %v14472_v57, %v14474_v1  ;;  %v33571_v57 = vld [vmem:[#allocation12_spill] sm:$0xff]  ;;  %v9941_v24 = vrot.slane %v30969_v11, 1 }
 0x7ff   :  { %22820 = vmatmul.mubr.msk.bf16.gmra.mrb[88].mxu1 %vm911_vm4, %v33567_v51  ;;  %v14456_v51 = vpack.c.bf16 %v30857_v53, %v30841_v48 }
 0x800   :  { %22823 = vmatprep.mubr.msk.bf16.mxu1 %vm911_vm4, %v14455_v12  ;;  %v14476_v12 = vrot.slane %v30885_v38, 1 }
 0x802   :  { %v30899_v30 = vsel %vm268_vm2, %v14474_v1, %v14476_v12  ;;  %v33572_v1 = vld [vmem:[#allocation134_spill] sm:$0xff] }
 0x803   :  { %22230 = vmatmul.mubr.msk.bf16.gmra.mrb[92].mxu0 %vm911_vm4, %v9916_v49  ;;  %v33573_v49 = vld [vmem:[#allocation141_spill] sm:$0xff]  ;;  %v33574_v12 = vld [vmem:[#allocation138_spill] sm:$0xff] }
 0x804   :  { %22233 = vmatprep.mubr.msk.bf16.mxu0 %vm911_vm4, %v33568_v47  ;;  %v33575_v47 = vld [vmem:[#allocation144_spill] sm:$0xff] }
 0x807   :  { %22824 = vmatmul.mubr.msk.bf16.gmra.mrb[92].mxu1 %vm911_vm4, %v14456_v51  ;;  %v33576_v51 = vld [vmem:[#allocation147_spill] sm:$0xff] }
 0x808   :  { %22827 = vmatprep.mubr.msk.bf16.mxu1 %vm911_vm4, %v33569_v14  ;;  %v33577_v14 = vld [vmem:[#allocation152_spill] sm:$0xff] }
 0x80b   :  { %22234 = vmatmul.mubr.msk.bf16.gmra.mrb[96].mxu0 %vm911_vm4, %v33570_v4  ;;  %v33578_v4 = vld [vmem:[#allocation156_spill] sm:$0xff] }
 0x80c   :  { %22237 = vmatprep.mubr.msk.bf16.mxu0 %vm911_vm4, %v33571_v57  ;;  %v33579_v57 = vld [vmem:[#allocation57_spill] sm:$0xff] }
 0x80f   :  { %22828 = vmatmul.mubr.msk.bf16.gmra.mrb[96].mxu1 %vm911_vm4, %v33572_v1  ;;  %v33580_v1 = vld [vmem:[#allocation172_spill] sm:$0xff] }
 0x810   :  { %22831 = vmatprep.mubr.msk.bf16.mxu1 %vm911_vm4, %v33573_v49  ;;  %v33581_v49 = vld [vmem:[#allocation175_spill] sm:$0xff] }
 0x813   :  { %22238 = vmatmul.mubr.msk.bf16.gmra.mrb[100].mxu0 %vm911_vm4, %v33574_v12  ;;  %v33582_v12 = vld [vmem:[#allocation178_spill] sm:$0xff] }
 0x814   :  { %22241 = vmatprep.mubr.msk.bf16.mxu0 %vm911_vm4, %v33575_v47  ;;  %v33583_v47 = vld [vmem:[#allocation181_spill] sm:$0xff] }
 0x817   :  { %22832 = vmatmul.mubr.msk.bf16.gmra.mrb[100].mxu1 %vm911_vm4, %v33576_v51  ;;  %v33584_v51 = vld [vmem:[#allocation184_spill] sm:$0xff] }
 0x818   :  { %22835 = vmatprep.mubr.msk.bf16.mxu1 %vm911_vm4, %v33577_v14  ;;  %v33585_v14 = vld [vmem:[#allocation187_spill] sm:$0xff] }
 0x81b   :  { %22242 = vmatmul.mubr.msk.bf16.gmra.mrb[104].mxu0 %vm911_vm4, %v33578_v4  ;;  %v33586_v4 = vld [vmem:[#allocation190_spill] sm:$0xff] }
 0x81c   :  { %22245 = vmatprep.mubr.msk.bf16.mxu0 %vm911_vm4, %v33579_v57  ;;  %v33587_v57 = vld [vmem:[#allocation193_spill] sm:$0xff] }
 0x81f   :  { %22836 = vmatmul.mubr.msk.bf16.gmra.mrb[104].mxu1 %vm911_vm4, %v33580_v1  ;;  %v33588_v1 = vld [vmem:[#allocation196_spill] sm:$0xff] }
 0x820   :  { %22839 = vmatprep.mubr.msk.bf16.mxu1 %vm911_vm4, %v33581_v49  ;;  %v33589_v49 = vld [vmem:[#allocation199_spill] sm:$0xff] }
 0x823   :  { %22246 = vmatmul.mubr.msk.bf16.gmra.mrb[108].mxu0 %vm911_vm4, %v33582_v12  ;;  %v33590_v12 = vld [vmem:[#allocation202_spill] sm:$0xff] }
 0x824   :  { %22249 = vmatprep.mubr.msk.bf16.mxu0 %vm911_vm4, %v33583_v47  ;;  %v33591_v47 = vld [vmem:[#allocation133_spill] sm:$0xff] }
 0x827   :  { %22840 = vmatmul.mubr.msk.bf16.gmra.mrb[108].mxu1 %vm911_vm4, %v33584_v51  ;;  %v33592_v51 = vld [vmem:[#allocation205_spill] sm:$0xff] }
 0x828   :  { %22843 = vmatprep.mubr.msk.bf16.mxu1 %vm911_vm4, %v33585_v14  ;;  %v30955_v14 = vld [vmem:[#allocation2 + $0x938] sm:$0xff] }
 0x82b   :  { %22250 = vmatmul.mubr.msk.bf16.gmra.mrb[112].mxu0 %vm911_vm4, %v33586_v4  ;;  %v30957_v4 = vld [vmem:[#allocation2 + $0x940] sm:$0xff] }
 0x82c   :  { %22253 = vmatprep.mubr.msk.bf16.mxu0 %vm911_vm4, %v33587_v57  ;;  %v33593_v57 = vld [vmem:[#allocation136_spill] sm:$0xff] }
 0x82f   :  { %22844 = vmatmul.mubr.msk.bf16.gmra.mrb[112].mxu1 %vm911_vm4, %v33588_v1  ;;  %v30961_v1 = vld [vmem:[#allocation2 + $0xa78] sm:$0xff] }
 0x830   :  { %22847 = vmatprep.mubr.msk.bf16.mxu1 %vm911_vm4, %v33589_v49  ;;  %v9917_v49 = vpack.c.bf16 %v30957_v4, %v30955_v14  ;;  %v14478_v13 = vrot.slane %v30961_v1, 1  ;;  %v14457_v62 = vpack.c.bf16 %v30963_v2, %v30961_v1 }
 0x832   :  { %v30996_v21 = vsel %vm268_vm2, %v14478_v13, %v14479_v8 }
 0x833   :  { %22254 = vmatmul.mubr.msk.bf16.gmra.mrb[116].mxu0 %vm911_vm4, %v33590_v12  ;;  %v9938_v12 = vrot.slane %v30955_v14, 1 }
 0x834   :  { %22257 = vmatprep.mubr.msk.bf16.mxu0 %vm911_vm4, %v33591_v47  ;;  %v9939_v47 = vrot.slane %v30957_v4, 1 }
 0x836   :  { %v30990_v60 = vsel %vm268_vm2, %v9938_v12, %v9939_v47  ;;  %v30993_v32 = vsel %vm268_vm2, %v9939_v47, %v9941_v24  ;;  %v31007_v12 = vld [vmem:[#allocation2 + $0x958] sm:$0x3] }
 0x837   :  { %22848 = vmatmul.mubr.msk.bf16.gmra.mrb[116].mxu1 %vm911_vm4, %v33592_v51  ;;  %v30971_v51 = vld [vmem:[#allocation2 + $0xa88] sm:$0xff] }
 0x838   :  { %22851 = vmatprep.mubr.msk.bf16.mxu1 %vm911_vm4, %v33593_v57  ;;  %v30975_v57 = vld [vmem:[#allocation2 + $0x950] sm:$0xff]  ;;  %v14481_v33 = vrot.slane %v30971_v51, 1 }
 0x839   :  { %v9943_v5 = vrot.slane %v30975_v57, 1  ;;  %v9918_v13 = vpack.c.bf16 %v30975_v57, %v30969_v11 }
 0x83a   :  { %v30999_v35 = vsel %vm268_vm2, %v14479_v8, %v14481_v33  ;;  %v9945_v8 = vrot.slane %v31007_v12, 1 }
 0x83b   :  { %22258 = vmatmul.mubr.msk.bf16.gmra.mrb[120].mxu0 %vm911_vm4, %v30416_v39  ;;  %v14483_v39 = vrot.slane %v30987_v46, 1  ;;  %v31010_v47 = vsel %vm268_vm2, %v9941_v24, %v9943_v5 }
 0x83c   :  { %22261 = vmatprep.mubr.msk.bf16.mxu0 %vm911_vm4, %v9917_v49  ;;  %v31021_v40 = vsel %vm268_vm2, %v9943_v5, %v9945_v8  ;;  %v33594_v5 = vld [vmem:[#allocation75_spill] sm:$0xff]  ;;  %v33595_v8 = vld [vmem:[#allocation78_spill] sm:$0xff] }
 0x83d   :  { %v9958_v49 = vpack.c.bf16 %v31021_v40, %v31010_v47  ;;  %v31026_v24 = vsel %vm268_vm2, %v14481_v33, %v14483_v39  ;;  %v33596_v33 = vld [vmem:[#allocation81_spill] sm:$0xff]  ;;  %v33642_v40 = vld [vmem:[#allocation208_spill] sm:$0xff]  ;;  %v33644_v47 = vld [vmem:[#allocation210_spill] sm:$0xff] }
 0x83f   :  { %22852 = vmatmul.mubr.msk.bf16.gmra.mrb[120].mxu1 %vm911_vm4, %v30424_v28  ;;  %v14458_v28 = vpack.c.bf16 %v30987_v46, %v30971_v51 }
 0x840   :  { %22855 = vmatprep.mubr.msk.bf16.mxu1 %vm911_vm4, %v14457_v62  ;;  %v14485_v62 = vrot.slane %v31015_v17, 1 }
 0x842   :  { %v31029_v10 = vsel %vm268_vm2, %v14483_v39, %v14485_v62  ;;  %v33597_v39 = vld [vmem:[#allocation120_spill] sm:$0xff]  ;;  %v33601_v62 = vld [vmem:[#allocation135_spill] sm:$0xff] }
 0x843   :  { %22262 = vmatmul.mubr.msk.bf16.gmra.mrb[124].mxu0 %vm911_vm4, %v9918_v13  ;;  %v14498_v61 = vpack.c.bf16 %v31029_v10, %v31026_v24  ;;  %v33598_v13 = vld [vmem:[#allocation121_spill] sm:$0xff]  ;;  %v33646_v10 = vld [vmem:[#allocation212_spill] sm:$0xff]  ;;  %v33648_v24 = vld [vmem:[#allocation214_spill] sm:$0xff] }
 0x844   :  { %22267 = vmatprep.mubr.msk.bf16.mxu0 %vm911_vm4, %v33443_v0  ;;  %v33599_v0 = vld [vmem:[#allocation110_spill] sm:$0xff] }
 0x847   :  { %22856 = vmatmul.mubr.msk.bf16.gmra.mrb[124].mxu1 %vm911_vm4, %v14458_v28  ;;  %v33600_v28 = vld [vmem:[#allocation113_spill] sm:$0xff] }
 0x848   :  { %22861 = vmatprep.mubr.msk.bf16.mxu1 %vm911_vm4, %v33594_v5  ;;  %v33603_v5 = vld [vmem:[#allocation140_spill] sm:$0xff] }
 0x84b   :  { %22268 = vmatmul.mubr.msk.bf16.vlgmr.msra.gmra.mrb[64].mxu0 %vm911_vm4, %v33595_v8  ;;  %v33604_v8 = vld [vmem:[#allocation143_spill] sm:$0xff] }
 0x84c   :  { %22332 = vmatpush3.bf16.msra.mxu0 %v30775_v3  ;;  %22271 = vmatprep.mubr.msk.bf16.mxu0 %vm911_vm4, %v33596_v33  ;;  %v33602_v3 = vld [vmem:[#allocation137_spill] sm:$0xff]  ;;  %v33606_v33 = vld [vmem:[#allocation148_spill] sm:$0xff] }
 0x84f   :  { %22862 = vmatmul.mubr.msk.bf16.vlgmr.msra.gmra.mrb[64].mxu1 %vm911_vm4, %v33597_v39  ;;  %v33607_v39 = vld [vmem:[#allocation151_spill] sm:$0xff] }
 0x850   :  { %22926 = vmatpush3.bf16.msra.mxu1 %v30783_v19  ;;  %22865 = vmatprep.mubr.msk.bf16.mxu1 %vm911_vm4, %v33598_v13  ;;  %v33605_v19 = vld [vmem:[#allocation146_spill] sm:$0xff]  ;;  %v33608_v13 = vld [vmem:[#allocation153_spill] sm:$0xff] }
 0x853   :  { %22272 = vmatmul.mubr.msk.bf16.gmra.mrb[68].mxu0 %vm911_vm4, %v33599_v0  ;;  %v33609_v0 = vld [vmem:[#allocation155_spill] sm:$0xff] }
 0x854   :  { %22275 = vmatprep.mubr.msk.bf16.mxu0 %vm911_vm4, %v33600_v28  ;;  %v33610_v28 = vld [vmem:[#allocation157_spill] sm:$0xff] }
 0x857   :  { %22866 = vmatmul.mubr.msk.bf16.gmra.mrb[68].mxu1 %vm911_vm4, %v33601_v62  ;;  %v33611_v62 = vld [vmem:[#allocation158_spill] sm:$0xff] }
 0x858   :  { %22869 = vmatprep.mubr.msk.bf16.mxu1 %vm911_vm4, %v33602_v3  ;;  %v33612_v3 = vld [vmem:[#allocation159_spill] sm:$0xff] }
 0x85b   :  { %22276 = vmatmul.mubr.msk.bf16.gmra.mrb[72].mxu0 %vm911_vm4, %v33603_v5  ;;  %v33613_v5 = vld [vmem:[#allocation160_spill] sm:$0xff] }
 0x85c   :  { %22279 = vmatprep.mubr.msk.bf16.mxu0 %vm911_vm4, %v33604_v8  ;;  %v33614_v8 = vld [vmem:[#allocation13_spill] sm:$0xff] }
 0x85f   :  { %22870 = vmatmul.mubr.msk.bf16.gmra.mrb[72].mxu1 %vm911_vm4, %v33605_v19  ;;  %v33615_v19 = vld [vmem:[#allocation163_spill] sm:$0xff] }
 0x860   :  { %22873 = vmatprep.mubr.msk.bf16.mxu1 %vm911_vm4, %v33606_v33  ;;  %v9959_v33 = vrot.slane %v30825_v45, 2 }
 0x863   :  { %22280 = vmatmul.mubr.msk.bf16.gmra.mrb[76].mxu0 %vm911_vm4, %v33607_v39  ;;  %v9960_v39 = vrot.slane %v30827_v23, 2 }
 0x864   :  { %22283 = vmatprep.mubr.msk.bf16.mxu0 %vm911_vm4, %v33608_v13  ;;  %v14499_v13 = vrot.slane %v30831_v31, 2  ;;  %v9966_v31 = vrot.slane %v30877_v20, 2 }
 0x865   :  { %v31106_v45 = vsel %vm509_vm3, %v9959_v33, %v9960_v39  ;;  %v33632_v33 = vld [vmem:[#allocation53_spill] sm:$0xff] }
 0x867   :  { %22874 = vmatmul.mubr.msk.bf16.gmra.mrb[76].mxu1 %vm911_vm4, %v33609_v0  ;;  %v9962_v0 = vrot.slane %v30839_v50, 2 }
 0x868   :  { %22877 = vmatprep.mubr.msk.bf16.mxu1 %vm911_vm4, %v33610_v28  ;;  %v9964_v28 = vrot.slane %v30845_v37, 2 }
 0x869   :  { %v31109_v50 = vsel %vm509_vm3, %v9960_v39, %v9962_v0  ;;  %v33633_v39 = vld [vmem:[#allocation59_spill] sm:$0xff] }
 0x86b   :  { %22284 = vmatmul.mubr.msk.bf16.gmra.mrb[80].mxu0 %vm911_vm4, %v33611_v62  ;;  %v14504_v62 = vrot.slane %v30857_v53, 2 }
 0x86c   :  { %22287 = vmatprep.mubr.msk.bf16.mxu0 %vm911_vm4, %v33612_v3  ;;  %v33618_v3 = vpack.c.bf16 %v30891_v55, %v30880_v63  ;;  %v33620_v55 = vld [vmem:[#allocation42_spill] sm:$0xff]  ;;  %v33623_v63 = vld [vmem:[#allocation44_spill] sm:$0xff] }
 0x86f   :  { %22878 = vmatmul.mubr.msk.bf16.gmra.mrb[80].mxu1 %vm911_vm4, %v33613_v5  ;;  %v33629_v5 = vld [vmem:[#allocation52_spill] sm:$0xff] }
 0x870   :  { %22881 = vmatprep.mubr.msk.bf16.mxu1 %vm911_vm4, %v33465_v59  ;;  %v14500_v59 = vrot.slane %v30833_v9, 2  ;;  %v31130_v9 = vsel %vm509_vm3, %v9964_v28, %v9966_v31  ;;  %v9973_v31 = vrot.slane %v30975_v57, 2 }
 0x872   :  { %v31112_v23 = vsel %vm509_vm3, %v14499_v13, %v14500_v59  ;;  %v33634_v13 = vld [vmem:[#allocation61_spill] sm:$0xff] }
 0x873   :  { %22288 = vmatmul.mubr.msk.bf16.gmra.mrb[84].mxu0 %vm911_vm4, %v33466_v41  ;;  %v14502_v41 = vrot.slane %v30841_v48, 2  ;;  %v14506_v48 = vrot.slane %v30885_v38, 2  ;;  %v33619_v38 = vpack.c.bf16 %v30899_v30, %v30896_v52  ;;  %v33622_v30 = vld [vmem:[#allocation45_spill] sm:$0xff]  ;;  %v33628_v52 = vld [vmem:[#allocation48_spill] sm:$0xff] }
 0x874   :  { %22291 = vmatprep.mubr.msk.bf16.mxu0 %vm911_vm4, %v33614_v8  ;;  %v33630_v8 = vld [vmem:[#allocation55_spill] sm:$0xff] }
 0x875   :  { %v31139_v37 = vsel %vm509_vm3, %v14504_v62, %v14506_v48  ;;  %v14513_v48 = vrot.slane %v30987_v46, 2 }
 0x877   :  { %22882 = vmatmul.mubr.msk.bf16.gmra.mrb[84].mxu1 %vm911_vm4, %v33615_v19  ;;  %v33631_v19 = vld [vmem:[#allocation54_spill] sm:$0xff] }
 0x878   :  { %22885 = vmatprep.mubr.msk.bf16.mxu1 %vm911_vm4, %v30283_v42  ;;  %v33616_v42 = vpack.c.bf16 %v30863_v36, %v30860_v15  ;;  %v33617_v36 = vpack.c.bf16 %v30869_v16, %v30866_v27  ;;  %v31126_v15 = vsel %vm509_vm3, %v9962_v0, %v9964_v28  ;;  %v31136_v27 = vsel %vm509_vm3, %v14502_v41, %v14504_v62  ;;  %v33636_v0 = vld [vmem:[#allocation139_spill] sm:$0xff] }
 0x879   :  { %v9986_v16 = vpack.c.bf16 %v31130_v9, %v31126_v15  ;;  %v14526_v20 = vpack.c.bf16 %v31139_v37, %v31136_v27  ;;  %v9968_v28 = vrot.slane %v30955_v14, 2  ;;  %v9969_v62 = vrot.slane %v30957_v4, 2  ;;  %v33674_v15 = vld [vmem:[#allocation83_spill] sm:$0xff]  ;;  %v33675_v9 = vld [vmem:[#allocation85_spill] sm:$0xff]  ;;  %v33677_v27 = vld [vmem:[#allocation80_spill] sm:$0xff] }
 0x87a   :  { %v9975_v4 = vrot.slane %v31007_v12, 2  ;;  %v33678_v37 = vld [vmem:[#allocation88_spill] sm:$0xff] }
 0x87b   :  { %22292 = vmatmul.mubr.msk.bf16.gmra.mrb[88].mxu0 %vm911_vm4, %v30301_v25  ;;  %v31115_v25 = vsel %vm509_vm3, %v14500_v59, %v14502_v41  ;;  %v33635_v59 = vld [vmem:[#allocation60_spill] sm:$0xff]  ;;  %v33637_v41 = vld [vmem:[#allocation66_spill] sm:$0xff] }
 0x87c   :  { %22295 = vmatprep.mubr.msk.bf16.mxu0 %vm911_vm4, %v33616_v42  ;;  %v14525_v53 = vpack.c.bf16 %v31115_v25, %v31112_v23  ;;  %v14508_v42 = vrot.slane %v30961_v1, 2  ;;  %v31244_v1 = vsel %vm509_vm3, %v9973_v31, %v9975_v4  ;;  %v33670_v23 = vld [vmem:[#allocation68_spill] sm:$0xff]  ;;  %v33690_v4 = vld [vmem:[#allocation150_spill] sm:$0xff] }
 0x87d   :  { %v33671_v25 = vld [vmem:[#allocation76_spill] sm:$0xff] }
 0x87f   :  { %22886 = vmatmul.mubr.msk.bf16.gmra.mrb[88].mxu1 %vm911_vm4, %v30307_v44  ;;  %v9985_v44 = vpack.c.bf16 %v31109_v50, %v31106_v45  ;;  %v33668_v45 = vld [vmem:[#allocation77_spill] sm:$0xff] }
 0x880   :  { %22889 = vmatprep.mubr.msk.bf16.mxu1 %vm911_vm4, %v33617_v36  ;;  %v9971_v36 = vrot.slane %v30969_v11, 2  ;;  %v33669_v50 = vld [vmem:[#allocation169_spill] sm:$0xff] }
 0x882   :  { %v31223_v11 = vsel %vm509_vm3, %v9969_v62, %v9971_v36 }
 0x883   :  { %22296 = vmatmul.mubr.msk.bf16.gmra.mrb[92].mxu0 %vm911_vm4, %v33618_v3  ;;  %v33641_v3 = vld [vmem:[#allocation207_spill] sm:$0xff] }
 0x884   :  { %22299 = vmatprep.mubr.msk.bf16.mxu0 %vm911_vm4, %v33475_v26  ;;  %v33621_v26 = vld [vmem:[#allocation39_spill] sm:$0xff] }
 0x887   :  { %22890 = vmatmul.mubr.msk.bf16.gmra.mrb[92].mxu1 %vm911_vm4, %v33619_v38  ;;  %v33649_v38 = vld [vmem:[#allocation29_spill] sm:$0xff] }
 0x888   :  { %22893 = vmatprep.mubr.msk.bf16.mxu1 %vm911_vm4, %v33477_v22  ;;  %v33624_v22 = vld [vmem:[#allocation46_spill] sm:$0xff] }
 0x88b   :  { %22300 = vmatmul.mubr.msk.bf16.gmra.mrb[96].mxu0 %vm911_vm4, %v33478_v7  ;;  %v33625_v7 = vld [vmem:[#allocation43_spill] sm:$0xff] }
 0x88c   :  { %22303 = vmatprep.mubr.msk.bf16.mxu0 %vm911_vm4, %v33479_v43  ;;  %v33626_v43 = vld [vmem:[#allocation51_spill] sm:$0xff] }
 0x88f   :  { %22894 = vmatmul.mubr.msk.bf16.gmra.mrb[96].mxu1 %vm911_vm4, %v33480_v56  ;;  %v33627_v56 = vld [vmem:[#allocation50_spill] sm:$0xff] }
 0x890   :  { %22897 = vmatprep.mubr.msk.bf16.mxu1 %vm911_vm4, %v33620_v55  ;;  %v33650_v55 = vld [vmem:[#allocation31_spill] sm:$0xff] }
 0x893   :  { %22304 = vmatmul.mubr.msk.bf16.gmra.mrb[100].mxu0 %vm911_vm4, %v33621_v26  ;;  %v33651_v26 = vld [vmem:[#allocation32_spill] sm:$0xff] }
 0x894   :  { %22307 = vmatprep.mubr.msk.bf16.mxu0 %vm911_vm4, %v33622_v30  ;;  %v33652_v30 = vld [vmem:[#allocation40_spill] sm:$0xff] }
 0x897   :  { %22898 = vmatmul.mubr.msk.bf16.gmra.mrb[100].mxu1 %vm911_vm4, %v33623_v63  ;;  %v33653_v63 = vld [vmem:[#allocation34_spill] sm:$0xff] }
 0x898   :  { %22901 = vmatprep.mubr.msk.bf16.mxu1 %vm911_vm4, %v33624_v22  ;;  %v33654_v22 = vld [vmem:[#allocation36_spill] sm:$0xff] }
 0x89b   :  { %22308 = vmatmul.mubr.msk.bf16.gmra.mrb[104].mxu0 %vm911_vm4, %v33625_v7  ;;  %v33655_v7 = vld [vmem:[#allocation37_spill] sm:$0xff] }
 0x89c   :  { %22311 = vmatprep.mubr.msk.bf16.mxu0 %vm911_vm4, %v33626_v43  ;;  %v33656_v43 = vld [vmem:[#allocation93_spill] sm:$0xff] }
 0x89f   :  { %22902 = vmatmul.mubr.msk.bf16.gmra.mrb[104].mxu1 %vm911_vm4, %v33627_v56  ;;  %v33657_v56 = vld [vmem:[#allocation126_spill] sm:$0xff] }
 0x8a0   :  { %22905 = vmatprep.mubr.msk.bf16.mxu1 %vm911_vm4, %v33628_v52  ;;  %v33658_v52 = vld [vmem:[#allocation82_spill] sm:$0xff] }
 0x8a3   :  { %22312 = vmatmul.mubr.msk.bf16.gmra.mrb[108].mxu0 %vm911_vm4, %v33629_v5  ;;  %v33659_v5 = vld [vmem:[#allocation84_spill] sm:$0xff] }
 0x8a4   :  { %22315 = vmatprep.mubr.msk.bf16.mxu0 %vm911_vm4, %v33630_v8  ;;  %v33660_v8 = vld [vmem:[#allocation109_spill] sm:$0xff] }
 0x8a7   :  { %22906 = vmatmul.mubr.msk.bf16.gmra.mrb[108].mxu1 %vm911_vm4, %v33631_v19  ;;  %v33661_v19 = vld [vmem:[#allocation94_spill] sm:$0xff] }
 0x8a8   :  { %22909 = vmatprep.mubr.msk.bf16.mxu1 %vm911_vm4, %v33632_v33  ;;  %v33662_v33 = vld [vmem:[#allocation142_spill] sm:$0xff] }
 0x8ab   :  { %22316 = vmatmul.mubr.msk.bf16.gmra.mrb[112].mxu0 %vm911_vm4, %v33633_v39  ;;  %v33663_v39 = vld [vmem:[#allocation101_spill] sm:$0xff] }
 0x8ac   :  { %22319 = vmatprep.mubr.msk.bf16.mxu0 %vm911_vm4, %v33634_v13  ;;  %v33664_v13 = vld [vmem:[#allocation154_spill] sm:$0xff] }
 0x8af   :  { %22910 = vmatmul.mubr.msk.bf16.gmra.mrb[112].mxu1 %vm911_vm4, %v33635_v59  ;;  %v33665_v59 = vld [vmem:[#allocation145_spill] sm:$0xff] }
 0x8b0   :  { %22913 = vmatprep.mubr.msk.bf16.mxu1 %vm911_vm4, %v33497_v58  ;;  %v14509_v58 = vrot.slane %v30963_v2, 2  ;;  %v31220_v2 = vsel %vm509_vm3, %v9968_v28, %v9969_v62  ;;  %v33680_v28 = vld [vmem:[#allocation100_spill] sm:$0xff]  ;;  %v33681_v62 = vld [vmem:[#allocation95_spill] sm:$0xff] }
 0x8b2   :  { %v31226_v14 = vsel %vm509_vm3, %v14508_v42, %v14509_v58  ;;  %v33682_v42 = vld [vmem:[#allocation96_spill] sm:$0xff] }
 0x8b3   :  { %22320 = vmatmul.mubr.msk.bf16.gmra.mrb[116].mxu0 %vm911_vm4, %v33498_v34  ;;  %v14511_v34 = vrot.slane %v30971_v51, 2  ;;  %v14515_v51 = vrot.slane %v31015_v17, 2  ;;  %v33640_v17 = vld [vmem:[#allocation206_spill] sm:$0xff] }
 0x8b4   :  { %22323 = vmatprep.mubr.msk.bf16.mxu0 %vm911_vm4, %v33636_v0  ;;  %v33666_v0 = vld [vmem:[#allocation149_spill] sm:$0xff] }
 0x8b5   :  { %v31253_v57 = vsel %vm509_vm3, %v14513_v48, %v14515_v51  ;;  %v33691_v51 = vld [vmem:[#allocation19_spill] sm:$0xff] }
 0x8b7   :  { %22914 = vmatmul.mubr.msk.bf16.gmra.mrb[116].mxu1 %vm911_vm4, %v33637_v41  ;;  %v33667_v41 = vld [vmem:[#allocation116_spill] sm:$0xff] }
 0x8b8   :  { %22917 = vmatprep.mubr.msk.bf16.mxu1 %vm911_vm4, %v30409_v29  ;;  %v33638_v29 = vpack.c.bf16 %v30993_v32, %v30990_v60  ;;  %v33639_v32 = vpack.c.bf16 %v30999_v35, %v30996_v21  ;;  %v9987_v60 = vpack.c.bf16 %v31223_v11, %v31220_v2  ;;  %v31250_v21 = vsel %vm509_vm3, %v14511_v34, %v14513_v48  ;;  %v33687_v48 = vld [vmem:[#allocation107_spill] sm:$0xff] }
 0x8b9   :  { %v14528_v12 = vpack.c.bf16 %v31253_v57, %v31250_v21  ;;  %v31409_v11 = vld [vmem:[#allocation7] ss:$0 sm:$0xff] }
 0x8bb   :  { %22324 = vmatmul.mubr.msk.bf16.gmra.mrb[120].mxu0 %vm911_vm4, %v30427_v18  ;;  %v31229_v18 = vsel %vm509_vm3, %v14509_v58, %v14511_v34  ;;  %v33683_v58 = vld [vmem:[#allocation97_spill] sm:$0xff]  ;;  %v33685_v34 = vld [vmem:[#allocation102_spill] sm:$0xff] }
 0x8bc   :  { %22327 = vmatprep.mubr.msk.bf16.mxu0 %vm911_vm4, %v33638_v29  ;;  %v14527_v46 = vpack.c.bf16 %v31229_v18, %v31226_v14  ;;  %v33688_v29 = vld [vmem:[#allocation114_spill] sm:$0xff] }
 0x8bf   :  { %22918 = vmatmul.mubr.msk.bf16.gmra.mrb[120].mxu1 %vm911_vm4, %v30433_v6  ;;  %v31240_v6 = vsel %vm509_vm3, %v9971_v36, %v9973_v31  ;;  %v33684_v36 = vld [vmem:[#allocation104_spill] sm:$0xff]  ;;  %v33686_v31 = vld [vmem:[#allocation98_spill] sm:$0xff] }
 0x8c0   :  { %22921 = vmatprep.mubr.msk.bf16.mxu1 %vm911_vm4, %v33639_v32  ;;  %v9988_v35 = vpack.c.bf16 %v31244_v1, %v31240_v6  ;;  %v33689_v32 = vld [vmem:[#allocation16_spill] sm:$0xff] }
 0x8c3   :  { %22328 = vmatmul.mubr.msk.bf16.gmra.mrb[124].mxu0 %vm911_vm4, %v9958_v49  ;;  %v33643_v49 = vld [vmem:[#allocation209_spill] sm:$0xff] }
 0x8c4   :  { %22333 = vmatprep.mubr.msk.bf16.mxu0 %vm911_vm4, %v29740_v54  ;;  %v33645_v54 = vld [vmem:[#allocation211_spill] sm:$0xff] }
 0x8c7   :  { %22922 = vmatmul.mubr.msk.bf16.gmra.mrb[124].mxu1 %vm911_vm4, %v14498_v61  ;;  %v33647_v61 = vld [vmem:[#allocation213_spill] sm:$0xff] }
 0x8c8   :  { %22927 = vmatprep.mubr.msk.bf16.mxu1 %vm911_vm4, %v33640_v17  ;;  %v33692_v17 = vld [vmem:[#allocation170_spill] sm:$0xff] }
 0x8cb   :  { %22334 = vmatmul.mubr.msk.bf16.vlgmr.msra.gmra.mrb[64].mxu0 %vm911_vm4, %v33641_v3  ;;  %v33693_v3 = vld [vmem:[#allocation18_spill] sm:$0xff] }
 0x8cc   :  { %22337 = vmatprep.mubr.msk.bf16.mxu0 %vm911_vm4, %v33642_v40  ;;  %v33694_v40 = vld [vmem:[#allocation41_spill] sm:$0xff] }
 0x8cf   :  { %22928 = vmatmul.mubr.msk.bf16.vlgmr.msra.gmra.mrb[64].mxu1 %vm911_vm4, %v33643_v49 }
 0x8d0   :  { %22931 = vmatprep.mubr.msk.bf16.mxu1 %vm911_vm4, %v33644_v47 }
 0x8d3   :  { %22338 = vmatmul.mubr.msk.bf16.gmra.mrb[68].mxu0 %vm911_vm4, %v33645_v54 }
 0x8d4   :  { %22341 = vmatprep.mubr.msk.bf16.mxu0 %vm911_vm4, %v33646_v10 }
 0x8d7   :  { %22932 = vmatmul.mubr.msk.bf16.gmra.mrb[68].mxu1 %vm911_vm4, %v33647_v61 }
 0x8d8   :  { %22935 = vmatprep.mubr.msk.bf16.mxu1 %vm911_vm4, %v33648_v24 }
 0x8db   :  { %22342 = vmatmul.mubr.msk.bf16.gmra.mrb[72].mxu0 %vm911_vm4, %v33649_v38 }
 0x8dc   :  { %22345 = vmatprep.mubr.msk.bf16.mxu0 %vm911_vm4, %v33650_v55 }
 0x8df   :  { %22936 = vmatmul.mubr.msk.bf16.gmra.mrb[72].mxu1 %vm911_vm4, %v33651_v26 }
 0x8e0   :  { %22939 = vmatprep.mubr.msk.bf16.mxu1 %vm911_vm4, %v33652_v30 }
 0x8e3   :  { %22346 = vmatmul.mubr.msk.bf16.gmra.mrb[76].mxu0 %vm911_vm4, %v33653_v63 }
 0x8e4   :  { %22349 = vmatprep.mubr.msk.bf16.mxu0 %vm911_vm4, %v33654_v22 }
 0x8e7   :  { %22940 = vmatmul.mubr.msk.bf16.gmra.mrb[76].mxu1 %vm911_vm4, %v33655_v7 }
 0x8e8   :  { %22943 = vmatprep.mubr.msk.bf16.mxu1 %vm911_vm4, %v33656_v43 }
 0x8eb   :  { %22350 = vmatmul.mubr.msk.bf16.gmra.mrb[80].mxu0 %vm911_vm4, %v33657_v56 }
 0x8ec   :  { %22353 = vmatprep.mubr.msk.bf16.mxu0 %vm911_vm4, %v33658_v52 }
 0x8ef   :  { %22944 = vmatmul.mubr.msk.bf16.gmra.mrb[80].mxu1 %vm911_vm4, %v33659_v5 }
 0x8f0   :  { %22947 = vmatprep.mubr.msk.bf16.mxu1 %vm911_vm4, %v33660_v8 }
 0x8f3   :  { %22354 = vmatmul.mubr.msk.bf16.gmra.mrb[84].mxu0 %vm911_vm4, %v33661_v19 }
 0x8f4   :  { %22357 = vmatprep.mubr.msk.bf16.mxu0 %vm911_vm4, %v33662_v33 }
 0x8f7   :  { %22948 = vmatmul.mubr.msk.bf16.gmra.mrb[84].mxu1 %vm911_vm4, %v33663_v39 }
 0x8f8   :  { %22951 = vmatprep.mubr.msk.bf16.mxu1 %vm911_vm4, %v33664_v13 }
 0x8fb   :  { %22358 = vmatmul.mubr.msk.bf16.gmra.mrb[88].mxu0 %vm911_vm4, %v33665_v59 }
 0x8fc   :  { %22361 = vmatprep.mubr.msk.bf16.mxu0 %vm911_vm4, %v9985_v44  ;;  %v33672_v44 = vld [vmem:[#allocation86_spill] sm:$0xff] }
 0x8ff   :  { %22952 = vmatmul.mubr.msk.bf16.gmra.mrb[88].mxu1 %vm911_vm4, %v33666_v0 }
 0x900   :  { %22955 = vmatprep.mubr.msk.bf16.mxu1 %vm911_vm4, %v14525_v53  ;;  %v33673_v53 = vld [vmem:[#allocation79_spill] sm:$0xff] }
 0x903   :  { %22362 = vmatmul.mubr.msk.bf16.gmra.mrb[92].mxu0 %vm911_vm4, %v9986_v16  ;;  %v33676_v16 = vld [vmem:[#allocation87_spill] sm:$0xff] }
 0x904   :  { %22365 = vmatprep.mubr.msk.bf16.mxu0 %vm911_vm4, %v33667_v41 }
 0x907   :  { %22956 = vmatmul.mubr.msk.bf16.gmra.mrb[92].mxu1 %vm911_vm4, %v14526_v20  ;;  %v33679_v20 = vld [vmem:[#allocation90_spill] sm:$0xff] }
 0x908   :  { %22959 = vmatprep.mubr.msk.bf16.mxu1 %vm911_vm4, %v33668_v45 }
 0x90b   :  { %22366 = vmatmul.mubr.msk.bf16.gmra.mrb[96].mxu0 %vm911_vm4, %v33669_v50 }
 0x90c   :  { %22369 = vmatprep.mubr.msk.bf16.mxu0 %vm911_vm4, %v33670_v23 }
 0x90f   :  { %22960 = vmatmul.mubr.msk.bf16.gmra.mrb[96].mxu1 %vm911_vm4, %v33671_v25 }
 0x910   :  { %22963 = vmatprep.mubr.msk.bf16.mxu1 %vm911_vm4, %v33672_v44 }
 0x913   :  { %22370 = vmatmul.mubr.msk.bf16.gmra.mrb[100].mxu0 %vm911_vm4, %v33673_v53 }
 0x914   :  { %22373 = vmatprep.mubr.msk.bf16.mxu0 %vm911_vm4, %v33674_v15 }
 0x917   :  { %22964 = vmatmul.mubr.msk.bf16.gmra.mrb[100].mxu1 %vm911_vm4, %v33675_v9 }
 0x918   :  { %22967 = vmatprep.mubr.msk.bf16.mxu1 %vm911_vm4, %v33676_v16 }
 0x91b   :  { %22374 = vmatmul.mubr.msk.bf16.gmra.mrb[104].mxu0 %vm911_vm4, %v33677_v27 }
 0x91c   :  { %22377 = vmatprep.mubr.msk.bf16.mxu0 %vm911_vm4, %v33678_v37 }
 0x91f   :  { %22968 = vmatmul.mubr.msk.bf16.gmra.mrb[104].mxu1 %vm911_vm4, %v33679_v20 }
 0x920   :  { %22971 = vmatprep.mubr.msk.bf16.mxu1 %vm911_vm4, %v33680_v28 }
 0x923   :  { %22378 = vmatmul.mubr.msk.bf16.gmra.mrb[108].mxu0 %vm911_vm4, %v33681_v62 }
 0x924   :  { %22381 = vmatprep.mubr.msk.bf16.mxu0 %vm911_vm4, %v33682_v42 }
 0x927   :  { %22972 = vmatmul.mubr.msk.bf16.gmra.mrb[108].mxu1 %vm911_vm4, %v33683_v58 }
 0x928   :  { %22975 = vmatprep.mubr.msk.bf16.mxu1 %vm911_vm4, %v33684_v36 }
 0x92b   :  { %22382 = vmatmul.mubr.msk.bf16.gmra.mrb[112].mxu0 %vm911_vm4, %v33685_v34 }
 0x92c   :  { %22385 = vmatprep.mubr.msk.bf16.mxu0 %vm911_vm4, %v33686_v31 }
 0x92f   :  { %22976 = vmatmul.mubr.msk.bf16.gmra.mrb[112].mxu1 %vm911_vm4, %v33687_v48 }
 0x930   :  { %22979 = vmatprep.mubr.msk.bf16.mxu1 %vm911_vm4, %v33688_v29 }
 0x933   :  { %22386 = vmatmul.mubr.msk.bf16.gmra.mrb[116].mxu0 %vm911_vm4, %v33689_v32 }
 0x934   :  { %22389 = vmatprep.mubr.msk.bf16.mxu0 %vm911_vm4, %v33690_v4 }
 0x937   :  { %22980 = vmatmul.mubr.msk.bf16.gmra.mrb[116].mxu1 %vm911_vm4, %v33691_v51 }
 0x938   :  { %22983 = vmatprep.mubr.msk.bf16.mxu1 %vm911_vm4, %v33692_v17 }
 0x93b   :  { %22390 = vmatmul.mubr.msk.bf16.gmra.mrb[120].mxu0 %vm911_vm4, %v33693_v3 }
 0x93c   :  { %22393 = vmatprep.mubr.msk.bf16.mxu0 %vm911_vm4, %v9987_v60 }
 0x93f   :  { %22984 = vmatmul.mubr.msk.bf16.gmra.mrb[120].mxu1 %vm911_vm4, %v33694_v40 }
 0x940   :  { %22987 = vmatprep.mubr.msk.bf16.mxu1 %vm911_vm4, %v14527_v46 }
 0x943   :  { %22394 = vmatmul.mubr.msk.bf16.gmra.mrb[124].mxu0 %vm911_vm4, %v9988_v35 }
 0x947   :  { %22988 = vmatmul.mubr.msk.bf16.gmra.mrb[124].mxu1 %vm911_vm4, %v14528_v12 }
 0x99e   :  { %v22335_v2 = vpop.f32.mrb[64].mxu0 }
 0x99f   :  { %v13497_v60 = vadd.f32 %v31409_v11, %v22335_v2  ;;  %v13176_v49 = vpop.f32.mrb[65].mxu0 }
 0x9a0   :  { %v13495_v14 = vadd.f32 %v31409_v11, %v13176_v49  ;;  %v22336_v18 = vpop.f32.mrb[66].mxu0 }
 0x9a1   :  { %v13561_v46 = vmax.f32 %v13497_v60, 0.0  ;;  %v13498_v35 = vadd.f32 %v31409_v11, %v22336_v18  ;;  %v13179_v54 = vpop.f32.mrb[67].mxu0 }
 0x9a2   :  { %v22929_v47 = vpop.f32.mrb[64].mxu1  ;;  %v13559_v21 = vmax.f32 %v13495_v14, 0.0  ;;  %v13496_v10 = vadd.f32 %v31409_v11, %v13179_v54 }
 0x9a3   :  { %v18037_v6 = vadd.f32 %v31409_v11, %v22929_v47  ;;  %v17716_v1 = vpop.f32.mrb[65].mxu1  ;;  %13626 = vst.msk [vmem:[#allocation8 + $0x210] sm:$0xff] %vm4543_vm5, %v13561_v46  ;;  %v13562_v24 = vmax.f32 %v13498_v35, 0.0 }
 0x9a4   :  { %v18035_v57 = vadd.f32 %v31409_v11, %v17716_v1  ;;  %v22930_v12 = vpop.f32.mrb[66].mxu1  ;;  %13624 = vst.msk [vmem:[#allocation8 + $0x200] sm:$0xff] %vm4543_vm5, %v13559_v21  ;;  %v13560_v30 = vmax.f32 %v13496_v10, 0.0 }
 0x9a5   :  { %v18101_v61 = vmax.f32 %v18037_v6, 0.0  ;;  %v18038_v38 = vadd.f32 %v31409_v11, %v22930_v12  ;;  %v17719_v55 = vpop.f32.mrb[67].mxu1  ;;  %13627 = vst.msk [vmem:[#allocation8 + $0x218] sm:$0xff] %vm4543_vm5, %v13562_v24 }
 0x9a6   :  { %v18099_v26 = vmax.f32 %v18035_v57, 0.0  ;;  %v18036_v63 = vadd.f32 %v31409_v11, %v17719_v55  ;;  %13625 = vst.msk [vmem:[#allocation8 + $0x208] sm:$0xff] %vm4543_vm5, %v13560_v30  ;;  %v22339_v43 = vpop.f32.mrb[68].mxu0 }
 0x9a7   :  { %18166 = vst.msk [vmem:[#allocation8 + $0x310] sm:$0xff] %vm4543_vm5, %v18101_v61  ;;  %v18102_v22 = vmax.f32 %v18038_v38, 0.0  ;;  %v13501_v56 = vadd.f32 %v31409_v11, %v22339_v43  ;;  %v13192_v52 = vpop.f32.mrb[69].mxu0 }
 0x9a8   :  { %18164 = vst.msk [vmem:[#allocation8 + $0x300] sm:$0xff] %vm4543_vm5, %v18099_v26  ;;  %v18100_v7 = vmax.f32 %v18036_v63, 0.0  ;;  %v13499_v8 = vadd.f32 %v31409_v11, %v13192_v52  ;;  %v22340_v19 = vpop.f32.mrb[70].mxu0 }
 0x9a9   :  { %18167 = vst.msk [vmem:[#allocation8 + $0x318] sm:$0xff] %vm4543_vm5, %v18102_v22  ;;  %v13565_v33 = vmax.f32 %v13501_v56, 0.0  ;;  %v13502_v59 = vadd.f32 %v31409_v11, %v22340_v19  ;;  %v13195_v0 = vpop.f32.mrb[71].mxu0 }
 0x9aa   :  { %18165 = vst.msk [vmem:[#allocation8 + $0x308] sm:$0xff] %vm4543_vm5, %v18100_v7  ;;  %v22933_v5 = vpop.f32.mrb[68].mxu1  ;;  %v13563_v41 = vmax.f32 %v13499_v8, 0.0  ;;  %v13500_v23 = vadd.f32 %v31409_v11, %v13195_v0 }
 0x9ab   :  { %v18041_v39 = vadd.f32 %v31409_v11, %v22933_v5  ;;  %v17732_v13 = vpop.f32.mrb[69].mxu1  ;;  %13630 = vst.msk [vmem:[#allocation8 + $0x230] sm:$0xff] %vm4543_vm5, %v13565_v33  ;;  %v13566_v44 = vmax.f32 %v13502_v59, 0.0 }
 0x9ac   :  { %v18039_v45 = vadd.f32 %v31409_v11, %v17732_v13  ;;  %v22934_v50 = vpop.f32.mrb[70].mxu1  ;;  %13628 = vst.msk [vmem:[#allocation8 + $0x220] sm:$0xff] %vm4543_vm5, %v13563_v41  ;;  %v13564_v16 = vmax.f32 %v13500_v23, 0.0 }
 0x9ad   :  { %v18105_v25 = vmax.f32 %v18041_v39, 0.0  ;;  %v18042_v53 = vadd.f32 %v31409_v11, %v22934_v50  ;;  %v17735_v15 = vpop.f32.mrb[71].mxu1  ;;  %13631 = vst.msk [vmem:[#allocation8 + $0x238] sm:$0xff] %vm4543_vm5, %v13566_v44 }
 0x9ae   :  { %v18103_v9 = vmax.f32 %v18039_v45, 0.0  ;;  %v18040_v27 = vadd.f32 %v31409_v11, %v17735_v15  ;;  %13629 = vst.msk [vmem:[#allocation8 + $0x228] sm:$0xff] %vm4543_vm5, %v13564_v16  ;;  %v22343_v28 = vpop.f32.mrb[72].mxu0 }
 0x9af   :  { %18170 = vst.msk [vmem:[#allocation8 + $0x330] sm:$0xff] %vm4543_vm5, %v18105_v25  ;;  %v18106_v37 = vmax.f32 %v18042_v53, 0.0  ;;  %v13505_v62 = vadd.f32 %v31409_v11, %v22343_v28  ;;  %v13208_v42 = vpop.f32.mrb[73].mxu0 }
 0x9b0   :  { %18168 = vst.msk [vmem:[#allocation8 + $0x320] sm:$0xff] %vm4543_vm5, %v18103_v9  ;;  %v18104_v20 = vmax.f32 %v18040_v27, 0.0  ;;  %v13503_v36 = vadd.f32 %v31409_v11, %v13208_v42  ;;  %v22344_v34 = vpop.f32.mrb[74].mxu0 }
 0x9b1   :  { %18171 = vst.msk [vmem:[#allocation8 + $0x338] sm:$0xff] %vm4543_vm5, %v18106_v37  ;;  %v13569_v31 = vmax.f32 %v13505_v62, 0.0  ;;  %v13506_v32 = vadd.f32 %v31409_v11, %v22344_v34  ;;  %v13211_v4 = vpop.f32.mrb[75].mxu0 }
 0x9b2   :  { %18169 = vst.msk [vmem:[#allocation8 + $0x328] sm:$0xff] %vm4543_vm5, %v18104_v20  ;;  %v22937_v58 = vpop.f32.mrb[72].mxu1  ;;  %v13567_v51 = vmax.f32 %v13503_v36, 0.0  ;;  %v13504_v40 = vadd.f32 %v31409_v11, %v13211_v4 }
 0x9b3   :  { %v18045_v48 = vadd.f32 %v31409_v11, %v22937_v58  ;;  %v17748_v29 = vpop.f32.mrb[73].mxu1  ;;  %13634 = vst.msk [vmem:[#allocation8 + $0x250] sm:$0xff] %vm4543_vm5, %v13569_v31  ;;  %v13570_v60 = vmax.f32 %v13506_v32, 0.0 }
 0x9b4   :  { %v18043_v17 = vadd.f32 %v31409_v11, %v17748_v29  ;;  %v22938_v3 = vpop.f32.mrb[74].mxu1  ;;  %13632 = vst.msk [vmem:[#allocation8 + $0x240] sm:$0xff] %vm4543_vm5, %v13567_v51  ;;  %v13568_v18 = vmax.f32 %v13504_v40, 0.0 }
 0x9b5   :  { %v18109_v2 = vmax.f32 %v18045_v48, 0.0  ;;  %v18046_v49 = vadd.f32 %v31409_v11, %v22938_v3  ;;  %v17751_v47 = vpop.f32.mrb[75].mxu1  ;;  %13635 = vst.msk [vmem:[#allocation8 + $0x258] sm:$0xff] %vm4543_vm5, %v13570_v60 }
 0x9b6   :  { %v18107_v14 = vmax.f32 %v18043_v17, 0.0  ;;  %v18044_v46 = vadd.f32 %v31409_v11, %v17751_v47  ;;  %13633 = vst.msk [vmem:[#allocation8 + $0x248] sm:$0xff] %vm4543_vm5, %v13568_v18  ;;  %v22347_v35 = vpop.f32.mrb[76].mxu0 }
 0x9b7   :  { %18174 = vst.msk [vmem:[#allocation8 + $0x350] sm:$0xff] %vm4543_vm5, %v18109_v2  ;;  %v18110_v6 = vmax.f32 %v18046_v49, 0.0  ;;  %v13509_v54 = vadd.f32 %v31409_v11, %v22347_v35  ;;  %v13224_v21 = vpop.f32.mrb[77].mxu0 }
 0x9b8   :  { %18172 = vst.msk [vmem:[#allocation8 + $0x340] sm:$0xff] %vm4543_vm5, %v18107_v14  ;;  %v18108_v1 = vmax.f32 %v18044_v46, 0.0  ;;  %v13507_v12 = vadd.f32 %v31409_v11, %v13224_v21  ;;  %v22348_v10 = vpop.f32.mrb[78].mxu0 }
 0x9b9   :  { %18175 = vst.msk [vmem:[#allocation8 + $0x358] sm:$0xff] %vm4543_vm5, %v18110_v6  ;;  %v13573_v61 = vmax.f32 %v13509_v54, 0.0  ;;  %v13510_v55 = vadd.f32 %v31409_v11, %v22348_v10  ;;  %v13227_v26 = vpop.f32.mrb[79].mxu0 }
 0x9ba   :  { %18173 = vst.msk [vmem:[#allocation8 + $0x348] sm:$0xff] %vm4543_vm5, %v18108_v1  ;;  %v22941_v57 = vpop.f32.mrb[76].mxu1  ;;  %v13571_v30 = vmax.f32 %v13507_v12, 0.0  ;;  %v13508_v7 = vadd.f32 %v31409_v11, %v13227_v26 }
 0x9bb   :  { %v18049_v24 = vadd.f32 %v31409_v11, %v22941_v57  ;;  %v17764_v38 = vpop.f32.mrb[77].mxu1  ;;  %13638 = vst.msk [vmem:[#allocation8 + $0x270] sm:$0xff] %vm4543_vm5, %v13573_v61  ;;  %v13574_v56 = vmax.f32 %v13510_v55, 0.0 }
 0x9bc   :  { %v18047_v63 = vadd.f32 %v31409_v11, %v17764_v38  ;;  %v22942_v22 = vpop.f32.mrb[78].mxu1  ;;  %13636 = vst.msk [vmem:[#allocation8 + $0x260] sm:$0xff] %vm4543_vm5, %v13571_v30  ;;  %v13572_v19 = vmax.f32 %v13508_v7, 0.0 }
 0x9bd   :  { %v18113_v43 = vmax.f32 %v18049_v24, 0.0  ;;  %v18050_v52 = vadd.f32 %v31409_v11, %v22942_v22  ;;  %v17767_v5 = vpop.f32.mrb[79].mxu1  ;;  %13639 = vst.msk [vmem:[#allocation8 + $0x278] sm:$0xff] %vm4543_vm5, %v13574_v56 }
 0x9be   :  { %v18111_v8 = vmax.f32 %v18047_v63, 0.0  ;;  %v18048_v33 = vadd.f32 %v31409_v11, %v17767_v5  ;;  %13637 = vst.msk [vmem:[#allocation8 + $0x268] sm:$0xff] %vm4543_vm5, %v13572_v19  ;;  %v22351_v59 = vpop.f32.mrb[80].mxu0 }
 0x9bf   :  { %18178 = vst.msk [vmem:[#allocation8 + $0x370] sm:$0xff] %vm4543_vm5, %v18113_v43  ;;  %v18114_v39 = vmax.f32 %v18050_v52, 0.0  ;;  %v13513_v0 = vadd.f32 %v31409_v11, %v22351_v59  ;;  %v13240_v41 = vpop.f32.mrb[81].mxu0 }
 0x9c0   :  { %18176 = vst.msk [vmem:[#allocation8 + $0x360] sm:$0xff] %vm4543_vm5, %v18111_v8  ;;  %v18112_v13 = vmax.f32 %v18048_v33, 0.0  ;;  %v13511_v50 = vadd.f32 %v31409_v11, %v13240_v41  ;;  %v22352_v23 = vpop.f32.mrb[82].mxu0 }
 0x9c1   :  { %18179 = vst.msk [vmem:[#allocation8 + $0x378] sm:$0xff] %vm4543_vm5, %v18114_v39  ;;  %v13577_v25 = vmax.f32 %v13513_v0, 0.0  ;;  %v13514_v15 = vadd.f32 %v31409_v11, %v22352_v23  ;;  %v13243_v9 = vpop.f32.mrb[83].mxu0 }
 0x9c2   :  { %18177 = vst.msk [vmem:[#allocation8 + $0x368] sm:$0xff] %vm4543_vm5, %v18112_v13  ;;  %v22945_v45 = vpop.f32.mrb[80].mxu1  ;;  %v13575_v16 = vmax.f32 %v13511_v50, 0.0  ;;  %v13512_v20 = vadd.f32 %v31409_v11, %v13243_v9 }
 0x9c3   :  { %v18053_v44 = vadd.f32 %v31409_v11, %v22945_v45  ;;  %v17780_v53 = vpop.f32.mrb[81].mxu1  ;;  %13642 = vst.msk [vmem:[#allocation8 + $0x290] sm:$0xff] %vm4543_vm5, %v13577_v25  ;;  %v13578_v62 = vmax.f32 %v13514_v15, 0.0 }
 0x9c4   :  { %v18051_v27 = vadd.f32 %v31409_v11, %v17780_v53  ;;  %v22946_v37 = vpop.f32.mrb[82].mxu1  ;;  %13640 = vst.msk [vmem:[#allocation8 + $0x280] sm:$0xff] %vm4543_vm5, %v13575_v16  ;;  %v13576_v34 = vmax.f32 %v13512_v20, 0.0 }
 0x9c5   :  { %v18117_v28 = vmax.f32 %v18053_v44, 0.0  ;;  %v18054_v42 = vadd.f32 %v31409_v11, %v22946_v37  ;;  %v17783_v58 = vpop.f32.mrb[83].mxu1  ;;  %13643 = vst.msk [vmem:[#allocation8 + $0x298] sm:$0xff] %vm4543_vm5, %v13578_v62 }
 0x9c6   :  { %v18115_v36 = vmax.f32 %v18051_v27, 0.0  ;;  %v18052_v31 = vadd.f32 %v31409_v11, %v17783_v58  ;;  %13641 = vst.msk [vmem:[#allocation8 + $0x288] sm:$0xff] %vm4543_vm5, %v13576_v34  ;;  %v22355_v32 = vpop.f32.mrb[84].mxu0 }
 0x9c7   :  { %18182 = vst.msk [vmem:[#allocation8 + $0x390] sm:$0xff] %vm4543_vm5, %v18117_v28  ;;  %v18118_v48 = vmax.f32 %v18054_v42, 0.0  ;;  %v13517_v4 = vadd.f32 %v31409_v11, %v22355_v32  ;;  %v13256_v51 = vpop.f32.mrb[85].mxu0 }
 0x9c8   :  { %18180 = vst.msk [vmem:[#allocation8 + $0x380] sm:$0xff] %vm4543_vm5, %v18115_v36  ;;  %v18116_v29 = vmax.f32 %v18052_v31, 0.0  ;;  %v13515_v3 = vadd.f32 %v31409_v11, %v13256_v51  ;;  %v22356_v40 = vpop.f32.mrb[86].mxu0 }
 0x9c9   :  { %18183 = vst.msk [vmem:[#allocation8 + $0x398] sm:$0xff] %vm4543_vm5, %v18118_v48  ;;  %v13581_v2 = vmax.f32 %v13517_v4, 0.0  ;;  %v13518_v47 = vadd.f32 %v31409_v11, %v22356_v40  ;;  %v13259_v14 = vpop.f32.mrb[87].mxu0 }
 0x9ca   :  { %18181 = vst.msk [vmem:[#allocation8 + $0x388] sm:$0xff] %vm4543_vm5, %v18116_v29  ;;  %v22949_v17 = vpop.f32.mrb[84].mxu1  ;;  %v13579_v18 = vmax.f32 %v13515_v3, 0.0  ;;  %v13516_v1 = vadd.f32 %v31409_v11, %v13259_v14 }
 0x9cb   :  { %v18057_v60 = vadd.f32 %v31409_v11, %v22949_v17  ;;  %v17796_v49 = vpop.f32.mrb[85].mxu1  ;;  %13646 = vst.msk [vmem:[#allocation8 + $0x2b0] sm:$0xff] %vm4543_vm5, %v13581_v2  ;;  %v13582_v54 = vmax.f32 %v13518_v47, 0.0 }
 0x9cc   :  { %v18055_v46 = vadd.f32 %v31409_v11, %v17796_v49  ;;  %v22950_v6 = vpop.f32.mrb[86].mxu1  ;;  %13644 = vst.msk [vmem:[#allocation8 + $0x2a0] sm:$0xff] %vm4543_vm5, %v13579_v18  ;;  %v13580_v10 = vmax.f32 %v13516_v1, 0.0 }
 0x9cd   :  { %v18121_v35 = vmax.f32 %v18057_v60, 0.0  ;;  %v18058_v21 = vadd.f32 %v31409_v11, %v22950_v6  ;;  %v17799_v57 = vpop.f32.mrb[87].mxu1  ;;  %13647 = vst.msk [vmem:[#allocation8 + $0x2b8] sm:$0xff] %vm4543_vm5, %v13582_v54 }
 0x9ce   :  { %v18119_v12 = vmax.f32 %v18055_v46, 0.0  ;;  %v18056_v61 = vadd.f32 %v31409_v11, %v17799_v57  ;;  %13645 = vst.msk [vmem:[#allocation8 + $0x2a8] sm:$0xff] %vm4543_vm5, %v13580_v10  ;;  %v22359_v55 = vpop.f32.mrb[88].mxu0 }
 0x9cf   :  { %18186 = vst.msk [vmem:[#allocation8 + $0x3b0] sm:$0xff] %vm4543_vm5, %v18121_v35  ;;  %v18122_v24 = vmax.f32 %v18058_v21, 0.0  ;;  %v13521_v26 = vadd.f32 %v31409_v11, %v22359_v55  ;;  %v13272_v30 = vpop.f32.mrb[89].mxu0 }
 0x9d0   :  { %18184 = vst.msk [vmem:[#allocation8 + $0x3a0] sm:$0xff] %vm4543_vm5, %v18119_v12  ;;  %v18120_v38 = vmax.f32 %v18056_v61, 0.0  ;;  %v13519_v22 = vadd.f32 %v31409_v11, %v13272_v30  ;;  %v22360_v7 = vpop.f32.mrb[90].mxu0 }
 0x9d1   :  { %18187 = vst.msk [vmem:[#allocation8 + $0x3b8] sm:$0xff] %vm4543_vm5, %v18122_v24  ;;  %v13585_v43 = vmax.f32 %v13521_v26, 0.0  ;;  %v13522_v5 = vadd.f32 %v31409_v11, %v22360_v7  ;;  %v13275_v8 = vpop.f32.mrb[91].mxu0 }
 0x9d2   :  { %18185 = vst.msk [vmem:[#allocation8 + $0x3a8] sm:$0xff] %vm4543_vm5, %v18120_v38  ;;  %v22953_v63 = vpop.f32.mrb[88].mxu1  ;;  %v13583_v19 = vmax.f32 %v13519_v22, 0.0  ;;  %v13520_v13 = vadd.f32 %v31409_v11, %v13275_v8 }
 0x9d3   :  { %v18061_v56 = vadd.f32 %v31409_v11, %v22953_v63  ;;  %v17812_v52 = vpop.f32.mrb[89].mxu1  ;;  %13650 = vst.msk [vmem:[#allocation8 + $0x2d0] sm:$0xff] %vm4543_vm5, %v13585_v43  ;;  %v13586_v0 = vmax.f32 %v13522_v5, 0.0 }
 0x9d4   :  { %v18059_v33 = vadd.f32 %v31409_v11, %v17812_v52  ;;  %v22954_v39 = vpop.f32.mrb[90].mxu1  ;;  %13648 = vst.msk [vmem:[#allocation8 + $0x2c0] sm:$0xff] %vm4543_vm5, %v13583_v19  ;;  %v13584_v23 = vmax.f32 %v13520_v13, 0.0 }
 0x9d5   :  { %v18125_v59 = vmax.f32 %v18061_v56, 0.0  ;;  %v18062_v41 = vadd.f32 %v31409_v11, %v22954_v39  ;;  %v17815_v45 = vpop.f32.mrb[91].mxu1  ;;  %13651 = vst.msk [vmem:[#allocation8 + $0x2d8] sm:$0xff] %vm4543_vm5, %v13586_v0 }
 0x9d6   :  { %v18123_v50 = vmax.f32 %v18059_v33, 0.0  ;;  %v18060_v25 = vadd.f32 %v31409_v11, %v17815_v45  ;;  %13649 = vst.msk [vmem:[#allocation8 + $0x2c8] sm:$0xff] %vm4543_vm5, %v13584_v23  ;;  %v22363_v15 = vpop.f32.mrb[92].mxu0 }
 0x9d7   :  { %18190 = vst.msk [vmem:[#allocation8 + $0x3d0] sm:$0xff] %vm4543_vm5, %v18125_v59  ;;  %v18126_v44 = vmax.f32 %v18062_v41, 0.0  ;;  %v13525_v9 = vadd.f32 %v31409_v11, %v22363_v15  ;;  %v13288_v16 = vpop.f32.mrb[93].mxu0 }
 0x9d8   :  { %18188 = vst.msk [vmem:[#allocation8 + $0x3c0] sm:$0xff] %vm4543_vm5, %v18123_v50  ;;  %v18124_v53 = vmax.f32 %v18060_v25, 0.0  ;;  %v13523_v37 = vadd.f32 %v31409_v11, %v13288_v16  ;;  %v22364_v20 = vpop.f32.mrb[94].mxu0 }
 0x9d9   :  { %18191 = vst.msk [vmem:[#allocation8 + $0x3d8] sm:$0xff] %vm4543_vm5, %v18126_v44  ;;  %v13589_v28 = vmax.f32 %v13525_v9, 0.0  ;;  %v13526_v58 = vadd.f32 %v31409_v11, %v22364_v20  ;;  %v13291_v36 = vpop.f32.mrb[95].mxu0 }
 0x9da   :  { %18189 = vst.msk [vmem:[#allocation8 + $0x3c8] sm:$0xff] %vm4543_vm5, %v18124_v53  ;;  %v22957_v27 = vpop.f32.mrb[92].mxu1  ;;  %v13587_v34 = vmax.f32 %v13523_v37, 0.0  ;;  %v13524_v29 = vadd.f32 %v31409_v11, %v13291_v36 }
 0x9db   :  { %v18065_v62 = vadd.f32 %v31409_v11, %v22957_v27  ;;  %v17828_v42 = vpop.f32.mrb[93].mxu1  ;;  %13654 = vst.msk [vmem:[#allocation8 + $0x2f0] sm:$0xff] %vm4543_vm5, %v13589_v28  ;;  %v13590_v4 = vmax.f32 %v13526_v58, 0.0 }
 0x9dc   :  { %v18063_v31 = vadd.f32 %v31409_v11, %v17828_v42  ;;  %v22958_v48 = vpop.f32.mrb[94].mxu1  ;;  %13652 = vst.msk [vmem:[#allocation8 + $0x2e0] sm:$0xff] %vm4543_vm5, %v13587_v34  ;;  %v13588_v40 = vmax.f32 %v13524_v29, 0.0 }
 0x9dd   :  { %v18129_v32 = vmax.f32 %v18065_v62, 0.0  ;;  %v18066_v51 = vadd.f32 %v31409_v11, %v22958_v48  ;;  %v17831_v17 = vpop.f32.mrb[95].mxu1  ;;  %13655 = vst.msk [vmem:[#allocation8 + $0x2f8] sm:$0xff] %vm4543_vm5, %v13590_v4 }
 0x9de   :  { %v18127_v3 = vmax.f32 %v18063_v31, 0.0  ;;  %v18064_v2 = vadd.f32 %v31409_v11, %v17831_v17  ;;  %13653 = vst.msk [vmem:[#allocation8 + $0x2e8] sm:$0xff] %vm4543_vm5, %v13588_v40  ;;  %v22367_v47 = vpop.f32.mrb[96].mxu0 }
 0x9df   :  { %18194 = vst.msk [vmem:[#allocation8 + $0x3f0] sm:$0xff] %vm4543_vm5, %v18129_v32  ;;  %v18130_v60 = vmax.f32 %v18066_v51, 0.0  ;;  %v13529_v14 = vadd.f32 %v31409_v11, %v22367_v47  ;;  %v13304_v18 = vpop.f32.mrb[97].mxu0 }
 0x9e0   :  { %18192 = vst.msk [vmem:[#allocation8 + $0x3e0] sm:$0xff] %vm4543_vm5, %v18127_v3  ;;  %v18128_v49 = vmax.f32 %v18064_v2, 0.0  ;;  %v13527_v6 = vadd.f32 %v31409_v11, %v13304_v18  ;;  %v22368_v1 = vpop.f32.mrb[98].mxu0 }
 0x9e1   :  { %18195 = vst.msk [vmem:[#allocation8 + $0x3f8] sm:$0xff] %vm4543_vm5, %v18130_v60  ;;  %v13593_v35 = vmax.f32 %v13529_v14, 0.0  ;;  %v13530_v57 = vadd.f32 %v31409_v11, %v22368_v1  ;;  %v13307_v12 = vpop.f32.mrb[99].mxu0 }
 0x9e2   :  { %18193 = vst.msk [vmem:[#allocation8 + $0x3e8] sm:$0xff] %vm4543_vm5, %v18128_v49  ;;  %v22961_v46 = vpop.f32.mrb[96].mxu1  ;;  %v13591_v10 = vmax.f32 %v13527_v6, 0.0  ;;  %v13528_v38 = vadd.f32 %v31409_v11, %v13307_v12 }
 0x9e3   :  { %v18069_v54 = vadd.f32 %v31409_v11, %v22961_v46  ;;  %v17844_v21 = vpop.f32.mrb[97].mxu1  ;;  %13658 = vst.msk [vmem:[#allocation8 + $0x610] sm:$0xff] %vm4543_vm5, %v13593_v35  ;;  %v13594_v26 = vmax.f32 %v13530_v57, 0.0 }
 0x9e4   :  { %v18067_v61 = vadd.f32 %v31409_v11, %v17844_v21  ;;  %v22962_v24 = vpop.f32.mrb[98].mxu1  ;;  %13656 = vst.msk [vmem:[#allocation8 + $0x600] sm:$0xff] %vm4543_vm5, %v13591_v10  ;;  %v13592_v7 = vmax.f32 %v13528_v38, 0.0 }
 0x9e5   :  { %v18133_v55 = vmax.f32 %v18069_v54, 0.0  ;;  %v18070_v30 = vadd.f32 %v31409_v11, %v22962_v24  ;;  %v17847_v63 = vpop.f32.mrb[99].mxu1  ;;  %13659 = vst.msk [vmem:[#allocation8 + $0x618] sm:$0xff] %vm4543_vm5, %v13594_v26 }
 0x9e6   :  { %v18131_v22 = vmax.f32 %v18067_v61, 0.0  ;;  %v18068_v43 = vadd.f32 %v31409_v11, %v17847_v63  ;;  %13657 = vst.msk [vmem:[#allocation8 + $0x608] sm:$0xff] %vm4543_vm5, %v13592_v7  ;;  %v22371_v5 = vpop.f32.mrb[100].mxu0 }
 0x9e7   :  { %18198 = vst.msk [vmem:[#allocation8 + $0x710] sm:$0xff] %vm4543_vm5, %v18133_v55  ;;  %v18134_v56 = vmax.f32 %v18070_v30, 0.0  ;;  %v13533_v8 = vadd.f32 %v31409_v11, %v22371_v5  ;;  %v13320_v19 = vpop.f32.mrb[101].mxu0 }
 0x9e8   :  { %18196 = vst.msk [vmem:[#allocation8 + $0x700] sm:$0xff] %vm4543_vm5, %v18131_v22  ;;  %v18132_v52 = vmax.f32 %v18068_v43, 0.0  ;;  %v13531_v39 = vadd.f32 %v31409_v11, %v13320_v19  ;;  %v22372_v13 = vpop.f32.mrb[102].mxu0 }
 0x9e9   :  { %18199 = vst.msk [vmem:[#allocation8 + $0x718] sm:$0xff] %vm4543_vm5, %v18134_v56  ;;  %v13597_v59 = vmax.f32 %v13533_v8, 0.0  ;;  %v13534_v45 = vadd.f32 %v31409_v11, %v22372_v13  ;;  %v13323_v50 = vpop.f32.mrb[103].mxu0 }
 0x9ea   :  { %18197 = vst.msk [vmem:[#allocation8 + $0x708] sm:$0xff] %vm4543_vm5, %v18132_v52  ;;  %v22965_v33 = vpop.f32.mrb[100].mxu1  ;;  %v13595_v23 = vmax.f32 %v13531_v39, 0.0  ;;  %v13532_v53 = vadd.f32 %v31409_v11, %v13323_v50 }
 0x9eb   :  { %v18073_v0 = vadd.f32 %v31409_v11, %v22965_v33  ;;  %v17860_v41 = vpop.f32.mrb[101].mxu1  ;;  %13662 = vst.msk [vmem:[#allocation8 + $0x630] sm:$0xff] %vm4543_vm5, %v13597_v59  ;;  %v13598_v9 = vmax.f32 %v13534_v45, 0.0 }
 0x9ec   :  { %v18071_v25 = vadd.f32 %v31409_v11, %v17860_v41  ;;  %v22966_v44 = vpop.f32.mrb[102].mxu1  ;;  %13660 = vst.msk [vmem:[#allocation8 + $0x620] sm:$0xff] %vm4543_vm5, %v13595_v23  ;;  %v13596_v20 = vmax.f32 %v13532_v53, 0.0 }
 0x9ed   :  { %v18137_v15 = vmax.f32 %v18073_v0, 0.0  ;;  %v18074_v16 = vadd.f32 %v31409_v11, %v22966_v44  ;;  %v17863_v27 = vpop.f32.mrb[103].mxu1  ;;  %13663 = vst.msk [vmem:[#allocation8 + $0x638] sm:$0xff] %vm4543_vm5, %v13598_v9 }
 0x9ee   :  { %v18135_v37 = vmax.f32 %v18071_v25, 0.0  ;;  %v18072_v28 = vadd.f32 %v31409_v11, %v17863_v27  ;;  %13661 = vst.msk [vmem:[#allocation8 + $0x628] sm:$0xff] %vm4543_vm5, %v13596_v20  ;;  %v22375_v58 = vpop.f32.mrb[104].mxu0 }
 0x9ef   :  { %18202 = vst.msk [vmem:[#allocation8 + $0x730] sm:$0xff] %vm4543_vm5, %v18137_v15  ;;  %v18138_v62 = vmax.f32 %v18074_v16, 0.0  ;;  %v13537_v36 = vadd.f32 %v31409_v11, %v22375_v58  ;;  %v13336_v34 = vpop.f32.mrb[105].mxu0 }
 0x9f0   :  { %18200 = vst.msk [vmem:[#allocation8 + $0x720] sm:$0xff] %vm4543_vm5, %v18135_v37  ;;  %v18136_v42 = vmax.f32 %v18072_v28, 0.0  ;;  %v13535_v48 = vadd.f32 %v31409_v11, %v13336_v34  ;;  %v22376_v29 = vpop.f32.mrb[106].mxu0 }
 0x9f1   :  { %18203 = vst.msk [vmem:[#allocation8 + $0x738] sm:$0xff] %vm4543_vm5, %v18138_v62  ;;  %v13601_v32 = vmax.f32 %v13537_v36, 0.0  ;;  %v13538_v17 = vadd.f32 %v31409_v11, %v22376_v29  ;;  %v13339_v3 = vpop.f32.mrb[107].mxu0 }
 0x9f2   :  { %18201 = vst.msk [vmem:[#allocation8 + $0x728] sm:$0xff] %vm4543_vm5, %v18136_v42  ;;  %v22969_v31 = vpop.f32.mrb[104].mxu1  ;;  %v13599_v40 = vmax.f32 %v13535_v48, 0.0  ;;  %v13536_v49 = vadd.f32 %v31409_v11, %v13339_v3 }
 0x9f3   :  { %v18077_v4 = vadd.f32 %v31409_v11, %v22969_v31  ;;  %v17876_v51 = vpop.f32.mrb[105].mxu1  ;;  %13666 = vst.msk [vmem:[#allocation8 + $0x650] sm:$0xff] %vm4543_vm5, %v13601_v32  ;;  %v13602_v14 = vmax.f32 %v13538_v17, 0.0 }
 0x9f4   :  { %v18075_v2 = vadd.f32 %v31409_v11, %v17876_v51  ;;  %v22970_v60 = vpop.f32.mrb[106].mxu1  ;;  %13664 = vst.msk [vmem:[#allocation8 + $0x640] sm:$0xff] %vm4543_vm5, %v13599_v40  ;;  %v13600_v1 = vmax.f32 %v13536_v49, 0.0 }
 0x9f5   :  { %v18141_v47 = vmax.f32 %v18077_v4, 0.0  ;;  %v18078_v18 = vadd.f32 %v31409_v11, %v22970_v60  ;;  %v17879_v46 = vpop.f32.mrb[107].mxu1  ;;  %13667 = vst.msk [vmem:[#allocation8 + $0x658] sm:$0xff] %vm4543_vm5, %v13602_v14 }
 0x9f6   :  { %v18139_v6 = vmax.f32 %v18075_v2, 0.0  ;;  %v18076_v35 = vadd.f32 %v31409_v11, %v17879_v46  ;;  %13665 = vst.msk [vmem:[#allocation8 + $0x648] sm:$0xff] %vm4543_vm5, %v13600_v1  ;;  %v22379_v57 = vpop.f32.mrb[108].mxu0 }
 0x9f7   :  { %18206 = vst.msk [vmem:[#allocation8 + $0x750] sm:$0xff] %vm4543_vm5, %v18141_v47  ;;  %v18142_v54 = vmax.f32 %v18078_v18, 0.0  ;;  %v13541_v12 = vadd.f32 %v31409_v11, %v22379_v57  ;;  %v13352_v10 = vpop.f32.mrb[109].mxu0 }
 0x9f8   :  { %18204 = vst.msk [vmem:[#allocation8 + $0x740] sm:$0xff] %vm4543_vm5, %v18139_v6  ;;  %v18140_v21 = vmax.f32 %v18076_v35, 0.0  ;;  %v13539_v24 = vadd.f32 %v31409_v11, %v13352_v10  ;;  %v22380_v38 = vpop.f32.mrb[110].mxu0 }
 0x9f9   :  { %18207 = vst.msk [vmem:[#allocation8 + $0x758] sm:$0xff] %vm4543_vm5, %v18142_v54  ;;  %v13605_v55 = vmax.f32 %v13541_v12, 0.0  ;;  %v13542_v63 = vadd.f32 %v31409_v11, %v22380_v38  ;;  %v13355_v22 = vpop.f32.mrb[111].mxu0 }
 0x9fa   :  { %18205 = vst.msk [vmem:[#allocation8 + $0x748] sm:$0xff] %vm4543_vm5, %v18140_v21  ;;  %v22973_v61 = vpop.f32.mrb[108].mxu1  ;;  %v13603_v7 = vmax.f32 %v13539_v24, 0.0  ;;  %v13540_v52 = vadd.f32 %v31409_v11, %v13355_v22 }
 0x9fb   :  { %v18081_v26 = vadd.f32 %v31409_v11, %v22973_v61  ;;  %v17892_v30 = vpop.f32.mrb[109].mxu1  ;;  %13670 = vst.msk [vmem:[#allocation8 + $0x670] sm:$0xff] %vm4543_vm5, %v13605_v55  ;;  %v13606_v8 = vmax.f32 %v13542_v63, 0.0 }
 0x9fc   :  { %v18079_v43 = vadd.f32 %v31409_v11, %v17892_v30  ;;  %v22974_v56 = vpop.f32.mrb[110].mxu1  ;;  %13668 = vst.msk [vmem:[#allocation8 + $0x660] sm:$0xff] %vm4543_vm5, %v13603_v7  ;;  %v13604_v13 = vmax.f32 %v13540_v52, 0.0 }
 0x9fd   :  { %v18145_v5 = vmax.f32 %v18081_v26, 0.0  ;;  %v18082_v19 = vadd.f32 %v31409_v11, %v22974_v56  ;;  %v17895_v33 = vpop.f32.mrb[111].mxu1  ;;  %13671 = vst.msk [vmem:[#allocation8 + $0x678] sm:$0xff] %vm4543_vm5, %v13606_v8 }
 0x9fe   :  { %v18143_v39 = vmax.f32 %v18079_v43, 0.0  ;;  %v18080_v59 = vadd.f32 %v31409_v11, %v17895_v33  ;;  %13669 = vst.msk [vmem:[#allocation8 + $0x668] sm:$0xff] %vm4543_vm5, %v13604_v13  ;;  %v22383_v45 = vpop.f32.mrb[112].mxu0 }
 0x9ff   :  { %18210 = vst.msk [vmem:[#allocation8 + $0x770] sm:$0xff] %vm4543_vm5, %v18145_v5  ;;  %v18146_v0 = vmax.f32 %v18082_v19, 0.0  ;;  %v13545_v50 = vadd.f32 %v31409_v11, %v22383_v45  ;;  %v13368_v23 = vpop.f32.mrb[113].mxu0 }
 0xa00   :  { %18208 = vst.msk [vmem:[#allocation8 + $0x760] sm:$0xff] %vm4543_vm5, %v18143_v39  ;;  %v18144_v41 = vmax.f32 %v18080_v59, 0.0  ;;  %v13543_v44 = vadd.f32 %v31409_v11, %v13368_v23  ;;  %v22384_v53 = vpop.f32.mrb[114].mxu0 }
 0xa01   :  { %18211 = vst.msk [vmem:[#allocation8 + $0x778] sm:$0xff] %vm4543_vm5, %v18146_v0  ;;  %v13609_v15 = vmax.f32 %v13545_v50, 0.0  ;;  %v13546_v27 = vadd.f32 %v31409_v11, %v22384_v53  ;;  %v13371_v37 = vpop.f32.mrb[115].mxu0 }
 0xa02   :  { %18209 = vst.msk [vmem:[#allocation8 + $0x768] sm:$0xff] %vm4543_vm5, %v18144_v41  ;;  %v22977_v25 = vpop.f32.mrb[112].mxu1  ;;  %v13607_v20 = vmax.f32 %v13543_v44, 0.0  ;;  %v13544_v42 = vadd.f32 %v31409_v11, %v13371_v37 }
 0xa03   :  { %v18085_v9 = vadd.f32 %v31409_v11, %v22977_v25  ;;  %v17908_v16 = vpop.f32.mrb[113].mxu1  ;;  %13674 = vst.msk [vmem:[#allocation8 + $0x690] sm:$0xff] %vm4543_vm5, %v13609_v15  ;;  %v13610_v36 = vmax.f32 %v13546_v27, 0.0 }
 0xa04   :  { %v18083_v28 = vadd.f32 %v31409_v11, %v17908_v16  ;;  %v22978_v62 = vpop.f32.mrb[114].mxu1  ;;  %13672 = vst.msk [vmem:[#allocation8 + $0x680] sm:$0xff] %vm4543_vm5, %v13607_v20  ;;  %v13608_v29 = vmax.f32 %v13544_v42, 0.0 }
 0xa05   :  { %v18149_v58 = vmax.f32 %v18085_v9, 0.0  ;;  %v18086_v34 = vadd.f32 %v31409_v11, %v22978_v62  ;;  %v17911_v31 = vpop.f32.mrb[115].mxu1  ;;  %13675 = vst.msk [vmem:[#allocation8 + $0x698] sm:$0xff] %vm4543_vm5, %v13610_v36 }
 0xa06   :  { %v18147_v48 = vmax.f32 %v18083_v28, 0.0  ;;  %v18084_v32 = vadd.f32 %v31409_v11, %v17911_v31  ;;  %13673 = vst.msk [vmem:[#allocation8 + $0x688] sm:$0xff] %vm4543_vm5, %v13608_v29  ;;  %v22387_v17 = vpop.f32.mrb[116].mxu0 }
 0xa07   :  { %18214 = vst.msk [vmem:[#allocation8 + $0x790] sm:$0xff] %vm4543_vm5, %v18149_v58  ;;  %v18150_v4 = vmax.f32 %v18086_v34, 0.0  ;;  %v13549_v3 = vadd.f32 %v31409_v11, %v22387_v17  ;;  %v13384_v40 = vpop.f32.mrb[117].mxu0 }
 0xa08   :  { %18212 = vst.msk [vmem:[#allocation8 + $0x780] sm:$0xff] %vm4543_vm5, %v18147_v48  ;;  %v18148_v51 = vmax.f32 %v18084_v32, 0.0  ;;  %v13547_v60 = vadd.f32 %v31409_v11, %v13384_v40  ;;  %v22388_v49 = vpop.f32.mrb[118].mxu0 }
 0xa09   :  { %18215 = vst.msk [vmem:[#allocation8 + $0x798] sm:$0xff] %vm4543_vm5, %v18150_v4  ;;  %v13613_v47 = vmax.f32 %v13549_v3, 0.0  ;;  %v13550_v46 = vadd.f32 %v31409_v11, %v22388_v49  ;;  %v13387_v6 = vpop.f32.mrb[119].mxu0 }
 0xa0a   :  { %18213 = vst.msk [vmem:[#allocation8 + $0x788] sm:$0xff] %vm4543_vm5, %v18148_v51  ;;  %v22981_v2 = vpop.f32.mrb[116].mxu1  ;;  %v13611_v1 = vmax.f32 %v13547_v60, 0.0  ;;  %v13548_v21 = vadd.f32 %v31409_v11, %v13387_v6 }
 0xa0b   :  { %v18089_v14 = vadd.f32 %v31409_v11, %v22981_v2  ;;  %v17924_v18 = vpop.f32.mrb[117].mxu1  ;;  %13678 = vst.msk [vmem:[#allocation8 + $0x6b0] sm:$0xff] %vm4543_vm5, %v13613_v47  ;;  %v13614_v12 = vmax.f32 %v13550_v46, 0.0 }
 0xa0c   :  { %v18087_v35 = vadd.f32 %v31409_v11, %v17924_v18  ;;  %v22982_v54 = vpop.f32.mrb[118].mxu1  ;;  %13676 = vst.msk [vmem:[#allocation8 + $0x6a0] sm:$0xff] %vm4543_vm5, %v13611_v1  ;;  %v13612_v38 = vmax.f32 %v13548_v21, 0.0 }
 0xa0d   :  { %v18153_v57 = vmax.f32 %v18089_v14, 0.0  ;;  %v18090_v10 = vadd.f32 %v31409_v11, %v22982_v54  ;;  %v17927_v61 = vpop.f32.mrb[119].mxu1  ;;  %13679 = vst.msk [vmem:[#allocation8 + $0x6b8] sm:$0xff] %vm4543_vm5, %v13614_v12 }
 0xa0e   :  { %v18151_v24 = vmax.f32 %v18087_v35, 0.0  ;;  %v18088_v55 = vadd.f32 %v31409_v11, %v17927_v61  ;;  %13677 = vst.msk [vmem:[#allocation8 + $0x6a8] sm:$0xff] %vm4543_vm5, %v13612_v38  ;;  %v22391_v63 = vpop.f32.mrb[120].mxu0 }
 0xa0f   :  { %18218 = vst.msk [vmem:[#allocation8 + $0x7b0] sm:$0xff] %vm4543_vm5, %v18153_v57  ;;  %v18154_v26 = vmax.f32 %v18090_v10, 0.0  ;;  %v13553_v22 = vadd.f32 %v31409_v11, %v22391_v63  ;;  %v13400_v7 = vpop.f32.mrb[121].mxu0 }
 0xa10   :  { %18216 = vst.msk [vmem:[#allocation8 + $0x7a0] sm:$0xff] %vm4543_vm5, %v18151_v24  ;;  %v18152_v30 = vmax.f32 %v18088_v55, 0.0  ;;  %v13551_v56 = vadd.f32 %v31409_v11, %v13400_v7  ;;  %v22392_v52 = vpop.f32.mrb[122].mxu0 }
 0xa11   :  { %18219 = vst.msk [vmem:[#allocation8 + $0x7b8] sm:$0xff] %vm4543_vm5, %v18154_v26  ;;  %v13617_v5 = vmax.f32 %v13553_v22, 0.0  ;;  %v13554_v33 = vadd.f32 %v31409_v11, %v22392_v52  ;;  %v13403_v39 = vpop.f32.mrb[123].mxu0 }
 0xa12   :  { %18217 = vst.msk [vmem:[#allocation8 + $0x7a8] sm:$0xff] %vm4543_vm5, %v18152_v30  ;;  %v22985_v43 = vpop.f32.mrb[120].mxu1  ;;  %v13615_v13 = vmax.f32 %v13551_v56, 0.0  ;;  %v13552_v41 = vadd.f32 %v31409_v11, %v13403_v39 }
 0xa13   :  { %v18093_v8 = vadd.f32 %v31409_v11, %v22985_v43  ;;  %v17940_v19 = vpop.f32.mrb[121].mxu1  ;;  %13682 = vst.msk [vmem:[#allocation8 + $0x6d0] sm:$0xff] %vm4543_vm5, %v13617_v5  ;;  %v13618_v50 = vmax.f32 %v13554_v33, 0.0 }
 0xa14   :  { %v18091_v59 = vadd.f32 %v31409_v11, %v17940_v19  ;;  %v22986_v0 = vpop.f32.mrb[122].mxu1  ;;  %13680 = vst.msk [vmem:[#allocation8 + $0x6c0] sm:$0xff] %vm4543_vm5, %v13615_v13  ;;  %v13616_v53 = vmax.f32 %v13552_v41, 0.0 }
 0xa15   :  { %v18157_v45 = vmax.f32 %v18093_v8, 0.0  ;;  %v18094_v23 = vadd.f32 %v31409_v11, %v22986_v0  ;;  %v17943_v25 = vpop.f32.mrb[123].mxu1  ;;  %13683 = vst.msk [vmem:[#allocation8 + $0x6d8] sm:$0xff] %vm4543_vm5, %v13618_v50 }
 0xa16   :  { %v18155_v44 = vmax.f32 %v18091_v59, 0.0  ;;  %v18092_v15 = vadd.f32 %v31409_v11, %v17943_v25  ;;  %13681 = vst.msk [vmem:[#allocation8 + $0x6c8] sm:$0xff] %vm4543_vm5, %v13616_v53  ;;  %v22395_v27 = vpop.f32.mrb[124].mxu0 }
 0xa17   :  { %18222 = vst.msk [vmem:[#allocation8 + $0x7d0] sm:$0xff] %vm4543_vm5, %v18157_v45  ;;  %v18158_v9 = vmax.f32 %v18094_v23, 0.0  ;;  %v13557_v37 = vadd.f32 %v31409_v11, %v22395_v27  ;;  %v13416_v20 = vpop.f32.mrb[125].mxu0 }
 0xa18   :  { %18220 = vst.msk [vmem:[#allocation8 + $0x7c0] sm:$0xff] %vm4543_vm5, %v18155_v44  ;;  %v18156_v16 = vmax.f32 %v18092_v15, 0.0  ;;  %v13555_v62 = vadd.f32 %v31409_v11, %v13416_v20  ;;  %v22396_v42 = vpop.f32.mrb[126].mxu0 }
 0xa19   :  { %18223 = vst.msk [vmem:[#allocation8 + $0x7d8] sm:$0xff] %vm4543_vm5, %v18158_v9  ;;  %v13621_v58 = vmax.f32 %v13557_v37, 0.0  ;;  %v13558_v31 = vadd.f32 %v31409_v11, %v22396_v42  ;;  %v13419_v48 = vpop.f32.mrb[127].mxu0 }
 0xa1a   :  { %18221 = vst.msk [vmem:[#allocation8 + $0x7c8] sm:$0xff] %vm4543_vm5, %v18156_v16  ;;  %v22989_v28 = vpop.f32.mrb[124].mxu1  ;;  %v13619_v29 = vmax.f32 %v13555_v62, 0.0  ;;  %v13556_v51 = vadd.f32 %v31409_v11, %v13419_v48 }
 0xa1b   :  { %v18097_v36 = vadd.f32 %v31409_v11, %v22989_v28  ;;  %v17956_v34 = vpop.f32.mrb[125].mxu1  ;;  %13686 = vst.msk [vmem:[#allocation8 + $0x6f0] sm:$0xff] %vm4543_vm5, %v13621_v58  ;;  %v13622_v3 = vmax.f32 %v13558_v31, 0.0 }
 0xa1c   :  { %v18095_v32 = vadd.f32 %v31409_v11, %v17956_v34  ;;  %v22990_v4 = vpop.f32.mrb[126].mxu1  ;;  %13684 = vst.msk [vmem:[#allocation8 + $0x6e0] sm:$0xff] %vm4543_vm5, %v13619_v29  ;;  %v13620_v49 = vmax.f32 %v13556_v51, 0.0 }
 0xa1d   :  { %v18161_v17 = vmax.f32 %v18097_v36, 0.0  ;;  %v18098_v40 = vadd.f32 %v31409_v11, %v22990_v4  ;;  %v17959_v2 = vpop.f32.mrb[127].mxu1  ;;  %13687 = vst.msk [vmem:[#allocation8 + $0x6f8] sm:$0xff] %vm4543_vm5, %v13622_v3 }
 0xa1e   :  { %v18159_v60 = vmax.f32 %v18095_v32, 0.0  ;;  %v18096_v47 = vadd.f32 %v31409_v11, %v17959_v2  ;;  %13685 = vst.msk [vmem:[#allocation8 + $0x6e8] sm:$0xff] %vm4543_vm5, %v13620_v49 }
 0xa1f   :  { %18226 = vst.msk [vmem:[#allocation8 + $0x7f0] sm:$0xff] %vm4543_vm5, %v18161_v17  ;;  %v18162_v14 = vmax.f32 %v18098_v40, 0.0 }
 0xa20   :  { %18224 = vst.msk [vmem:[#allocation8 + $0x7e0] sm:$0xff] %vm4543_vm5, %v18159_v60  ;;  %v18160_v18 = vmax.f32 %v18096_v47, 0.0 }
 0xa21   :  { %18227 = vst.msk [vmem:[#allocation8 + $0x7f8] sm:$0xff] %vm4543_vm5, %v18162_v14 }
 0xa22   :  { %18225 = vst.msk [vmem:[#allocation8 + $0x7e8] sm:$0xff] %vm4543_vm5, %v18160_v18 }
 0xa23   :  { %25473 = shalt.err (!%p25470_p0)
}
 0xa24   :  { %s25474_s28 = scalar_lea.hbm %s31685_s3, 32768 }
 0xa25   :  { %p25475_p1 = scmp.ne.s32.totalorder %s31685_s3, %s25474_s28  ;;  %p25478_p2 = scmp.lt.u32.totalorder %s25474_s28, %s31685_s3 }
 0xa27   :  { %p25480_p3 = pnand %p25478_p2, %p25475_p1 }
 0xa29   :  { %25483 = shalt.err (!%p25480_p3)
}
 0xa2a   :  { %18239 = dma.vmem_to_hbm [thread:$0]  %s18234_s24, 32768, %s31685_s3, [#allocation4], %s25494_s1, %s25494_s1, %s25495_s9  }
 0xa2b   :  { %25488 = dma.done.wait [#allocation4], 32768  }
 0xa2c   :  { %25489 = vsyncadd [#allocation4], 4294934528 }
 0xa2d   :  { %18243 = vsyncpa [#allocation3], 1 }
 0xa2e   :  { %18244 = vsyncpa [#allocation6], 1 }
 0xa2f   :  { %18245 = vsyncpa [#allocation4], 1 }

</bundles_post_ra>
